<compile_context>
chip_gen: v7x
topology: tpu7x:2x2x1
jax: 0.10.0
libtpu: 0.0.40
codegen_flags: <defaults>
</compile_context>

<pallas_src>
import jax
import jax.numpy as jnp
from jax.experimental import pallas as pl
from jax.experimental.pallas import tpu as pltpu


_MAX_BATCH_TILE = 256  # rows per batch tile when B is large


def _swish(z):
    return z * jax.nn.sigmoid(z)


def _ensemble_mlp_kernel(
    x_ref,                     # (E, TB, Din)
    w1_ref, b1_ref,            # (E, Din, H), (E, 1, H)
    w2_ref, b2_ref,            # (E, H, H),   (E, 1, H)
    w3_ref, b3_ref,
    w4_ref, b4_ref,
    w5m_ref, b5m_ref,          # (E, H, half), (E, 1, half)   mean head
    w5v_ref, b5v_ref,          # (E, H, half), (E, 1, half)   logvar head
    max_lv_ref, min_lv_ref,    # (1, half) each, shared across ensemble
    mean_ref, var_ref,         # (E, TB, half) each
):
    """One grid step = one batch tile; all ensemble members unrolled inside."""
    max_lv = max_lv_ref[...]   # (1, half)
    min_lv = min_lv_ref[...]   # (1, half)
    ensemble_size = x_ref.shape[0]

    for e in range(ensemble_size):   # static unroll — E is small (e.g. 5)
        h = x_ref[e]                 # (TB, Din)

        def fc(h, w_ref, b_ref, e=e):
            y = jnp.dot(h, w_ref[e], preferred_element_type=jnp.float32)
            return y + b_ref[e]      # (1, out) broadcasts over the batch rows

        h = _swish(fc(h, w1_ref, b1_ref))
        h = _swish(fc(h, w2_ref, b2_ref))
        h = _swish(fc(h, w3_ref, b3_ref))
        h = _swish(fc(h, w4_ref, b4_ref))

        mean = fc(h, w5m_ref, b5m_ref)        # (TB, half), lane-aligned head
        raw_logvar = fc(h, w5v_ref, b5v_ref)  # (TB, half), lane-aligned head

        logvar = max_lv - jax.nn.softplus(max_lv - raw_logvar)
        logvar = min_lv + jax.nn.softplus(logvar - min_lv)

        mean_ref[e] = mean
        var_ref[e] = jnp.exp(logvar)  # return_log_var=False path of the module


def _pad_axis(a, axis, target):
    pad = target - a.shape[axis]
    if pad <= 0:
        return a
    widths = [(0, 0)] * a.ndim
    widths[axis] = (0, pad)
    return jnp.pad(a, widths)


@jax.jit
def ensemble_model_forward(x, params, max_logvar, min_logvar):
    """params = list of (w, b) for the 5 FC layers (w: (E,din,dout), b: (E,dout))."""
    E, B, Din = x.shape
    half = max_logvar.shape[1]
    hidden = params[0][0].shape[2]
    hidden_p = ((hidden + 127) // 128) * 128   # lane / MXU-aligned hidden width

    # --- zero-pad hidden dims (numerically exact: swish(0) = 0, padded rows are 0).
    (w1, b1), (w2, b2), (w3, b3), (w4, b4), (w5, b5) = params
    w1 = _pad_axis(w1, 2, hidden_p); b1 = _pad_axis(b1, 1, hidden_p)
    w2 = _pad_axis(_pad_axis(w2, 1, hidden_p), 2, hidden_p); b2 = _pad_axis(b2, 1, hidden_p)
    w3 = _pad_axis(_pad_axis(w3, 1, hidden_p), 2, hidden_p); b3 = _pad_axis(b3, 1, hidden_p)
    w4 = _pad_axis(_pad_axis(w4, 1, hidden_p), 2, hidden_p); b4 = _pad_axis(b4, 1, hidden_p)
    w5 = _pad_axis(w5, 1, hidden_p)

    # --- split the final layer into lane-aligned mean / logvar heads.
    w5m, w5v = w5[:, :, :half], w5[:, :, half:]
    b5m, b5v = b5[:, :half], b5[:, half:]

    # --- layout-clean 3-D biases (E, 1, dout).
    b1, b2, b3, b4 = (b[:, None, :] for b in (b1, b2, b3, b4))
    b5m, b5v = b5m[:, None, :], b5v[:, None, :]

    # --- batch tiling (whole batch in one tile when small; 256-row tiles otherwise).
    if B <= _MAX_BATCH_TILE:
        tb, Bp = B, B
        xp = x
    else:
        tb = _MAX_BATCH_TILE
        Bp = ((B + tb - 1) // tb) * tb
        xp = _pad_axis(x, 1, Bp)
    grid = (Bp // tb,)

    weights = [w1, b1, w2, b2, w3, b3, w4, b4, w5m, b5m, w5v, b5v]

    in_specs = [pl.BlockSpec((E, tb, Din), lambda i: (0, i, 0))]
    for p in weights:
        # Full-array blocks, constant index_map -> weights stay resident in VMEM.
        in_specs.append(pl.BlockSpec(p.shape, lambda i: (0, 0, 0)))
    in_specs.append(pl.BlockSpec((1, half), lambda i: (0, 0)))  # max_logvar (shared)
    in_specs.append(pl.BlockSpec((1, half), lambda i: (0, 0)))  # min_logvar (shared)

    out_specs = [
        pl.BlockSpec((E, tb, half), lambda i: (0, i, 0)),
        pl.BlockSpec((E, tb, half), lambda i: (0, i, 0)),
    ]

    # --- advisory cost estimate so XLA schedules this small call sensibly.
    flops = 2 * E * Bp * (Din * hidden_p + 3 * hidden_p * hidden_p
                          + hidden_p * 2 * half)
    transcendentals = E * Bp * (4 * hidden_p + 3 * half)
    bytes_accessed = 4 * (xp.size + sum(p.size for p in weights)
                          + 2 * half + 2 * E * Bp * half)

    mean, var = pl.pallas_call(
        _ensemble_mlp_kernel,
        out_shape=(
            jax.ShapeDtypeStruct((E, Bp, half), jnp.float32),
            jax.ShapeDtypeStruct((E, Bp, half), jnp.float32),
        ),
        grid_spec=pltpu.PrefetchScalarGridSpec(
            num_scalar_prefetch=0,
            grid=grid,
            in_specs=in_specs,
            out_specs=out_specs,
        ),
        compiler_params=pltpu.CompilerParams(
            dimension_semantics=("parallel",),   # batch tiles split across TCs (v7x)
        ),
        cost_estimate=pl.CostEstimate(
            flops=int(flops),
            transcendentals=int(transcendentals),
            bytes_accessed=int(bytes_accessed),
        ),
    )(xp, *weights, max_logvar, min_logvar)

    if Bp != B:
        mean = mean[:, :B]
        var = var[:, :B]
    return mean, var


def init_ensemble_params(key, state_dim, action_dim, ensemble_size, hidden=200):
    """Synthetic init mirroring the torch module's shapes:
    truncated-normal(std = 1/(2*sqrt(in_dim))) weights, zero biases."""
    output_dim = (state_dim + 1) * 2
    dims = [state_dim + action_dim, hidden, hidden, hidden, hidden, output_dim]
    params = []
    for i in range(5):
        key, wk = jax.random.split(key)
        din, dout = dims[i], dims[i + 1]
        std = 1.0 / (2.0 * jnp.sqrt(jnp.float32(din)))
        w = std * jax.random.truncated_normal(
            wk, -2.0, 2.0, (ensemble_size, din, dout), dtype=jnp.float32)
        b = jnp.zeros((ensemble_size, dout), dtype=jnp.float32)
        params.append((w, b))
    max_logvar = jnp.ones((1, output_dim // 2), jnp.float32) * 0.5
    min_logvar = -jnp.ones((1, output_dim // 2), jnp.float32) * 10.0
    return params, max_logvar, min_logvar


def _reference_forward(x, params, max_logvar, min_logvar):
    h = x
    for i, (w, b) in enumerate(params):
        h = jnp.einsum("ebi,eio->ebo", h, w) + b[:, None, :]
        if i < 4:
            h = h * jax.nn.sigmoid(h)
    half = max_logvar.shape[1]
    mean = h[:, :, :half]
    logvar = max_logvar - jax.nn.softplus(max_logvar - h[:, :, half:])
    logvar = min_logvar + jax.nn.softplus(logvar - min_logvar)
    return mean, jnp.exp(logvar)


if __name__ == "__main__":
    state_dim, action_dim = 8, 4
    ensemble_size = 5
    batch = 16

    key = jax.random.PRNGKey(0)
    key, xk = jax.random.split(key)
    x = jax.random.normal(
        xk, (ensemble_size, batch, state_dim + action_dim), dtype=jnp.float32)

    params, max_logvar, min_logvar = init_ensemble_params(
        key, state_dim, action_dim, ensemble_size)

    mean, var = ensemble_model_forward(x, params, max_logvar, min_logvar)
    jax.block_until_ready((mean, var))

    ref_mean, ref_var = _reference_forward(x, params, max_logvar, min_logvar)
    assert jnp.allclose(mean, ref_mean, atol=1e-4, rtol=1e-4)
    assert jnp.allclose(var, ref_var, atol=1e-4, rtol=1e-4)

    print("KERNEL_OK")
</pallas_src>

<mosaic_0001>
module attributes {stable_mosaic.version = 11 : i64} {
  func.func @_ensemble_mlp_kernel(%arg0: i32, %arg1: memref<5x16x12xf32, #tpu.memory_space<vmem>>, %arg2: memref<5x12x256xf32, #tpu.memory_space<vmem>>, %arg3: memref<5x1x256xf32, #tpu.memory_space<vmem>>, %arg4: memref<5x256x256xf32, #tpu.memory_space<vmem>>, %arg5: memref<5x1x256xf32, #tpu.memory_space<vmem>>, %arg6: memref<5x256x256xf32, #tpu.memory_space<vmem>>, %arg7: memref<5x1x256xf32, #tpu.memory_space<vmem>>, %arg8: memref<5x256x256xf32, #tpu.memory_space<vmem>>, %arg9: memref<5x1x256xf32, #tpu.memory_space<vmem>>, %arg10: memref<5x256x9xf32, #tpu.memory_space<vmem>>, %arg11: memref<5x1x9xf32, #tpu.memory_space<vmem>>, %arg12: memref<5x256x9xf32, #tpu.memory_space<vmem>>, %arg13: memref<5x1x9xf32, #tpu.memory_space<vmem>>, %arg14: memref<1x9xf32, #tpu.memory_space<vmem>>, %arg15: memref<1x9xf32, #tpu.memory_space<vmem>>, %arg16: memref<5x16x9xf32, #tpu.memory_space<vmem>>, %arg17: memref<5x16x9xf32, #tpu.memory_space<vmem>>) attributes {dimension_semantics = [#tpu.dimension_semantics<parallel>], iteration_bounds = array<i64: 1>, scalar_prefetch = 0 : i64, scratch_operands = 0 : i64, tpu.core_type = #tpu.core_type<tc>, window_params = [{transform_indices = @transform_0, window_bounds = array<i64: 5, 16, 12>}, {pipeline_mode = #tpu.pipeline_mode<synchronous>, transform_indices = @transform_1, window_bounds = array<i64: 5, 12, 256>}, {pipeline_mode = #tpu.pipeline_mode<synchronous>, transform_indices = @transform_2, window_bounds = array<i64: 5, 1, 256>}, {pipeline_mode = #tpu.pipeline_mode<synchronous>, transform_indices = @transform_3, window_bounds = array<i64: 5, 256, 256>}, {pipeline_mode = #tpu.pipeline_mode<synchronous>, transform_indices = @transform_4, window_bounds = array<i64: 5, 1, 256>}, {pipeline_mode = #tpu.pipeline_mode<synchronous>, transform_indices = @transform_5, window_bounds = array<i64: 5, 256, 256>}, {pipeline_mode = #tpu.pipeline_mode<synchronous>, transform_indices = @transform_6, window_bounds = array<i64: 5, 1, 256>}, {pipeline_mode = #tpu.pipeline_mode<synchronous>, transform_indices = @transform_7, window_bounds = array<i64: 5, 256, 256>}, {pipeline_mode = #tpu.pipeline_mode<synchronous>, transform_indices = @transform_8, window_bounds = array<i64: 5, 1, 256>}, {pipeline_mode = #tpu.pipeline_mode<synchronous>, transform_indices = @transform_9, window_bounds = array<i64: 5, 256, 9>}, {pipeline_mode = #tpu.pipeline_mode<synchronous>, transform_indices = @transform_10, window_bounds = array<i64: 5, 1, 9>}, {pipeline_mode = #tpu.pipeline_mode<synchronous>, transform_indices = @transform_11, window_bounds = array<i64: 5, 256, 9>}, {pipeline_mode = #tpu.pipeline_mode<synchronous>, transform_indices = @transform_12, window_bounds = array<i64: 5, 1, 9>}, {pipeline_mode = #tpu.pipeline_mode<synchronous>, transform_indices = @transform_13, window_bounds = array<i64: 1, 9>}, {pipeline_mode = #tpu.pipeline_mode<synchronous>, transform_indices = @transform_14, window_bounds = array<i64: 1, 9>}, {transform_indices = @transform_15, window_bounds = array<i64: 5, 16, 9>}, {transform_indices = @transform_16, window_bounds = array<i64: 5, 16, 9>}]} {
    %c0 = arith.constant 0 : index
    %c0_0 = arith.constant 0 : index
    %0 = vector.load %arg14[%c0, %c0_0] : memref<1x9xf32, #tpu.memory_space<vmem>>, vector<1x9xf32>
    %c0_1 = arith.constant 0 : index
    %c0_2 = arith.constant 0 : index
    %1 = vector.load %arg15[%c0_1, %c0_2] : memref<1x9xf32, #tpu.memory_space<vmem>>, vector<1x9xf32>
    %c0_3 = arith.constant 0 : index
    %c0_4 = arith.constant 0 : index
    %c0_5 = arith.constant 0 : index
    %2 = vector.load %arg1[%c0_3, %c0_4, %c0_5] : memref<5x16x12xf32, #tpu.memory_space<vmem>>, vector<1x16x12xf32>
    %3 = vector.shape_cast %2 : vector<1x16x12xf32> to vector<16x12xf32>
    %c0_6 = arith.constant 0 : index
    %c0_7 = arith.constant 0 : index
    %c0_8 = arith.constant 0 : index
    %4 = vector.load %arg2[%c0_6, %c0_7, %c0_8] : memref<5x12x256xf32, #tpu.memory_space<vmem>>, vector<1x12x256xf32>
    %5 = vector.shape_cast %4 : vector<1x12x256xf32> to vector<12x256xf32>
    %cst = arith.constant dense<0.000000e+00> : vector<16x256xf32>
    %6 = tpu.matmul %3, %5, %cst {dimension_numbers = #tpu.dot_dimension_numbers<[1], [0], [0], [1], [0, 0, 1, 1], [], []>} : vector<16x12xf32>, vector<12x256xf32>, vector<16x256xf32> -> vector<16x256xf32>
    %c0_9 = arith.constant 0 : index
    %c0_10 = arith.constant 0 : index
    %c0_11 = arith.constant 0 : index
    %7 = vector.load %arg3[%c0_9, %c0_10, %c0_11] : memref<5x1x256xf32, #tpu.memory_space<vmem>>, vector<1x1x256xf32>
    %8 = vector.shape_cast %7 : vector<1x1x256xf32> to vector<1x256xf32>
    %9 = vector.broadcast %8 : vector<1x256xf32> to vector<16x256xf32>
    %10 = arith.addf %6, %9 : vector<16x256xf32>
    %11 = arith.negf %10 : vector<16x256xf32>
    %12 = math.exp %11 : vector<16x256xf32>
    %cst_12 = arith.constant 1.000000e+00 : f32
    %13 = vector.broadcast %cst_12 : f32 to vector<16x256xf32>
    %14 = arith.addf %13, %12 : vector<16x256xf32>
    %15 = arith.divf %13, %14 : vector<16x256xf32>
    %16 = arith.mulf %10, %15 : vector<16x256xf32>
    %c0_13 = arith.constant 0 : index
    %c0_14 = arith.constant 0 : index
    %c0_15 = arith.constant 0 : index
    %17 = vector.load %arg4[%c0_13, %c0_14, %c0_15] : memref<5x256x256xf32, #tpu.memory_space<vmem>>, vector<1x256x256xf32>
    %18 = vector.shape_cast %17 : vector<1x256x256xf32> to vector<256x256xf32>
    %cst_16 = arith.constant dense<0.000000e+00> : vector<16x256xf32>
    %19 = tpu.matmul %16, %18, %cst_16 {dimension_numbers = #tpu.dot_dimension_numbers<[1], [0], [0], [1], [0, 0, 1, 1], [], []>} : vector<16x256xf32>, vector<256x256xf32>, vector<16x256xf32> -> vector<16x256xf32>
    %c0_17 = arith.constant 0 : index
    %c0_18 = arith.constant 0 : index
    %c0_19 = arith.constant 0 : index
    %20 = vector.load %arg5[%c0_17, %c0_18, %c0_19] : memref<5x1x256xf32, #tpu.memory_space<vmem>>, vector<1x1x256xf32>
    %21 = vector.shape_cast %20 : vector<1x1x256xf32> to vector<1x256xf32>
    %22 = vector.broadcast %21 : vector<1x256xf32> to vector<16x256xf32>
    %23 = arith.addf %19, %22 : vector<16x256xf32>
    %24 = arith.negf %23 : vector<16x256xf32>
    %25 = math.exp %24 : vector<16x256xf32>
    %cst_20 = arith.constant 1.000000e+00 : f32
    %26 = vector.broadcast %cst_20 : f32 to vector<16x256xf32>
    %27 = arith.addf %26, %25 : vector<16x256xf32>
    %28 = arith.divf %26, %27 : vector<16x256xf32>
    %29 = arith.mulf %23, %28 : vector<16x256xf32>
    %c0_21 = arith.constant 0 : index
    %c0_22 = arith.constant 0 : index
    %c0_23 = arith.constant 0 : index
    %30 = vector.load %arg6[%c0_21, %c0_22, %c0_23] : memref<5x256x256xf32, #tpu.memory_space<vmem>>, vector<1x256x256xf32>
    %31 = vector.shape_cast %30 : vector<1x256x256xf32> to vector<256x256xf32>
    %cst_24 = arith.constant dense<0.000000e+00> : vector<16x256xf32>
    %32 = tpu.matmul %29, %31, %cst_24 {dimension_numbers = #tpu.dot_dimension_numbers<[1], [0], [0], [1], [0, 0, 1, 1], [], []>} : vector<16x256xf32>, vector<256x256xf32>, vector<16x256xf32> -> vector<16x256xf32>
    %c0_25 = arith.constant 0 : index
    %c0_26 = arith.constant 0 : index
    %c0_27 = arith.constant 0 : index
    %33 = vector.load %arg7[%c0_25, %c0_26, %c0_27] : memref<5x1x256xf32, #tpu.memory_space<vmem>>, vector<1x1x256xf32>
    %34 = vector.shape_cast %33 : vector<1x1x256xf32> to vector<1x256xf32>
    %35 = vector.broadcast %34 : vector<1x256xf32> to vector<16x256xf32>
    %36 = arith.addf %32, %35 : vector<16x256xf32>
    %37 = arith.negf %36 : vector<16x256xf32>
    %38 = math.exp %37 : vector<16x256xf32>
    %cst_28 = arith.constant 1.000000e+00 : f32
    %39 = vector.broadcast %cst_28 : f32 to vector<16x256xf32>
    %40 = arith.addf %39, %38 : vector<16x256xf32>
    %41 = arith.divf %39, %40 : vector<16x256xf32>
    %42 = arith.mulf %36, %41 : vector<16x256xf32>
    %c0_29 = arith.constant 0 : index
    %c0_30 = arith.constant 0 : index
    %c0_31 = arith.constant 0 : index
    %43 = vector.load %arg8[%c0_29, %c0_30, %c0_31] : memref<5x256x256xf32, #tpu.memory_space<vmem>>, vector<1x256x256xf32>
    %44 = vector.shape_cast %43 : vector<1x256x256xf32> to vector<256x256xf32>
    %cst_32 = arith.constant dense<0.000000e+00> : vector<16x256xf32>
    %45 = tpu.matmul %42, %44, %cst_32 {dimension_numbers = #tpu.dot_dimension_numbers<[1], [0], [0], [1], [0, 0, 1, 1], [], []>} : vector<16x256xf32>, vector<256x256xf32>, vector<16x256xf32> -> vector<16x256xf32>
    %c0_33 = arith.constant 0 : index
    %c0_34 = arith.constant 0 : index
    %c0_35 = arith.constant 0 : index
    %46 = vector.load %arg9[%c0_33, %c0_34, %c0_35] : memref<5x1x256xf32, #tpu.memory_space<vmem>>, vector<1x1x256xf32>
    %47 = vector.shape_cast %46 : vector<1x1x256xf32> to vector<1x256xf32>
    %48 = vector.broadcast %47 : vector<1x256xf32> to vector<16x256xf32>
    %49 = arith.addf %45, %48 : vector<16x256xf32>
    %50 = arith.negf %49 : vector<16x256xf32>
    %51 = math.exp %50 : vector<16x256xf32>
    %cst_36 = arith.constant 1.000000e+00 : f32
    %52 = vector.broadcast %cst_36 : f32 to vector<16x256xf32>
    %53 = arith.addf %52, %51 : vector<16x256xf32>
    %54 = arith.divf %52, %53 : vector<16x256xf32>
    %55 = arith.mulf %49, %54 : vector<16x256xf32>
    %c0_37 = arith.constant 0 : index
    %c0_38 = arith.constant 0 : index
    %c0_39 = arith.constant 0 : index
    %56 = vector.load %arg10[%c0_37, %c0_38, %c0_39] : memref<5x256x9xf32, #tpu.memory_space<vmem>>, vector<1x256x9xf32>
    %57 = vector.shape_cast %56 : vector<1x256x9xf32> to vector<256x9xf32>
    %cst_40 = arith.constant dense<0.000000e+00> : vector<16x9xf32>
    %58 = tpu.matmul %55, %57, %cst_40 {dimension_numbers = #tpu.dot_dimension_numbers<[1], [0], [0], [1], [0, 0, 1, 1], [], []>} : vector<16x256xf32>, vector<256x9xf32>, vector<16x9xf32> -> vector<16x9xf32>
    %c0_41 = arith.constant 0 : index
    %c0_42 = arith.constant 0 : index
    %c0_43 = arith.constant 0 : index
    %59 = vector.load %arg11[%c0_41, %c0_42, %c0_43] : memref<5x1x9xf32, #tpu.memory_space<vmem>>, vector<1x1x9xf32>
    %60 = vector.shape_cast %59 : vector<1x1x9xf32> to vector<1x9xf32>
    %61 = vector.broadcast %60 : vector<1x9xf32> to vector<16x9xf32>
    %62 = arith.addf %58, %61 : vector<16x9xf32>
    %c0_44 = arith.constant 0 : index
    %c0_45 = arith.constant 0 : index
    %c0_46 = arith.constant 0 : index
    %63 = vector.load %arg12[%c0_44, %c0_45, %c0_46] : memref<5x256x9xf32, #tpu.memory_space<vmem>>, vector<1x256x9xf32>
    %64 = vector.shape_cast %63 : vector<1x256x9xf32> to vector<256x9xf32>
    %cst_47 = arith.constant dense<0.000000e+00> : vector<16x9xf32>
    %65 = tpu.matmul %55, %64, %cst_47 {dimension_numbers = #tpu.dot_dimension_numbers<[1], [0], [0], [1], [0, 0, 1, 1], [], []>} : vector<16x256xf32>, vector<256x9xf32>, vector<16x9xf32> -> vector<16x9xf32>
    %c0_48 = arith.constant 0 : index
    %c0_49 = arith.constant 0 : index
    %c0_50 = arith.constant 0 : index
    %66 = vector.load %arg13[%c0_48, %c0_49, %c0_50] : memref<5x1x9xf32, #tpu.memory_space<vmem>>, vector<1x1x9xf32>
    %67 = vector.shape_cast %66 : vector<1x1x9xf32> to vector<1x9xf32>
    %68 = vector.broadcast %67 : vector<1x9xf32> to vector<16x9xf32>
    %69 = arith.addf %65, %68 : vector<16x9xf32>
    %70 = vector.broadcast %0 : vector<1x9xf32> to vector<16x9xf32>
    %71 = arith.subf %70, %69 : vector<16x9xf32>
    %cst_51 = arith.constant 0.000000e+00 : f32
    %72 = vector.broadcast %cst_51 : f32 to vector<16x9xf32>
    %73 = arith.maximumf %71, %72 : vector<16x9xf32>
    %74 = vector.broadcast %cst_51 : f32 to vector<16x9xf32>
    %75 = arith.subf %71, %74 : vector<16x9xf32>
    %76 = arith.cmpf one, %75, %75 : vector<16x9xf32>
    %77 = vector.broadcast %cst_51 : f32 to vector<16x9xf32>
    %78 = arith.addf %71, %77 : vector<16x9xf32>
    %79 = math.absf %75 : vector<16x9xf32>
    %cst_52 = arith.constant 0.000000e+00 : f32
    %80 = vector.broadcast %cst_52 : f32 to vector<16x9xf32>
    %81 = arith.subf %80, %79 : vector<16x9xf32>
    %82 = math.exp %81 : vector<16x9xf32>
    %83 = math.log1p %82 : vector<16x9xf32>
    %84 = arith.addf %73, %83 : vector<16x9xf32>
    %85 = arith.select %76, %78, %84 : vector<16x9xi1>, vector<16x9xf32>
    %86 = vector.broadcast %0 : vector<1x9xf32> to vector<16x9xf32>
    %87 = arith.subf %86, %85 : vector<16x9xf32>
    %88 = vector.broadcast %1 : vector<1x9xf32> to vector<16x9xf32>
    %89 = arith.subf %87, %88 : vector<16x9xf32>
    %cst_53 = arith.constant 0.000000e+00 : f32
    %90 = vector.broadcast %cst_53 : f32 to vector<16x9xf32>
    %91 = arith.maximumf %89, %90 : vector<16x9xf32>
    %92 = vector.broadcast %cst_53 : f32 to vector<16x9xf32>
    %93 = arith.subf %89, %92 : vector<16x9xf32>
    %94 = arith.cmpf one, %93, %93 : vector<16x9xf32>
    %95 = vector.broadcast %cst_53 : f32 to vector<16x9xf32>
    %96 = arith.addf %89, %95 : vector<16x9xf32>
    %97 = math.absf %93 : vector<16x9xf32>
    %cst_54 = arith.constant 0.000000e+00 : f32
    %98 = vector.broadcast %cst_54 : f32 to vector<16x9xf32>
    %99 = arith.subf %98, %97 : vector<16x9xf32>
    %100 = math.exp %99 : vector<16x9xf32>
    %101 = math.log1p %100 : vector<16x9xf32>
    %102 = arith.addf %91, %101 : vector<16x9xf32>
    %103 = arith.select %94, %96, %102 : vector<16x9xi1>, vector<16x9xf32>
    %104 = vector.broadcast %1 : vector<1x9xf32> to vector<16x9xf32>
    %105 = arith.addf %104, %103 : vector<16x9xf32>
    %c0_55 = arith.constant 0 : index
    %c0_56 = arith.constant 0 : index
    %c0_57 = arith.constant 0 : index
    %106 = vector.load %arg16[%c0_55, %c0_56, %c0_57] : memref<5x16x9xf32, #tpu.memory_space<vmem>>, vector<1x16x9xf32>
    %107 = vector.shape_cast %106 : vector<1x16x9xf32> to vector<16x9xf32>
    %108 = vector.shape_cast %62 : vector<16x9xf32> to vector<1x16x9xf32>
    tpu.vector_store %arg16[%c0_55, %c0_56, %c0_57], %108 {strides = array<i32>} : memref<5x16x9xf32, #tpu.memory_space<vmem>>, vector<1x16x9xf32>,
    %109 = math.exp %105 : vector<16x9xf32>
    %c0_58 = arith.constant 0 : index
    %c0_59 = arith.constant 0 : index
    %c0_60 = arith.constant 0 : index
    %110 = vector.load %arg17[%c0_58, %c0_59, %c0_60] : memref<5x16x9xf32, #tpu.memory_space<vmem>>, vector<1x16x9xf32>
    %111 = vector.shape_cast %110 : vector<1x16x9xf32> to vector<16x9xf32>
    %112 = vector.shape_cast %109 : vector<16x9xf32> to vector<1x16x9xf32>
    tpu.vector_store %arg17[%c0_58, %c0_59, %c0_60], %112 {strides = array<i32>} : memref<5x16x9xf32, #tpu.memory_space<vmem>>, vector<1x16x9xf32>,
    %c1 = arith.constant 1 : index
    %c0_61 = arith.constant 0 : index
    %c0_62 = arith.constant 0 : index
    %113 = vector.load %arg1[%c1, %c0_61, %c0_62] : memref<5x16x12xf32, #tpu.memory_space<vmem>>, vector<1x16x12xf32>
    %114 = vector.shape_cast %113 : vector<1x16x12xf32> to vector<16x12xf32>
    %c1_63 = arith.constant 1 : index
    %c0_64 = arith.constant 0 : index
    %c0_65 = arith.constant 0 : index
    %115 = vector.load %arg2[%c1_63, %c0_64, %c0_65] : memref<5x12x256xf32, #tpu.memory_space<vmem>>, vector<1x12x256xf32>
    %116 = vector.shape_cast %115 : vector<1x12x256xf32> to vector<12x256xf32>
    %cst_66 = arith.constant dense<0.000000e+00> : vector<16x256xf32>
    %117 = tpu.matmul %114, %116, %cst_66 {dimension_numbers = #tpu.dot_dimension_numbers<[1], [0], [0], [1], [0, 0, 1, 1], [], []>} : vector<16x12xf32>, vector<12x256xf32>, vector<16x256xf32> -> vector<16x256xf32>
    %c1_67 = arith.constant 1 : index
    %c0_68 = arith.constant 0 : index
    %c0_69 = arith.constant 0 : index
    %118 = vector.load %arg3[%c1_67, %c0_68, %c0_69] : memref<5x1x256xf32, #tpu.memory_space<vmem>>, vector<1x1x256xf32>
    %119 = vector.shape_cast %118 : vector<1x1x256xf32> to vector<1x256xf32>
    %120 = vector.broadcast %119 : vector<1x256xf32> to vector<16x256xf32>
    %121 = arith.addf %117, %120 : vector<16x256xf32>
    %122 = arith.negf %121 : vector<16x256xf32>
    %123 = math.exp %122 : vector<16x256xf32>
    %cst_70 = arith.constant 1.000000e+00 : f32
    %124 = vector.broadcast %cst_70 : f32 to vector<16x256xf32>
    %125 = arith.addf %124, %123 : vector<16x256xf32>
    %126 = arith.divf %124, %125 : vector<16x256xf32>
    %127 = arith.mulf %121, %126 : vector<16x256xf32>
    %c1_71 = arith.constant 1 : index
    %c0_72 = arith.constant 0 : index
    %c0_73 = arith.constant 0 : index
    %128 = vector.load %arg4[%c1_71, %c0_72, %c0_73] : memref<5x256x256xf32, #tpu.memory_space<vmem>>, vector<1x256x256xf32>
    %129 = vector.shape_cast %128 : vector<1x256x256xf32> to vector<256x256xf32>
    %cst_74 = arith.constant dense<0.000000e+00> : vector<16x256xf32>
    %130 = tpu.matmul %127, %129, %cst_74 {dimension_numbers = #tpu.dot_dimension_numbers<[1], [0], [0], [1], [0, 0, 1, 1], [], []>} : vector<16x256xf32>, vector<256x256xf32>, vector<16x256xf32> -> vector<16x256xf32>
    %c1_75 = arith.constant 1 : index
    %c0_76 = arith.constant 0 : index
    %c0_77 = arith.constant 0 : index
    %131 = vector.load %arg5[%c1_75, %c0_76, %c0_77] : memref<5x1x256xf32, #tpu.memory_space<vmem>>, vector<1x1x256xf32>
    %132 = vector.shape_cast %131 : vector<1x1x256xf32> to vector<1x256xf32>
    %133 = vector.broadcast %132 : vector<1x256xf32> to vector<16x256xf32>
    %134 = arith.addf %130, %133 : vector<16x256xf32>
    %135 = arith.negf %134 : vector<16x256xf32>
    %136 = math.exp %135 : vector<16x256xf32>
    %cst_78 = arith.constant 1.000000e+00 : f32
    %137 = vector.broadcast %cst_78 : f32 to vector<16x256xf32>
    %138 = arith.addf %137, %136 : vector<16x256xf32>
    %139 = arith.divf %137, %138 : vector<16x256xf32>
    %140 = arith.mulf %134, %139 : vector<16x256xf32>
    %c1_79 = arith.constant 1 : index
    %c0_80 = arith.constant 0 : index
    %c0_81 = arith.constant 0 : index
    %141 = vector.load %arg6[%c1_79, %c0_80, %c0_81] : memref<5x256x256xf32, #tpu.memory_space<vmem>>, vector<1x256x256xf32>
    %142 = vector.shape_cast %141 : vector<1x256x256xf32> to vector<256x256xf32>
    %cst_82 = arith.constant dense<0.000000e+00> : vector<16x256xf32>
    %143 = tpu.matmul %140, %142, %cst_82 {dimension_numbers = #tpu.dot_dimension_numbers<[1], [0], [0], [1], [0, 0, 1, 1], [], []>} : vector<16x256xf32>, vector<256x256xf32>, vector<16x256xf32> -> vector<16x256xf32>
    %c1_83 = arith.constant 1 : index
    %c0_84 = arith.constant 0 : index
    %c0_85 = arith.constant 0 : index
    %144 = vector.load %arg7[%c1_83, %c0_84, %c0_85] : memref<5x1x256xf32, #tpu.memory_space<vmem>>, vector<1x1x256xf32>
    %145 = vector.shape_cast %144 : vector<1x1x256xf32> to vector<1x256xf32>
    %146 = vector.broadcast %145 : vector<1x256xf32> to vector<16x256xf32>
    %147 = arith.addf %143, %146 : vector<16x256xf32>
    %148 = arith.negf %147 : vector<16x256xf32>
    %149 = math.exp %148 : vector<16x256xf32>
    %cst_86 = arith.constant 1.000000e+00 : f32
    %150 = vector.broadcast %cst_86 : f32 to vector<16x256xf32>
    %151 = arith.addf %150, %149 : vector<16x256xf32>
    %152 = arith.divf %150, %151 : vector<16x256xf32>
    %153 = arith.mulf %147, %152 : vector<16x256xf32>
    %c1_87 = arith.constant 1 : index
    %c0_88 = arith.constant 0 : index
    %c0_89 = arith.constant 0 : index
    %154 = vector.load %arg8[%c1_87, %c0_88, %c0_89] : memref<5x256x256xf32, #tpu.memory_space<vmem>>, vector<1x256x256xf32>
    %155 = vector.shape_cast %154 : vector<1x256x256xf32> to vector<256x256xf32>
    %cst_90 = arith.constant dense<0.000000e+00> : vector<16x256xf32>
    %156 = tpu.matmul %153, %155, %cst_90 {dimension_numbers = #tpu.dot_dimension_numbers<[1], [0], [0], [1], [0, 0, 1, 1], [], []>} : vector<16x256xf32>, vector<256x256xf32>, vector<16x256xf32> -> vector<16x256xf32>
    %c1_91 = arith.constant 1 : index
    %c0_92 = arith.constant 0 : index
    %c0_93 = arith.constant 0 : index
    %157 = vector.load %arg9[%c1_91, %c0_92, %c0_93] : memref<5x1x256xf32, #tpu.memory_space<vmem>>, vector<1x1x256xf32>
    %158 = vector.shape_cast %157 : vector<1x1x256xf32> to vector<1x256xf32>
    %159 = vector.broadcast %158 : vector<1x256xf32> to vector<16x256xf32>
    %160 = arith.addf %156, %159 : vector<16x256xf32>
    %161 = arith.negf %160 : vector<16x256xf32>
    %162 = math.exp %161 : vector<16x256xf32>
    %cst_94 = arith.constant 1.000000e+00 : f32
    %163 = vector.broadcast %cst_94 : f32 to vector<16x256xf32>
    %164 = arith.addf %163, %162 : vector<16x256xf32>
    %165 = arith.divf %163, %164 : vector<16x256xf32>
    %166 = arith.mulf %160, %165 : vector<16x256xf32>
    %c1_95 = arith.constant 1 : index
    %c0_96 = arith.constant 0 : index
    %c0_97 = arith.constant 0 : index
    %167 = vector.load %arg10[%c1_95, %c0_96, %c0_97] : memref<5x256x9xf32, #tpu.memory_space<vmem>>, vector<1x256x9xf32>
    %168 = vector.shape_cast %167 : vector<1x256x9xf32> to vector<256x9xf32>
    %cst_98 = arith.constant dense<0.000000e+00> : vector<16x9xf32>
    %169 = tpu.matmul %166, %168, %cst_98 {dimension_numbers = #tpu.dot_dimension_numbers<[1], [0], [0], [1], [0, 0, 1, 1], [], []>} : vector<16x256xf32>, vector<256x9xf32>, vector<16x9xf32> -> vector<16x9xf32>
    %c1_99 = arith.constant 1 : index
    %c0_100 = arith.constant 0 : index
    %c0_101 = arith.constant 0 : index
    %170 = vector.load %arg11[%c1_99, %c0_100, %c0_101] : memref<5x1x9xf32, #tpu.memory_space<vmem>>, vector<1x1x9xf32>
    %171 = vector.shape_cast %170 : vector<1x1x9xf32> to vector<1x9xf32>
    %172 = vector.broadcast %171 : vector<1x9xf32> to vector<16x9xf32>
    %173 = arith.addf %169, %172 : vector<16x9xf32>
    %c1_102 = arith.constant 1 : index
    %c0_103 = arith.constant 0 : index
    %c0_104 = arith.constant 0 : index
    %174 = vector.load %arg12[%c1_102, %c0_103, %c0_104] : memref<5x256x9xf32, #tpu.memory_space<vmem>>, vector<1x256x9xf32>
    %175 = vector.shape_cast %174 : vector<1x256x9xf32> to vector<256x9xf32>
    %cst_105 = arith.constant dense<0.000000e+00> : vector<16x9xf32>
    %176 = tpu.matmul %166, %175, %cst_105 {dimension_numbers = #tpu.dot_dimension_numbers<[1], [0], [0], [1], [0, 0, 1, 1], [], []>} : vector<16x256xf32>, vector<256x9xf32>, vector<16x9xf32> -> vector<16x9xf32>
    %c1_106 = arith.constant 1 : index
    %c0_107 = arith.constant 0 : index
    %c0_108 = arith.constant 0 : index
    %177 = vector.load %arg13[%c1_106, %c0_107, %c0_108] : memref<5x1x9xf32, #tpu.memory_space<vmem>>, vector<1x1x9xf32>
    %178 = vector.shape_cast %177 : vector<1x1x9xf32> to vector<1x9xf32>
    %179 = vector.broadcast %178 : vector<1x9xf32> to vector<16x9xf32>
    %180 = arith.addf %176, %179 : vector<16x9xf32>
    %181 = vector.broadcast %0 : vector<1x9xf32> to vector<16x9xf32>
    %182 = arith.subf %181, %180 : vector<16x9xf32>
    %cst_109 = arith.constant 0.000000e+00 : f32
    %183 = vector.broadcast %cst_109 : f32 to vector<16x9xf32>
    %184 = arith.maximumf %182, %183 : vector<16x9xf32>
    %185 = vector.broadcast %cst_109 : f32 to vector<16x9xf32>
    %186 = arith.subf %182, %185 : vector<16x9xf32>
    %187 = arith.cmpf one, %186, %186 : vector<16x9xf32>
    %188 = vector.broadcast %cst_109 : f32 to vector<16x9xf32>
    %189 = arith.addf %182, %188 : vector<16x9xf32>
    %190 = math.absf %186 : vector<16x9xf32>
    %cst_110 = arith.constant 0.000000e+00 : f32
    %191 = vector.broadcast %cst_110 : f32 to vector<16x9xf32>
    %192 = arith.subf %191, %190 : vector<16x9xf32>
    %193 = math.exp %192 : vector<16x9xf32>
    %194 = math.log1p %193 : vector<16x9xf32>
    %195 = arith.addf %184, %194 : vector<16x9xf32>
    %196 = arith.select %187, %189, %195 : vector<16x9xi1>, vector<16x9xf32>
    %197 = vector.broadcast %0 : vector<1x9xf32> to vector<16x9xf32>
    %198 = arith.subf %197, %196 : vector<16x9xf32>
    %199 = vector.broadcast %1 : vector<1x9xf32> to vector<16x9xf32>
    %200 = arith.subf %198, %199 : vector<16x9xf32>
    %cst_111 = arith.constant 0.000000e+00 : f32
    %201 = vector.broadcast %cst_111 : f32 to vector<16x9xf32>
    %202 = arith.maximumf %200, %201 : vector<16x9xf32>
    %203 = vector.broadcast %cst_111 : f32 to vector<16x9xf32>
    %204 = arith.subf %200, %203 : vector<16x9xf32>
    %205 = arith.cmpf one, %204, %204 : vector<16x9xf32>
    %206 = vector.broadcast %cst_111 : f32 to vector<16x9xf32>
    %207 = arith.addf %200, %206 : vector<16x9xf32>
    %208 = math.absf %204 : vector<16x9xf32>
    %cst_112 = arith.constant 0.000000e+00 : f32
    %209 = vector.broadcast %cst_112 : f32 to vector<16x9xf32>
    %210 = arith.subf %209, %208 : vector<16x9xf32>
    %211 = math.exp %210 : vector<16x9xf32>
    %212 = math.log1p %211 : vector<16x9xf32>
    %213 = arith.addf %202, %212 : vector<16x9xf32>
    %214 = arith.select %205, %207, %213 : vector<16x9xi1>, vector<16x9xf32>
    %215 = vector.broadcast %1 : vector<1x9xf32> to vector<16x9xf32>
    %216 = arith.addf %215, %214 : vector<16x9xf32>
    %c1_113 = arith.constant 1 : index
    %c0_114 = arith.constant 0 : index
    %c0_115 = arith.constant 0 : index
    %217 = vector.load %arg16[%c1_113, %c0_114, %c0_115] : memref<5x16x9xf32, #tpu.memory_space<vmem>>, vector<1x16x9xf32>
    %218 = vector.shape_cast %217 : vector<1x16x9xf32> to vector<16x9xf32>
    %219 = vector.shape_cast %173 : vector<16x9xf32> to vector<1x16x9xf32>
    tpu.vector_store %arg16[%c1_113, %c0_114, %c0_115], %219 {strides = array<i32>} : memref<5x16x9xf32, #tpu.memory_space<vmem>>, vector<1x16x9xf32>,
    %220 = math.exp %216 : vector<16x9xf32>
    %c1_116 = arith.constant 1 : index
    %c0_117 = arith.constant 0 : index
    %c0_118 = arith.constant 0 : index
    %221 = vector.load %arg17[%c1_116, %c0_117, %c0_118] : memref<5x16x9xf32, #tpu.memory_space<vmem>>, vector<1x16x9xf32>
    %222 = vector.shape_cast %221 : vector<1x16x9xf32> to vector<16x9xf32>
    %223 = vector.shape_cast %220 : vector<16x9xf32> to vector<1x16x9xf32>
    tpu.vector_store %arg17[%c1_116, %c0_117, %c0_118], %223 {strides = array<i32>} : memref<5x16x9xf32, #tpu.memory_space<vmem>>, vector<1x16x9xf32>,
    %c2 = arith.constant 2 : index
    %c0_119 = arith.constant 0 : index
    %c0_120 = arith.constant 0 : index
    %224 = vector.load %arg1[%c2, %c0_119, %c0_120] : memref<5x16x12xf32, #tpu.memory_space<vmem>>, vector<1x16x12xf32>
    %225 = vector.shape_cast %224 : vector<1x16x12xf32> to vector<16x12xf32>
    %c2_121 = arith.constant 2 : index
    %c0_122 = arith.constant 0 : index
    %c0_123 = arith.constant 0 : index
    %226 = vector.load %arg2[%c2_121, %c0_122, %c0_123] : memref<5x12x256xf32, #tpu.memory_space<vmem>>, vector<1x12x256xf32>
    %227 = vector.shape_cast %226 : vector<1x12x256xf32> to vector<12x256xf32>
    %cst_124 = arith.constant dense<0.000000e+00> : vector<16x256xf32>
    %228 = tpu.matmul %225, %227, %cst_124 {dimension_numbers = #tpu.dot_dimension_numbers<[1], [0], [0], [1], [0, 0, 1, 1], [], []>} : vector<16x12xf32>, vector<12x256xf32>, vector<16x256xf32> -> vector<16x256xf32>
    %c2_125 = arith.constant 2 : index
    %c0_126 = arith.constant 0 : index
    %c0_127 = arith.constant 0 : index
    %229 = vector.load %arg3[%c2_125, %c0_126, %c0_127] : memref<5x1x256xf32, #tpu.memory_space<vmem>>, vector<1x1x256xf32>
    %230 = vector.shape_cast %229 : vector<1x1x256xf32> to vector<1x256xf32>
    %231 = vector.broadcast %230 : vector<1x256xf32> to vector<16x256xf32>
    %232 = arith.addf %228, %231 : vector<16x256xf32>
    %233 = arith.negf %232 : vector<16x256xf32>
    %234 = math.exp %233 : vector<16x256xf32>
    %cst_128 = arith.constant 1.000000e+00 : f32
    %235 = vector.broadcast %cst_128 : f32 to vector<16x256xf32>
    %236 = arith.addf %235, %234 : vector<16x256xf32>
    %237 = arith.divf %235, %236 : vector<16x256xf32>
    %238 = arith.mulf %232, %237 : vector<16x256xf32>
    %c2_129 = arith.constant 2 : index
    %c0_130 = arith.constant 0 : index
    %c0_131 = arith.constant 0 : index
    %239 = vector.load %arg4[%c2_129, %c0_130, %c0_131] : memref<5x256x256xf32, #tpu.memory_space<vmem>>, vector<1x256x256xf32>
    %240 = vector.shape_cast %239 : vector<1x256x256xf32> to vector<256x256xf32>
    %cst_132 = arith.constant dense<0.000000e+00> : vector<16x256xf32>
    %241 = tpu.matmul %238, %240, %cst_132 {dimension_numbers = #tpu.dot_dimension_numbers<[1], [0], [0], [1], [0, 0, 1, 1], [], []>} : vector<16x256xf32>, vector<256x256xf32>, vector<16x256xf32> -> vector<16x256xf32>
    %c2_133 = arith.constant 2 : index
    %c0_134 = arith.constant 0 : index
    %c0_135 = arith.constant 0 : index
    %242 = vector.load %arg5[%c2_133, %c0_134, %c0_135] : memref<5x1x256xf32, #tpu.memory_space<vmem>>, vector<1x1x256xf32>
    %243 = vector.shape_cast %242 : vector<1x1x256xf32> to vector<1x256xf32>
    %244 = vector.broadcast %243 : vector<1x256xf32> to vector<16x256xf32>
    %245 = arith.addf %241, %244 : vector<16x256xf32>
    %246 = arith.negf %245 : vector<16x256xf32>
    %247 = math.exp %246 : vector<16x256xf32>
    %cst_136 = arith.constant 1.000000e+00 : f32
    %248 = vector.broadcast %cst_136 : f32 to vector<16x256xf32>
    %249 = arith.addf %248, %247 : vector<16x256xf32>
    %250 = arith.divf %248, %249 : vector<16x256xf32>
    %251 = arith.mulf %245, %250 : vector<16x256xf32>
    %c2_137 = arith.constant 2 : index
    %c0_138 = arith.constant 0 : index
    %c0_139 = arith.constant 0 : index
    %252 = vector.load %arg6[%c2_137, %c0_138, %c0_139] : memref<5x256x256xf32, #tpu.memory_space<vmem>>, vector<1x256x256xf32>
    %253 = vector.shape_cast %252 : vector<1x256x256xf32> to vector<256x256xf32>
    %cst_140 = arith.constant dense<0.000000e+00> : vector<16x256xf32>
    %254 = tpu.matmul %251, %253, %cst_140 {dimension_numbers = #tpu.dot_dimension_numbers<[1], [0], [0], [1], [0, 0, 1, 1], [], []>} : vector<16x256xf32>, vector<256x256xf32>, vector<16x256xf32> -> vector<16x256xf32>
    %c2_141 = arith.constant 2 : index
    %c0_142 = arith.constant 0 : index
    %c0_143 = arith.constant 0 : index
    %255 = vector.load %arg7[%c2_141, %c0_142, %c0_143] : memref<5x1x256xf32, #tpu.memory_space<vmem>>, vector<1x1x256xf32>
    %256 = vector.shape_cast %255 : vector<1x1x256xf32> to vector<1x256xf32>
    %257 = vector.broadcast %256 : vector<1x256xf32> to vector<16x256xf32>
    %258 = arith.addf %254, %257 : vector<16x256xf32>
    %259 = arith.negf %258 : vector<16x256xf32>
    %260 = math.exp %259 : vector<16x256xf32>
    %cst_144 = arith.constant 1.000000e+00 : f32
    %261 = vector.broadcast %cst_144 : f32 to vector<16x256xf32>
    %262 = arith.addf %261, %260 : vector<16x256xf32>
    %263 = arith.divf %261, %262 : vector<16x256xf32>
    %264 = arith.mulf %258, %263 : vector<16x256xf32>
    %c2_145 = arith.constant 2 : index
    %c0_146 = arith.constant 0 : index
    %c0_147 = arith.constant 0 : index
    %265 = vector.load %arg8[%c2_145, %c0_146, %c0_147] : memref<5x256x256xf32, #tpu.memory_space<vmem>>, vector<1x256x256xf32>
    %266 = vector.shape_cast %265 : vector<1x256x256xf32> to vector<256x256xf32>
    %cst_148 = arith.constant dense<0.000000e+00> : vector<16x256xf32>
    %267 = tpu.matmul %264, %266, %cst_148 {dimension_numbers = #tpu.dot_dimension_numbers<[1], [0], [0], [1], [0, 0, 1, 1], [], []>} : vector<16x256xf32>, vector<256x256xf32>, vector<16x256xf32> -> vector<16x256xf32>
    %c2_149 = arith.constant 2 : index
    %c0_150 = arith.constant 0 : index
    %c0_151 = arith.constant 0 : index
    %268 = vector.load %arg9[%c2_149, %c0_150, %c0_151] : memref<5x1x256xf32, #tpu.memory_space<vmem>>, vector<1x1x256xf32>
    %269 = vector.shape_cast %268 : vector<1x1x256xf32> to vector<1x256xf32>
    %270 = vector.broadcast %269 : vector<1x256xf32> to vector<16x256xf32>
    %271 = arith.addf %267, %270 : vector<16x256xf32>
    %272 = arith.negf %271 : vector<16x256xf32>
    %273 = math.exp %272 : vector<16x256xf32>
    %cst_152 = arith.constant 1.000000e+00 : f32
    %274 = vector.broadcast %cst_152 : f32 to vector<16x256xf32>
    %275 = arith.addf %274, %273 : vector<16x256xf32>
    %276 = arith.divf %274, %275 : vector<16x256xf32>
    %277 = arith.mulf %271, %276 : vector<16x256xf32>
    %c2_153 = arith.constant 2 : index
    %c0_154 = arith.constant 0 : index
    %c0_155 = arith.constant 0 : index
    %278 = vector.load %arg10[%c2_153, %c0_154, %c0_155] : memref<5x256x9xf32, #tpu.memory_space<vmem>>, vector<1x256x9xf32>
    %279 = vector.shape_cast %278 : vector<1x256x9xf32> to vector<256x9xf32>
    %cst_156 = arith.constant dense<0.000000e+00> : vector<16x9xf32>
    %280 = tpu.matmul %277, %279, %cst_156 {dimension_numbers = #tpu.dot_dimension_numbers<[1], [0], [0], [1], [0, 0, 1, 1], [], []>} : vector<16x256xf32>, vector<256x9xf32>, vector<16x9xf32> -> vector<16x9xf32>
    %c2_157 = arith.constant 2 : index
    %c0_158 = arith.constant 0 : index
    %c0_159 = arith.constant 0 : index
    %281 = vector.load %arg11[%c2_157, %c0_158, %c0_159] : memref<5x1x9xf32, #tpu.memory_space<vmem>>, vector<1x1x9xf32>
    %282 = vector.shape_cast %281 : vector<1x1x9xf32> to vector<1x9xf32>
    %283 = vector.broadcast %282 : vector<1x9xf32> to vector<16x9xf32>
    %284 = arith.addf %280, %283 : vector<16x9xf32>
    %c2_160 = arith.constant 2 : index
    %c0_161 = arith.constant 0 : index
    %c0_162 = arith.constant 0 : index
    %285 = vector.load %arg12[%c2_160, %c0_161, %c0_162] : memref<5x256x9xf32, #tpu.memory_space<vmem>>, vector<1x256x9xf32>
    %286 = vector.shape_cast %285 : vector<1x256x9xf32> to vector<256x9xf32>
    %cst_163 = arith.constant dense<0.000000e+00> : vector<16x9xf32>
    %287 = tpu.matmul %277, %286, %cst_163 {dimension_numbers = #tpu.dot_dimension_numbers<[1], [0], [0], [1], [0, 0, 1, 1], [], []>} : vector<16x256xf32>, vector<256x9xf32>, vector<16x9xf32> -> vector<16x9xf32>
    %c2_164 = arith.constant 2 : index
    %c0_165 = arith.constant 0 : index
    %c0_166 = arith.constant 0 : index
    %288 = vector.load %arg13[%c2_164, %c0_165, %c0_166] : memref<5x1x9xf32, #tpu.memory_space<vmem>>, vector<1x1x9xf32>
    %289 = vector.shape_cast %288 : vector<1x1x9xf32> to vector<1x9xf32>
    %290 = vector.broadcast %289 : vector<1x9xf32> to vector<16x9xf32>
    %291 = arith.addf %287, %290 : vector<16x9xf32>
    %292 = vector.broadcast %0 : vector<1x9xf32> to vector<16x9xf32>
    %293 = arith.subf %292, %291 : vector<16x9xf32>
    %cst_167 = arith.constant 0.000000e+00 : f32
    %294 = vector.broadcast %cst_167 : f32 to vector<16x9xf32>
    %295 = arith.maximumf %293, %294 : vector<16x9xf32>
    %296 = vector.broadcast %cst_167 : f32 to vector<16x9xf32>
    %297 = arith.subf %293, %296 : vector<16x9xf32>
    %298 = arith.cmpf one, %297, %297 : vector<16x9xf32>
    %299 = vector.broadcast %cst_167 : f32 to vector<16x9xf32>
    %300 = arith.addf %293, %299 : vector<16x9xf32>
    %301 = math.absf %297 : vector<16x9xf32>
    %cst_168 = arith.constant 0.000000e+00 : f32
    %302 = vector.broadcast %cst_168 : f32 to vector<16x9xf32>
    %303 = arith.subf %302, %301 : vector<16x9xf32>
    %304 = math.exp %303 : vector<16x9xf32>
    %305 = math.log1p %304 : vector<16x9xf32>
    %306 = arith.addf %295, %305 : vector<16x9xf32>
    %307 = arith.select %298, %300, %306 : vector<16x9xi1>, vector<16x9xf32>
    %308 = vector.broadcast %0 : vector<1x9xf32> to vector<16x9xf32>
    %309 = arith.subf %308, %307 : vector<16x9xf32>
    %310 = vector.broadcast %1 : vector<1x9xf32> to vector<16x9xf32>
    %311 = arith.subf %309, %310 : vector<16x9xf32>
    %cst_169 = arith.constant 0.000000e+00 : f32
    %312 = vector.broadcast %cst_169 : f32 to vector<16x9xf32>
    %313 = arith.maximumf %311, %312 : vector<16x9xf32>
    %314 = vector.broadcast %cst_169 : f32 to vector<16x9xf32>
    %315 = arith.subf %311, %314 : vector<16x9xf32>
    %316 = arith.cmpf one, %315, %315 : vector<16x9xf32>
    %317 = vector.broadcast %cst_169 : f32 to vector<16x9xf32>
    %318 = arith.addf %311, %317 : vector<16x9xf32>
    %319 = math.absf %315 : vector<16x9xf32>
    %cst_170 = arith.constant 0.000000e+00 : f32
    %320 = vector.broadcast %cst_170 : f32 to vector<16x9xf32>
    %321 = arith.subf %320, %319 : vector<16x9xf32>
    %322 = math.exp %321 : vector<16x9xf32>
    %323 = math.log1p %322 : vector<16x9xf32>
    %324 = arith.addf %313, %323 : vector<16x9xf32>
    %325 = arith.select %316, %318, %324 : vector<16x9xi1>, vector<16x9xf32>
    %326 = vector.broadcast %1 : vector<1x9xf32> to vector<16x9xf32>
    %327 = arith.addf %326, %325 : vector<16x9xf32>
    %c2_171 = arith.constant 2 : index
    %c0_172 = arith.constant 0 : index
    %c0_173 = arith.constant 0 : index
    %328 = vector.load %arg16[%c2_171, %c0_172, %c0_173] : memref<5x16x9xf32, #tpu.memory_space<vmem>>, vector<1x16x9xf32>
    %329 = vector.shape_cast %328 : vector<1x16x9xf32> to vector<16x9xf32>
    %330 = vector.shape_cast %284 : vector<16x9xf32> to vector<1x16x9xf32>
    tpu.vector_store %arg16[%c2_171, %c0_172, %c0_173], %330 {strides = array<i32>} : memref<5x16x9xf32, #tpu.memory_space<vmem>>, vector<1x16x9xf32>,
    %331 = math.exp %327 : vector<16x9xf32>
    %c2_174 = arith.constant 2 : index
    %c0_175 = arith.constant 0 : index
    %c0_176 = arith.constant 0 : index
    %332 = vector.load %arg17[%c2_174, %c0_175, %c0_176] : memref<5x16x9xf32, #tpu.memory_space<vmem>>, vector<1x16x9xf32>
    %333 = vector.shape_cast %332 : vector<1x16x9xf32> to vector<16x9xf32>
    %334 = vector.shape_cast %331 : vector<16x9xf32> to vector<1x16x9xf32>
    tpu.vector_store %arg17[%c2_174, %c0_175, %c0_176], %334 {strides = array<i32>} : memref<5x16x9xf32, #tpu.memory_space<vmem>>, vector<1x16x9xf32>,
    %c3 = arith.constant 3 : index
    %c0_177 = arith.constant 0 : index
    %c0_178 = arith.constant 0 : index
    %335 = vector.load %arg1[%c3, %c0_177, %c0_178] : memref<5x16x12xf32, #tpu.memory_space<vmem>>, vector<1x16x12xf32>
    %336 = vector.shape_cast %335 : vector<1x16x12xf32> to vector<16x12xf32>
    %c3_179 = arith.constant 3 : index
    %c0_180 = arith.constant 0 : index
    %c0_181 = arith.constant 0 : index
    %337 = vector.load %arg2[%c3_179, %c0_180, %c0_181] : memref<5x12x256xf32, #tpu.memory_space<vmem>>, vector<1x12x256xf32>
    %338 = vector.shape_cast %337 : vector<1x12x256xf32> to vector<12x256xf32>
    %cst_182 = arith.constant dense<0.000000e+00> : vector<16x256xf32>
    %339 = tpu.matmul %336, %338, %cst_182 {dimension_numbers = #tpu.dot_dimension_numbers<[1], [0], [0], [1], [0, 0, 1, 1], [], []>} : vector<16x12xf32>, vector<12x256xf32>, vector<16x256xf32> -> vector<16x256xf32>
    %c3_183 = arith.constant 3 : index
    %c0_184 = arith.constant 0 : index
    %c0_185 = arith.constant 0 : index
    %340 = vector.load %arg3[%c3_183, %c0_184, %c0_185] : memref<5x1x256xf32, #tpu.memory_space<vmem>>, vector<1x1x256xf32>
    %341 = vector.shape_cast %340 : vector<1x1x256xf32> to vector<1x256xf32>
    %342 = vector.broadcast %341 : vector<1x256xf32> to vector<16x256xf32>
    %343 = arith.addf %339, %342 : vector<16x256xf32>
    %344 = arith.negf %343 : vector<16x256xf32>
    %345 = math.exp %344 : vector<16x256xf32>
    %cst_186 = arith.constant 1.000000e+00 : f32
    %346 = vector.broadcast %cst_186 : f32 to vector<16x256xf32>
    %347 = arith.addf %346, %345 : vector<16x256xf32>
    %348 = arith.divf %346, %347 : vector<16x256xf32>
    %349 = arith.mulf %343, %348 : vector<16x256xf32>
    %c3_187 = arith.constant 3 : index
    %c0_188 = arith.constant 0 : index
    %c0_189 = arith.constant 0 : index
    %350 = vector.load %arg4[%c3_187, %c0_188, %c0_189] : memref<5x256x256xf32, #tpu.memory_space<vmem>>, vector<1x256x256xf32>
    %351 = vector.shape_cast %350 : vector<1x256x256xf32> to vector<256x256xf32>
    %cst_190 = arith.constant dense<0.000000e+00> : vector<16x256xf32>
    %352 = tpu.matmul %349, %351, %cst_190 {dimension_numbers = #tpu.dot_dimension_numbers<[1], [0], [0], [1], [0, 0, 1, 1], [], []>} : vector<16x256xf32>, vector<256x256xf32>, vector<16x256xf32> -> vector<16x256xf32>
    %c3_191 = arith.constant 3 : index
    %c0_192 = arith.constant 0 : index
    %c0_193 = arith.constant 0 : index
    %353 = vector.load %arg5[%c3_191, %c0_192, %c0_193] : memref<5x1x256xf32, #tpu.memory_space<vmem>>, vector<1x1x256xf32>
    %354 = vector.shape_cast %353 : vector<1x1x256xf32> to vector<1x256xf32>
    %355 = vector.broadcast %354 : vector<1x256xf32> to vector<16x256xf32>
    %356 = arith.addf %352, %355 : vector<16x256xf32>
    %357 = arith.negf %356 : vector<16x256xf32>
    %358 = math.exp %357 : vector<16x256xf32>
    %cst_194 = arith.constant 1.000000e+00 : f32
    %359 = vector.broadcast %cst_194 : f32 to vector<16x256xf32>
    %360 = arith.addf %359, %358 : vector<16x256xf32>
    %361 = arith.divf %359, %360 : vector<16x256xf32>
    %362 = arith.mulf %356, %361 : vector<16x256xf32>
    %c3_195 = arith.constant 3 : index
    %c0_196 = arith.constant 0 : index
    %c0_197 = arith.constant 0 : index
    %363 = vector.load %arg6[%c3_195, %c0_196, %c0_197] : memref<5x256x256xf32, #tpu.memory_space<vmem>>, vector<1x256x256xf32>
    %364 = vector.shape_cast %363 : vector<1x256x256xf32> to vector<256x256xf32>
    %cst_198 = arith.constant dense<0.000000e+00> : vector<16x256xf32>
    %365 = tpu.matmul %362, %364, %cst_198 {dimension_numbers = #tpu.dot_dimension_numbers<[1], [0], [0], [1], [0, 0, 1, 1], [], []>} : vector<16x256xf32>, vector<256x256xf32>, vector<16x256xf32> -> vector<16x256xf32>
    %c3_199 = arith.constant 3 : index
    %c0_200 = arith.constant 0 : index
    %c0_201 = arith.constant 0 : index
    %366 = vector.load %arg7[%c3_199, %c0_200, %c0_201] : memref<5x1x256xf32, #tpu.memory_space<vmem>>, vector<1x1x256xf32>
    %367 = vector.shape_cast %366 : vector<1x1x256xf32> to vector<1x256xf32>
    %368 = vector.broadcast %367 : vector<1x256xf32> to vector<16x256xf32>
    %369 = arith.addf %365, %368 : vector<16x256xf32>
    %370 = arith.negf %369 : vector<16x256xf32>
    %371 = math.exp %370 : vector<16x256xf32>
    %cst_202 = arith.constant 1.000000e+00 : f32
    %372 = vector.broadcast %cst_202 : f32 to vector<16x256xf32>
    %373 = arith.addf %372, %371 : vector<16x256xf32>
    %374 = arith.divf %372, %373 : vector<16x256xf32>
    %375 = arith.mulf %369, %374 : vector<16x256xf32>
    %c3_203 = arith.constant 3 : index
    %c0_204 = arith.constant 0 : index
    %c0_205 = arith.constant 0 : index
    %376 = vector.load %arg8[%c3_203, %c0_204, %c0_205] : memref<5x256x256xf32, #tpu.memory_space<vmem>>, vector<1x256x256xf32>
    %377 = vector.shape_cast %376 : vector<1x256x256xf32> to vector<256x256xf32>
    %cst_206 = arith.constant dense<0.000000e+00> : vector<16x256xf32>
    %378 = tpu.matmul %375, %377, %cst_206 {dimension_numbers = #tpu.dot_dimension_numbers<[1], [0], [0], [1], [0, 0, 1, 1], [], []>} : vector<16x256xf32>, vector<256x256xf32>, vector<16x256xf32> -> vector<16x256xf32>
    %c3_207 = arith.constant 3 : index
    %c0_208 = arith.constant 0 : index
    %c0_209 = arith.constant 0 : index
    %379 = vector.load %arg9[%c3_207, %c0_208, %c0_209] : memref<5x1x256xf32, #tpu.memory_space<vmem>>, vector<1x1x256xf32>
    %380 = vector.shape_cast %379 : vector<1x1x256xf32> to vector<1x256xf32>
    %381 = vector.broadcast %380 : vector<1x256xf32> to vector<16x256xf32>
    %382 = arith.addf %378, %381 : vector<16x256xf32>
    %383 = arith.negf %382 : vector<16x256xf32>
    %384 = math.exp %383 : vector<16x256xf32>
    %cst_210 = arith.constant 1.000000e+00 : f32
    %385 = vector.broadcast %cst_210 : f32 to vector<16x256xf32>
    %386 = arith.addf %385, %384 : vector<16x256xf32>
    %387 = arith.divf %385, %386 : vector<16x256xf32>
    %388 = arith.mulf %382, %387 : vector<16x256xf32>
    %c3_211 = arith.constant 3 : index
    %c0_212 = arith.constant 0 : index
    %c0_213 = arith.constant 0 : index
    %389 = vector.load %arg10[%c3_211, %c0_212, %c0_213] : memref<5x256x9xf32, #tpu.memory_space<vmem>>, vector<1x256x9xf32>
    %390 = vector.shape_cast %389 : vector<1x256x9xf32> to vector<256x9xf32>
    %cst_214 = arith.constant dense<0.000000e+00> : vector<16x9xf32>
    %391 = tpu.matmul %388, %390, %cst_214 {dimension_numbers = #tpu.dot_dimension_numbers<[1], [0], [0], [1], [0, 0, 1, 1], [], []>} : vector<16x256xf32>, vector<256x9xf32>, vector<16x9xf32> -> vector<16x9xf32>
    %c3_215 = arith.constant 3 : index
    %c0_216 = arith.constant 0 : index
    %c0_217 = arith.constant 0 : index
    %392 = vector.load %arg11[%c3_215, %c0_216, %c0_217] : memref<5x1x9xf32, #tpu.memory_space<vmem>>, vector<1x1x9xf32>
    %393 = vector.shape_cast %392 : vector<1x1x9xf32> to vector<1x9xf32>
    %394 = vector.broadcast %393 : vector<1x9xf32> to vector<16x9xf32>
    %395 = arith.addf %391, %394 : vector<16x9xf32>
    %c3_218 = arith.constant 3 : index
    %c0_219 = arith.constant 0 : index
    %c0_220 = arith.constant 0 : index
    %396 = vector.load %arg12[%c3_218, %c0_219, %c0_220] : memref<5x256x9xf32, #tpu.memory_space<vmem>>, vector<1x256x9xf32>
    %397 = vector.shape_cast %396 : vector<1x256x9xf32> to vector<256x9xf32>
    %cst_221 = arith.constant dense<0.000000e+00> : vector<16x9xf32>
    %398 = tpu.matmul %388, %397, %cst_221 {dimension_numbers = #tpu.dot_dimension_numbers<[1], [0], [0], [1], [0, 0, 1, 1], [], []>} : vector<16x256xf32>, vector<256x9xf32>, vector<16x9xf32> -> vector<16x9xf32>
    %c3_222 = arith.constant 3 : index
    %c0_223 = arith.constant 0 : index
    %c0_224 = arith.constant 0 : index
    %399 = vector.load %arg13[%c3_222, %c0_223, %c0_224] : memref<5x1x9xf32, #tpu.memory_space<vmem>>, vector<1x1x9xf32>
    %400 = vector.shape_cast %399 : vector<1x1x9xf32> to vector<1x9xf32>
    %401 = vector.broadcast %400 : vector<1x9xf32> to vector<16x9xf32>
    %402 = arith.addf %398, %401 : vector<16x9xf32>
    %403 = vector.broadcast %0 : vector<1x9xf32> to vector<16x9xf32>
    %404 = arith.subf %403, %402 : vector<16x9xf32>
    %cst_225 = arith.constant 0.000000e+00 : f32
    %405 = vector.broadcast %cst_225 : f32 to vector<16x9xf32>
    %406 = arith.maximumf %404, %405 : vector<16x9xf32>
    %407 = vector.broadcast %cst_225 : f32 to vector<16x9xf32>
    %408 = arith.subf %404, %407 : vector<16x9xf32>
    %409 = arith.cmpf one, %408, %408 : vector<16x9xf32>
    %410 = vector.broadcast %cst_225 : f32 to vector<16x9xf32>
    %411 = arith.addf %404, %410 : vector<16x9xf32>
    %412 = math.absf %408 : vector<16x9xf32>
    %cst_226 = arith.constant 0.000000e+00 : f32
    %413 = vector.broadcast %cst_226 : f32 to vector<16x9xf32>
    %414 = arith.subf %413, %412 : vector<16x9xf32>
    %415 = math.exp %414 : vector<16x9xf32>
    %416 = math.log1p %415 : vector<16x9xf32>
    %417 = arith.addf %406, %416 : vector<16x9xf32>
    %418 = arith.select %409, %411, %417 : vector<16x9xi1>, vector<16x9xf32>
    %419 = vector.broadcast %0 : vector<1x9xf32> to vector<16x9xf32>
    %420 = arith.subf %419, %418 : vector<16x9xf32>
    %421 = vector.broadcast %1 : vector<1x9xf32> to vector<16x9xf32>
    %422 = arith.subf %420, %421 : vector<16x9xf32>
    %cst_227 = arith.constant 0.000000e+00 : f32
    %423 = vector.broadcast %cst_227 : f32 to vector<16x9xf32>
    %424 = arith.maximumf %422, %423 : vector<16x9xf32>
    %425 = vector.broadcast %cst_227 : f32 to vector<16x9xf32>
    %426 = arith.subf %422, %425 : vector<16x9xf32>
    %427 = arith.cmpf one, %426, %426 : vector<16x9xf32>
    %428 = vector.broadcast %cst_227 : f32 to vector<16x9xf32>
    %429 = arith.addf %422, %428 : vector<16x9xf32>
    %430 = math.absf %426 : vector<16x9xf32>
    %cst_228 = arith.constant 0.000000e+00 : f32
    %431 = vector.broadcast %cst_228 : f32 to vector<16x9xf32>
    %432 = arith.subf %431, %430 : vector<16x9xf32>
    %433 = math.exp %432 : vector<16x9xf32>
    %434 = math.log1p %433 : vector<16x9xf32>
    %435 = arith.addf %424, %434 : vector<16x9xf32>
    %436 = arith.select %427, %429, %435 : vector<16x9xi1>, vector<16x9xf32>
    %437 = vector.broadcast %1 : vector<1x9xf32> to vector<16x9xf32>
    %438 = arith.addf %437, %436 : vector<16x9xf32>
    %c3_229 = arith.constant 3 : index
    %c0_230 = arith.constant 0 : index
    %c0_231 = arith.constant 0 : index
    %439 = vector.load %arg16[%c3_229, %c0_230, %c0_231] : memref<5x16x9xf32, #tpu.memory_space<vmem>>, vector<1x16x9xf32>
    %440 = vector.shape_cast %439 : vector<1x16x9xf32> to vector<16x9xf32>
    %441 = vector.shape_cast %395 : vector<16x9xf32> to vector<1x16x9xf32>
    tpu.vector_store %arg16[%c3_229, %c0_230, %c0_231], %441 {strides = array<i32>} : memref<5x16x9xf32, #tpu.memory_space<vmem>>, vector<1x16x9xf32>,
    %442 = math.exp %438 : vector<16x9xf32>
    %c3_232 = arith.constant 3 : index
    %c0_233 = arith.constant 0 : index
    %c0_234 = arith.constant 0 : index
    %443 = vector.load %arg17[%c3_232, %c0_233, %c0_234] : memref<5x16x9xf32, #tpu.memory_space<vmem>>, vector<1x16x9xf32>
    %444 = vector.shape_cast %443 : vector<1x16x9xf32> to vector<16x9xf32>
    %445 = vector.shape_cast %442 : vector<16x9xf32> to vector<1x16x9xf32>
    tpu.vector_store %arg17[%c3_232, %c0_233, %c0_234], %445 {strides = array<i32>} : memref<5x16x9xf32, #tpu.memory_space<vmem>>, vector<1x16x9xf32>,
    %c4 = arith.constant 4 : index
    %c0_235 = arith.constant 0 : index
    %c0_236 = arith.constant 0 : index
    %446 = vector.load %arg1[%c4, %c0_235, %c0_236] : memref<5x16x12xf32, #tpu.memory_space<vmem>>, vector<1x16x12xf32>
    %447 = vector.shape_cast %446 : vector<1x16x12xf32> to vector<16x12xf32>
    %c4_237 = arith.constant 4 : index
    %c0_238 = arith.constant 0 : index
    %c0_239 = arith.constant 0 : index
    %448 = vector.load %arg2[%c4_237, %c0_238, %c0_239] : memref<5x12x256xf32, #tpu.memory_space<vmem>>, vector<1x12x256xf32>
    %449 = vector.shape_cast %448 : vector<1x12x256xf32> to vector<12x256xf32>
    %cst_240 = arith.constant dense<0.000000e+00> : vector<16x256xf32>
    %450 = tpu.matmul %447, %449, %cst_240 {dimension_numbers = #tpu.dot_dimension_numbers<[1], [0], [0], [1], [0, 0, 1, 1], [], []>} : vector<16x12xf32>, vector<12x256xf32>, vector<16x256xf32> -> vector<16x256xf32>
    %c4_241 = arith.constant 4 : index
    %c0_242 = arith.constant 0 : index
    %c0_243 = arith.constant 0 : index
    %451 = vector.load %arg3[%c4_241, %c0_242, %c0_243] : memref<5x1x256xf32, #tpu.memory_space<vmem>>, vector<1x1x256xf32>
    %452 = vector.shape_cast %451 : vector<1x1x256xf32> to vector<1x256xf32>
    %453 = vector.broadcast %452 : vector<1x256xf32> to vector<16x256xf32>
    %454 = arith.addf %450, %453 : vector<16x256xf32>
    %455 = arith.negf %454 : vector<16x256xf32>
    %456 = math.exp %455 : vector<16x256xf32>
    %cst_244 = arith.constant 1.000000e+00 : f32
    %457 = vector.broadcast %cst_244 : f32 to vector<16x256xf32>
    %458 = arith.addf %457, %456 : vector<16x256xf32>
    %459 = arith.divf %457, %458 : vector<16x256xf32>
    %460 = arith.mulf %454, %459 : vector<16x256xf32>
    %c4_245 = arith.constant 4 : index
    %c0_246 = arith.constant 0 : index
    %c0_247 = arith.constant 0 : index
    %461 = vector.load %arg4[%c4_245, %c0_246, %c0_247] : memref<5x256x256xf32, #tpu.memory_space<vmem>>, vector<1x256x256xf32>
    %462 = vector.shape_cast %461 : vector<1x256x256xf32> to vector<256x256xf32>
    %cst_248 = arith.constant dense<0.000000e+00> : vector<16x256xf32>
    %463 = tpu.matmul %460, %462, %cst_248 {dimension_numbers = #tpu.dot_dimension_numbers<[1], [0], [0], [1], [0, 0, 1, 1], [], []>} : vector<16x256xf32>, vector<256x256xf32>, vector<16x256xf32> -> vector<16x256xf32>
    %c4_249 = arith.constant 4 : index
    %c0_250 = arith.constant 0 : index
    %c0_251 = arith.constant 0 : index
    %464 = vector.load %arg5[%c4_249, %c0_250, %c0_251] : memref<5x1x256xf32, #tpu.memory_space<vmem>>, vector<1x1x256xf32>
    %465 = vector.shape_cast %464 : vector<1x1x256xf32> to vector<1x256xf32>
    %466 = vector.broadcast %465 : vector<1x256xf32> to vector<16x256xf32>
    %467 = arith.addf %463, %466 : vector<16x256xf32>
    %468 = arith.negf %467 : vector<16x256xf32>
    %469 = math.exp %468 : vector<16x256xf32>
    %cst_252 = arith.constant 1.000000e+00 : f32
    %470 = vector.broadcast %cst_252 : f32 to vector<16x256xf32>
    %471 = arith.addf %470, %469 : vector<16x256xf32>
    %472 = arith.divf %470, %471 : vector<16x256xf32>
    %473 = arith.mulf %467, %472 : vector<16x256xf32>
    %c4_253 = arith.constant 4 : index
    %c0_254 = arith.constant 0 : index
    %c0_255 = arith.constant 0 : index
    %474 = vector.load %arg6[%c4_253, %c0_254, %c0_255] : memref<5x256x256xf32, #tpu.memory_space<vmem>>, vector<1x256x256xf32>
    %475 = vector.shape_cast %474 : vector<1x256x256xf32> to vector<256x256xf32>
    %cst_256 = arith.constant dense<0.000000e+00> : vector<16x256xf32>
    %476 = tpu.matmul %473, %475, %cst_256 {dimension_numbers = #tpu.dot_dimension_numbers<[1], [0], [0], [1], [0, 0, 1, 1], [], []>} : vector<16x256xf32>, vector<256x256xf32>, vector<16x256xf32> -> vector<16x256xf32>
    %c4_257 = arith.constant 4 : index
    %c0_258 = arith.constant 0 : index
    %c0_259 = arith.constant 0 : index
    %477 = vector.load %arg7[%c4_257, %c0_258, %c0_259] : memref<5x1x256xf32, #tpu.memory_space<vmem>>, vector<1x1x256xf32>
    %478 = vector.shape_cast %477 : vector<1x1x256xf32> to vector<1x256xf32>
    %479 = vector.broadcast %478 : vector<1x256xf32> to vector<16x256xf32>
    %480 = arith.addf %476, %479 : vector<16x256xf32>
    %481 = arith.negf %480 : vector<16x256xf32>
    %482 = math.exp %481 : vector<16x256xf32>
    %cst_260 = arith.constant 1.000000e+00 : f32
    %483 = vector.broadcast %cst_260 : f32 to vector<16x256xf32>
    %484 = arith.addf %483, %482 : vector<16x256xf32>
    %485 = arith.divf %483, %484 : vector<16x256xf32>
    %486 = arith.mulf %480, %485 : vector<16x256xf32>
    %c4_261 = arith.constant 4 : index
    %c0_262 = arith.constant 0 : index
    %c0_263 = arith.constant 0 : index
    %487 = vector.load %arg8[%c4_261, %c0_262, %c0_263] : memref<5x256x256xf32, #tpu.memory_space<vmem>>, vector<1x256x256xf32>
    %488 = vector.shape_cast %487 : vector<1x256x256xf32> to vector<256x256xf32>
    %cst_264 = arith.constant dense<0.000000e+00> : vector<16x256xf32>
    %489 = tpu.matmul %486, %488, %cst_264 {dimension_numbers = #tpu.dot_dimension_numbers<[1], [0], [0], [1], [0, 0, 1, 1], [], []>} : vector<16x256xf32>, vector<256x256xf32>, vector<16x256xf32> -> vector<16x256xf32>
    %c4_265 = arith.constant 4 : index
    %c0_266 = arith.constant 0 : index
    %c0_267 = arith.constant 0 : index
    %490 = vector.load %arg9[%c4_265, %c0_266, %c0_267] : memref<5x1x256xf32, #tpu.memory_space<vmem>>, vector<1x1x256xf32>
    %491 = vector.shape_cast %490 : vector<1x1x256xf32> to vector<1x256xf32>
    %492 = vector.broadcast %491 : vector<1x256xf32> to vector<16x256xf32>
    %493 = arith.addf %489, %492 : vector<16x256xf32>
    %494 = arith.negf %493 : vector<16x256xf32>
    %495 = math.exp %494 : vector<16x256xf32>
    %cst_268 = arith.constant 1.000000e+00 : f32
    %496 = vector.broadcast %cst_268 : f32 to vector<16x256xf32>
    %497 = arith.addf %496, %495 : vector<16x256xf32>
    %498 = arith.divf %496, %497 : vector<16x256xf32>
    %499 = arith.mulf %493, %498 : vector<16x256xf32>
    %c4_269 = arith.constant 4 : index
    %c0_270 = arith.constant 0 : index
    %c0_271 = arith.constant 0 : index
    %500 = vector.load %arg10[%c4_269, %c0_270, %c0_271] : memref<5x256x9xf32, #tpu.memory_space<vmem>>, vector<1x256x9xf32>
    %501 = vector.shape_cast %500 : vector<1x256x9xf32> to vector<256x9xf32>
    %cst_272 = arith.constant dense<0.000000e+00> : vector<16x9xf32>
    %502 = tpu.matmul %499, %501, %cst_272 {dimension_numbers = #tpu.dot_dimension_numbers<[1], [0], [0], [1], [0, 0, 1, 1], [], []>} : vector<16x256xf32>, vector<256x9xf32>, vector<16x9xf32> -> vector<16x9xf32>
    %c4_273 = arith.constant 4 : index
    %c0_274 = arith.constant 0 : index
    %c0_275 = arith.constant 0 : index
    %503 = vector.load %arg11[%c4_273, %c0_274, %c0_275] : memref<5x1x9xf32, #tpu.memory_space<vmem>>, vector<1x1x9xf32>
    %504 = vector.shape_cast %503 : vector<1x1x9xf32> to vector<1x9xf32>
    %505 = vector.broadcast %504 : vector<1x9xf32> to vector<16x9xf32>
    %506 = arith.addf %502, %505 : vector<16x9xf32>
    %c4_276 = arith.constant 4 : index
    %c0_277 = arith.constant 0 : index
    %c0_278 = arith.constant 0 : index
    %507 = vector.load %arg12[%c4_276, %c0_277, %c0_278] : memref<5x256x9xf32, #tpu.memory_space<vmem>>, vector<1x256x9xf32>
    %508 = vector.shape_cast %507 : vector<1x256x9xf32> to vector<256x9xf32>
    %cst_279 = arith.constant dense<0.000000e+00> : vector<16x9xf32>
    %509 = tpu.matmul %499, %508, %cst_279 {dimension_numbers = #tpu.dot_dimension_numbers<[1], [0], [0], [1], [0, 0, 1, 1], [], []>} : vector<16x256xf32>, vector<256x9xf32>, vector<16x9xf32> -> vector<16x9xf32>
    %c4_280 = arith.constant 4 : index
    %c0_281 = arith.constant 0 : index
    %c0_282 = arith.constant 0 : index
    %510 = vector.load %arg13[%c4_280, %c0_281, %c0_282] : memref<5x1x9xf32, #tpu.memory_space<vmem>>, vector<1x1x9xf32>
    %511 = vector.shape_cast %510 : vector<1x1x9xf32> to vector<1x9xf32>
    %512 = vector.broadcast %511 : vector<1x9xf32> to vector<16x9xf32>
    %513 = arith.addf %509, %512 : vector<16x9xf32>
    %514 = vector.broadcast %0 : vector<1x9xf32> to vector<16x9xf32>
    %515 = arith.subf %514, %513 : vector<16x9xf32>
    %cst_283 = arith.constant 0.000000e+00 : f32
    %516 = vector.broadcast %cst_283 : f32 to vector<16x9xf32>
    %517 = arith.maximumf %515, %516 : vector<16x9xf32>
    %518 = vector.broadcast %cst_283 : f32 to vector<16x9xf32>
    %519 = arith.subf %515, %518 : vector<16x9xf32>
    %520 = arith.cmpf one, %519, %519 : vector<16x9xf32>
    %521 = vector.broadcast %cst_283 : f32 to vector<16x9xf32>
    %522 = arith.addf %515, %521 : vector<16x9xf32>
    %523 = math.absf %519 : vector<16x9xf32>
    %cst_284 = arith.constant 0.000000e+00 : f32
    %524 = vector.broadcast %cst_284 : f32 to vector<16x9xf32>
    %525 = arith.subf %524, %523 : vector<16x9xf32>
    %526 = math.exp %525 : vector<16x9xf32>
    %527 = math.log1p %526 : vector<16x9xf32>
    %528 = arith.addf %517, %527 : vector<16x9xf32>
    %529 = arith.select %520, %522, %528 : vector<16x9xi1>, vector<16x9xf32>
    %530 = vector.broadcast %0 : vector<1x9xf32> to vector<16x9xf32>
    %531 = arith.subf %530, %529 : vector<16x9xf32>
    %532 = vector.broadcast %1 : vector<1x9xf32> to vector<16x9xf32>
    %533 = arith.subf %531, %532 : vector<16x9xf32>
    %cst_285 = arith.constant 0.000000e+00 : f32
    %534 = vector.broadcast %cst_285 : f32 to vector<16x9xf32>
    %535 = arith.maximumf %533, %534 : vector<16x9xf32>
    %536 = vector.broadcast %cst_285 : f32 to vector<16x9xf32>
    %537 = arith.subf %533, %536 : vector<16x9xf32>
    %538 = arith.cmpf one, %537, %537 : vector<16x9xf32>
    %539 = vector.broadcast %cst_285 : f32 to vector<16x9xf32>
    %540 = arith.addf %533, %539 : vector<16x9xf32>
    %541 = math.absf %537 : vector<16x9xf32>
    %cst_286 = arith.constant 0.000000e+00 : f32
    %542 = vector.broadcast %cst_286 : f32 to vector<16x9xf32>
    %543 = arith.subf %542, %541 : vector<16x9xf32>
    %544 = math.exp %543 : vector<16x9xf32>
    %545 = math.log1p %544 : vector<16x9xf32>
    %546 = arith.addf %535, %545 : vector<16x9xf32>
    %547 = arith.select %538, %540, %546 : vector<16x9xi1>, vector<16x9xf32>
    %548 = vector.broadcast %1 : vector<1x9xf32> to vector<16x9xf32>
    %549 = arith.addf %548, %547 : vector<16x9xf32>
    %c4_287 = arith.constant 4 : index
    %c0_288 = arith.constant 0 : index
    %c0_289 = arith.constant 0 : index
    %550 = vector.load %arg16[%c4_287, %c0_288, %c0_289] : memref<5x16x9xf32, #tpu.memory_space<vmem>>, vector<1x16x9xf32>
    %551 = vector.shape_cast %550 : vector<1x16x9xf32> to vector<16x9xf32>
    %552 = vector.shape_cast %506 : vector<16x9xf32> to vector<1x16x9xf32>
    tpu.vector_store %arg16[%c4_287, %c0_288, %c0_289], %552 {strides = array<i32>} : memref<5x16x9xf32, #tpu.memory_space<vmem>>, vector<1x16x9xf32>,
    %553 = math.exp %549 : vector<16x9xf32>
    %c4_290 = arith.constant 4 : index
    %c0_291 = arith.constant 0 : index
    %c0_292 = arith.constant 0 : index
    %554 = vector.load %arg17[%c4_290, %c0_291, %c0_292] : memref<5x16x9xf32, #tpu.memory_space<vmem>>, vector<1x16x9xf32>
    %555 = vector.shape_cast %554 : vector<1x16x9xf32> to vector<16x9xf32>
    %556 = vector.shape_cast %553 : vector<16x9xf32> to vector<1x16x9xf32>
    tpu.vector_store %arg17[%c4_290, %c0_291, %c0_292], %556 {strides = array<i32>} : memref<5x16x9xf32, #tpu.memory_space<vmem>>, vector<1x16x9xf32>,
    return
  }
  func.func @transform_0(%arg0: i32) -> (i32, i32, i32) {
    %c0_i32 = arith.constant 0 : i32
    %c0_i32_0 = arith.constant 0 : i32
    %c0_i32_1 = arith.constant 0 : i32
    return %c0_i32, %arg0, %c0_i32_0 : i32, i32, i32
  }
  func.func @transform_1(%arg0: i32) -> (i32, i32, i32) {
    %c0_i32 = arith.constant 0 : i32
    %c0_i32_0 = arith.constant 0 : i32
    %c0_i32_1 = arith.constant 0 : i32
    %c0_i32_2 = arith.constant 0 : i32
    return %c0_i32, %c0_i32_0, %c0_i32_1 : i32, i32, i32
  }
  func.func @transform_2(%arg0: i32) -> (i32, i32, i32) {
    %c0_i32 = arith.constant 0 : i32
    %c0_i32_0 = arith.constant 0 : i32
    %c0_i32_1 = arith.constant 0 : i32
    %c0_i32_2 = arith.constant 0 : i32
    return %c0_i32, %c0_i32_0, %c0_i32_1 : i32, i32, i32
  }
  func.func @transform_3(%arg0: i32) -> (i32, i32, i32) {
    %c0_i32 = arith.constant 0 : i32
    %c0_i32_0 = arith.constant 0 : i32
    %c0_i32_1 = arith.constant 0 : i32
    %c0_i32_2 = arith.constant 0 : i32
    return %c0_i32, %c0_i32_0, %c0_i32_1 : i32, i32, i32
  }
  func.func @transform_4(%arg0: i32) -> (i32, i32, i32) {
    %c0_i32 = arith.constant 0 : i32
    %c0_i32_0 = arith.constant 0 : i32
    %c0_i32_1 = arith.constant 0 : i32
    %c0_i32_2 = arith.constant 0 : i32
    return %c0_i32, %c0_i32_0, %c0_i32_1 : i32, i32, i32
  }
  func.func @transform_5(%arg0: i32) -> (i32, i32, i32) {
    %c0_i32 = arith.constant 0 : i32
    %c0_i32_0 = arith.constant 0 : i32
    %c0_i32_1 = arith.constant 0 : i32
    %c0_i32_2 = arith.constant 0 : i32
    return %c0_i32, %c0_i32_0, %c0_i32_1 : i32, i32, i32
  }
  func.func @transform_6(%arg0: i32) -> (i32, i32, i32) {
    %c0_i32 = arith.constant 0 : i32
    %c0_i32_0 = arith.constant 0 : i32
    %c0_i32_1 = arith.constant 0 : i32
    %c0_i32_2 = arith.constant 0 : i32
    return %c0_i32, %c0_i32_0, %c0_i32_1 : i32, i32, i32
  }
  func.func @transform_7(%arg0: i32) -> (i32, i32, i32) {
    %c0_i32 = arith.constant 0 : i32
    %c0_i32_0 = arith.constant 0 : i32
    %c0_i32_1 = arith.constant 0 : i32
    %c0_i32_2 = arith.constant 0 : i32
    return %c0_i32, %c0_i32_0, %c0_i32_1 : i32, i32, i32
  }
  func.func @transform_8(%arg0: i32) -> (i32, i32, i32) {
    %c0_i32 = arith.constant 0 : i32
    %c0_i32_0 = arith.constant 0 : i32
    %c0_i32_1 = arith.constant 0 : i32
    %c0_i32_2 = arith.constant 0 : i32
    return %c0_i32, %c0_i32_0, %c0_i32_1 : i32, i32, i32
  }
  func.func @transform_9(%arg0: i32) -> (i32, i32, i32) {
    %c0_i32 = arith.constant 0 : i32
    %c0_i32_0 = arith.constant 0 : i32
    %c0_i32_1 = arith.constant 0 : i32
    %c0_i32_2 = arith.constant 0 : i32
    return %c0_i32, %c0_i32_0, %c0_i32_1 : i32, i32, i32
  }
  func.func @transform_10(%arg0: i32) -> (i32, i32, i32) {
    %c0_i32 = arith.constant 0 : i32
    %c0_i32_0 = arith.constant 0 : i32
    %c0_i32_1 = arith.constant 0 : i32
    %c0_i32_2 = arith.constant 0 : i32
    return %c0_i32, %c0_i32_0, %c0_i32_1 : i32, i32, i32
  }
  func.func @transform_11(%arg0: i32) -> (i32, i32, i32) {
    %c0_i32 = arith.constant 0 : i32
    %c0_i32_0 = arith.constant 0 : i32
    %c0_i32_1 = arith.constant 0 : i32
    %c0_i32_2 = arith.constant 0 : i32
    return %c0_i32, %c0_i32_0, %c0_i32_1 : i32, i32, i32
  }
  func.func @transform_12(%arg0: i32) -> (i32, i32, i32) {
    %c0_i32 = arith.constant 0 : i32
    %c0_i32_0 = arith.constant 0 : i32
    %c0_i32_1 = arith.constant 0 : i32
    %c0_i32_2 = arith.constant 0 : i32
    return %c0_i32, %c0_i32_0, %c0_i32_1 : i32, i32, i32
  }
  func.func @transform_13(%arg0: i32) -> (i32, i32) {
    %c0_i32 = arith.constant 0 : i32
    %c0_i32_0 = arith.constant 0 : i32
    %c0_i32_1 = arith.constant 0 : i32
    return %c0_i32, %c0_i32_0 : i32, i32
  }
  func.func @transform_14(%arg0: i32) -> (i32, i32) {
    %c0_i32 = arith.constant 0 : i32
    %c0_i32_0 = arith.constant 0 : i32
    %c0_i32_1 = arith.constant 0 : i32
    return %c0_i32, %c0_i32_0 : i32, i32
  }
  func.func @transform_15(%arg0: i32) -> (i32, i32, i32) {
    %c0_i32 = arith.constant 0 : i32
    %c0_i32_0 = arith.constant 0 : i32
    %c0_i32_1 = arith.constant 0 : i32
    return %c0_i32, %arg0, %c0_i32_0 : i32, i32, i32
  }
  func.func @transform_16(%arg0: i32) -> (i32, i32, i32) {
    %c0_i32 = arith.constant 0 : i32
    %c0_i32_0 = arith.constant 0 : i32
    %c0_i32_1 = arith.constant 0 : i32
    return %c0_i32, %arg0, %c0_i32_0 : i32, i32, i32
  }
}

</mosaic_0001>

<bundles_post_ra>
// kernel: ensemble_model_forward.1
= control target key start
LH: loop header
LB: loop body
LE: loop exit
PB: predicated region body
PF: predicated region fallthrough
CT: control target
= control target key end

     0   :  { %vm79_vm0 = vcmask 1043456   ;;  %vm8425_vm1 = vmmov 1   ;;  %v8426_v3 = vmov 0.0   ;;  %vm72_vm3 = vcmask 97280   ;;  %s12990_s1 = inlined_call_operand.vmem [shape: f32[5,12,256], index: 1, kind: input, shape index: {}]   ;;  %s12991_s0 = inlined_call_operand.vmem [shape: f32[5,16,12], index: 0, kind: input, shape index: {}]   ;;  %s12992_s3 = inlined_call_operand.vmem [shape: f32[5,256,256], index: 3, kind: input, shape index: {}]   ;;  %s12993_s5 = inlined_call_operand.vmem [shape: f32[5,256,256], index: 5, kind: input, shape index: {}]   ;;  %s12994_s2 = inlined_call_operand.vmem [shape: f32[5,1,256], index: 2, kind: input, shape index: {}]   ;;  %s12995_s7 = inlined_call_operand.vmem [shape: f32[5,256,256], index: 7, kind: input, shape index: {}]   ;;  %s12996_s4 = inlined_call_operand.vmem [shape: f32[5,1,256], index: 4, kind: input, shape index: {}]   ;;  %s12997_s6 = inlined_call_operand.vmem [shape: f32[5,1,256], index: 6, kind: input, shape index: {}]   ;;  %s12998_s9 = inlined_call_operand.vmem [shape: f32[5,256,9], index: 9, kind: input, shape index: {}]   ;;  %s12999_s11 = inlined_call_operand.vmem [shape: f32[5,256,9], index: 11, kind: input, shape index: {}]   ;;  %s13000_s8 = inlined_call_operand.vmem [shape: f32[5,1,256], index: 8, kind: input, shape index: {}]   ;;  %s13001_s10 = inlined_call_operand.vmem [shape: f32[5,1,9], index: 10, kind: input, shape index: {}]   ;;  %s13002_s15 = inlined_call_operand.vmem [shape: f32[5,16,9], index: 15, kind: output, shape index: {0}]   ;;  %s13003_s12 = inlined_call_operand.vmem [shape: f32[5,1,9], index: 12, kind: input, shape index: {}]   ;;  %s13004_s13 = inlined_call_operand.vmem [shape: f32[1,9], index: 13, kind: input, shape index: {}]   ;;  %s13005_s14 = inlined_call_operand.vmem [shape: f32[1,9], index: 14, kind: input, shape index: {}]   ;;  %s13006_s16 = inlined_call_operand.vmem [shape: f32[5,16,9], index: 16, kind: output, shape index: {1}]  }
   0x1   :  { %13008 = sst [smem:[#allocation2_spill]] %s12990_s1  ;;  %vm8518_vm2 = vmpackc.low %vm79_vm0, %vm8425_vm1  ;;  %150 = vmatprep.mubr.f32.mxu0 %v8426_v3  ;;  %v54_v8 = vld [vmem:[%s12991_s0] sm:$0xff]  ;;  %v192_v9 = vld [vmem:[%s12992_s3 + $0x8] sm:$0xff]  ;;  %vm1054_vm4 = vcmask 72704  }
   0x2   :  { %s13009_s23 = sld [smem:[#allocation2_spill]]  ;;  %v194_v10 = vld [vmem:[%s12992_s3 + $0x18] sm:$0xff]  ;;  %v191_v12 = vld [vmem:[%s12992_s3] sm:$0xff]  ;;  %v193_v13 = vld [vmem:[%s12992_s3 + $0x10] sm:$0xff] }
   0x3   :  { %v6693_v11 = vpack.c.bf16 %v194_v10, %v192_v9  ;;  %v196_v14 = vld [vmem:[%s12992_s3 + $0x28] sm:$0xff]  ;;  %v6695_v15 = vpack.c.bf16 %v193_v13, %v191_v12  ;;  %v198_v16 = vld [vmem:[%s12992_s3 + $0x38] sm:$0xff]  ;;  %v195_v17 = vld [vmem:[%s12992_s3 + $0x20] sm:$0xff] }
   0x4   :  { %v197_v18 = vld [vmem:[%s12992_s3 + $0x30] sm:$0xff]  ;;  %v6697_v19 = vpack.c.bf16 %v198_v16, %v196_v14  ;;  %v200_v20 = vld [vmem:[%s12992_s3 + $0x48] sm:$0xff]  ;;  %v202_v21 = vld [vmem:[%s12992_s3 + $0x58] sm:$0xff] }
   0x5   :  { %6694 = vmatprep.subr.bf16.mxu1 %v6693_v11  ;;  %v6699_v22 = vpack.c.bf16 %v197_v18, %v195_v17  ;;  %v6701_v23 = vpack.c.bf16 %v202_v21, %v200_v20  ;;  %v199_v24 = vld [vmem:[%s12992_s3 + $0x40] sm:$0xff]  ;;  %v201_v25 = vld [vmem:[%s12992_s3 + $0x50] sm:$0xff]  ;;  %v55_v26 = vld [vmem:[%s12991_s0 + $0x8] sm:$0xff] }
   0x6   :  { %6696 = vmatpush1.bf16.msra.mxu1 %v6695_v15  ;;  %v204_v27 = vld [vmem:[%s12992_s3 + $0x68] sm:$0xff]  ;;  %v206_v28 = vld [vmem:[%s12992_s3 + $0x78] sm:$0xff]  ;;  %v6703_v29 = vpack.c.bf16 %v201_v25, %v199_v24  ;;  %v203_v31 = vld [vmem:[%s12992_s3 + $0x60] sm:$0xff] }
   0x7   :  { %6698 = vmatprep.subr.bf16.mxu1 %v6697_v19  ;;  %v6705_v30 = vpack.c.bf16 %v206_v28, %v204_v27  ;;  %v205_v32 = vld [vmem:[%s12992_s3 + $0x70] sm:$0xff]  ;;  %v208_v33 = vld [vmem:[%s12992_s3 + $0x88] sm:$0xff]  ;;  %v210_v34 = vld [vmem:[%s12992_s3 + $0x98] sm:$0xff] }
   0x8   :  { %v57_v0 = vld [vmem:[%s13009_s23 + $0x8] sm:$0xff]  ;;  %v59_v1 = vld [vmem:[%s13009_s23 + $0x18] sm:$0xf]  ;;  %v56_v5 = vld [vmem:[%s13009_s23] sm:$0xff]  ;;  %v6707_v35 = vpack.c.bf16 %v205_v32, %v203_v31  ;;  %v6709_v36 = vpack.c.bf16 %v210_v34, %v208_v33 }
   0x9   :  { %v6687_v4 = vpack.c.bf16 %v59_v1, %v57_v0  ;;  %v58_v6 = vld [vmem:[%s13009_s23 + $0x10] sm:$0xf]  ;;  %v207_v37 = vld [vmem:[%s12992_s3 + $0x80] sm:$0xff]  ;;  %v212_v39 = vld [vmem:[%s12992_s3 + $0xa8] sm:$0xff] }
   0xa   :  { %v6690_v7 = vpack.c.bf16 %v58_v6, %v56_v5  ;;  %6700 = vmatpush1.bf16.msra.mxu1 %v6699_v22  ;;  %v209_v38 = vld [vmem:[%s12992_s3 + $0x90] sm:$0xff]  ;;  %v214_v40 = vld [vmem:[%s12992_s3 + $0xb8] sm:$0xff]  ;;  %v211_v43 = vld [vmem:[%s12992_s3 + $0xa0] sm:$0xff] }
   0xb   :  { %6689 = vmatprep.subr.msk.bf16.mxu0 %vm8518_vm2, %v6687_v4  ;;  %6702 = vmatprep.subr.bf16.mxu1 %v6701_v23  ;;  %v6711_v41 = vpack.c.bf16 %v209_v38, %v207_v37  ;;  %v6713_v42 = vpack.c.bf16 %v214_v40, %v212_v39  ;;  %v213_v44 = vld [vmem:[%s12992_s3 + $0xb0] sm:$0xff]  ;;  %v216_v45 = vld [vmem:[%s12992_s3 + $0xc8] sm:$0xff]  ;;  %v218_v46 = vld [vmem:[%s12992_s3 + $0xd8] sm:$0xff] }
   0xc   :  { %6692 = vmatpush1.bf16.msk.msra.mxu0 %vm8518_vm2, %v6690_v7  ;;  %v6715_v47 = vpack.c.bf16 %v213_v44, %v211_v43  ;;  %v6717_v48 = vpack.c.bf16 %v218_v46, %v216_v45  ;;  %v215_v49 = vld [vmem:[%s12992_s3 + $0xc0] sm:$0xff]  ;;  %v217_v50 = vld [vmem:[%s12992_s3 + $0xd0] sm:$0xff]  ;;  %v220_v51 = vld [vmem:[%s12992_s3 + $0xe8] sm:$0xff] }
   0xd   :  { %v222_v52 = vld [vmem:[%s12992_s3 + $0xf8] sm:$0xff]  ;;  %v6719_v53 = vpack.c.bf16 %v217_v50, %v215_v49  ;;  %v219_v55 = vld [vmem:[%s12992_s3 + $0xe0] sm:$0xff]  ;;  %v221_v56 = vld [vmem:[%s12992_s3 + $0xf0] sm:$0xff] }
   0xe   :  { %6704 = vmatpush1.bf16.msra.mxu1 %v6703_v29  ;;  %v6721_v54 = vpack.c.bf16 %v222_v52, %v220_v51  ;;  %v6723_v57 = vpack.c.bf16 %v221_v56, %v219_v55  ;;  %v224_v58 = vld [vmem:[%s12992_s3 + $0x108] sm:$0xff]  ;;  %v226_v59 = vld [vmem:[%s12992_s3 + $0x118] sm:$0xff]  ;;  %v223_v61 = vld [vmem:[%s12992_s3 + $0x100] sm:$0xff] }
   0xf   :  { %5109 = vmatmul.mubr.msk.f32.vlgmr.msra.gmra.mrb[0].mxu0 %vm72_vm3, %v54_v8  ;;  %6706 = vmatprep.subr.bf16.mxu1 %v6705_v30  ;;  %v6725_v60 = vpack.c.bf16 %v226_v59, %v224_v58  ;;  %v225_v62 = vld [vmem:[%s12992_s3 + $0x110] sm:$0xff]  ;;  %v228_v0 = vld [vmem:[%s12992_s3 + $0x128] sm:$0xff]  ;;  %v230_v1 = vld [vmem:[%s12992_s3 + $0x138] sm:$0xff] }
  0x10   :  { %156 = vmatprep.mubr.f32.mxu0 %v8426_v3  ;;  %v6727_v63 = vpack.c.bf16 %v225_v62, %v223_v61  ;;  %v6729_v4 = vpack.c.bf16 %v230_v1, %v228_v0  ;;  %v227_v5 = vld [vmem:[%s12992_s3 + $0x120] sm:$0xff]  ;;  %v229_v6 = vld [vmem:[%s12992_s3 + $0x130] sm:$0xff]  ;;  %v232_v8 = vld [vmem:[%s12992_s3 + $0x148] sm:$0xff] }
  0x11   :  { %v6731_v7 = vpack.c.bf16 %v229_v6, %v227_v5  ;;  %v234_v9 = vld [vmem:[%s12992_s3 + $0x158] sm:$0xff]  ;;  %v231_v11 = vld [vmem:[%s12992_s3 + $0x140] sm:$0xff]  ;;  %v233_v12 = vld [vmem:[%s12992_s3 + $0x150] sm:$0xff] }
  0x12   :  { %6708 = vmatpush1.bf16.msra.mxu1 %v6707_v35  ;;  %v6733_v10 = vpack.c.bf16 %v234_v9, %v232_v8  ;;  %v6735_v13 = vpack.c.bf16 %v233_v12, %v231_v11  ;;  %v236_v14 = vld [vmem:[%s12992_s3 + $0x168] sm:$0xff]  ;;  %v238_v15 = vld [vmem:[%s12992_s3 + $0x178] sm:$0xff]  ;;  %v235_v17 = vld [vmem:[%s12992_s3 + $0x160] sm:$0xff] }
  0x13   :  { %5110 = vmatmul.mubr.msk.f32.gmra.mrb[2].mxu0 %vm72_vm3, %v55_v26  ;;  %6710 = vmatprep.subr.bf16.mxu1 %v6709_v36  ;;  %v6737_v16 = vpack.c.bf16 %v238_v15, %v236_v14  ;;  %v237_v18 = vld [vmem:[%s12992_s3 + $0x170] sm:$0xff]  ;;  %v240_v20 = vld [vmem:[%s12992_s3 + $0x188] sm:$0xff]  ;;  %v242_v21 = vld [vmem:[%s12992_s3 + $0x198] sm:$0xff] }
  0x14   :  { %v6739_v19 = vpack.c.bf16 %v237_v18, %v235_v17  ;;  %v6741_v22 = vpack.c.bf16 %v242_v21, %v240_v20  ;;  %v239_v23 = vld [vmem:[%s12992_s3 + $0x180] sm:$0xff]  ;;  %v241_v24 = vld [vmem:[%s12992_s3 + $0x190] sm:$0xff]  ;;  %v244_v26 = vld [vmem:[%s12992_s3 + $0x1a8] sm:$0xff] }
  0x15   :  { %v6743_v25 = vpack.c.bf16 %v241_v24, %v239_v23  ;;  %v246_v27 = vld [vmem:[%s12992_s3 + $0x1b8] sm:$0xff]  ;;  %v243_v29 = vld [vmem:[%s12992_s3 + $0x1a0] sm:$0xff]  ;;  %v245_v30 = vld [vmem:[%s12992_s3 + $0x1b0] sm:$0xff] }
  0x16   :  { %6712 = vmatpush1.bf16.msra.mxu1 %v6711_v41  ;;  %v6745_v28 = vpack.c.bf16 %v246_v27, %v244_v26  ;;  %v6747_v31 = vpack.c.bf16 %v245_v30, %v243_v29  ;;  %v248_v32 = vld [vmem:[%s12992_s3 + $0x1c8] sm:$0xff]  ;;  %v250_v33 = vld [vmem:[%s12992_s3 + $0x1d8] sm:$0xff]  ;;  %v247_v35 = vld [vmem:[%s12992_s3 + $0x1c0] sm:$0xff]  ;;  %v62_v30 = vlaneseq }
  0x17   :  { %6714 = vmatprep.subr.bf16.mxu1 %v6713_v42  ;;  %v6749_v34 = vpack.c.bf16 %v250_v33, %v248_v32  ;;  %v249_v36 = vld [vmem:[%s12992_s3 + $0x1d0] sm:$0xff]  ;;  %v252_v38 = vld [vmem:[%s12992_s3 + $0x1e8] sm:$0xff]  ;;  %v254_v39 = vld [vmem:[%s12992_s3 + $0x1f8] sm:$0xff] }
  0x18   :  { %v6751_v37 = vpack.c.bf16 %v249_v36, %v247_v35  ;;  %v6753_v40 = vpack.c.bf16 %v254_v39, %v252_v38  ;;  %v251_v41 = vld [vmem:[%s12992_s3 + $0x1e0] sm:$0xff]  ;;  %v253_v42 = vld [vmem:[%s12992_s3 + $0x1f0] sm:$0xff]  ;;  %v373_v44 = vld [vmem:[%s12993_s5 + $0x8] sm:$0xff] }
  0x19   :  { %v6755_v43 = vpack.c.bf16 %v253_v42, %v251_v41  ;;  %v375_v45 = vld [vmem:[%s12993_s5 + $0x18] sm:$0xff]  ;;  %v372_v46 = vld [vmem:[%s12993_s5] sm:$0xff]  ;;  %v377_v49 = vld [vmem:[%s12993_s5 + $0x28] sm:$0xff] }
  0x1a   :  { %6716 = vmatpush1.bf16.msra.mxu1 %v6715_v47  ;;  %v6757_v47 = vpack.c.bf16 %v375_v45, %v373_v44  ;;  %v379_v50 = vld [vmem:[%s12993_s5 + $0x38] sm:$0xff]  ;;  %v381_v55 = vld [vmem:[%s12993_s5 + $0x48] sm:$0xff]  ;;  %v380_v59 = vld [vmem:[%s12993_s5 + $0x40] sm:$0xff] }
  0x1b   :  { %6718 = vmatprep.subr.bf16.mxu1 %v6717_v48  ;;  %v374_v48 = vld [vmem:[%s12993_s5 + $0x10] sm:$0xff]  ;;  %v6761_v52 = vpack.c.bf16 %v379_v50, %v377_v49  ;;  %v383_v56 = vld [vmem:[%s12993_s5 + $0x58] sm:$0xff]  ;;  %v385_v61 = vld [vmem:[%s12993_s5 + $0x68] sm:$0xff] }
  0x1c   :  { %v6759_v51 = vpack.c.bf16 %v374_v48, %v372_v46  ;;  %6758 = vmatprep.subr.bf16.mxu0 %v6757_v47  ;;  %v6765_v58 = vpack.c.bf16 %v383_v56, %v381_v55  ;;  %v387_v62 = vld [vmem:[%s12993_s5 + $0x78] sm:$0xff]  ;;  %v384_v1 = vld [vmem:[%s12993_s5 + $0x60] sm:$0xff]  ;;  %v389_v5 = vld [vmem:[%s12993_s5 + $0x88] sm:$0xff] }
  0x1d   :  { %v6769_v0 = vpack.c.bf16 %v387_v62, %v385_v61  ;;  %v391_v6 = vld [vmem:[%s12993_s5 + $0x98] sm:$0xff]  ;;  %v388_v9 = vld [vmem:[%s12993_s5 + $0x80] sm:$0xff]  ;;  %v393_v11 = vld [vmem:[%s12993_s5 + $0xa8] sm:$0xff] }
  0x1e   :  { %6720 = vmatpush1.bf16.msra.mxu1 %v6719_v53  ;;  %v376_v53 = vld [vmem:[%s12993_s5 + $0x20] sm:$0xff]  ;;  %6760 = vmatpush1.bf16.msra.mxu0 %v6759_v51  ;;  %v6773_v8 = vpack.c.bf16 %v391_v6, %v389_v5  ;;  %v395_v12 = vld [vmem:[%s12993_s5 + $0xb8] sm:$0xff]  ;;  %v397_v17 = vld [vmem:[%s12993_s5 + $0xc8] sm:$0xff] }
  0x1f   :  { %6722 = vmatprep.subr.bf16.mxu1 %v6721_v54  ;;  %v378_v54 = vld [vmem:[%s12993_s5 + $0x30] sm:$0xff]  ;;  %6762 = vmatprep.subr.bf16.mxu0 %v6761_v52  ;;  %v6777_v14 = vpack.c.bf16 %v395_v12, %v393_v11  ;;  %v392_v15 = vld [vmem:[%s12993_s5 + $0xa0] sm:$0xff]  ;;  %v399_v18 = vld [vmem:[%s12993_s5 + $0xd8] sm:$0xff] }
  0x20   :  { %v6781_v20 = vpack.c.bf16 %v399_v18, %v397_v17  ;;  %v396_v21 = vld [vmem:[%s12993_s5 + $0xc0] sm:$0xff]  ;;  %v401_v23 = vld [vmem:[%s12993_s5 + $0xe8] sm:$0xff]  ;;  %v403_v24 = vld [vmem:[%s12993_s5 + $0xf8] sm:$0xff] }
  0x21   :  { %v6785_v26 = vpack.c.bf16 %v403_v24, %v401_v23  ;;  %v400_v27 = vld [vmem:[%s12993_s5 + $0xe0] sm:$0xff] }
  0x22   :  { %6724 = vmatpush1.bf16.msra.mxu1 %v6723_v57  ;;  %v6763_v57 = vpack.c.bf16 %v378_v54, %v376_v53  ;;  %v60_v33 = vld [vmem:[%s12994_s2] sm:$0x3] }
  0x23   :  { %6726 = vmatprep.subr.bf16.mxu1 %v6725_v60  ;;  %v382_v60 = vld [vmem:[%s12993_s5 + $0x50] sm:$0xff]  ;;  %v404_v6 = vld [vmem:[%s12993_s5 + $0x100] sm:$0xff] }
  0x24   :  { %6764 = vmatpush1.bf16.msra.mxu0 %v6763_v57  ;;  %v408_v12 = vld [vmem:[%s12993_s5 + $0x120] sm:$0xff] }
  0x25   :  { %6766 = vmatprep.subr.bf16.mxu0 %v6765_v58  ;;  %v412_v18 = vld [vmem:[%s12993_s5 + $0x140] sm:$0xff] }
  0x26   :  { %6728 = vmatpush1.bf16.msra.mxu1 %v6727_v63  ;;  %v6767_v63 = vpack.c.bf16 %v382_v60, %v380_v59  ;;  %v416_v24 = vld [vmem:[%s12993_s5 + $0x160] sm:$0xff] }
  0x27   :  { %6730 = vmatprep.subr.bf16.mxu1 %v6729_v4  ;;  %v386_v4 = vld [vmem:[%s12993_s5 + $0x70] sm:$0xff]  ;;  %v5957_v2 = vld [vmem:[%s12998_s9 + $0x380] sm:$0xff] }
  0x28   :  { %6768 = vmatpush1.bf16.msra.mxu0 %v6767_v63 }
  0x29   :  { %6770 = vmatprep.subr.bf16.mxu0 %v6769_v0 }
  0x2a   :  { %6732 = vmatpush1.bf16.msra.mxu1 %v6731_v7  ;;  %v6771_v7 = vpack.c.bf16 %v386_v4, %v384_v1  ;;  %v405_v1 = vld [vmem:[%s12993_s5 + $0x108] sm:$0xff]  ;;  %v407_v4 = vld [vmem:[%s12993_s5 + $0x118] sm:$0xff] }
  0x2b   :  { %6734 = vmatprep.subr.bf16.mxu1 %v6733_v10  ;;  %v390_v10 = vld [vmem:[%s12993_s5 + $0x90] sm:$0xff]  ;;  %v6789_v5 = vpack.c.bf16 %v407_v4, %v405_v1  ;;  %v564_v1 = vld [vmem:[%s12995_s7 + $0x58] sm:$0xff] }
  0x2c   :  { %6772 = vmatpush1.bf16.msra.mxu0 %v6771_v7  ;;  %v406_v7 = vld [vmem:[%s12993_s5 + $0x110] sm:$0xff] }
  0x2d   :  { %6774 = vmatprep.subr.bf16.mxu0 %v6773_v8  ;;  %v6791_v8 = vpack.c.bf16 %v406_v7, %v404_v6  ;;  %v561_v6 = vld [vmem:[%s12995_s7 + $0x40] sm:$0xff]  ;;  %v563_v7 = vld [vmem:[%s12995_s7 + $0x50] sm:$0xff] }
  0x2e   :  { %6736 = vmatpush1.bf16.msra.mxu1 %v6735_v13  ;;  %v6775_v13 = vpack.c.bf16 %v390_v10, %v388_v9  ;;  %v409_v9 = vld [vmem:[%s12993_s5 + $0x128] sm:$0xff]  ;;  %v411_v10 = vld [vmem:[%s12993_s5 + $0x138] sm:$0xff] }
  0x2f   :  { %6738 = vmatprep.subr.bf16.mxu1 %v6737_v16  ;;  %v394_v16 = vld [vmem:[%s12993_s5 + $0xb0] sm:$0xff]  ;;  %v6793_v11 = vpack.c.bf16 %v411_v10, %v409_v9  ;;  %v568_v9 = vld [vmem:[%s12995_s7 + $0x78] sm:$0xff]  ;;  %v6831_v10 = vpack.c.bf16 %v563_v7, %v561_v6 }
  0x30   :  { %6776 = vmatpush1.bf16.msra.mxu0 %v6775_v13  ;;  %v410_v13 = vld [vmem:[%s12993_s5 + $0x130] sm:$0xff] }
  0x31   :  { %6778 = vmatprep.subr.bf16.mxu0 %v6777_v14  ;;  %v6795_v14 = vpack.c.bf16 %v410_v13, %v408_v12  ;;  %v565_v12 = vld [vmem:[%s12995_s7 + $0x60] sm:$0xff]  ;;  %v567_v13 = vld [vmem:[%s12995_s7 + $0x70] sm:$0xff] }
  0x32   :  { %6740 = vmatpush1.bf16.msra.mxu1 %v6739_v19  ;;  %v6779_v19 = vpack.c.bf16 %v394_v16, %v392_v15  ;;  %v413_v15 = vld [vmem:[%s12993_s5 + $0x148] sm:$0xff]  ;;  %v415_v16 = vld [vmem:[%s12993_s5 + $0x158] sm:$0xff] }
  0x33   :  { %6742 = vmatprep.subr.bf16.mxu1 %v6741_v22  ;;  %v398_v22 = vld [vmem:[%s12993_s5 + $0xd0] sm:$0xff]  ;;  %v6797_v17 = vpack.c.bf16 %v415_v16, %v413_v15  ;;  %v572_v15 = vld [vmem:[%s12995_s7 + $0x98] sm:$0xff]  ;;  %v6835_v16 = vpack.c.bf16 %v567_v13, %v565_v12  ;;  %v585_v13 = vld [vmem:[%s12995_s7 + $0x100] sm:$0xff] }
  0x34   :  { %6780 = vmatpush1.bf16.msra.mxu0 %v6779_v19  ;;  %v414_v19 = vld [vmem:[%s12993_s5 + $0x150] sm:$0xff] }
  0x35   :  { %6782 = vmatprep.subr.bf16.mxu0 %v6781_v20  ;;  %v6799_v20 = vpack.c.bf16 %v414_v19, %v412_v18  ;;  %v569_v18 = vld [vmem:[%s12995_s7 + $0x80] sm:$0xff]  ;;  %v571_v19 = vld [vmem:[%s12995_s7 + $0x90] sm:$0xff] }
  0x36   :  { %6744 = vmatpush1.bf16.msra.mxu1 %v6743_v25  ;;  %v6783_v25 = vpack.c.bf16 %v398_v22, %v396_v21  ;;  %v417_v21 = vld [vmem:[%s12993_s5 + $0x168] sm:$0xff]  ;;  %v419_v22 = vld [vmem:[%s12993_s5 + $0x178] sm:$0xff] }
  0x37   :  { %6746 = vmatprep.subr.bf16.mxu1 %v6745_v28  ;;  %v402_v28 = vld [vmem:[%s12993_s5 + $0xf0] sm:$0xff]  ;;  %v6801_v23 = vpack.c.bf16 %v419_v22, %v417_v21  ;;  %v576_v21 = vld [vmem:[%s12995_s7 + $0xb8] sm:$0xff]  ;;  %v6839_v22 = vpack.c.bf16 %v571_v19, %v569_v18  ;;  %v589_v19 = vld [vmem:[%s12995_s7 + $0x120] sm:$0xff] }
  0x38   :  { %6784 = vmatpush1.bf16.msra.mxu0 %v6783_v25  ;;  %v6787_v29 = vpack.c.bf16 %v402_v28, %v400_v27  ;;  %v418_v25 = vld [vmem:[%s12993_s5 + $0x170] sm:$0xff]  ;;  %v421_v27 = vld [vmem:[%s12993_s5 + $0x188] sm:$0xff]  ;;  %v423_v28 = vld [vmem:[%s12993_s5 + $0x198] sm:$0xff] }
  0x39   :  { %6786 = vmatprep.subr.bf16.mxu0 %v6785_v26  ;;  %v6803_v26 = vpack.c.bf16 %v418_v25, %v416_v24  ;;  %v573_v24 = vld [vmem:[%s12995_s7 + $0xa0] sm:$0xff]  ;;  %v575_v25 = vld [vmem:[%s12995_s7 + $0xb0] sm:$0xff] }
  0x3a   :  { %6748 = vmatpush1.bf16.msra.mxu1 %v6747_v31  ;;  %v63_v31 = vshrl.u32 %v62_v30, 7  ;;  %v420_v30 = vld [vmem:[%s12993_s5 + $0x180] sm:$0xff] }
  0x3b   :  { %6750 = vmatprep.subr.bf16.mxu1 %v6749_v34 }
  0x3c   :  { %6788 = vmatpush1.bf16.msra.mxu0 %v6787_v29  ;;  %v8830_v32 = vsub.s32 0, %v63_v31  ;;  %v8835_v34 = vsub.s32 1, %v63_v31  ;;  %v6805_v29 = vpack.c.bf16 %v423_v28, %v421_v27  ;;  %v422_v31 = vld [vmem:[%s12993_s5 + $0x190] sm:$0xff]  ;;  %v580_v27 = vld [vmem:[%s12995_s7 + $0xd8] sm:$0xff]  ;;  %v6843_v28 = vpack.c.bf16 %v575_v25, %v573_v24  ;;  %v593_v25 = vld [vmem:[%s12995_s7 + $0x140] sm:$0xff] }
  0x3d   :  { %6790 = vmatprep.subr.bf16.mxu0 %v6789_v5 }
  0x3e   :  { %6752 = vmatpush1.bf16.msra.mxu1 %v6751_v37  ;;  %v65_v35 = vrot.slane %v60_v33, %v8830_v32  ;;  %v69_v36 = vrot.slane %v60_v33, %v8835_v34  ;;  %v6807_v33 = vpack.c.bf16 %v422_v31, %v420_v30  ;;  %v577_v30 = vld [vmem:[%s12995_s7 + $0xc0] sm:$0xff]  ;;  %v579_v31 = vld [vmem:[%s12995_s7 + $0xd0] sm:$0xff] }
  0x3f   :  { %6754 = vmatprep.subr.bf16.mxu1 %v6753_v40 }
  0x40   :  { %6792 = vmatpush1.bf16.msra.mxu0 %v6791_v8  ;;  %v566_v8 = vld [vmem:[%s12995_s7 + $0x68] sm:$0xff] }
  0x41   :  { %6794 = vmatprep.subr.bf16.mxu0 %v6793_v11  ;;  %v6833_v11 = vpack.c.bf16 %v568_v9, %v566_v8 }
  0x42   :  { %6756 = vmatpush1.bf16.msra.mxu1 %v6755_v43 }
  0x44   :  { %6796 = vmatpush1.bf16.msra.mxu0 %v6795_v14  ;;  %v570_v14 = vld [vmem:[%s12995_s7 + $0x88] sm:$0xff] }
  0x45   :  { %6798 = vmatprep.subr.bf16.mxu0 %v6797_v17  ;;  %v6837_v17 = vpack.c.bf16 %v572_v15, %v570_v14  ;;  %v587_v14 = vld [vmem:[%s12995_s7 + $0x110] sm:$0xff] }
  0x46   :  { %v6855_v15 = vpack.c.bf16 %v587_v14, %v585_v13 }
  0x48   :  { %6800 = vmatpush1.bf16.msra.mxu0 %v6799_v20  ;;  %v574_v20 = vld [vmem:[%s12995_s7 + $0xa8] sm:$0xff] }
  0x49   :  { %6802 = vmatprep.subr.bf16.mxu0 %v6801_v23  ;;  %v6841_v23 = vpack.c.bf16 %v576_v21, %v574_v20  ;;  %v591_v20 = vld [vmem:[%s12995_s7 + $0x130] sm:$0xff] }
  0x4a   :  { %v6859_v21 = vpack.c.bf16 %v591_v20, %v589_v19 }
  0x4c   :  { %6804 = vmatpush1.bf16.msra.mxu0 %v6803_v26  ;;  %v578_v26 = vld [vmem:[%s12995_s7 + $0xc8] sm:$0xff] }
  0x4d   :  { %6806 = vmatprep.subr.bf16.mxu0 %v6805_v29  ;;  %v6845_v29 = vpack.c.bf16 %v580_v27, %v578_v26  ;;  %v595_v26 = vld [vmem:[%s12995_s7 + $0x150] sm:$0xff] }
  0x4e   :  { %v6863_v27 = vpack.c.bf16 %v595_v26, %v593_v25  ;;  %v5135_v25 = vld [vmem:[%s13009_s23 + $0x30] sm:$0xf] }
  0x50   :  { %6808 = vmatpush1.bf16.msra.mxu0 %v6807_v33  ;;  %v582_v33 = vld [vmem:[%s12995_s7 + $0xe8] sm:$0xff] }
  0xe2   :  { %v152_v37 = vpop.f32.mrb[0].mxu0 }
  0xe3   :  { %v153_v38 = vadd.f32 %v152_v37, %v65_v35  ;;  %v154_v39 = vpop.f32.mrb[1].mxu0 }
  0xe4   :  { %v155_v40 = vadd.f32 %v154_v39, %v69_v36  ;;  %v426_v39 = vld [vmem:[%s12993_s5 + $0x1b0] sm:$0xff] }
  0xe5   :  { %v5111_v41 = vmul.f32 -1.442695, %v153_v38 }
  0xe6   :  { %v5112_v42 = vmul.f32 -1.442695, %v155_v40  ;;  %v158_v43 = vpop.f32.mrb[2].mxu0 }
  0xe7   :  { %7999 = vpow2.f32 %v5111_v41  ;;  %v159_v44 = vadd.f32 %v158_v43, %v65_v35  ;;  %v160_v45 = vpop.f32.mrb[3].mxu0  ;;  %v425_v35 = vld [vmem:[%s12993_s5 + $0x1a8] sm:$0xff] }
  0xe8   :  { %8001 = vpow2.f32 %v5112_v42  ;;  %v161_v46 = vadd.f32 %v160_v45, %v69_v36  ;;  %v427_v36 = vld [vmem:[%s12993_s5 + $0x1b8] sm:$0xff]  ;;  %v429_v41 = vld [vmem:[%s12993_s5 + $0x1c8] sm:$0xff]  ;;  %v430_v45 = vld [vmem:[%s12993_s5 + $0x1d0] sm:$0xff] }
  0xe9   :  { %v5113_v47 = vmul.f32 -1.442695, %v159_v44  ;;  %v6809_v37 = vpack.c.bf16 %v427_v36, %v425_v35  ;;  %v431_v42 = vld [vmem:[%s12993_s5 + $0x1d8] sm:$0xff]  ;;  %v6847_v36 = vpack.c.bf16 %v579_v31, %v577_v30  ;;  %v597_v31 = vld [vmem:[%s12995_s7 + $0x160] sm:$0xff] }
  0xea   :  { %v5114_v48 = vmul.f32 -1.442695, %v161_v46  ;;  %v6813_v43 = vpack.c.bf16 %v431_v42, %v429_v41  ;;  %v584_v35 = vld [vmem:[%s12995_s7 + $0xf8] sm:$0xff]  ;;  %v255_v41 = vld [vmem:[%s12996_s4] sm:$0x3] }
  0xeb   :  { %8003 = vpow2.f32 %v5113_v47  ;;  %6810 = vmatprep.subr.bf16.mxu0 %v6809_v37  ;;  %v433_v47 = vld [vmem:[%s12993_s5 + $0x1e8] sm:$0xff]  ;;  %v6849_v37 = vpack.c.bf16 %v584_v35, %v582_v33  ;;  %v260_v42 = vrot.slane %v255_v41, %v8830_v32  ;;  %v599_v33 = vld [vmem:[%s12995_s7 + $0x170] sm:$0xff] }
  0xec   :  { %8005 = vpow2.f32 %v5114_v48  ;;  %v435_v48 = vld [vmem:[%s12993_s5 + $0x1f8] sm:$0xff]  ;;  %v6867_v35 = vpack.c.bf16 %v599_v33, %v597_v31 }
  0xf1   :  { %v8000_v49 = vpop.eup %7999 }
  0xf2   :  { %v8002_v50 = vpop.eup %8001  ;;  %v175_v51 = vadd.f32 1.0, %v8000_v49  ;;  %v6817_v49 = vpack.c.bf16 %v435_v48, %v433_v47 }
  0xf3   :  { %v176_v52 = vadd.f32 1.0, %v8002_v50  ;;  %v432_v50 = vld [vmem:[%s12993_s5 + $0x1e0] sm:$0xff] }
  0xf4   :  { %8007 = vrcp.f32 %v175_v51  ;;  %v434_v51 = vld [vmem:[%s12993_s5 + $0x1f0] sm:$0xff] }
  0xf5   :  { %v8004_v53 = vpop.eup %8003  ;;  %8009 = vrcp.f32 %v176_v52  ;;  %v6819_v52 = vpack.c.bf16 %v434_v51, %v432_v50 }
  0xf6   :  { %v8006_v54 = vpop.eup %8005  ;;  %v177_v55 = vadd.f32 1.0, %v8004_v53  ;;  %v554_v53 = vld [vmem:[%s12995_s7 + $0x8] sm:$0xff] }
  0xf7   :  { %v178_v56 = vadd.f32 1.0, %v8006_v54  ;;  %v556_v54 = vld [vmem:[%s12995_s7 + $0x18] sm:$0xff] }
  0xf8   :  { %8011 = vrcp.f32 %v177_v55  ;;  %v553_v55 = vld [vmem:[%s12995_s7] sm:$0xff] }
  0xf9   :  { %8013 = vrcp.f32 %v178_v56  ;;  %v6821_v56 = vpack.c.bf16 %v556_v54, %v554_v53 }
  0xfb   :  { %6822 = vmatprep.subr.bf16.mxu1 %v6821_v56 }
  0xfe   :  { %v8008_v57 = vpop.eup %8007 }
  0xff   :  { %v8010_v58 = vpop.eup %8009  ;;  %v187_v60 = vmul.f32 %v8008_v57, %v153_v38  ;;  %v424_v38 = vld [vmem:[%s12993_s5 + $0x1a0] sm:$0xff]  ;;  %v555_v57 = vld [vmem:[%s12995_s7 + $0x10] sm:$0xff] }
 0x100   :  { %v188_v59 = vmul.f32 %v8010_v58, %v155_v40  ;;  %v6811_v40 = vpack.c.bf16 %v426_v39, %v424_v38  ;;  %v558_v58 = vld [vmem:[%s12995_s7 + $0x28] sm:$0xff]  ;;  %v581_v38 = vld [vmem:[%s12995_s7 + $0xe0] sm:$0xff]  ;;  %v583_v39 = vld [vmem:[%s12995_s7 + $0xf0] sm:$0xff] }
 0x102   :  { %v8012_v61 = vpop.eup %8011  ;;  %331 = vmatprep.mubr.f32.mxu1 %v188_v59  ;;  %6812 = vmatpush1.bf16.msra.mxu0 %v6811_v40  ;;  %v560_v59 = vld [vmem:[%s12995_s7 + $0x38] sm:$0xff]  ;;  %v6851_v40 = vpack.c.bf16 %v583_v39, %v581_v38  ;;  %v601_v39 = vld [vmem:[%s12995_s7 + $0x180] sm:$0xff] }
 0x103   :  { %v8014_v62 = vpop.eup %8013  ;;  %332 = vmatmul.mubr.f32.vlgmr.msra.gmra.mrb[0].mxu1 %v187_v60  ;;  %v189_v0 = vmul.f32 %v8012_v61, %v159_v44  ;;  %v428_v44 = vld [vmem:[%s12993_s5 + $0x1c0] sm:$0xff]  ;;  %6814 = vmatprep.subr.bf16.mxu0 %v6813_v43  ;;  %v6823_v60 = vpack.c.bf16 %v555_v57, %v553_v55  ;;  %v6825_v61 = vpack.c.bf16 %v560_v59, %v558_v58 }
 0x104   :  { %v190_v63 = vmul.f32 %v8014_v62, %v161_v46  ;;  %v6815_v46 = vpack.c.bf16 %v430_v45, %v428_v44  ;;  %v557_v62 = vld [vmem:[%s12995_s7 + $0x20] sm:$0xff]  ;;  %v264_v43 = vrot.slane %v255_v41, %v8835_v34 }
 0x105   :  { %6824 = vmatpush1.bf16.msra.mxu1 %v6823_v60 }
 0x106   :  { %337 = vmatprep.mubr.f32.mxu1 %v190_v63  ;;  %6816 = vmatpush1.bf16.msra.mxu0 %v6815_v46  ;;  %v559_v63 = vld [vmem:[%s12995_s7 + $0x30] sm:$0xff] }
 0x107   :  { %338 = vmatmul.mubr.f32.gmra.mrb[2].mxu1 %v189_v0  ;;  %6818 = vmatprep.subr.bf16.mxu0 %v6817_v49  ;;  %v562_v0 = vld [vmem:[%s12995_s7 + $0x48] sm:$0xff]  ;;  %v6827_v4 = vpack.c.bf16 %v559_v63, %v557_v62 }
 0x108   :  { %6826 = vmatprep.subr.bf16.mxu1 %v6825_v61  ;;  %v6829_v5 = vpack.c.bf16 %v564_v1, %v562_v0 }
 0x109   :  { %6828 = vmatpush1.bf16.msra.mxu1 %v6827_v4 }
 0x10a   :  { %6820 = vmatpush1.bf16.msra.mxu0 %v6819_v52  ;;  %6830 = vmatprep.subr.bf16.mxu1 %v6829_v5 }
 0x10d   :  { %6832 = vmatpush1.bf16.msra.mxu1 %v6831_v10  ;;  %v586_v10 = vld [vmem:[%s12995_s7 + $0x108] sm:$0xff] }
 0x10e   :  { %6834 = vmatprep.subr.bf16.mxu1 %v6833_v11  ;;  %v588_v11 = vld [vmem:[%s12995_s7 + $0x118] sm:$0xff] }
 0x10f   :  { %v6853_v12 = vpack.c.bf16 %v588_v11, %v586_v10 }
 0x111   :  { %6836 = vmatpush1.bf16.msra.mxu1 %v6835_v16  ;;  %v590_v16 = vld [vmem:[%s12995_s7 + $0x128] sm:$0xff] }
 0x112   :  { %6838 = vmatprep.subr.bf16.mxu1 %v6837_v17  ;;  %v592_v17 = vld [vmem:[%s12995_s7 + $0x138] sm:$0xff] }
 0x113   :  { %v6857_v18 = vpack.c.bf16 %v592_v17, %v590_v16 }
 0x115   :  { %6840 = vmatpush1.bf16.msra.mxu1 %v6839_v22  ;;  %v594_v22 = vld [vmem:[%s12995_s7 + $0x148] sm:$0xff] }
 0x116   :  { %6842 = vmatprep.subr.bf16.mxu1 %v6841_v23  ;;  %v596_v23 = vld [vmem:[%s12995_s7 + $0x158] sm:$0xff] }
 0x117   :  { %v6861_v24 = vpack.c.bf16 %v596_v23, %v594_v22 }
 0x119   :  { %6844 = vmatpush1.bf16.msra.mxu1 %v6843_v28  ;;  %v598_v28 = vld [vmem:[%s12995_s7 + $0x168] sm:$0xff] }
 0x11a   :  { %6846 = vmatprep.subr.bf16.mxu1 %v6845_v29  ;;  %v600_v29 = vld [vmem:[%s12995_s7 + $0x178] sm:$0xff] }
 0x11b   :  { %v6865_v30 = vpack.c.bf16 %v600_v29, %v598_v28 }
 0x11d   :  { %6848 = vmatpush1.bf16.msra.mxu1 %v6847_v36  ;;  %v602_v36 = vld [vmem:[%s12995_s7 + $0x188] sm:$0xff] }
 0x11e   :  { %6850 = vmatprep.subr.bf16.mxu1 %v6849_v37  ;;  %v604_v37 = vld [vmem:[%s12995_s7 + $0x198] sm:$0xff] }
 0x11f   :  { %v6869_v38 = vpack.c.bf16 %v604_v37, %v602_v36  ;;  %v5131_v37 = vld [vmem:[%s12991_s0 + $0x10] sm:$0xff] }
 0x121   :  { %6852 = vmatpush1.bf16.msra.mxu1 %v6851_v40  ;;  %v603_v40 = vld [vmem:[%s12995_s7 + $0x190] sm:$0xff] }
 0x122   :  { %6854 = vmatprep.subr.bf16.mxu1 %v6853_v12  ;;  %v6871_v41 = vpack.c.bf16 %v603_v40, %v601_v39  ;;  %v750_v39 = vld [vmem:[%s12998_s9 + $0x80] sm:$0xff]  ;;  %v751_v40 = vld [vmem:[%s12998_s9 + $0x88] sm:$0xff] }
 0x125   :  { %6856 = vmatpush1.bf16.msra.mxu1 %v6855_v15 }
 0x126   :  { %6858 = vmatprep.subr.bf16.mxu1 %v6857_v18 }
 0x129   :  { %6860 = vmatpush1.bf16.msra.mxu1 %v6859_v21 }
 0x12a   :  { %6862 = vmatprep.subr.bf16.mxu1 %v6861_v24  ;;  %v5133_v24 = vld [vmem:[%s13009_s23 + $0x20] sm:$0xff] }
 0x12b   :  { %v6952_v29 = vpack.c.bf16 %v5135_v25, %v5133_v24  ;;  %v864_v25 = vld [vmem:[%s12999_s11 + $0x80] sm:$0xff] }
 0x12d   :  { %6864 = vmatpush1.bf16.msra.mxu1 %v6863_v27 }
 0x12e   :  { %6866 = vmatprep.subr.bf16.mxu1 %v6865_v30 }
 0x131   :  { %6868 = vmatpush1.bf16.msra.mxu1 %v6867_v35 }
 0x132   :  { %6870 = vmatprep.subr.bf16.mxu1 %v6869_v38  ;;  %v5132_v38 = vld [vmem:[%s12991_s0 + $0x18] sm:$0xff] }
 0x135   :  { %6872 = vmatpush1.bf16.msra.mxu1 %v6871_v41  ;;  %v6885_v41 = vpack.c.bf16 %v751_v40, %v750_v39 }
 0x137   :  { %6886 = vmatprep.subr.bf16.mxu0 %v6885_v41 }
 0x1d6   :  { %v333_v44 = vpop.f32.mrb[0].mxu1 }
 0x1d7   :  { %v334_v45 = vadd.f32 %v333_v44, %v260_v42  ;;  %v335_v46 = vpop.f32.mrb[1].mxu1 }
 0x1d8   :  { %v336_v47 = vadd.f32 %v335_v46, %v264_v43  ;;  %v607_v46 = vld [vmem:[%s12995_s7 + $0x1b0] sm:$0xff] }
 0x1d9   :  { %v5115_v48 = vmul.f32 -1.442695, %v334_v45 }
 0x1da   :  { %v5116_v49 = vmul.f32 -1.442695, %v336_v47  ;;  %v339_v50 = vpop.f32.mrb[2].mxu1 }
 0x1db   :  { %8015 = vpow2.f32 %v5115_v48  ;;  %v340_v51 = vadd.f32 %v339_v50, %v260_v42  ;;  %v341_v52 = vpop.f32.mrb[3].mxu1  ;;  %v606_v42 = vld [vmem:[%s12995_s7 + $0x1a8] sm:$0xff] }
 0x1dc   :  { %8017 = vpow2.f32 %v5116_v49  ;;  %v342_v53 = vadd.f32 %v341_v52, %v264_v43  ;;  %v608_v43 = vld [vmem:[%s12995_s7 + $0x1b8] sm:$0xff]  ;;  %v610_v48 = vld [vmem:[%s12995_s7 + $0x1c8] sm:$0xff]  ;;  %v611_v52 = vld [vmem:[%s12995_s7 + $0x1d0] sm:$0xff] }
 0x1dd   :  { %v5117_v54 = vmul.f32 -1.442695, %v340_v51  ;;  %v6873_v44 = vpack.c.bf16 %v608_v43, %v606_v42  ;;  %v612_v49 = vld [vmem:[%s12995_s7 + $0x1d8] sm:$0xff]  ;;  %v734_v42 = vld [vmem:[%s12998_s9] sm:$0xff]  ;;  %v735_v43 = vld [vmem:[%s12998_s9 + $0x8] sm:$0xff] }
 0x1de   :  { %v5118_v55 = vmul.f32 -1.442695, %v342_v53  ;;  %v6877_v50 = vpack.c.bf16 %v612_v49, %v610_v48  ;;  %v736_v48 = vld [vmem:[%s12998_s9 + $0x10] sm:$0xff]  ;;  %v737_v49 = vld [vmem:[%s12998_s9 + $0x18] sm:$0xff] }
 0x1df   :  { %8019 = vpow2.f32 %v5117_v54  ;;  %6874 = vmatprep.subr.bf16.mxu1 %v6873_v44  ;;  %v614_v54 = vld [vmem:[%s12995_s7 + $0x1e8] sm:$0xff]  ;;  %v6887_v44 = vpack.c.bf16 %v735_v43, %v734_v42 }
 0x1e0   :  { %8021 = vpow2.f32 %v5118_v55  ;;  %v616_v55 = vld [vmem:[%s12995_s7 + $0x1f8] sm:$0xff] }
 0x1e5   :  { %v8016_v56 = vpop.eup %8015 }
 0x1e6   :  { %v8018_v57 = vpop.eup %8017  ;;  %v356_v58 = vadd.f32 1.0, %v8016_v56  ;;  %v6881_v56 = vpack.c.bf16 %v616_v55, %v614_v54  ;;  %v738_v54 = vld [vmem:[%s12998_s9 + $0x20] sm:$0xff]  ;;  %v739_v55 = vld [vmem:[%s12998_s9 + $0x28] sm:$0xff] }
 0x1e7   :  { %v357_v59 = vadd.f32 1.0, %v8018_v57  ;;  %v613_v57 = vld [vmem:[%s12995_s7 + $0x1e0] sm:$0xff] }
 0x1e8   :  { %8023 = vrcp.f32 %v356_v58  ;;  %v615_v58 = vld [vmem:[%s12995_s7 + $0x1f0] sm:$0xff] }
 0x1e9   :  { %v8020_v60 = vpop.eup %8019  ;;  %8025 = vrcp.f32 %v357_v59  ;;  %v6883_v59 = vpack.c.bf16 %v615_v58, %v613_v57  ;;  %v756_v57 = vld [vmem:[%s12998_s9 + $0xb0] sm:$0xff]  ;;  %v757_v58 = vld [vmem:[%s12998_s9 + $0xb8] sm:$0xff] }
 0x1ea   :  { %v8022_v61 = vpop.eup %8021  ;;  %v358_v62 = vadd.f32 1.0, %v8020_v60  ;;  %v5134_v60 = vld [vmem:[%s13009_s23 + $0x28] sm:$0xff] }
 0x1eb   :  { %v359_v63 = vadd.f32 1.0, %v8022_v61  ;;  %v5136_v61 = vld [vmem:[%s13009_s23 + $0x38] sm:$0xf] }
 0x1ec   :  { %8027 = vrcp.f32 %v358_v62  ;;  %v6949_v62 = vpack.c.bf16 %v5136_v61, %v5134_v60  ;;  %v740_v60 = vld [vmem:[%s12998_s9 + $0x30] sm:$0xff]  ;;  %v741_v61 = vld [vmem:[%s12998_s9 + $0x38] sm:$0xff] }
 0x1ed   :  { %8029 = vrcp.f32 %v359_v63  ;;  %v436_v63 = vld [vmem:[%s12997_s6] sm:$0x3] }
 0x1f2   :  { %v8024_v0 = vpop.eup %8023 }
 0x1f3   :  { %v8026_v1 = vpop.eup %8025  ;;  %v368_v5 = vmul.f32 %v8024_v0, %v334_v45  ;;  %v605_v45 = vld [vmem:[%s12995_s7 + $0x1a0] sm:$0xff]  ;;  %v441_v0 = vrot.slane %v436_v63, %v8830_v32 }
 0x1f4   :  { %v369_v4 = vmul.f32 %v8026_v1, %v336_v47  ;;  %v6875_v47 = vpack.c.bf16 %v607_v46, %v605_v45  ;;  %v445_v1 = vrot.slane %v436_v63, %v8835_v34  ;;  %v752_v45 = vld [vmem:[%s12998_s9 + $0x90] sm:$0xff]  ;;  %v753_v46 = vld [vmem:[%s12998_s9 + $0x98] sm:$0xff]  ;;  %v758_v63 = vld [vmem:[%s12998_s9 + $0xc0] sm:$0xff] }
 0x1f6   :  { %v8028_v6 = vpop.eup %8027  ;;  %512 = vmatprep.mubr.f32.mxu0 %v369_v4  ;;  %6876 = vmatpush1.bf16.msra.mxu1 %v6875_v47  ;;  %v6889_v47 = vpack.c.bf16 %v753_v46, %v752_v45 }
 0x1f7   :  { %v8030_v7 = vpop.eup %8029  ;;  %513 = vmatmul.mubr.f32.vlgmr.msra.gmra.mrb[4].mxu0 %v368_v5  ;;  %v370_v9 = vmul.f32 %v8028_v6, %v340_v51  ;;  %v609_v51 = vld [vmem:[%s12995_s7 + $0x1c0] sm:$0xff]  ;;  %6878 = vmatprep.subr.bf16.mxu1 %v6877_v50  ;;  %v6891_v50 = vpack.c.bf16 %v737_v49, %v736_v48 }
 0x1f8   :  { %v371_v8 = vmul.f32 %v8030_v7, %v342_v53  ;;  %v6879_v53 = vpack.c.bf16 %v611_v52, %v609_v51  ;;  %6888 = vmatpush3.bf16.msra.mxu0 %v6887_v44  ;;  %v754_v51 = vld [vmem:[%s12998_s9 + $0xa0] sm:$0xff]  ;;  %v755_v52 = vld [vmem:[%s12998_s9 + $0xa8] sm:$0xff] }
 0x1f9   :  { %6890 = vmatprep.subr.bf16.mxu0 %v6889_v47 }
 0x1fa   :  { %518 = vmatprep.mubr.f32.mxu0 %v371_v8  ;;  %6880 = vmatpush1.bf16.msra.mxu1 %v6879_v53  ;;  %v6893_v53 = vpack.c.bf16 %v755_v52, %v754_v51 }
 0x1fb   :  { %519 = vmatmul.mubr.f32.gmra.mrb[6].mxu0 %v370_v9  ;;  %6882 = vmatprep.subr.bf16.mxu1 %v6881_v56  ;;  %v6895_v56 = vpack.c.bf16 %v739_v55, %v738_v54 }
 0x1fc   :  { %6892 = vmatpush3.bf16.msra.mxu0 %v6891_v50 }
 0x1fd   :  { %6894 = vmatprep.subr.bf16.mxu0 %v6893_v53 }
 0x1fe   :  { %6884 = vmatpush1.bf16.msra.mxu1 %v6883_v59  ;;  %v6897_v59 = vpack.c.bf16 %v757_v58, %v756_v57  ;;  %v9279_v57 = vld [vmem:[%s12994_s2 + $0x2] sm:$0x3] }
 0x1ff   :  { %6951 = vmatprep.subr.msk.bf16.mxu1 %vm8518_vm2, %v6949_v62  ;;  %v6899_v62 = vpack.c.bf16 %v741_v61, %v740_v60  ;;  %v9283_v58 = vrot.slane %v9279_v57, %v8835_v34  ;;  %v849_v60 = vld [vmem:[%s12999_s11 + $0x8] sm:$0xff] }
 0x200   :  { %6896 = vmatpush3.bf16.msra.mxu0 %v6895_v56 }
 0x201   :  { %6898 = vmatprep.subr.bf16.mxu0 %v6897_v59  ;;  %v848_v59 = vld [vmem:[%s12999_s11] sm:$0xff] }
 0x204   :  { %6900 = vmatpush3.bf16.msra.mxu0 %v6899_v62  ;;  %v866_v62 = vld [vmem:[%s12999_s11 + $0x90] sm:$0xff] }
 0x2ca   :  { %v514_v4 = vpop.f32.mrb[4].mxu0 }
 0x2cb   :  { %v515_v5 = vadd.f32 %v514_v4, %v441_v0  ;;  %v516_v6 = vpop.f32.mrb[5].mxu0  ;;  %v742_v4 = vld [vmem:[%s12998_s9 + $0x40] sm:$0xff] }
 0x2cc   :  { %v517_v7 = vadd.f32 %v516_v6, %v445_v1 }
 0x2cd   :  { %v5119_v8 = vmul.f32 -1.442695, %v515_v5 }
 0x2ce   :  { %v5120_v9 = vmul.f32 -1.442695, %v517_v7  ;;  %v520_v10 = vpop.f32.mrb[6].mxu0 }
 0x2cf   :  { %8031 = vpow2.f32 %v5119_v8  ;;  %v521_v11 = vadd.f32 %v520_v10, %v441_v0  ;;  %v522_v12 = vpop.f32.mrb[7].mxu0  ;;  %v759_v0 = vld [vmem:[%s12998_s9 + $0xc8] sm:$0xff]  ;;  %v761_v8 = vld [vmem:[%s12998_s9 + $0xd8] sm:$0xff]  ;;  %v744_v10 = vld [vmem:[%s12998_s9 + $0x50] sm:$0xff] }
 0x2d0   :  { %8033 = vpow2.f32 %v5120_v9  ;;  %v523_v13 = vadd.f32 %v522_v12, %v445_v1  ;;  %v6901_v1 = vpack.c.bf16 %v759_v0, %v758_v63  ;;  %v867_v63 = vld [vmem:[%s12999_s11 + $0x98] sm:$0xff] }
 0x2d1   :  { %v5121_v14 = vmul.f32 -1.442695, %v521_v11 }
 0x2d2   :  { %v5122_v15 = vmul.f32 -1.442695, %v523_v13  ;;  %6902 = vmatprep.subr.bf16.mxu0 %v6901_v1 }
 0x2d3   :  { %8035 = vpow2.f32 %v5121_v14  ;;  %v763_v14 = vld [vmem:[%s12998_s9 + $0xe8] sm:$0xff] }
 0x2d4   :  { %8037 = vpow2.f32 %v5122_v15 }
 0x2d9   :  { %v8032_v16 = vpop.eup %8031 }
 0x2da   :  { %v8034_v17 = vpop.eup %8033  ;;  %v537_v18 = vadd.f32 1.0, %v8032_v16  ;;  %v746_v16 = vld [vmem:[%s12998_s9 + $0x60] sm:$0xff] }
 0x2db   :  { %v538_v19 = vadd.f32 1.0, %v8034_v17  ;;  %v747_v17 = vld [vmem:[%s12998_s9 + $0x68] sm:$0xff] }
 0x2dc   :  { %8039 = vrcp.f32 %v537_v18  ;;  %v6911_v18 = vpack.c.bf16 %v747_v17, %v746_v16 }
 0x2dd   :  { %v8036_v20 = vpop.eup %8035  ;;  %8041 = vrcp.f32 %v538_v19  ;;  %v764_v19 = vld [vmem:[%s12998_s9 + $0xf0] sm:$0xff] }
 0x2de   :  { %v8038_v21 = vpop.eup %8037  ;;  %v539_v22 = vadd.f32 1.0, %v8036_v20  ;;  %v765_v20 = vld [vmem:[%s12998_s9 + $0xf8] sm:$0xff] }
 0x2df   :  { %v540_v23 = vadd.f32 1.0, %v8038_v21  ;;  %v6913_v21 = vpack.c.bf16 %v765_v20, %v764_v19  ;;  %v852_v19 = vld [vmem:[%s12999_s11 + $0x20] sm:$0xff]  ;;  %v853_v20 = vld [vmem:[%s12999_s11 + $0x28] sm:$0xff] }
 0x2e0   :  { %8043 = vrcp.f32 %v539_v22  ;;  %v748_v22 = vld [vmem:[%s12998_s9 + $0x70] sm:$0xff] }
 0x2e1   :  { %8045 = vrcp.f32 %v540_v23  ;;  %v749_v23 = vld [vmem:[%s12998_s9 + $0x78] sm:$0xff] }
 0x2e2   :  { %v6915_v24 = vpack.c.bf16 %v749_v23, %v748_v22  ;;  %v871_v22 = vld [vmem:[%s12999_s11 + $0xb8] sm:$0xff]  ;;  %v6927_v23 = vpack.c.bf16 %v853_v20, %v852_v19  ;;  %v5154_v20 = vld [vmem:[%s12992_s3 + $0x240] sm:$0xff] }
 0x2e6   :  { %v8040_v26 = vpop.eup %8039 }
 0x2e7   :  { %v8042_v27 = vpop.eup %8041  ;;  %v549_v30 = vmul.f32 %v8040_v26, %v515_v5  ;;  %v743_v5 = vld [vmem:[%s12998_s9 + $0x48] sm:$0xff] }
 0x2e8   :  { %v550_v28 = vmul.f32 %v8042_v27, %v517_v7  ;;  %v6903_v6 = vpack.c.bf16 %v743_v5, %v742_v4  ;;  %v760_v7 = vld [vmem:[%s12998_s9 + $0xd0] sm:$0xff]  ;;  %v865_v26 = vld [vmem:[%s12999_s11 + $0x88] sm:$0xff]  ;;  %v6919_v5 = vpack.c.bf16 %v849_v60, %v848_v59  ;;  %v863_v59 = vld [vmem:[%s12999_s11 + $0x78] sm:$0xff] }
 0x2e9   :  { %v6905_v9 = vpack.c.bf16 %v761_v8, %v760_v7  ;;  %v6917_v27 = vpack.c.bf16 %v865_v26, %v864_v25  ;;  %v6921_v7 = vpack.c.bf16 %v867_v63, %v866_v62  ;;  %v850_v8 = vld [vmem:[%s12999_s11 + $0x10] sm:$0xff]  ;;  %v855_v26 = vld [vmem:[%s12999_s11 + $0x38] sm:$0xff]  ;;  %v5147_v60 = vld [vmem:[%s12992_s3 + $0x208] sm:$0xff] }
 0x2ea   :  { %v8044_v31 = vpop.eup %8043  ;;  %693 = vmatprep.mubr.f32.mxu1 %v550_v28  ;;  %6904 = vmatpush3.bf16.msra.mxu0 %v6903_v6  ;;  %v617_v28 = vld [vmem:[%s13000_s8] sm:$0x3]  ;;  %v854_v25 = vld [vmem:[%s12999_s11 + $0x30] sm:$0xff] }
 0x2eb   :  { %v8046_v33 = vpop.eup %8045  ;;  %694 = vmatmul.mubr.f32.vlgmr.msra.gmra.mrb[4].mxu1 %v549_v30  ;;  %v551_v36 = vmul.f32 %v8044_v31, %v521_v11  ;;  %v745_v11 = vld [vmem:[%s12998_s9 + $0x58] sm:$0xff]  ;;  %6906 = vmatprep.subr.bf16.mxu0 %v6905_v9  ;;  %v626_v30 = vrot.slane %v617_v28, %v8835_v34 }
 0x2ec   :  { %v552_v35 = vmul.f32 %v8046_v33, %v523_v13  ;;  %6954 = vmatpush1.bf16.msk.msra.mxu1 %vm8518_vm2, %v6952_v29  ;;  %v6907_v12 = vpack.c.bf16 %v745_v11, %v744_v10  ;;  %v762_v13 = vld [vmem:[%s12998_s9 + $0xe0] sm:$0xff]  ;;  %v622_v29 = vrot.slane %v617_v28, %v8830_v32  ;;  %v851_v9 = vld [vmem:[%s12999_s11 + $0x18] sm:$0xff]  ;;  %v873_v28 = vld [vmem:[%s12999_s11 + $0xc8] sm:$0xff] }
 0x2ed   :  { %v6909_v15 = vpack.c.bf16 %v763_v14, %v762_v13  ;;  %v868_v11 = vld [vmem:[%s12999_s11 + $0xa0] sm:$0xff]  ;;  %v6923_v16 = vpack.c.bf16 %v851_v9, %v850_v8 }
 0x2ee   :  { %699 = vmatprep.mubr.f32.mxu1 %v552_v35  ;;  %6908 = vmatpush3.bf16.msra.mxu0 %v6907_v12  ;;  %v869_v12 = vld [vmem:[%s12999_s11 + $0xa8] sm:$0xff] }
 0x2ef   :  { %700 = vmatmul.mubr.f32.gmra.mrb[6].mxu1 %v551_v36  ;;  %6910 = vmatprep.subr.bf16.mxu0 %v6909_v15 }
 0x2f0   :  { %1160 = vmatprep.mubr.f32.mxu1 %v8426_v3 }
 0x2f2   :  { %6912 = vmatpush3.bf16.msra.mxu0 %v6911_v18  ;;  %v6925_v18 = vpack.c.bf16 %v869_v12, %v868_v11  ;;  %v5150_v11 = vld [vmem:[%s12992_s3 + $0x220] sm:$0xff]  ;;  %v5152_v12 = vld [vmem:[%s12992_s3 + $0x230] sm:$0xff] }
 0x2f3   :  { %5140 = vmatmul.mubr.msk.f32.vlgmr.msra.gmra.mrb[8].mxu1 %vm72_vm3, %v5131_v37  ;;  %6914 = vmatprep.subr.bf16.mxu0 %v6913_v21  ;;  %v870_v21 = vld [vmem:[%s12999_s11 + $0xb0] sm:$0xff] }
 0x2f4   :  { %1166 = vmatprep.mubr.f32.mxu1 %v8426_v3 }
 0x2f6   :  { %6916 = vmatpush3.bf16.msra.mxu0 %v6915_v24  ;;  %v6929_v24 = vpack.c.bf16 %v871_v22, %v870_v21  ;;  %v5156_v21 = vld [vmem:[%s12992_s3 + $0x250] sm:$0xff] }
 0x2f7   :  { %5141 = vmatmul.mubr.msk.f32.gmra.mrb[10].mxu1 %vm72_vm3, %v5132_v38  ;;  %6918 = vmatprep.subr.bf16.mxu0 %v6917_v27  ;;  %v872_v27 = vld [vmem:[%s12999_s11 + $0xc0] sm:$0xff] }
 0x3be   :  { %v695_v31 = vpop.f32.mrb[4].mxu1 }
 0x3bf   :  { %v696_v33 = vadd.f32 %v695_v31, %v622_v29  ;;  %v697_v35 = vpop.f32.mrb[5].mxu1  ;;  %v856_v31 = vld [vmem:[%s12999_s11 + $0x40] sm:$0xff] }
 0x3c0   :  { %v698_v36 = vadd.f32 %v697_v35, %v626_v30  ;;  %v874_v35 = vld [vmem:[%s12999_s11 + $0xd0] sm:$0xff] }
 0x3c1   :  { %v5123_v37 = vmul.f32 -1.442695, %v696_v33 }
 0x3c2   :  { %v5124_v38 = vmul.f32 -1.442695, %v698_v36  ;;  %v701_v39 = vpop.f32.mrb[6].mxu1 }
 0x3c3   :  { %8047 = vpow2.f32 %v5123_v37  ;;  %v702_v40 = vadd.f32 %v701_v39, %v622_v29  ;;  %v703_v41 = vpop.f32.mrb[7].mxu1  ;;  %v6931_v29 = vpack.c.bf16 %v855_v26, %v854_v25  ;;  %v5163_v25 = vld [vmem:[%s12992_s3 + $0x288] sm:$0xff] }
 0x3c4   :  { %8049 = vpow2.f32 %v5124_v38  ;;  %v704_v42 = vadd.f32 %v703_v41, %v626_v30  ;;  %v6933_v30 = vpack.c.bf16 %v873_v28, %v872_v27  ;;  %v859_v41 = vld [vmem:[%s12999_s11 + $0x58] sm:$0xff]  ;;  %v5162_v28 = vld [vmem:[%s12992_s3 + $0x280] sm:$0xff] }
 0x3c5   :  { %v5125_v43 = vmul.f32 -1.442695, %v702_v40 }
 0x3c6   :  { %v5126_v44 = vmul.f32 -1.442695, %v704_v42  ;;  %v9270_v45 = vpop.f32.mrb[8].mxu1 }
 0x3c7   :  { %8051 = vpow2.f32 %v5125_v43  ;;  %v1164_v46 = vpop.f32.mrb[9].mxu1  ;;  %v877_v43 = vld [vmem:[%s12999_s11 + $0xe8] sm:$0xff] }
 0x3c8   :  { %8053 = vpow2.f32 %v5126_v44  ;;  %v9298_v0 = vadd.f32 %v1164_v46, %v9283_v58 }
 0x3ca   :  { %v9272_v47 = vpop.f32.mrb[10].mxu1  ;;  %v5143_v13 = vmul.f32 -1.442695, %v9298_v0 }
 0x3cb   :  { %v9274_v48 = vpop.f32.mrb[11].mxu1 }
 0x3cd   :  { %v8048_v49 = vpop.eup %8047 }
 0x3ce   :  { %v8050_v50 = vpop.eup %8049  ;;  %v718_v51 = vadd.f32 1.0, %v8048_v49 }
 0x3cf   :  { %v719_v52 = vadd.f32 1.0, %v8050_v50  ;;  %v860_v50 = vld [vmem:[%s12999_s11 + $0x60] sm:$0xff] }
 0x3d0   :  { %8055 = vrcp.f32 %v718_v51  ;;  %v861_v51 = vld [vmem:[%s12999_s11 + $0x68] sm:$0xff] }
 0x3d1   :  { %v8052_v53 = vpop.eup %8051  ;;  %8057 = vrcp.f32 %v719_v52  ;;  %v878_v52 = vld [vmem:[%s12999_s11 + $0xf0] sm:$0xff] }
 0x3d2   :  { %v8054_v54 = vpop.eup %8053  ;;  %v720_v55 = vadd.f32 1.0, %v8052_v53  ;;  %v879_v53 = vld [vmem:[%s12999_s11 + $0xf8] sm:$0xff] }
 0x3d3   :  { %v721_v56 = vadd.f32 1.0, %v8054_v54  ;;  %v6943_v54 = vpack.c.bf16 %v861_v51, %v860_v50 }
 0x3d4   :  { %8059 = vrcp.f32 %v720_v55  ;;  %v6945_v55 = vpack.c.bf16 %v879_v53, %v878_v52  ;;  %v5174_v52 = vld [vmem:[%s12992_s3 + $0x2e0] sm:$0xff]  ;;  %v5176_v53 = vld [vmem:[%s12992_s3 + $0x2f0] sm:$0xff] }
 0x3d5   :  { %8061 = vrcp.f32 %v721_v56  ;;  %v862_v56 = vld [vmem:[%s12999_s11 + $0x70] sm:$0xff] }
 0x3d6   :  { %8063 = vpow2.f32 %v5143_v13  ;;  %v6947_v62 = vpack.c.bf16 %v863_v59, %v862_v56  ;;  %v5155_v13 = vld [vmem:[%s12992_s3 + $0x248] sm:$0xff]  ;;  %v6985_v59 = vpack.c.bf16 %v5176_v53, %v5174_v52  ;;  %v5206_v52 = vld [vmem:[%s12992_s3 + $0x3e0] sm:$0xff]  ;;  %v5208_v53 = vld [vmem:[%s12992_s3 + $0x3f0] sm:$0xff] }
 0x3da   :  { %v8056_v61 = vpop.eup %8055 }
 0x3db   :  { %v8058_v1 = vpop.eup %8057  ;;  %v9300_v6 = vmul.f32 %v8056_v61, %v696_v33  ;;  %v857_v33 = vld [vmem:[%s12999_s11 + $0x48] sm:$0xff]  ;;  %v5149_v61 = vld [vmem:[%s12992_s3 + $0x218] sm:$0xff] }
 0x3dc   :  { %v731_v4 = vmul.f32 %v8058_v1, %v698_v36  ;;  %v875_v36 = vld [vmem:[%s12999_s11 + $0xd8] sm:$0xff]  ;;  %v6935_v38 = vpack.c.bf16 %v857_v33, %v856_v31  ;;  %v6955_v63 = vpack.c.bf16 %v5149_v61, %v5147_v60  ;;  %v5146_v1 = vld [vmem:[%s12992_s3 + $0x200] sm:$0xff] }
 0x3dd   :  { %v6937_v39 = vpack.c.bf16 %v875_v36, %v874_v35  ;;  %v5169_v31 = vld [vmem:[%s12992_s3 + $0x2b8] sm:$0xff]  ;;  %v5166_v36 = vld [vmem:[%s12992_s3 + $0x2a0] sm:$0xff] }
 0x3de   :  { %v8060_v10 = vpop.eup %8059  ;;  %837 = vmatprep.mubr.f32.mxu0 %v731_v4  ;;  %v5178_v61 = vld [vmem:[%s12992_s3 + $0x300] sm:$0xff] }
 0x3df   :  { %v8062_v14 = vpop.eup %8061  ;;  %838 = vmatmul.mubr.f32.vlgmr.msra.gmra.mrb[8].mxu0 %v9300_v6  ;;  %v9318_v17 = vmul.f32 %v8060_v10, %v702_v40  ;;  %v858_v40 = vld [vmem:[%s12999_s11 + $0x50] sm:$0xff] }
 0x3e0   :  { %v9316_v15 = vmul.f32 %v8062_v14, %v704_v42  ;;  %6920 = vmatpush3.bf16.msra.mxu0 %v6919_v5  ;;  %v8064_v37 = vpop.eup %8063  ;;  %v876_v42 = vld [vmem:[%s12999_s11 + $0xe0] sm:$0xff]  ;;  %v6939_v46 = vpack.c.bf16 %v859_v41, %v858_v40  ;;  %v5151_v5 = vld [vmem:[%s12992_s3 + $0x228] sm:$0xff]  ;;  %v5157_v14 = vld [vmem:[%s12992_s3 + $0x258] sm:$0xff] }
 0x3e1   :  { %6922 = vmatprep.subr.bf16.mxu0 %v6921_v7  ;;  %v1186_v44 = vadd.f32 1.0, %v8064_v37  ;;  %v6941_v49 = vpack.c.bf16 %v877_v43, %v876_v42  ;;  %v5153_v7 = vld [vmem:[%s12992_s3 + $0x238] sm:$0xff]  ;;  %v6963_v19 = vpack.c.bf16 %v5157_v14, %v5155_v13  ;;  %v5168_v37 = vld [vmem:[%s12992_s3 + $0x2b0] sm:$0xff]  ;;  %v5170_v42 = vld [vmem:[%s12992_s3 + $0x2c0] sm:$0xff] }
 0x3e2   :  { %842 = vmatprep.mubr.f32.mxu0 %v9316_v15  ;;  %v6959_v10 = vpack.c.bf16 %v5153_v7, %v5151_v5  ;;  %v6977_v40 = vpack.c.bf16 %v5168_v37, %v5166_v36  ;;  %v5172_v43 = vld [vmem:[%s12992_s3 + $0x2d0] sm:$0xff]  ;;  %v5182_v7 = vld [vmem:[%s12992_s3 + $0x320] sm:$0xff] }
 0x3e3   :  { %843 = vmatmul.mubr.f32.gmra.mrb[10].mxu0 %v9318_v17  ;;  %8065 = vrcp.f32 %v1186_v44  ;;  %v5175_v44 = vld [vmem:[%s12992_s3 + $0x2e8] sm:$0xff]  ;;  %v6981_v50 = vpack.c.bf16 %v5172_v43, %v5170_v42  ;;  %v5186_v13 = vld [vmem:[%s12992_s3 + $0x340] sm:$0xff]  ;;  %v5188_v14 = vld [vmem:[%s12992_s3 + $0x350] sm:$0xff] }
 0x3e4   :  { %6924 = vmatpush3.bf16.msra.mxu0 %v6923_v16  ;;  %951 = vmatprep.mubr.f32.mxu0 %v731_v4  ;;  %v5148_v4 = vld [vmem:[%s12992_s3 + $0x210] sm:$0xff]  ;;  %v5198_v36 = vld [vmem:[%s12992_s3 + $0x3a0] sm:$0xff] }
 0x3e5   :  { %6926 = vmatprep.subr.bf16.mxu0 %v6925_v18  ;;  %v6957_v8 = vpack.c.bf16 %v5148_v4, %v5146_v1  ;;  %v6961_v18 = vpack.c.bf16 %v5152_v12, %v5150_v11  ;;  %v5200_v37 = vld [vmem:[%s12992_s3 + $0x3b0] sm:$0xff]  ;;  %v5202_v43 = vld [vmem:[%s12992_s3 + $0x3c0] sm:$0xff] }
 0x3e8   :  { %6928 = vmatpush3.bf16.msra.mxu0 %v6927_v23  ;;  %v5158_v23 = vld [vmem:[%s12992_s3 + $0x260] sm:$0xff] }
 0x3e9   :  { %6930 = vmatprep.subr.bf16.mxu0 %v6929_v24  ;;  %v5160_v24 = vld [vmem:[%s12992_s3 + $0x270] sm:$0xff] }
 0x3ea   :  { %v6969_v26 = vpack.c.bf16 %v5160_v24, %v5158_v23 }
 0x3ec   :  { %6932 = vmatpush3.bf16.msra.mxu0 %v6931_v29  ;;  %v5164_v29 = vld [vmem:[%s12992_s3 + $0x290] sm:$0xff] }
 0x3ed   :  { %6934 = vmatprep.subr.bf16.mxu0 %v6933_v30  ;;  %v8066_v9 = vpop.eup %8065  ;;  %v5167_v30 = vld [vmem:[%s12992_s3 + $0x2a8] sm:$0xff]  ;;  %v6973_v33 = vpack.c.bf16 %v5164_v29, %v5162_v28  ;;  %v5201_v28 = vld [vmem:[%s12992_s3 + $0x3b8] sm:$0xff] }
 0x3ee   :  { %v1198_v16 = vmul.f32 %v8066_v9, %v9298_v0  ;;  %v6965_v0 = vpack.c.bf16 %v5156_v21, %v5154_v20  ;;  %v6975_v35 = vpack.c.bf16 %v5169_v31, %v5167_v30  ;;  %v5187_v9 = vld [vmem:[%s12992_s3 + $0x348] sm:$0xff]  ;;  %v5190_v21 = vld [vmem:[%s12992_s3 + $0x360] sm:$0xff] }
 0x3f0   :  { %6936 = vmatpush3.bf16.msra.mxu0 %v6935_v38  ;;  %v5171_v38 = vld [vmem:[%s12992_s3 + $0x2c8] sm:$0xff] }
 0x3f1   :  { %6938 = vmatprep.subr.bf16.mxu0 %v6937_v39  ;;  %v5173_v39 = vld [vmem:[%s12992_s3 + $0x2d8] sm:$0xff] }
 0x3f2   :  { %v6979_v41 = vpack.c.bf16 %v5173_v39, %v5171_v38  ;;  %v5203_v38 = vld [vmem:[%s12992_s3 + $0x3c8] sm:$0xff]  ;;  %v5205_v39 = vld [vmem:[%s12992_s3 + $0x3d8] sm:$0xff] }
 0x3f3   :  { %v7011_v42 = vpack.c.bf16 %v5205_v39, %v5203_v38  ;;  %v5241_v38 = vld [vmem:[%s12993_s5 + $0x2d0] sm:$0xff] }
 0x3f4   :  { %6940 = vmatpush3.bf16.msra.mxu0 %v6939_v46  ;;  %v5177_v46 = vld [vmem:[%s12992_s3 + $0x2f8] sm:$0xff] }
 0x3f5   :  { %6942 = vmatprep.subr.bf16.mxu0 %v6941_v49  ;;  %v1077_v49 = vrot.slane %v9279_v57, %v8830_v32  ;;  %v6983_v51 = vpack.c.bf16 %v5177_v46, %v5175_v44  ;;  %v5181_v57 = vld [vmem:[%s12992_s3 + $0x318] sm:$0xff]  ;;  %v5204_v44 = vld [vmem:[%s12992_s3 + $0x3d0] sm:$0xff]  ;;  %v5207_v46 = vld [vmem:[%s12992_s3 + $0x3e8] sm:$0xff] }
 0x3f7   :  { %v9501_v56 = vadd.f32 %v9270_v45, %v1077_v49  ;;  %v5185_v45 = vld [vmem:[%s12992_s3 + $0x338] sm:$0xff]  ;;  %v9518_v1 = vadd.f32 %v9272_v47, %v1077_v49 }
 0x3f8   :  { %6944 = vmatpush3.bf16.msra.mxu0 %v6943_v54  ;;  %v5179_v54 = vld [vmem:[%s12992_s3 + $0x308] sm:$0xff]  ;;  %v5189_v47 = vld [vmem:[%s12992_s3 + $0x358] sm:$0xff] }
 0x3f9   :  { %6946 = vmatprep.subr.bf16.mxu0 %v6945_v55  ;;  %v9498_v55 = vadd.f32 %v9274_v48, %v9283_v58  ;;  %v6987_v60 = vpack.c.bf16 %v5181_v57, %v5179_v54  ;;  %v5183_v48 = vld [vmem:[%s12992_s3 + $0x328] sm:$0xff]  ;;  %v5142_v58 = vmul.f32 -1.442695, %v9501_v56  ;;  %v6995_v12 = vpack.c.bf16 %v5189_v47, %v5187_v9  ;;  %v5209_v49 = vld [vmem:[%s12992_s3 + $0x3f8] sm:$0xff]  ;;  %v5221_v9 = vld [vmem:[%s12993_s5 + $0x230] sm:$0xff] }
 0x3fa   :  { %v6991_v5 = vpack.c.bf16 %v5185_v45, %v5183_v48  ;;  %v7017_v54 = vpack.c.bf16 %v5208_v53, %v5206_v52  ;;  %v5216_v48 = vld [vmem:[%s12993_s5 + $0x208] sm:$0xff]  ;;  %v5218_v45 = vld [vmem:[%s12993_s5 + $0x218] sm:$0xff]  ;;  %v5247_v52 = vld [vmem:[%s12993_s5 + $0x300] sm:$0xff] }
 0x3fb   :  { %v5249_v53 = vld [vmem:[%s12993_s5 + $0x310] sm:$0xff] }
 0x3fc   :  { %6948 = vmatpush3.bf16.msra.mxu0 %v6947_v62  ;;  %v5180_v62 = vld [vmem:[%s12992_s3 + $0x310] sm:$0xff] }
 0x3fd   :  { %6956 = vmatprep.subr.bf16.mxu0 %v6955_v63  ;;  %v5145_v63 = vmul.f32 -1.442695, %v9498_v55  ;;  %v6989_v4 = vpack.c.bf16 %v5180_v62, %v5178_v61 }
 0x3ff   :  { %952 = vmatmul.mubr.f32.vlgmr.msra.gmra.mrb[12].mxu0 %v9300_v6  ;;  %v5159_v6 = vld [vmem:[%s12992_s3 + $0x268] sm:$0xff]  ;;  %8067 = vpow2.f32 %v5145_v63 }
 0x400   :  { %956 = vmatprep.mubr.f32.mxu0 %v9316_v15  ;;  %6958 = vmatpush1.bf16.msra.mxu0 %v6957_v8  ;;  %v5161_v15 = vld [vmem:[%s12992_s3 + $0x278] sm:$0xff]  ;;  %v5184_v8 = vld [vmem:[%s12992_s3 + $0x330] sm:$0xff]  ;;  %8069 = vpow2.f32 %v5142_v58  ;;  %v7019_v58 = vpack.c.bf16 %v5218_v45, %v5216_v48  ;;  %v5256_v48 = vld [vmem:[%s12993_s5 + $0x348] sm:$0xff] }
 0x401   :  { %6960 = vmatprep.subr.bf16.mxu0 %v6959_v10  ;;  %v6967_v22 = vpack.c.bf16 %v5161_v15, %v5159_v6  ;;  %v5144_v10 = vmul.f32 -1.442695, %v9518_v1  ;;  %v6993_v11 = vpack.c.bf16 %v5184_v8, %v5182_v7  ;;  %v5192_v6 = vld [vmem:[%s12992_s3 + $0x370] sm:$0xff]  ;;  %v5195_v15 = vld [vmem:[%s12992_s3 + $0x388] sm:$0xff]  ;;  %v5219_v8 = vld [vmem:[%s12993_s5 + $0x220] sm:$0xff] }
 0x402   :  { %v7001_v23 = vpack.c.bf16 %v5192_v6, %v5190_v21  ;;  %7020 = vmatprep.subr.bf16.mxu1 %v7019_v58  ;;  %v7025_v47 = vpack.c.bf16 %v5221_v9, %v5219_v8  ;;  %v5227_v21 = vld [vmem:[%s12993_s5 + $0x260] sm:$0xff]  ;;  %v5229_v6 = vld [vmem:[%s12993_s5 + $0x270] sm:$0xff]  ;;  %v5258_v45 = vld [vmem:[%s12993_s5 + $0x358] sm:$0xff] }
 0x403   :  { %957 = vmatmul.mubr.f32.gmra.mrb[14].mxu0 %v9318_v17  ;;  %v5165_v17 = vld [vmem:[%s12992_s3 + $0x298] sm:$0xff]  ;;  %8071 = vpow2.f32 %v5144_v10  ;;  %v5224_v10 = vld [vmem:[%s12993_s5 + $0x248] sm:$0xff]  ;;  %v7059_v58 = vpack.c.bf16 %v5258_v45, %v5256_v48  ;;  %v5259_v8 = vld [vmem:[%s12993_s5 + $0x360] sm:$0xff] }
 0x404   :  { %6962 = vmatpush1.bf16.msra.mxu0 %v6961_v18  ;;  %1343 = vmatprep.mubr.f32.mxu0 %v1198_v16  ;;  %v6971_v27 = vpack.c.bf16 %v5165_v17, %v5163_v25  ;;  %v5191_v16 = vld [vmem:[%s12992_s3 + $0x368] sm:$0xff]  ;;  %v5193_v18 = vld [vmem:[%s12992_s3 + $0x378] sm:$0xff]  ;;  %v5194_v17 = vld [vmem:[%s12992_s3 + $0x380] sm:$0xff] }
 0x405   :  { %6964 = vmatprep.subr.bf16.mxu0 %v6963_v19  ;;  %v6997_v19 = vpack.c.bf16 %v5188_v14, %v5186_v13  ;;  %v6999_v20 = vpack.c.bf16 %v5193_v18, %v5191_v16  ;;  %v5223_v13 = vld [vmem:[%s12993_s5 + $0x240] sm:$0xff]  ;;  %v5225_v14 = vld [vmem:[%s12993_s5 + $0x250] sm:$0xff]  ;;  %v5228_v18 = vld [vmem:[%s12993_s5 + $0x268] sm:$0xff] }
 0x406   :  { %v7029_v16 = vpack.c.bf16 %v5225_v14, %v5223_v13  ;;  %v5261_v9 = vld [vmem:[%s12993_s5 + $0x370] sm:$0xff]  ;;  %v5263_v13 = vld [vmem:[%s12993_s5 + $0x380] sm:$0xff] }
 0x407   :  { %v5265_v14 = vld [vmem:[%s12993_s5 + $0x390] sm:$0xff]  ;;  %v5292_v48 = vld [vmem:[%s12995_s7 + $0x240] sm:$0xff] }
 0x408   :  { %6966 = vmatpush1.bf16.msra.mxu0 %v6965_v0  ;;  %v5197_v0 = vld [vmem:[%s12992_s3 + $0x398] sm:$0xff]  ;;  %v5294_v45 = vld [vmem:[%s12995_s7 + $0x250] sm:$0xff] }
 0x409   :  { %6968 = vmatprep.subr.bf16.mxu0 %v6967_v22  ;;  %v8068_v22 = vpop.eup %8067  ;;  %v7003_v25 = vpack.c.bf16 %v5197_v0, %v5195_v15  ;;  %v7033_v15 = vpack.c.bf16 %v5229_v6, %v5227_v21  ;;  %v5232_v0 = vld [vmem:[%s12993_s5 + $0x288] sm:$0xff]  ;;  %v5267_v21 = vld [vmem:[%s12993_s5 + $0x3a0] sm:$0xff]  ;;  %v5269_v6 = vld [vmem:[%s12993_s5 + $0x3b0] sm:$0xff] }
 0x40a   :  { %v8070_v24 = vpop.eup %8069  ;;  %v1188_v29 = vadd.f32 1.0, %v8068_v22  ;;  %v5234_v22 = vld [vmem:[%s12993_s5 + $0x298] sm:$0xff] }
 0x40b   :  { %v1185_v30 = vadd.f32 1.0, %v8070_v24  ;;  %v5231_v24 = vld [vmem:[%s12993_s5 + $0x280] sm:$0xff] }
 0x40c   :  { %6970 = vmatpush1.bf16.msra.mxu0 %v6969_v26  ;;  %v5196_v26 = vld [vmem:[%s12992_s3 + $0x390] sm:$0xff]  ;;  %8073 = vrcp.f32 %v1188_v29  ;;  %v5235_v29 = vld [vmem:[%s12993_s5 + $0x2a0] sm:$0xff] }
 0x40d   :  { %6972 = vmatprep.subr.bf16.mxu0 %v6971_v27  ;;  %v5199_v27 = vld [vmem:[%s12992_s3 + $0x3a8] sm:$0xff]  ;;  %v7005_v31 = vpack.c.bf16 %v5196_v26, %v5194_v17  ;;  %8075 = vrcp.f32 %v1185_v30  ;;  %v5237_v30 = vld [vmem:[%s12993_s5 + $0x2b0] sm:$0xff] }
 0x40e   :  { %v5236_v26 = vld [vmem:[%s12993_s5 + $0x2a8] sm:$0xff] }
 0x410   :  { %6974 = vmatpush1.bf16.msra.mxu0 %v6973_v33  ;;  %v8072_v33 = vpop.eup %8071 }
 0x411   :  { %6976 = vmatprep.subr.bf16.mxu0 %v6975_v35  ;;  %v7007_v35 = vpack.c.bf16 %v5201_v28, %v5199_v27  ;;  %v5238_v27 = vld [vmem:[%s12993_s5 + $0x2b8] sm:$0xff] }
 0x412   :  { %v7039_v28 = vpack.c.bf16 %v5238_v27, %v5236_v26  ;;  %v5276_v26 = vld [vmem:[%s12993_s5 + $0x3e8] sm:$0xff]  ;;  %v5278_v27 = vld [vmem:[%s12993_s5 + $0x3f8] sm:$0xff] }
 0x414   :  { %6978 = vmatpush1.bf16.msra.mxu0 %v6977_v40  ;;  %v1187_v40 = vadd.f32 1.0, %v8072_v33  ;;  %v5240_v33 = vld [vmem:[%s12993_s5 + $0x2c8] sm:$0xff] }
 0x415   :  { %6980 = vmatprep.subr.bf16.mxu0 %v6979_v41  ;;  %v7009_v41 = vpack.c.bf16 %v5200_v37, %v5198_v36  ;;  %v5239_v37 = vld [vmem:[%s12993_s5 + $0x2c0] sm:$0xff] }
 0x416   :  { %8077 = vrcp.f32 %v1187_v40  ;;  %v8074_v57 = vpop.eup %8073  ;;  %v7045_v39 = vpack.c.bf16 %v5241_v38, %v5239_v37  ;;  %v5244_v40 = vld [vmem:[%s12993_s5 + $0x2e8] sm:$0xff] }
 0x418   :  { %6982 = vmatpush1.bf16.msra.mxu0 %v6981_v50  ;;  %v7013_v50 = vpack.c.bf16 %v5204_v44, %v5202_v43  ;;  %v5243_v43 = vld [vmem:[%s12993_s5 + $0x2e0] sm:$0xff]  ;;  %v5245_v44 = vld [vmem:[%s12993_s5 + $0x2f0] sm:$0xff] }
 0x419   :  { %6984 = vmatprep.subr.bf16.mxu0 %v6983_v51  ;;  %v7015_v51 = vpack.c.bf16 %v5209_v49, %v5207_v46  ;;  %v7049_v46 = vpack.c.bf16 %v5245_v44, %v5243_v43  ;;  %v5248_v49 = vld [vmem:[%s12993_s5 + $0x308] sm:$0xff]  ;;  %v5287_v43 = vld [vmem:[%s12995_s7 + $0x218] sm:$0xff]  ;;  %v5284_v44 = vld [vmem:[%s12995_s7 + $0x200] sm:$0xff] }
 0x41c   :  { %6986 = vmatpush1.bf16.msra.mxu0 %v6985_v59  ;;  %v8076_v59 = vpop.eup %8075 }
 0x41d   :  { %6988 = vmatprep.subr.bf16.mxu0 %v6987_v60  ;;  %v1200_v60 = vmul.f32 %v8074_v57, %v9498_v55  ;;  %v1197_v61 = vmul.f32 %v8076_v59, %v9501_v56  ;;  %v5215_v55 = vld [vmem:[%s12993_s5 + $0x200] sm:$0xff]  ;;  %v5217_v56 = vld [vmem:[%s12993_s5 + $0x210] sm:$0xff]  ;;  %v5252_v57 = vld [vmem:[%s12993_s5 + $0x328] sm:$0xff] }
 0x41e   :  { %v5254_v59 = vld [vmem:[%s12993_s5 + $0x338] sm:$0xff] }
 0x420   :  { %6990 = vmatpush1.bf16.msra.mxu0 %v6989_v4  ;;  %v8078_v62 = vpop.eup %8077  ;;  %v7021_v4 = vpack.c.bf16 %v5217_v56, %v5215_v55  ;;  %v5255_v55 = vld [vmem:[%s12993_s5 + $0x340] sm:$0xff]  ;;  %v5257_v56 = vld [vmem:[%s12993_s5 + $0x350] sm:$0xff] }
 0x421   :  { %6992 = vmatprep.subr.bf16.mxu0 %v6991_v5  ;;  %v1199_v63 = vmul.f32 %v8078_v62, %v9518_v1  ;;  %v5220_v1 = vld [vmem:[%s12993_s5 + $0x228] sm:$0xff]  ;;  %v5222_v5 = vld [vmem:[%s12993_s5 + $0x238] sm:$0xff]  ;;  %v5253_v62 = vld [vmem:[%s12993_s5 + $0x330] sm:$0xff] }
 0x422   :  { %7022 = vmatpush1.bf16.msra.mxu1 %v7021_v4  ;;  %v7023_v7 = vpack.c.bf16 %v5222_v5, %v5220_v1  ;;  %v7061_v4 = vpack.c.bf16 %v5257_v56, %v5255_v55  ;;  %v5260_v1 = vld [vmem:[%s12993_s5 + $0x368] sm:$0xff]  ;;  %v5262_v5 = vld [vmem:[%s12993_s5 + $0x378] sm:$0xff]  ;;  %v7093_v56 = vpack.c.bf16 %v5294_v45, %v5292_v48 }
 0x423   :  { %v5299_v55 = vld [vmem:[%s12995_s7 + $0x278] sm:$0xff] }
 0x424   :  { %6994 = vmatpush1.bf16.msra.mxu0 %v6993_v11  ;;  %7024 = vmatprep.subr.bf16.mxu1 %v7023_v7  ;;  %v5226_v11 = vld [vmem:[%s12993_s5 + $0x258] sm:$0xff]  ;;  %v7063_v7 = vpack.c.bf16 %v5262_v5, %v5260_v1  ;;  %v5296_v1 = vld [vmem:[%s12995_s7 + $0x260] sm:$0xff]  ;;  %v5298_v5 = vld [vmem:[%s12995_s7 + $0x270] sm:$0xff] }
 0x425   :  { %6996 = vmatprep.subr.bf16.mxu0 %v6995_v12  ;;  %v7027_v12 = vpack.c.bf16 %v5226_v11, %v5224_v10  ;;  %v5264_v10 = vld [vmem:[%s12993_s5 + $0x388] sm:$0xff]  ;;  %v5266_v11 = vld [vmem:[%s12993_s5 + $0x398] sm:$0xff] }
 0x426   :  { %7026 = vmatpush1.bf16.msra.mxu1 %v7025_v47  ;;  %v7065_v47 = vpack.c.bf16 %v5261_v9, %v5259_v8  ;;  %v5303_v8 = vld [vmem:[%s12995_s7 + $0x298] sm:$0xff]  ;;  %v7097_v9 = vpack.c.bf16 %v5298_v5, %v5296_v1 }
 0x427   :  { %7028 = vmatprep.subr.bf16.mxu1 %v7027_v12  ;;  %v7067_v12 = vpack.c.bf16 %v5266_v11, %v5264_v10  ;;  %v5300_v10 = vld [vmem:[%s12995_s7 + $0x280] sm:$0xff]  ;;  %v5302_v11 = vld [vmem:[%s12995_s7 + $0x290] sm:$0xff] }
 0x428   :  { %6998 = vmatpush1.bf16.msra.mxu0 %v6997_v19  ;;  %v5230_v19 = vld [vmem:[%s12993_s5 + $0x278] sm:$0xff] }
 0x429   :  { %7000 = vmatprep.subr.bf16.mxu0 %v6999_v20  ;;  %v7031_v20 = vpack.c.bf16 %v5230_v19, %v5228_v18  ;;  %v5268_v18 = vld [vmem:[%s12993_s5 + $0x3a8] sm:$0xff]  ;;  %v5270_v19 = vld [vmem:[%s12993_s5 + $0x3b8] sm:$0xff] }
 0x42a   :  { %7030 = vmatpush1.bf16.msra.mxu1 %v7029_v16  ;;  %v7069_v16 = vpack.c.bf16 %v5265_v14, %v5263_v13  ;;  %v5307_v13 = vld [vmem:[%s12995_s7 + $0x2b8] sm:$0xff]  ;;  %v7101_v14 = vpack.c.bf16 %v5302_v11, %v5300_v10 }
 0x42b   :  { %7032 = vmatprep.subr.bf16.mxu1 %v7031_v20  ;;  %v7071_v20 = vpack.c.bf16 %v5270_v19, %v5268_v18  ;;  %v5304_v18 = vld [vmem:[%s12995_s7 + $0x2a0] sm:$0xff]  ;;  %v5306_v19 = vld [vmem:[%s12995_s7 + $0x2b0] sm:$0xff] }
 0x42c   :  { %7002 = vmatpush1.bf16.msra.mxu0 %v7001_v23  ;;  %v7035_v23 = vpack.c.bf16 %v5234_v22, %v5232_v0  ;;  %v5272_v0 = vld [vmem:[%s12993_s5 + $0x3c8] sm:$0xff]  ;;  %v5274_v22 = vld [vmem:[%s12993_s5 + $0x3d8] sm:$0xff] }
 0x42d   :  { %7004 = vmatprep.subr.bf16.mxu0 %v7003_v25  ;;  %v5233_v25 = vld [vmem:[%s12993_s5 + $0x290] sm:$0xff] }
 0x42e   :  { %7034 = vmatpush1.bf16.msra.mxu1 %v7033_v15  ;;  %v7037_v17 = vpack.c.bf16 %v5233_v25, %v5231_v24  ;;  %v7073_v15 = vpack.c.bf16 %v5269_v6, %v5267_v21  ;;  %v5271_v24 = vld [vmem:[%s12993_s5 + $0x3c0] sm:$0xff]  ;;  %v5273_v25 = vld [vmem:[%s12993_s5 + $0x3d0] sm:$0xff]  ;;  %v5311_v21 = vld [vmem:[%s12995_s7 + $0x2d8] sm:$0xff]  ;;  %v7105_v6 = vpack.c.bf16 %v5306_v19, %v5304_v18 }
 0x42f   :  { %7036 = vmatprep.subr.bf16.mxu1 %v7035_v23  ;;  %v7075_v23 = vpack.c.bf16 %v5274_v22, %v5272_v0  ;;  %v5308_v0 = vld [vmem:[%s12995_s7 + $0x2c0] sm:$0xff]  ;;  %v5310_v22 = vld [vmem:[%s12995_s7 + $0x2d0] sm:$0xff] }
 0x430   :  { %7006 = vmatpush1.bf16.msra.mxu0 %v7005_v31  ;;  %v7041_v31 = vpack.c.bf16 %v5237_v30, %v5235_v29  ;;  %v5275_v29 = vld [vmem:[%s12993_s5 + $0x3e0] sm:$0xff]  ;;  %v5277_v30 = vld [vmem:[%s12993_s5 + $0x3f0] sm:$0xff] }
 0x431   :  { %7008 = vmatprep.subr.bf16.mxu0 %v7007_v35  ;;  %v5242_v35 = vld [vmem:[%s12993_s5 + $0x2d8] sm:$0xff] }
 0x432   :  { %7038 = vmatpush1.bf16.msra.mxu1 %v7037_v17  ;;  %v7043_v36 = vpack.c.bf16 %v5242_v35, %v5240_v33  ;;  %v7077_v17 = vpack.c.bf16 %v5273_v25, %v5271_v24  ;;  %v5127_v35 = vld [vmem:[%s13001_s10] ss:$0 sm:$0xff]  ;;  %v5315_v24 = vld [vmem:[%s12995_s7 + $0x2f8] sm:$0xff]  ;;  %v7109_v25 = vpack.c.bf16 %v5310_v22, %v5308_v0 }
 0x433   :  { %7040 = vmatprep.subr.bf16.mxu1 %v7039_v28  ;;  %v7079_v28 = vpack.c.bf16 %v5278_v27, %v5276_v26  ;;  %v5312_v27 = vld [vmem:[%s12995_s7 + $0x2e0] sm:$0xff] }
 0x434   :  { %7010 = vmatpush1.bf16.msra.mxu0 %v7009_v41  ;;  %v5246_v41 = vld [vmem:[%s12993_s5 + $0x2f8] sm:$0xff] }
 0x435   :  { %7012 = vmatprep.subr.bf16.mxu0 %v7011_v42  ;;  %v7047_v42 = vpack.c.bf16 %v5246_v41, %v5244_v40 }
 0x436   :  { %7042 = vmatpush1.bf16.msra.mxu1 %v7041_v31  ;;  %v7081_v31 = vpack.c.bf16 %v5277_v30, %v5275_v29  ;;  %v5128_v29 = vld [vmem:[%s13003_s12] ss:$0 sm:$0xff] }
 0x437   :  { %7044 = vmatprep.subr.bf16.mxu1 %v7043_v36 }
 0x438   :  { %7014 = vmatpush1.bf16.msra.mxu0 %v7013_v50  ;;  %v5250_v50 = vld [vmem:[%s12993_s5 + $0x318] sm:$0xff] }
 0x439   :  { %7016 = vmatprep.subr.bf16.mxu0 %v7015_v51  ;;  %v7051_v51 = vpack.c.bf16 %v5250_v50, %v5248_v49  ;;  %v5286_v50 = vld [vmem:[%s12995_s7 + $0x210] sm:$0xff] }
 0x43a   :  { %7046 = vmatpush1.bf16.msra.mxu1 %v7045_v39 }
 0x43b   :  { %7048 = vmatprep.subr.bf16.mxu1 %v7047_v42  ;;  %v5285_v42 = vld [vmem:[%s12995_s7 + $0x208] sm:$0xff] }
 0x43c   :  { %7018 = vmatpush1.bf16.msra.mxu0 %v7017_v54  ;;  %v7053_v54 = vpack.c.bf16 %v5249_v53, %v5247_v52  ;;  %v7083_v49 = vpack.c.bf16 %v5287_v43, %v5285_v42  ;;  %v5291_v52 = vld [vmem:[%s12995_s7 + $0x238] sm:$0xff]  ;;  %v7085_v53 = vpack.c.bf16 %v5286_v50, %v5284_v44 }
 0x43e   :  { %7050 = vmatpush1.bf16.msra.mxu1 %v7049_v46  ;;  %7084 = vmatprep.subr.bf16.mxu0 %v7083_v49 }
 0x43f   :  { %1344 = vmatmul.mubr.f32.vlgmr.msra.gmra.mrb[16].mxu0 %v1197_v61  ;;  %7052 = vmatprep.subr.bf16.mxu1 %v7051_v51  ;;  %v5251_v61 = vld [vmem:[%s12993_s5 + $0x320] sm:$0xff]  ;;  %v5289_v51 = vld [vmem:[%s12995_s7 + $0x228] sm:$0xff] }
 0x440   :  { %1349 = vmatprep.mubr.f32.mxu0 %v1200_v60  ;;  %v7055_v60 = vpack.c.bf16 %v5254_v59, %v5252_v57  ;;  %v5288_v57 = vld [vmem:[%s12995_s7 + $0x220] sm:$0xff]  ;;  %v5290_v59 = vld [vmem:[%s12995_s7 + $0x230] sm:$0xff]  ;;  %7086 = vmatpush1.bf16.msra.mxu0 %v7085_v53 }
 0x442   :  { %7054 = vmatpush1.bf16.msra.mxu1 %v7053_v54  ;;  %v7087_v54 = vpack.c.bf16 %v5291_v52, %v5289_v51 }
 0x443   :  { %1350 = vmatmul.mubr.f32.gmra.mrb[18].mxu0 %v1199_v63  ;;  %v7057_v63 = vpack.c.bf16 %v5253_v62, %v5251_v61  ;;  %7056 = vmatprep.subr.bf16.mxu1 %v7055_v60  ;;  %v5293_v60 = vld [vmem:[%s12995_s7 + $0x248] sm:$0xff]  ;;  %v5295_v61 = vld [vmem:[%s12995_s7 + $0x258] sm:$0xff]  ;;  %v7089_v62 = vpack.c.bf16 %v5290_v59, %v5288_v57 }
 0x444   :  { %7088 = vmatprep.subr.bf16.mxu0 %v7087_v54 }
 0x445   :  { %7090 = vmatpush1.bf16.msra.mxu0 %v7089_v62 }
 0x446   :  { %7058 = vmatpush1.bf16.msra.mxu1 %v7057_v63  ;;  %v7091_v63 = vpack.c.bf16 %v5295_v61, %v5293_v60 }
 0x447   :  { %7060 = vmatprep.subr.bf16.mxu1 %v7059_v58  ;;  %v5297_v58 = vld [vmem:[%s12995_s7 + $0x268] sm:$0xff] }
 0x448   :  { %7092 = vmatprep.subr.bf16.mxu0 %v7091_v63 }
 0x449   :  { %7094 = vmatpush1.bf16.msra.mxu0 %v7093_v56 }
 0x44a   :  { %7062 = vmatpush1.bf16.msra.mxu1 %v7061_v4  ;;  %v7095_v4 = vpack.c.bf16 %v5299_v55, %v5297_v58 }
 0x44b   :  { %7064 = vmatprep.subr.bf16.mxu1 %v7063_v7  ;;  %v5301_v7 = vld [vmem:[%s12995_s7 + $0x288] sm:$0xff] }
 0x44c   :  { %7096 = vmatprep.subr.bf16.mxu0 %v7095_v4 }
 0x44d   :  { %7098 = vmatpush1.bf16.msra.mxu0 %v7097_v9  ;;  %v9910_v9 = vld [vmem:[%s13005_s14] ss:$0 sm:$0xff] }
 0x44e   :  { %7066 = vmatpush1.bf16.msra.mxu1 %v7065_v47  ;;  %v7099_v47 = vpack.c.bf16 %v5303_v8, %v5301_v7 }
 0x44f   :  { %7068 = vmatprep.subr.bf16.mxu1 %v7067_v12  ;;  %v5305_v12 = vld [vmem:[%s12995_s7 + $0x2a8] sm:$0xff] }
 0x450   :  { %7100 = vmatprep.subr.bf16.mxu0 %v7099_v47 }
 0x451   :  { %7102 = vmatpush1.bf16.msra.mxu0 %v7101_v14 }
 0x452   :  { %7070 = vmatpush1.bf16.msra.mxu1 %v7069_v16  ;;  %v7103_v16 = vpack.c.bf16 %v5307_v13, %v5305_v12 }
 0x453   :  { %7072 = vmatprep.subr.bf16.mxu1 %v7071_v20  ;;  %v5309_v20 = vld [vmem:[%s12995_s7 + $0x2c8] sm:$0xff] }
 0x454   :  { %7104 = vmatprep.subr.bf16.mxu0 %v7103_v16 }
 0x455   :  { %7106 = vmatpush1.bf16.msra.mxu0 %v7105_v6 }
 0x456   :  { %7074 = vmatpush1.bf16.msra.mxu1 %v7073_v15  ;;  %v7107_v15 = vpack.c.bf16 %v5311_v21, %v5309_v20 }
 0x457   :  { %7076 = vmatprep.subr.bf16.mxu1 %v7075_v23  ;;  %v5313_v23 = vld [vmem:[%s12995_s7 + $0x2e8] sm:$0xff] }
 0x458   :  { %7108 = vmatprep.subr.bf16.mxu0 %v7107_v15  ;;  %v7111_v26 = vpack.c.bf16 %v5315_v24, %v5313_v23  ;;  %v5210_v23 = vld [vmem:[%s12996_s4 + $0x2] sm:$0x3] }
 0x459   :  { %7110 = vmatpush1.bf16.msra.mxu0 %v7109_v25  ;;  %v1272_v24 = vrot.slane %v5210_v23, %v8830_v32  ;;  %v1276_v25 = vrot.slane %v5210_v23, %v8835_v34 }
 0x45a   :  { %7078 = vmatpush1.bf16.msra.mxu1 %v7077_v17  ;;  %7112 = vmatprep.subr.bf16.mxu0 %v7111_v26 }
 0x45b   :  { %7080 = vmatprep.subr.bf16.mxu1 %v7079_v28  ;;  %v5314_v28 = vld [vmem:[%s12995_s7 + $0x2f0] sm:$0xff] }
 0x45e   :  { %7082 = vmatpush1.bf16.msra.mxu1 %v7081_v31 }
 0x4b2   :  { %v6339_v33 = vpop.f32.mrb[8].mxu0 }
 0x4b3   :  { %v6340_v36 = vpop.f32.mrb[9].mxu0 }
 0x4b4   :  { %v6341_v37 = vadd.f32 %v6340_v36, %v6339_v33  ;;  %v5129_v33 = vld [vmem:[%s13004_s13] ss:$0 sm:$0xff] }
 0x4b6   :  { %v840_v38 = vadd.f32 %v6341_v37, %v5127_v35  ;;  %v6342_v39 = vpop.f32.mrb[10].mxu0 }
 0x4b7   :  { %v6343_v40 = vpop.f32.mrb[11].mxu0 }
 0x4b8   :  { %1055 = vst.msk [vmem:[%s13002_s15] sm:$0xff] %vm1054_vm4, %v840_v38  ;;  %v6344_v41 = vadd.f32 %v6343_v40, %v6342_v39 }
 0x4ba   :  { %v845_v46 = vadd.f32 %v6344_v41, %v5127_v35  ;;  %v7113_v35 = vpack.c.bf16 %v5314_v28, %v5312_v27 }
 0x4bc   :  { %1056 = vst.msk [vmem:[%s13002_s15 + $0x8] sm:$0xff] %vm1054_vm4, %v845_v46  ;;  %7114 = vmatpush1.bf16.msra.mxu0 %v7113_v35 }
 0x4d2   :  { %v6377_v17 = vpop.f32.mrb[12].mxu0 }
 0x4d3   :  { %v6378_v30 = vpop.f32.mrb[13].mxu0 }
 0x4d4   :  { %v6379_v31 = vadd.f32 %v6378_v30, %v6377_v17 }
 0x4d6   :  { %v954_v36 = vadd.f32 %v6379_v31, %v5128_v29  ;;  %v6380_v37 = vpop.f32.mrb[14].mxu0 }
 0x4d7   :  { %v6381_v38 = vpop.f32.mrb[15].mxu0 }
 0x4d8   :  { %v968_v39 = vsub.f32 %v5129_v33, %v954_v36  ;;  %v6382_v40 = vadd.f32 %v6381_v38, %v6380_v37 }
 0x4da   :  { %v976_v41 = vand.u32 2147483647, %v968_v39  ;;  %v959_v42 = vadd.f32 %v6382_v40, %v5128_v29  ;;  %v970_v55 = vmax.f32 %v968_v39, 0.0  ;;  %vm972_vm6 = vcmp.ne.f32.partialorder %v968_v39, %v968_v39 }
 0x4dc   :  { %v978_v43 = vsub.f32 0.0, %v976_v41  ;;  %v969_v44 = vsub.f32 %v5129_v33, %v959_v42 }
 0x4de   :  { %v980_v46 = vmul.f32 1.442695, %v978_v43  ;;  %v977_v49 = vand.u32 2147483647, %v969_v44  ;;  %v971_v10 = vmax.f32 %v969_v44, 0.0  ;;  %vm973_vm8 = vcmp.ne.f32.partialorder %v969_v44, %v969_v44 }
 0x4e0   :  { %8079 = vpow2.f32 %v980_v46  ;;  %v979_v50 = vsub.f32 0.0, %v977_v49 }
 0x4e2   :  { %v982_v51 = vmul.f32 1.442695, %v979_v50 }
 0x4e4   :  { %8081 = vpow2.f32 %v982_v51 }
 0x4ea   :  { %v8080_v52 = vpop.eup %8079 }
 0x4eb   :  { %v984_v53 = vadd.f32 1.0, %v8080_v52  ;;  %v987_v59 = vmul.f32 -0.5, %v8080_v52  ;;  %v990_v62 = vand.u32 2147483647, %v8080_v52 }
 0x4ed   :  { %8083 = vlog2.f32 %v984_v53  ;;  %v988_v60 = vadd.f32 1.0, %v987_v59  ;;  %vm991_vm5 = vcmp.lt.f32.partialorder %v990_v62, 0.0004427343 }
 0x4ee   :  { %v8082_v54 = vpop.eup %8081 }
 0x4ef   :  { %v993_v57 = vadd.f32 1.0, %v8082_v54  ;;  %v996_v61 = vmul.f32 -0.5, %v8082_v54  ;;  %v989_v45 = vmul.f32 %v8080_v52, %v988_v60  ;;  %v999_v56 = vand.u32 2147483647, %v8082_v54 }
 0x4f1   :  { %8085 = vlog2.f32 %v993_v57  ;;  %v997_v58 = vadd.f32 1.0, %v996_v61  ;;  %vm1000_vm7 = vcmp.lt.f32.partialorder %v999_v56, 0.0004427343 }
 0x4f3   :  { %v998_v8 = vmul.f32 %v8082_v54, %v997_v58 }
 0x4f7   :  { %v8084_v63 = vpop.eup %8083 }
 0x4f8   :  { %v986_v48 = vmul.f32 0.6931472, %v8084_v63 }
 0x4fa   :  { %v992_v4 = vsel %vm991_vm5, %v989_v45, %v986_v48 }
 0x4fb   :  { %v8086_v1 = vpop.eup %8085  ;;  %v1002_v5 = vadd.f32 %v992_v4, %v970_v55 }
 0x4fc   :  { %v995_v7 = vmul.f32 0.6931472, %v8086_v1 }
 0x4fd   :  { %v1004_v47 = vsel %vm972_vm6, %v968_v39, %v1002_v5 }
 0x4fe   :  { %v1006_v11 = vsub.f32 %v5129_v33, %v1004_v47  ;;  %v1001_v12 = vsel %vm1000_vm7, %v998_v8, %v995_v7 }
 0x4ff   :  { %v1003_v13 = vadd.f32 %v1001_v12, %v971_v10 }
 0x500   :  { %v1014_v14 = vsub.f32 %v1006_v11, %v9910_v9 }
 0x501   :  { %v1005_v16 = vsel %vm973_vm8, %v969_v44, %v1003_v13 }
 0x502   :  { %v1022_v18 = vand.u32 2147483647, %v1014_v14  ;;  %v1007_v19 = vsub.f32 %v5129_v33, %v1005_v16  ;;  %v1016_v54 = vmax.f32 %v1014_v14, 0.0  ;;  %vm1018_vm10 = vcmp.ne.f32.partialorder %v1014_v14, %v1014_v14 }
 0x504   :  { %v1024_v20 = vsub.f32 0.0, %v1022_v18  ;;  %v9914_v21 = vsub.f32 %v1007_v19, %v9910_v9 }
 0x506   :  { %v1026_v6 = vmul.f32 1.442695, %v1024_v20  ;;  %v1023_v15 = vand.u32 2147483647, %v9914_v21  ;;  %v1017_v56 = vmax.f32 %v9914_v21, 0.0  ;;  %vm1019_vm12 = vcmp.ne.f32.partialorder %v9914_v21, %v9914_v21 }
 0x508   :  { %8087 = vpow2.f32 %v1026_v6  ;;  %v1025_v0 = vsub.f32 0.0, %v1023_v15 }
 0x50a   :  { %v1028_v22 = vmul.f32 1.442695, %v1025_v0 }
 0x50c   :  { %8089 = vpow2.f32 %v1028_v22 }
 0x512   :  { %v8088_v17 = vpop.eup %8087  ;;  %v1345_v26 = vpop.f32.mrb[16].mxu0 }
 0x513   :  { %v1030_v27 = vadd.f32 1.0, %v8088_v17  ;;  %v9922_v28 = vadd.f32 %v1345_v26, %v1272_v24  ;;  %v1347_v29 = vpop.f32.mrb[17].mxu0  ;;  %v1033_v39 = vmul.f32 -0.5, %v8088_v17  ;;  %v1036_v49 = vand.u32 2147483647, %v8088_v17  ;;  %v5316_v26 = vld [vmem:[%s12995_s7 + $0x300] sm:$0xff] }
 0x514   :  { %v1348_v30 = vadd.f32 %v1347_v29, %v1276_v25  ;;  %v5321_v29 = vld [vmem:[%s12995_s7 + $0x328] sm:$0xff] }
 0x515   :  { %8091 = vlog2.f32 %v1030_v27  ;;  %v5211_v31 = vmul.f32 -1.442695, %v9922_v28  ;;  %v1034_v44 = vadd.f32 1.0, %v1033_v39  ;;  %vm1037_vm9 = vcmp.lt.f32.partialorder %v1036_v49, 0.0004427343  ;;  %v5318_v27 = vld [vmem:[%s12995_s7 + $0x310] sm:$0xff] }
 0x516   :  { %v8090_v33 = vpop.eup %8089  ;;  %v5212_v35 = vmul.f32 -1.442695, %v1348_v30  ;;  %v1351_v36 = vpop.f32.mrb[18].mxu0  ;;  %v5328_v49 = vld [vmem:[%s12995_s7 + $0x360] sm:$0xff] }
 0x517   :  { %v1039_v37 = vadd.f32 1.0, %v8090_v33  ;;  %v1353_v38 = vpop.f32.mrb[19].mxu0  ;;  %8093 = vpow2.f32 %v5211_v31  ;;  %v1352_v40 = vadd.f32 %v1351_v36, %v1272_v24  ;;  %v1042_v46 = vmul.f32 -0.5, %v8090_v33  ;;  %v5317_v24 = vld [vmem:[%s12995_s7 + $0x308] sm:$0xff] }
 0x518   :  { %v1354_v41 = vadd.f32 %v1353_v38, %v1276_v25  ;;  %v1035_v52 = vmul.f32 %v8088_v17, %v1034_v44  ;;  %v1045_v57 = vand.u32 2147483647, %v8090_v33  ;;  %v5319_v25 = vld [vmem:[%s12995_s7 + $0x318] sm:$0xff] }
 0x519   :  { %8095 = vlog2.f32 %v1039_v37  ;;  %v5213_v42 = vmul.f32 -1.442695, %v1352_v40  ;;  %v1043_v53 = vadd.f32 1.0, %v1042_v46  ;;  %v7115_v17 = vpack.c.bf16 %v5319_v25, %v5317_v24  ;;  %v5325_v37 = vld [vmem:[%s12995_s7 + $0x348] sm:$0xff]  ;;  %v5327_v38 = vld [vmem:[%s12995_s7 + $0x358] sm:$0xff] }
 0x51a   :  { %8097 = vpow2.f32 %v5212_v35  ;;  %v5214_v43 = vmul.f32 -1.442695, %v1354_v41  ;;  %vm1046_vm11 = vcmp.lt.f32.partialorder %v1045_v57, 0.0004427343  ;;  %v5322_v35 = vld [vmem:[%s12995_s7 + $0x330] sm:$0xff]  ;;  %v7123_v39 = vpack.c.bf16 %v5327_v38, %v5325_v37  ;;  %v5331_v44 = vld [vmem:[%s12995_s7 + $0x378] sm:$0xff] }
 0x51b   :  { %8099 = vpow2.f32 %v5213_v42  ;;  %v1044_v58 = vmul.f32 %v8090_v33, %v1043_v53  ;;  %7116 = vmatprep.subr.bf16.mxu0 %v7115_v17  ;;  %v5320_v33 = vld [vmem:[%s12995_s7 + $0x320] sm:$0xff]  ;;  %v5335_v53 = vld [vmem:[%s12995_s7 + $0x398] sm:$0xff] }
 0x51c   :  { %8101 = vpow2.f32 %v5214_v43  ;;  %v7121_v36 = vpack.c.bf16 %v5322_v35, %v5320_v33  ;;  %v5329_v43 = vld [vmem:[%s12995_s7 + $0x368] sm:$0xff]  ;;  %v5332_v57 = vld [vmem:[%s12995_s7 + $0x380] sm:$0xff] }
 0x51d   :  { %v7127_v46 = vpack.c.bf16 %v5331_v44, %v5329_v43 }
 0x51f   :  { %v8092_v50 = vpop.eup %8091 }
 0x520   :  { %v1032_v51 = vmul.f32 0.6931472, %v8092_v50  ;;  %v5330_v50 = vld [vmem:[%s12995_s7 + $0x370] sm:$0xff] }
 0x521   :  { %v8094_v59 = vpop.eup %8093 }
 0x522   :  { %v1038_v60 = vsel %vm1037_vm9, %v1035_v52, %v1032_v51  ;;  %v1368_v63 = vadd.f32 1.0, %v8094_v59  ;;  %v7129_v51 = vpack.c.bf16 %v5330_v50, %v5328_v49  ;;  %v5333_v52 = vld [vmem:[%s12995_s7 + $0x388] sm:$0xff]  ;;  %v5334_v59 = vld [vmem:[%s12995_s7 + $0x390] sm:$0xff] }
 0x523   :  { %v8096_v61 = vpop.eup %8095  ;;  %v1048_v62 = vadd.f32 %v1038_v60, %v1016_v54  ;;  %v7131_v54 = vpack.c.bf16 %v5335_v53, %v5333_v52  ;;  %v7133_v60 = vpack.c.bf16 %v5334_v59, %v5332_v57  ;;  %v5425_v53 = vld [vmem:[%s12991_s0 + $0x20] sm:$0xff]  ;;  %v5370_v59 = vld [vmem:[%s12998_s9 + $0x188] sm:$0xff] }
 0x524   :  { %v8098_v48 = vpop.eup %8097  ;;  %v1041_v45 = vmul.f32 0.6931472, %v8096_v61  ;;  %8103 = vrcp.f32 %v1368_v63  ;;  %v5337_v61 = vld [vmem:[%s12995_s7 + $0x3a8] sm:$0xff]  ;;  %v5369_v57 = vld [vmem:[%s12998_s9 + $0x180] sm:$0xff] }
 0x525   :  { %v1050_v55 = vsel %vm1018_vm10, %v1014_v14, %v1048_v62  ;;  %v1369_v4 = vadd.f32 1.0, %v8098_v48  ;;  %v8100_v1 = vpop.eup %8099  ;;  %v5339_v62 = vld [vmem:[%s12995_s7 + $0x3b8] sm:$0xff]  ;;  %v5336_v48 = vld [vmem:[%s12995_s7 + $0x3a0] sm:$0xff] }
 0x526   :  { %v1052_v5 = vadd.f32 %v9910_v9, %v1050_v55  ;;  %v1047_v7 = vsel %vm1046_vm11, %v1044_v58, %v1041_v45  ;;  %v8102_v8 = vpop.eup %8101  ;;  %v1370_v10 = vadd.f32 1.0, %v8100_v1  ;;  %v7135_v63 = vpack.c.bf16 %v5339_v62, %v5337_v61  ;;  %v5338_v45 = vld [vmem:[%s12995_s7 + $0x3b0] sm:$0xff]  ;;  %v5341_v55 = vld [vmem:[%s12995_s7 + $0x3c8] sm:$0xff]  ;;  %v5340_v1 = vld [vmem:[%s12995_s7 + $0x3c0] sm:$0xff] }
 0x527   :  { %v1049_v47 = vadd.f32 %v1047_v7, %v1017_v56  ;;  %8105 = vrcp.f32 %v1369_v4  ;;  %v1371_v12 = vadd.f32 1.0, %v8102_v8  ;;  %v7137_v58 = vpack.c.bf16 %v5338_v45, %v5336_v48  ;;  %v5343_v56 = vld [vmem:[%s12995_s7 + $0x3d8] sm:$0xff]  ;;  %v5345_v8 = vld [vmem:[%s12995_s7 + $0x3e8] sm:$0xff]  ;;  %v5353_v61 = vld [vmem:[%s12998_s9 + $0x100] sm:$0xff] }
 0x528   :  { %v1057_v11 = vmul.f32 1.442695, %v1052_v5  ;;  %8107 = vrcp.f32 %v1370_v10  ;;  %v7139_v4 = vpack.c.bf16 %v5343_v56, %v5341_v55  ;;  %v5342_v5 = vld [vmem:[%s12995_s7 + $0x3d0] sm:$0xff]  ;;  %v5354_v62 = vld [vmem:[%s12998_s9 + $0x108] sm:$0xff]  ;;  %v5372_v45 = vld [vmem:[%s12998_s9 + $0x198] sm:$0xff] }
 0x529   :  { %v1051_v13 = vsel %vm1019_vm12, %v9914_v21, %v1049_v47  ;;  %v7141_v7 = vpack.c.bf16 %v5342_v5, %v5340_v1  ;;  %v5347_v47 = vld [vmem:[%s12995_s7 + $0x3f8] sm:$0xff]  ;;  %v5371_v48 = vld [vmem:[%s12998_s9 + $0x190] sm:$0xff]  ;;  %v5373_v1 = vld [vmem:[%s12998_s9 + $0x1a0] sm:$0xff] }
 0x52a   :  { %8109 = vpow2.f32 %v1057_v11  ;;  %v1053_v14 = vadd.f32 %v9910_v9, %v1051_v13  ;;  %v7143_v10 = vpack.c.bf16 %v5347_v47, %v5345_v8  ;;  %v5344_v11 = vld [vmem:[%s12995_s7 + $0x3e0] sm:$0xff]  ;;  %v5355_v55 = vld [vmem:[%s12998_s9 + $0x110] sm:$0xff]  ;;  %v5356_v56 = vld [vmem:[%s12998_s9 + $0x118] sm:$0xff] }
 0x52b   :  { %8111 = vrcp.f32 %v1371_v12  ;;  %v5346_v12 = vld [vmem:[%s12995_s7 + $0x3f0] sm:$0xff]  ;;  %v5374_v5 = vld [vmem:[%s12998_s9 + $0x1a8] sm:$0xff]  ;;  %v5357_v8 = vld [vmem:[%s12998_s9 + $0x120] sm:$0xff] }
 0x52c   :  { %v1059_v16 = vmul.f32 1.442695, %v1053_v14  ;;  %v7145_v13 = vpack.c.bf16 %v5346_v12, %v5344_v11  ;;  %v5428_v14 = vld [vmem:[%s13009_s23 + $0x48] sm:$0xff]  ;;  %v5375_v11 = vld [vmem:[%s12998_s9 + $0x1b0] sm:$0xff]  ;;  %v5376_v12 = vld [vmem:[%s12998_s9 + $0x1b8] sm:$0xff] }
 0x52d   :  { %v5358_v47 = vld [vmem:[%s12998_s9 + $0x128] sm:$0xff] }
 0x52e   :  { %8113 = vpow2.f32 %v1059_v16  ;;  %v8104_v18 = vpop.eup %8103  ;;  %v5430_v16 = vld [vmem:[%s13009_s23 + $0x58] sm:$0xf] }
 0x52f   :  { %v1380_v15 = vmul.f32 %v8104_v18, %v9922_v28  ;;  %v7117_v28 = vpack.c.bf16 %v5318_v27, %v5316_v26  ;;  %v7211_v18 = vpack.c.bf16 %v5430_v16, %v5428_v14  ;;  %v5359_v14 = vld [vmem:[%s12998_s9 + $0x130] sm:$0xff]  ;;  %v5360_v16 = vld [vmem:[%s12998_s9 + $0x138] sm:$0xff] }
 0x531   :  { %v8106_v19 = vpop.eup %8105  ;;  %7118 = vmatpush1.bf16.msra.mxu0 %v7117_v28 }
 0x532   :  { %v1381_v20 = vmul.f32 %v8106_v19, %v1348_v30  ;;  %v8108_v6 = vpop.eup %8107  ;;  %v5323_v30 = vld [vmem:[%s12995_s7 + $0x338] sm:$0xff]  ;;  %v5279_v19 = vld [vmem:[%s12997_s6 + $0x2] sm:$0x3] }
 0x533   :  { %v1382_v9 = vmul.f32 %v8108_v6, %v1352_v40  ;;  %v7119_v31 = vpack.c.bf16 %v5323_v30, %v5321_v29  ;;  %v5324_v40 = vld [vmem:[%s12995_s7 + $0x340] sm:$0xff]  ;;  %v1459_v6 = vrot.slane %v5279_v19, %v8835_v34 }
 0x534   :  { %v8110_v0 = vpop.eup %8109  ;;  %1526 = vmatprep.mubr.f32.mxu1 %v1381_v20  ;;  %v1455_v20 = vrot.slane %v5279_v19, %v8830_v32  ;;  %v5377_v19 = vld [vmem:[%s12998_s9 + $0x1c0] sm:$0xff] }
 0x535   :  { %v8112_v22 = vpop.eup %8111  ;;  %1061 = vst.msk [vmem:[%s13006_s16] sm:$0xff] %vm1054_vm4, %v8110_v0  ;;  %1527 = vmatmul.mubr.f32.vlgmr.msra.gmra.mrb[12].mxu1 %v1380_v15  ;;  %7120 = vmatprep.subr.bf16.mxu0 %v7119_v31 }
 0x536   :  { %v1383_v21 = vmul.f32 %v8112_v22, %v1354_v41  ;;  %7122 = vmatpush1.bf16.msra.mxu0 %v7121_v36  ;;  %v5326_v41 = vld [vmem:[%s12995_s7 + $0x350] sm:$0xff] }
 0x537   :  { %v7125_v42 = vpack.c.bf16 %v5326_v41, %v5324_v40  ;;  %7124 = vmatprep.subr.bf16.mxu0 %v7123_v39  ;;  %v5427_v39 = vld [vmem:[%s13009_s23 + $0x40] sm:$0xff]  ;;  %v5429_v40 = vld [vmem:[%s13009_s23 + $0x50] sm:$0xf] }
 0x538   :  { %v8114_v23 = vpop.eup %8113  ;;  %1532 = vmatprep.mubr.f32.mxu1 %v1383_v21  ;;  %v7214_v44 = vpack.c.bf16 %v5429_v40, %v5427_v39  ;;  %v5403_v40 = vld [vmem:[%s12999_s11 + $0x180] sm:$0xff] }
 0x539   :  { %1062 = vst.msk [vmem:[%s13006_s16 + $0x8] sm:$0xff] %vm1054_vm4, %v8114_v23  ;;  %1533 = vmatmul.mubr.f32.gmra.mrb[14].mxu1 %v1382_v9 }
 0x53a   :  { %7126 = vmatpush1.bf16.msra.mxu0 %v7125_v42 }
 0x53b   :  { %7128 = vmatprep.subr.bf16.mxu0 %v7127_v46 }
 0x53e   :  { %7130 = vmatpush1.bf16.msra.mxu0 %v7129_v51 }
 0x53f   :  { %7132 = vmatprep.subr.bf16.mxu0 %v7131_v54  ;;  %v5426_v54 = vld [vmem:[%s12991_s0 + $0x28] sm:$0xff] }
 0x542   :  { %7134 = vmatpush1.bf16.msra.mxu0 %v7133_v60  ;;  %v7147_v60 = vpack.c.bf16 %v5370_v59, %v5369_v57 }
 0x543   :  { %7136 = vmatprep.subr.bf16.mxu0 %v7135_v63  ;;  %v7149_v63 = vpack.c.bf16 %v5354_v62, %v5353_v61 }
 0x544   :  { %7148 = vmatprep.subr.bf16.mxu1 %v7147_v60 }
 0x545   :  { %7150 = vmatpush3.bf16.msra.mxu1 %v7149_v63 }
 0x546   :  { %7138 = vmatpush1.bf16.msra.mxu0 %v7137_v58  ;;  %v7151_v58 = vpack.c.bf16 %v5372_v45, %v5371_v48 }
 0x547   :  { %7140 = vmatprep.subr.bf16.mxu0 %v7139_v4  ;;  %v7153_v4 = vpack.c.bf16 %v5356_v56, %v5355_v55 }
 0x548   :  { %7152 = vmatprep.subr.bf16.mxu1 %v7151_v58 }
 0x549   :  { %7154 = vmatpush3.bf16.msra.mxu1 %v7153_v4 }
 0x54a   :  { %7142 = vmatpush1.bf16.msra.mxu0 %v7141_v7  ;;  %v7155_v7 = vpack.c.bf16 %v5374_v5, %v5373_v1 }
 0x54b   :  { %7144 = vmatprep.subr.bf16.mxu0 %v7143_v10  ;;  %v7157_v10 = vpack.c.bf16 %v5358_v47, %v5357_v8 }
 0x54c   :  { %7156 = vmatprep.subr.bf16.mxu1 %v7155_v7 }
 0x54d   :  { %7158 = vmatpush3.bf16.msra.mxu1 %v7157_v10 }
 0x54e   :  { %7146 = vmatpush1.bf16.msra.mxu0 %v7145_v13  ;;  %v7159_v13 = vpack.c.bf16 %v5376_v12, %v5375_v11  ;;  %v10183_v11 = vld [vmem:[%s12994_s2 + $0x4] sm:$0x3] }
 0x54f   :  { %7213 = vmatprep.subr.msk.bf16.mxu0 %vm8518_vm2, %v7211_v18  ;;  %v7161_v18 = vpack.c.bf16 %v5360_v16, %v5359_v14  ;;  %v10187_v12 = vrot.slane %v10183_v11, %v8835_v34  ;;  %v5388_v14 = vld [vmem:[%s12999_s11 + $0x108] sm:$0xff] }
 0x550   :  { %7160 = vmatprep.subr.bf16.mxu1 %v7159_v13  ;;  %v5387_v13 = vld [vmem:[%s12999_s11 + $0x100] sm:$0xff] }
 0x551   :  { %7162 = vmatpush3.bf16.msra.mxu1 %v7161_v18  ;;  %v5405_v18 = vld [vmem:[%s12999_s11 + $0x190] sm:$0xff] }
 0x608   :  { %v1528_v15 = vpop.f32.mrb[12].mxu1 }
 0x609   :  { %v1529_v0 = vadd.f32 %v1528_v15, %v1455_v20  ;;  %v1530_v22 = vpop.f32.mrb[13].mxu1  ;;  %v5361_v15 = vld [vmem:[%s12998_s9 + $0x140] sm:$0xff] }
 0x60a   :  { %v1531_v21 = vadd.f32 %v1530_v22, %v1459_v6 }
 0x60b   :  { %v5280_v9 = vmul.f32 -1.442695, %v1529_v0 }
 0x60c   :  { %v5281_v23 = vmul.f32 -1.442695, %v1531_v21  ;;  %v1534_v24 = vpop.f32.mrb[14].mxu1 }
 0x60d   :  { %8115 = vpow2.f32 %v5280_v9  ;;  %v1535_v25 = vadd.f32 %v1534_v24, %v1455_v20  ;;  %v1536_v17 = vpop.f32.mrb[15].mxu1  ;;  %v5378_v20 = vld [vmem:[%s12998_s9 + $0x1c8] sm:$0xff]  ;;  %v5380_v9 = vld [vmem:[%s12998_s9 + $0x1d8] sm:$0xff]  ;;  %v5363_v24 = vld [vmem:[%s12998_s9 + $0x150] sm:$0xff] }
 0x60e   :  { %8117 = vpow2.f32 %v5281_v23  ;;  %v1537_v26 = vadd.f32 %v1536_v17, %v1459_v6  ;;  %v7163_v6 = vpack.c.bf16 %v5378_v20, %v5377_v19  ;;  %v5406_v19 = vld [vmem:[%s12999_s11 + $0x198] sm:$0xff] }
 0x60f   :  { %v5282_v27 = vmul.f32 -1.442695, %v1535_v25 }
 0x610   :  { %v5283_v28 = vmul.f32 -1.442695, %v1537_v26  ;;  %7164 = vmatprep.subr.bf16.mxu1 %v7163_v6 }
 0x611   :  { %8119 = vpow2.f32 %v5282_v27  ;;  %v5382_v27 = vld [vmem:[%s12998_s9 + $0x1e8] sm:$0xff] }
 0x612   :  { %8121 = vpow2.f32 %v5283_v28 }
 0x617   :  { %v8116_v29 = vpop.eup %8115 }
 0x618   :  { %v8118_v30 = vpop.eup %8117  ;;  %v1551_v31 = vadd.f32 1.0, %v8116_v29  ;;  %v5365_v29 = vld [vmem:[%s12998_s9 + $0x160] sm:$0xff] }
 0x619   :  { %v1552_v33 = vadd.f32 1.0, %v8118_v30  ;;  %v5366_v30 = vld [vmem:[%s12998_s9 + $0x168] sm:$0xff] }
 0x61a   :  { %8123 = vrcp.f32 %v1551_v31  ;;  %v7173_v31 = vpack.c.bf16 %v5366_v30, %v5365_v29 }
 0x61b   :  { %v8120_v35 = vpop.eup %8119  ;;  %8125 = vrcp.f32 %v1552_v33  ;;  %v5383_v33 = vld [vmem:[%s12998_s9 + $0x1f0] sm:$0xff] }
 0x61c   :  { %v8122_v36 = vpop.eup %8121  ;;  %v1553_v37 = vadd.f32 1.0, %v8120_v35  ;;  %v5384_v35 = vld [vmem:[%s12998_s9 + $0x1f8] sm:$0xff] }
 0x61d   :  { %v1554_v38 = vadd.f32 1.0, %v8122_v36  ;;  %v7175_v36 = vpack.c.bf16 %v5384_v35, %v5383_v33  ;;  %v5391_v33 = vld [vmem:[%s12999_s11 + $0x120] sm:$0xff]  ;;  %v5392_v35 = vld [vmem:[%s12999_s11 + $0x128] sm:$0xff] }
 0x61e   :  { %8127 = vrcp.f32 %v1553_v37  ;;  %v5367_v37 = vld [vmem:[%s12998_s9 + $0x170] sm:$0xff] }
 0x61f   :  { %8129 = vrcp.f32 %v1554_v38  ;;  %v5368_v38 = vld [vmem:[%s12998_s9 + $0x178] sm:$0xff] }
 0x620   :  { %v7177_v39 = vpack.c.bf16 %v5368_v38, %v5367_v37  ;;  %v5410_v37 = vld [vmem:[%s12999_s11 + $0x1b8] sm:$0xff]  ;;  %v7189_v38 = vpack.c.bf16 %v5392_v35, %v5391_v33  ;;  %v5448_v35 = vld [vmem:[%s12992_s3 + $0x440] sm:$0xff] }
 0x624   :  { %v8124_v41 = vpop.eup %8123 }
 0x625   :  { %v8126_v42 = vpop.eup %8125  ;;  %v1563_v46 = vmul.f32 %v8124_v41, %v1529_v0  ;;  %v5362_v0 = vld [vmem:[%s12998_s9 + $0x148] sm:$0xff] }
 0x626   :  { %v1564_v43 = vmul.f32 %v8126_v42, %v1531_v21  ;;  %v7165_v22 = vpack.c.bf16 %v5362_v0, %v5361_v15  ;;  %v5379_v21 = vld [vmem:[%s12998_s9 + $0x1d0] sm:$0xff]  ;;  %v5404_v41 = vld [vmem:[%s12999_s11 + $0x188] sm:$0xff]  ;;  %v7181_v0 = vpack.c.bf16 %v5388_v14, %v5387_v13  ;;  %v5402_v13 = vld [vmem:[%s12999_s11 + $0x178] sm:$0xff] }
 0x627   :  { %v7167_v23 = vpack.c.bf16 %v5380_v9, %v5379_v21  ;;  %v7179_v42 = vpack.c.bf16 %v5404_v41, %v5403_v40  ;;  %v7183_v21 = vpack.c.bf16 %v5406_v19, %v5405_v18  ;;  %v5389_v9 = vld [vmem:[%s12999_s11 + $0x110] sm:$0xff]  ;;  %v5394_v41 = vld [vmem:[%s12999_s11 + $0x138] sm:$0xff]  ;;  %v5441_v14 = vld [vmem:[%s12992_s3 + $0x408] sm:$0xff] }
 0x628   :  { %v8128_v49 = vpop.eup %8127  ;;  %1709 = vmatprep.mubr.f32.mxu0 %v1564_v43  ;;  %7166 = vmatpush3.bf16.msra.mxu1 %v7165_v22  ;;  %v5348_v43 = vld [vmem:[%s13000_s8 + $0x2] sm:$0x3]  ;;  %v5393_v40 = vld [vmem:[%s12999_s11 + $0x130] sm:$0xff] }
 0x629   :  { %v8130_v50 = vpop.eup %8129  ;;  %1710 = vmatmul.mubr.f32.vlgmr.msra.gmra.mrb[20].mxu0 %v1563_v46  ;;  %v1565_v52 = vmul.f32 %v8128_v49, %v1535_v25  ;;  %v5364_v25 = vld [vmem:[%s12998_s9 + $0x158] sm:$0xff]  ;;  %7168 = vmatprep.subr.bf16.mxu1 %v7167_v23  ;;  %v1642_v46 = vrot.slane %v5348_v43, %v8835_v34 }
 0x62a   :  { %v1566_v51 = vmul.f32 %v8130_v50, %v1537_v26  ;;  %7216 = vmatpush1.bf16.msk.msra.mxu0 %vm8518_vm2, %v7214_v44  ;;  %v7169_v17 = vpack.c.bf16 %v5364_v25, %v5363_v24  ;;  %v5381_v26 = vld [vmem:[%s12998_s9 + $0x1e0] sm:$0xff]  ;;  %v1638_v44 = vrot.slane %v5348_v43, %v8830_v32  ;;  %v5390_v23 = vld [vmem:[%s12999_s11 + $0x118] sm:$0xff]  ;;  %v5412_v43 = vld [vmem:[%s12999_s11 + $0x1c8] sm:$0xff] }
 0x62b   :  { %v7171_v28 = vpack.c.bf16 %v5382_v27, %v5381_v26  ;;  %v5407_v25 = vld [vmem:[%s12999_s11 + $0x1a0] sm:$0xff]  ;;  %v7185_v29 = vpack.c.bf16 %v5390_v23, %v5389_v9 }
 0x62c   :  { %1715 = vmatprep.mubr.f32.mxu0 %v1566_v51  ;;  %7170 = vmatpush3.bf16.msra.mxu1 %v7169_v17  ;;  %v5408_v17 = vld [vmem:[%s12999_s11 + $0x1a8] sm:$0xff] }
 0x62d   :  { %1716 = vmatmul.mubr.f32.gmra.mrb[22].mxu0 %v1565_v52  ;;  %7172 = vmatprep.subr.bf16.mxu1 %v7171_v28 }
 0x62e   :  { %2169 = vmatprep.mubr.f32.mxu0 %v8426_v3 }
 0x630   :  { %7174 = vmatpush3.bf16.msra.mxu1 %v7173_v31  ;;  %v7187_v31 = vpack.c.bf16 %v5408_v17, %v5407_v25  ;;  %v5444_v25 = vld [vmem:[%s12992_s3 + $0x420] sm:$0xff]  ;;  %v5446_v17 = vld [vmem:[%s12992_s3 + $0x430] sm:$0xff] }
 0x631   :  { %5434 = vmatmul.mubr.msk.f32.vlgmr.msra.gmra.mrb[24].mxu0 %vm72_vm3, %v5425_v53  ;;  %7176 = vmatprep.subr.bf16.mxu1 %v7175_v36  ;;  %v5409_v36 = vld [vmem:[%s12999_s11 + $0x1b0] sm:$0xff] }
 0x632   :  { %2175 = vmatprep.mubr.f32.mxu0 %v8426_v3 }
 0x634   :  { %7178 = vmatpush3.bf16.msra.mxu1 %v7177_v39  ;;  %v7191_v39 = vpack.c.bf16 %v5410_v37, %v5409_v36  ;;  %v5450_v36 = vld [vmem:[%s12992_s3 + $0x450] sm:$0xff] }
 0x635   :  { %5435 = vmatmul.mubr.msk.f32.gmra.mrb[26].mxu0 %vm72_vm3, %v5426_v54  ;;  %7180 = vmatprep.subr.bf16.mxu1 %v7179_v42  ;;  %v5411_v42 = vld [vmem:[%s12999_s11 + $0x1c0] sm:$0xff] }
 0x6fc   :  { %v1711_v49 = vpop.f32.mrb[20].mxu0 }
 0x6fd   :  { %v1712_v50 = vadd.f32 %v1711_v49, %v1638_v44  ;;  %v1713_v51 = vpop.f32.mrb[21].mxu0  ;;  %v5395_v49 = vld [vmem:[%s12999_s11 + $0x140] sm:$0xff] }
 0x6fe   :  { %v1714_v52 = vadd.f32 %v1713_v51, %v1642_v46  ;;  %v5413_v51 = vld [vmem:[%s12999_s11 + $0x1d0] sm:$0xff] }
 0x6ff   :  { %v5349_v53 = vmul.f32 -1.442695, %v1712_v50 }
 0x700   :  { %v5350_v54 = vmul.f32 -1.442695, %v1714_v52  ;;  %v1717_v57 = vpop.f32.mrb[22].mxu0 }
 0x701   :  { %8131 = vpow2.f32 %v5349_v53  ;;  %v1718_v59 = vadd.f32 %v1717_v57, %v1638_v44  ;;  %v1719_v60 = vpop.f32.mrb[23].mxu0  ;;  %v7193_v44 = vpack.c.bf16 %v5394_v41, %v5393_v40  ;;  %v5457_v40 = vld [vmem:[%s12992_s3 + $0x488] sm:$0xff] }
 0x702   :  { %8133 = vpow2.f32 %v5350_v54  ;;  %v1720_v61 = vadd.f32 %v1719_v60, %v1642_v46  ;;  %v7195_v46 = vpack.c.bf16 %v5412_v43, %v5411_v42  ;;  %v5398_v60 = vld [vmem:[%s12999_s11 + $0x158] sm:$0xff]  ;;  %v5456_v43 = vld [vmem:[%s12992_s3 + $0x480] sm:$0xff] }
 0x703   :  { %v5351_v62 = vmul.f32 -1.442695, %v1718_v59 }
 0x704   :  { %v5352_v63 = vmul.f32 -1.442695, %v1720_v61  ;;  %v10174_v48 = vpop.f32.mrb[24].mxu0 }
 0x705   :  { %8135 = vpow2.f32 %v5351_v62  ;;  %v2173_v45 = vpop.f32.mrb[25].mxu0  ;;  %v5416_v62 = vld [vmem:[%s12999_s11 + $0x1e8] sm:$0xff] }
 0x706   :  { %8137 = vpow2.f32 %v5352_v63  ;;  %v10202_v20 = vadd.f32 %v2173_v45, %v10187_v12 }
 0x708   :  { %v10176_v58 = vpop.f32.mrb[26].mxu0  ;;  %v5437_v26 = vmul.f32 -1.442695, %v10202_v20 }
 0x709   :  { %v10178_v55 = vpop.f32.mrb[27].mxu0 }
 0x70b   :  { %v8132_v56 = vpop.eup %8131 }
 0x70c   :  { %v8134_v4 = vpop.eup %8133  ;;  %v1734_v1 = vadd.f32 1.0, %v8132_v56 }
 0x70d   :  { %v1735_v5 = vadd.f32 1.0, %v8134_v4  ;;  %v5399_v4 = vld [vmem:[%s12999_s11 + $0x160] sm:$0xff] }
 0x70e   :  { %8139 = vrcp.f32 %v1734_v1  ;;  %v5400_v1 = vld [vmem:[%s12999_s11 + $0x168] sm:$0xff] }
 0x70f   :  { %v8136_v7 = vpop.eup %8135  ;;  %8141 = vrcp.f32 %v1735_v5  ;;  %v5417_v5 = vld [vmem:[%s12999_s11 + $0x1f0] sm:$0xff] }
 0x710   :  { %v8138_v8 = vpop.eup %8137  ;;  %v1736_v47 = vadd.f32 1.0, %v8136_v7  ;;  %v5418_v7 = vld [vmem:[%s12999_s11 + $0x1f8] sm:$0xff] }
 0x711   :  { %v1737_v10 = vadd.f32 1.0, %v8138_v8  ;;  %v7205_v8 = vpack.c.bf16 %v5400_v1, %v5399_v4 }
 0x712   :  { %8143 = vrcp.f32 %v1736_v47  ;;  %v7207_v47 = vpack.c.bf16 %v5418_v7, %v5417_v5  ;;  %v5468_v5 = vld [vmem:[%s12992_s3 + $0x4e0] sm:$0xff]  ;;  %v5470_v7 = vld [vmem:[%s12992_s3 + $0x4f0] sm:$0xff] }
 0x713   :  { %8145 = vrcp.f32 %v1737_v10  ;;  %v5401_v10 = vld [vmem:[%s12999_s11 + $0x170] sm:$0xff] }
 0x714   :  { %8147 = vpow2.f32 %v5437_v26  ;;  %v7209_v18 = vpack.c.bf16 %v5402_v13, %v5401_v10  ;;  %v5449_v26 = vld [vmem:[%s12992_s3 + $0x448] sm:$0xff]  ;;  %v7247_v13 = vpack.c.bf16 %v5470_v7, %v5468_v5  ;;  %v5500_v5 = vld [vmem:[%s12992_s3 + $0x5e0] sm:$0xff]  ;;  %v5502_v7 = vld [vmem:[%s12992_s3 + $0x5f0] sm:$0xff] }
 0x718   :  { %v8140_v16 = vpop.eup %8139 }
 0x719   :  { %v8142_v6 = vpop.eup %8141  ;;  %v10204_v22 = vmul.f32 %v8140_v16, %v1712_v50  ;;  %v5396_v50 = vld [vmem:[%s12999_s11 + $0x148] sm:$0xff]  ;;  %v5443_v16 = vld [vmem:[%s12992_s3 + $0x418] sm:$0xff] }
 0x71a   :  { %v1747_v15 = vmul.f32 %v8142_v6, %v1714_v52  ;;  %v5414_v52 = vld [vmem:[%s12999_s11 + $0x1d8] sm:$0xff]  ;;  %v7197_v54 = vpack.c.bf16 %v5396_v50, %v5395_v49  ;;  %v7217_v19 = vpack.c.bf16 %v5443_v16, %v5441_v14  ;;  %v5440_v6 = vld [vmem:[%s12992_s3 + $0x400] sm:$0xff] }
 0x71b   :  { %v7199_v57 = vpack.c.bf16 %v5414_v52, %v5413_v51  ;;  %v5463_v49 = vld [vmem:[%s12992_s3 + $0x4b8] sm:$0xff]  ;;  %v5460_v52 = vld [vmem:[%s12992_s3 + $0x4a0] sm:$0xff] }
 0x71c   :  { %v8144_v24 = vpop.eup %8143  ;;  %1855 = vmatprep.mubr.f32.mxu1 %v1747_v15  ;;  %v5472_v16 = vld [vmem:[%s12992_s3 + $0x500] sm:$0xff] }
 0x71d   :  { %v8146_v27 = vpop.eup %8145  ;;  %1856 = vmatmul.mubr.f32.vlgmr.msra.gmra.mrb[16].mxu1 %v10204_v22  ;;  %v10222_v30 = vmul.f32 %v8144_v24, %v1718_v59  ;;  %v5397_v59 = vld [vmem:[%s12999_s11 + $0x150] sm:$0xff] }
 0x71e   :  { %v10220_v28 = vmul.f32 %v8146_v27, %v1720_v61  ;;  %7182 = vmatpush3.bf16.msra.mxu1 %v7181_v0  ;;  %v8148_v53 = vpop.eup %8147  ;;  %v5415_v61 = vld [vmem:[%s12999_s11 + $0x1e0] sm:$0xff]  ;;  %v7201_v45 = vpack.c.bf16 %v5398_v60, %v5397_v59  ;;  %v5445_v0 = vld [vmem:[%s12992_s3 + $0x428] sm:$0xff]  ;;  %v5451_v27 = vld [vmem:[%s12992_s3 + $0x458] sm:$0xff] }
 0x71f   :  { %7184 = vmatprep.subr.bf16.mxu1 %v7183_v21  ;;  %v2195_v63 = vadd.f32 1.0, %v8148_v53  ;;  %v7203_v56 = vpack.c.bf16 %v5416_v62, %v5415_v61  ;;  %v5447_v21 = vld [vmem:[%s12992_s3 + $0x438] sm:$0xff]  ;;  %v7225_v33 = vpack.c.bf16 %v5451_v27, %v5449_v26  ;;  %v5462_v53 = vld [vmem:[%s12992_s3 + $0x4b0] sm:$0xff]  ;;  %v5464_v61 = vld [vmem:[%s12992_s3 + $0x4c0] sm:$0xff] }
 0x720   :  { %1860 = vmatprep.mubr.f32.mxu1 %v10220_v28  ;;  %v7221_v24 = vpack.c.bf16 %v5447_v21, %v5445_v0  ;;  %v7239_v59 = vpack.c.bf16 %v5462_v53, %v5460_v52  ;;  %v5466_v62 = vld [vmem:[%s12992_s3 + $0x4d0] sm:$0xff]  ;;  %v5476_v21 = vld [vmem:[%s12992_s3 + $0x520] sm:$0xff] }
 0x721   :  { %1861 = vmatmul.mubr.f32.gmra.mrb[18].mxu1 %v10222_v30  ;;  %8149 = vrcp.f32 %v2195_v63  ;;  %v5469_v63 = vld [vmem:[%s12992_s3 + $0x4e8] sm:$0xff]  ;;  %v7243_v4 = vpack.c.bf16 %v5466_v62, %v5464_v61  ;;  %v5480_v26 = vld [vmem:[%s12992_s3 + $0x540] sm:$0xff]  ;;  %v5482_v27 = vld [vmem:[%s12992_s3 + $0x550] sm:$0xff] }
 0x722   :  { %7186 = vmatpush3.bf16.msra.mxu1 %v7185_v29  ;;  %1971 = vmatprep.mubr.f32.mxu1 %v1747_v15  ;;  %v5442_v15 = vld [vmem:[%s12992_s3 + $0x410] sm:$0xff]  ;;  %v5492_v52 = vld [vmem:[%s12992_s3 + $0x5a0] sm:$0xff] }
 0x723   :  { %7188 = vmatprep.subr.bf16.mxu1 %v7187_v31  ;;  %v7219_v9 = vpack.c.bf16 %v5442_v15, %v5440_v6  ;;  %v7223_v31 = vpack.c.bf16 %v5446_v17, %v5444_v25  ;;  %v5494_v53 = vld [vmem:[%s12992_s3 + $0x5b0] sm:$0xff]  ;;  %v5496_v62 = vld [vmem:[%s12992_s3 + $0x5c0] sm:$0xff] }
 0x726   :  { %7190 = vmatpush3.bf16.msra.mxu1 %v7189_v38  ;;  %v5452_v38 = vld [vmem:[%s12992_s3 + $0x460] sm:$0xff] }
 0x727   :  { %7192 = vmatprep.subr.bf16.mxu1 %v7191_v39  ;;  %v5454_v39 = vld [vmem:[%s12992_s3 + $0x470] sm:$0xff] }
 0x728   :  { %v7231_v41 = vpack.c.bf16 %v5454_v39, %v5452_v38 }
 0x72a   :  { %7194 = vmatpush3.bf16.msra.mxu1 %v7193_v44  ;;  %v5458_v44 = vld [vmem:[%s12992_s3 + $0x490] sm:$0xff] }
 0x72b   :  { %7196 = vmatprep.subr.bf16.mxu1 %v7195_v46  ;;  %v8150_v23 = vpop.eup %8149  ;;  %v5461_v46 = vld [vmem:[%s12992_s3 + $0x4a8] sm:$0xff]  ;;  %v7235_v50 = vpack.c.bf16 %v5458_v44, %v5456_v43  ;;  %v5495_v43 = vld [vmem:[%s12992_s3 + $0x5b8] sm:$0xff] }
 0x72c   :  { %v2207_v29 = vmul.f32 %v8150_v23, %v10202_v20  ;;  %v7227_v20 = vpack.c.bf16 %v5450_v36, %v5448_v35  ;;  %v7237_v51 = vpack.c.bf16 %v5463_v49, %v5461_v46  ;;  %v5481_v23 = vld [vmem:[%s12992_s3 + $0x548] sm:$0xff]  ;;  %v5484_v36 = vld [vmem:[%s12992_s3 + $0x560] sm:$0xff] }
 0x72e   :  { %7198 = vmatpush3.bf16.msra.mxu1 %v7197_v54  ;;  %v5465_v54 = vld [vmem:[%s12992_s3 + $0x4c8] sm:$0xff] }
 0x72f   :  { %7200 = vmatprep.subr.bf16.mxu1 %v7199_v57  ;;  %v5467_v57 = vld [vmem:[%s12992_s3 + $0x4d8] sm:$0xff] }
 0x730   :  { %v7241_v60 = vpack.c.bf16 %v5467_v57, %v5465_v54  ;;  %v5497_v54 = vld [vmem:[%s12992_s3 + $0x5c8] sm:$0xff]  ;;  %v5499_v57 = vld [vmem:[%s12992_s3 + $0x5d8] sm:$0xff] }
 0x731   :  { %v7273_v61 = vpack.c.bf16 %v5499_v57, %v5497_v54  ;;  %v5535_v54 = vld [vmem:[%s12993_s5 + $0x4d0] sm:$0xff] }
 0x732   :  { %7202 = vmatpush3.bf16.msra.mxu1 %v7201_v45  ;;  %v5471_v45 = vld [vmem:[%s12992_s3 + $0x4f8] sm:$0xff] }
 0x733   :  { %7204 = vmatprep.subr.bf16.mxu1 %v7203_v56  ;;  %v2086_v56 = vrot.slane %v10183_v11, %v8830_v32  ;;  %v7245_v1 = vpack.c.bf16 %v5471_v45, %v5469_v63  ;;  %v5475_v11 = vld [vmem:[%s12992_s3 + $0x518] sm:$0xff]  ;;  %v5498_v63 = vld [vmem:[%s12992_s3 + $0x5d0] sm:$0xff]  ;;  %v5501_v45 = vld [vmem:[%s12992_s3 + $0x5e8] sm:$0xff] }
 0x735   :  { %v10405_v10 = vadd.f32 %v10174_v48, %v2086_v56  ;;  %v5479_v48 = vld [vmem:[%s12992_s3 + $0x538] sm:$0xff]  ;;  %v10422_v6 = vadd.f32 %v10176_v58, %v2086_v56 }
 0x736   :  { %7206 = vmatpush3.bf16.msra.mxu1 %v7205_v8  ;;  %v5473_v8 = vld [vmem:[%s12992_s3 + $0x508] sm:$0xff]  ;;  %v5483_v58 = vld [vmem:[%s12992_s3 + $0x558] sm:$0xff] }
 0x737   :  { %7208 = vmatprep.subr.bf16.mxu1 %v7207_v47  ;;  %v10402_v47 = vadd.f32 %v10178_v55, %v10187_v12  ;;  %v7249_v14 = vpack.c.bf16 %v5475_v11, %v5473_v8  ;;  %v5477_v55 = vld [vmem:[%s12992_s3 + $0x528] sm:$0xff]  ;;  %v5436_v12 = vmul.f32 -1.442695, %v10405_v10  ;;  %v7257_v17 = vpack.c.bf16 %v5483_v58, %v5481_v23  ;;  %v5503_v56 = vld [vmem:[%s12992_s3 + $0x5f8] sm:$0xff]  ;;  %v5515_v23 = vld [vmem:[%s12993_s5 + $0x430] sm:$0xff] }
 0x738   :  { %v7253_v0 = vpack.c.bf16 %v5479_v48, %v5477_v55  ;;  %v7279_v8 = vpack.c.bf16 %v5502_v7, %v5500_v5  ;;  %v5510_v55 = vld [vmem:[%s12993_s5 + $0x408] sm:$0xff]  ;;  %v5512_v48 = vld [vmem:[%s12993_s5 + $0x418] sm:$0xff]  ;;  %v5541_v5 = vld [vmem:[%s12993_s5 + $0x500] sm:$0xff] }
 0x739   :  { %v5543_v7 = vld [vmem:[%s12993_s5 + $0x510] sm:$0xff] }
 0x73a   :  { %7210 = vmatpush3.bf16.msra.mxu1 %v7209_v18  ;;  %v5474_v18 = vld [vmem:[%s12992_s3 + $0x510] sm:$0xff] }
 0x73b   :  { %7218 = vmatprep.subr.bf16.mxu1 %v7217_v19  ;;  %v5439_v19 = vmul.f32 -1.442695, %v10402_v47  ;;  %v7251_v15 = vpack.c.bf16 %v5474_v18, %v5472_v16 }
 0x73d   :  { %1972 = vmatmul.mubr.f32.vlgmr.msra.gmra.mrb[20].mxu1 %v10204_v22  ;;  %v5453_v22 = vld [vmem:[%s12992_s3 + $0x468] sm:$0xff]  ;;  %8151 = vpow2.f32 %v5439_v19 }
 0x73e   :  { %1976 = vmatprep.mubr.f32.mxu1 %v10220_v28  ;;  %7220 = vmatpush1.bf16.msra.mxu1 %v7219_v9  ;;  %v5455_v28 = vld [vmem:[%s12992_s3 + $0x478] sm:$0xff]  ;;  %v5478_v9 = vld [vmem:[%s12992_s3 + $0x530] sm:$0xff]  ;;  %8153 = vpow2.f32 %v5436_v12  ;;  %v7281_v12 = vpack.c.bf16 %v5512_v48, %v5510_v55  ;;  %v5550_v55 = vld [vmem:[%s12993_s5 + $0x548] sm:$0xff] }
 0x73f   :  { %7222 = vmatprep.subr.bf16.mxu1 %v7221_v24  ;;  %v7229_v37 = vpack.c.bf16 %v5455_v28, %v5453_v22  ;;  %v5438_v24 = vmul.f32 -1.442695, %v10422_v6  ;;  %v7255_v25 = vpack.c.bf16 %v5478_v9, %v5476_v21  ;;  %v5486_v22 = vld [vmem:[%s12992_s3 + $0x570] sm:$0xff]  ;;  %v5489_v28 = vld [vmem:[%s12992_s3 + $0x588] sm:$0xff]  ;;  %v5513_v9 = vld [vmem:[%s12993_s5 + $0x420] sm:$0xff] }
 0x740   :  { %v7263_v38 = vpack.c.bf16 %v5486_v22, %v5484_v36  ;;  %7282 = vmatprep.subr.bf16.mxu0 %v7281_v12  ;;  %v7287_v58 = vpack.c.bf16 %v5515_v23, %v5513_v9  ;;  %v5521_v36 = vld [vmem:[%s12993_s5 + $0x460] sm:$0xff]  ;;  %v5523_v22 = vld [vmem:[%s12993_s5 + $0x470] sm:$0xff]  ;;  %v5552_v48 = vld [vmem:[%s12993_s5 + $0x558] sm:$0xff] }
 0x741   :  { %1977 = vmatmul.mubr.f32.gmra.mrb[22].mxu1 %v10222_v30  ;;  %v5459_v30 = vld [vmem:[%s12992_s3 + $0x498] sm:$0xff]  ;;  %8155 = vpow2.f32 %v5438_v24  ;;  %v5518_v24 = vld [vmem:[%s12993_s5 + $0x448] sm:$0xff]  ;;  %v7321_v12 = vpack.c.bf16 %v5552_v48, %v5550_v55  ;;  %v5553_v9 = vld [vmem:[%s12993_s5 + $0x560] sm:$0xff] }
 0x742   :  { %7224 = vmatpush1.bf16.msra.mxu1 %v7223_v31  ;;  %2352 = vmatprep.mubr.f32.mxu1 %v2207_v29  ;;  %v7233_v42 = vpack.c.bf16 %v5459_v30, %v5457_v40  ;;  %v5485_v29 = vld [vmem:[%s12992_s3 + $0x568] sm:$0xff]  ;;  %v5487_v31 = vld [vmem:[%s12992_s3 + $0x578] sm:$0xff]  ;;  %v5488_v30 = vld [vmem:[%s12992_s3 + $0x580] sm:$0xff] }
 0x743   :  { %7226 = vmatprep.subr.bf16.mxu1 %v7225_v33  ;;  %v7259_v33 = vpack.c.bf16 %v5482_v27, %v5480_v26  ;;  %v7261_v35 = vpack.c.bf16 %v5487_v31, %v5485_v29  ;;  %v5517_v26 = vld [vmem:[%s12993_s5 + $0x440] sm:$0xff]  ;;  %v5519_v27 = vld [vmem:[%s12993_s5 + $0x450] sm:$0xff]  ;;  %v5522_v31 = vld [vmem:[%s12993_s5 + $0x468] sm:$0xff] }
 0x744   :  { %v7291_v29 = vpack.c.bf16 %v5519_v27, %v5517_v26  ;;  %v5555_v23 = vld [vmem:[%s12993_s5 + $0x570] sm:$0xff]  ;;  %v5557_v26 = vld [vmem:[%s12993_s5 + $0x580] sm:$0xff] }
 0x745   :  { %v5559_v27 = vld [vmem:[%s12993_s5 + $0x590] sm:$0xff]  ;;  %v5586_v55 = vld [vmem:[%s12995_s7 + $0x440] sm:$0xff] }
 0x746   :  { %7228 = vmatpush1.bf16.msra.mxu1 %v7227_v20  ;;  %v5491_v20 = vld [vmem:[%s12992_s3 + $0x598] sm:$0xff]  ;;  %v5588_v48 = vld [vmem:[%s12995_s7 + $0x450] sm:$0xff] }
 0x747   :  { %7230 = vmatprep.subr.bf16.mxu1 %v7229_v37  ;;  %v8152_v37 = vpop.eup %8151  ;;  %v7265_v40 = vpack.c.bf16 %v5491_v20, %v5489_v28  ;;  %v7295_v28 = vpack.c.bf16 %v5523_v22, %v5521_v36  ;;  %v5526_v20 = vld [vmem:[%s12993_s5 + $0x488] sm:$0xff]  ;;  %v5561_v36 = vld [vmem:[%s12993_s5 + $0x5a0] sm:$0xff]  ;;  %v5563_v22 = vld [vmem:[%s12993_s5 + $0x5b0] sm:$0xff] }
 0x748   :  { %v8154_v39 = vpop.eup %8153  ;;  %v2197_v44 = vadd.f32 1.0, %v8152_v37  ;;  %v5528_v37 = vld [vmem:[%s12993_s5 + $0x498] sm:$0xff] }
 0x749   :  { %v2194_v46 = vadd.f32 1.0, %v8154_v39  ;;  %v5525_v39 = vld [vmem:[%s12993_s5 + $0x480] sm:$0xff] }
 0x74a   :  { %7232 = vmatpush1.bf16.msra.mxu1 %v7231_v41  ;;  %v5490_v41 = vld [vmem:[%s12992_s3 + $0x590] sm:$0xff]  ;;  %8157 = vrcp.f32 %v2197_v44  ;;  %v5529_v44 = vld [vmem:[%s12993_s5 + $0x4a0] sm:$0xff] }
 0x74b   :  { %7234 = vmatprep.subr.bf16.mxu1 %v7233_v42  ;;  %v5493_v42 = vld [vmem:[%s12992_s3 + $0x5a8] sm:$0xff]  ;;  %v7267_v49 = vpack.c.bf16 %v5490_v41, %v5488_v30  ;;  %8159 = vrcp.f32 %v2194_v46  ;;  %v5531_v46 = vld [vmem:[%s12993_s5 + $0x4b0] sm:$0xff] }
 0x74c   :  { %v5530_v41 = vld [vmem:[%s12993_s5 + $0x4a8] sm:$0xff] }
 0x74e   :  { %7236 = vmatpush1.bf16.msra.mxu1 %v7235_v50  ;;  %v8156_v50 = vpop.eup %8155 }
 0x74f   :  { %7238 = vmatprep.subr.bf16.mxu1 %v7237_v51  ;;  %v7269_v51 = vpack.c.bf16 %v5495_v43, %v5493_v42  ;;  %v5532_v42 = vld [vmem:[%s12993_s5 + $0x4b8] sm:$0xff] }
 0x750   :  { %v7301_v43 = vpack.c.bf16 %v5532_v42, %v5530_v41  ;;  %v5570_v41 = vld [vmem:[%s12993_s5 + $0x5e8] sm:$0xff]  ;;  %v5572_v42 = vld [vmem:[%s12993_s5 + $0x5f8] sm:$0xff] }
 0x752   :  { %7240 = vmatpush1.bf16.msra.mxu1 %v7239_v59  ;;  %v2196_v59 = vadd.f32 1.0, %v8156_v50  ;;  %v5534_v50 = vld [vmem:[%s12993_s5 + $0x4c8] sm:$0xff] }
 0x753   :  { %7242 = vmatprep.subr.bf16.mxu1 %v7241_v60  ;;  %v7271_v60 = vpack.c.bf16 %v5494_v53, %v5492_v52  ;;  %v5533_v53 = vld [vmem:[%s12993_s5 + $0x4c0] sm:$0xff] }
 0x754   :  { %8161 = vrcp.f32 %v2196_v59  ;;  %v8158_v11 = vpop.eup %8157  ;;  %v7307_v57 = vpack.c.bf16 %v5535_v54, %v5533_v53  ;;  %v5538_v59 = vld [vmem:[%s12993_s5 + $0x4e8] sm:$0xff] }
 0x756   :  { %7244 = vmatpush1.bf16.msra.mxu1 %v7243_v4  ;;  %v7275_v4 = vpack.c.bf16 %v5498_v63, %v5496_v62  ;;  %v5537_v62 = vld [vmem:[%s12993_s5 + $0x4e0] sm:$0xff]  ;;  %v5539_v63 = vld [vmem:[%s12993_s5 + $0x4f0] sm:$0xff] }
 0x757   :  { %7246 = vmatprep.subr.bf16.mxu1 %v7245_v1  ;;  %v7277_v1 = vpack.c.bf16 %v5503_v56, %v5501_v45  ;;  %v7311_v45 = vpack.c.bf16 %v5539_v63, %v5537_v62  ;;  %v5542_v56 = vld [vmem:[%s12993_s5 + $0x508] sm:$0xff]  ;;  %v5581_v62 = vld [vmem:[%s12995_s7 + $0x418] sm:$0xff]  ;;  %v5578_v63 = vld [vmem:[%s12995_s7 + $0x400] sm:$0xff] }
 0x75a   :  { %7248 = vmatpush1.bf16.msra.mxu1 %v7247_v13  ;;  %v8160_v13 = vpop.eup %8159 }
 0x75b   :  { %7250 = vmatprep.subr.bf16.mxu1 %v7249_v14  ;;  %v2209_v14 = vmul.f32 %v8158_v11, %v10402_v47  ;;  %v2206_v16 = vmul.f32 %v8160_v13, %v10405_v10  ;;  %v5509_v47 = vld [vmem:[%s12993_s5 + $0x400] sm:$0xff]  ;;  %v5511_v10 = vld [vmem:[%s12993_s5 + $0x410] sm:$0xff]  ;;  %v5546_v11 = vld [vmem:[%s12993_s5 + $0x528] sm:$0xff] }
 0x75c   :  { %v5548_v13 = vld [vmem:[%s12993_s5 + $0x538] sm:$0xff] }
 0x75e   :  { %7252 = vmatpush1.bf16.msra.mxu1 %v7251_v15  ;;  %v8162_v18 = vpop.eup %8161  ;;  %v7283_v15 = vpack.c.bf16 %v5511_v10, %v5509_v47  ;;  %v5549_v47 = vld [vmem:[%s12993_s5 + $0x540] sm:$0xff]  ;;  %v5551_v10 = vld [vmem:[%s12993_s5 + $0x550] sm:$0xff] }
 0x75f   :  { %7254 = vmatprep.subr.bf16.mxu1 %v7253_v0  ;;  %v2208_v19 = vmul.f32 %v8162_v18, %v10422_v6  ;;  %v5514_v6 = vld [vmem:[%s12993_s5 + $0x428] sm:$0xff]  ;;  %v5516_v0 = vld [vmem:[%s12993_s5 + $0x438] sm:$0xff]  ;;  %v5547_v18 = vld [vmem:[%s12993_s5 + $0x530] sm:$0xff] }
 0x760   :  { %7284 = vmatpush1.bf16.msra.mxu0 %v7283_v15  ;;  %v7285_v21 = vpack.c.bf16 %v5516_v0, %v5514_v6  ;;  %v7323_v15 = vpack.c.bf16 %v5551_v10, %v5549_v47  ;;  %v5554_v6 = vld [vmem:[%s12993_s5 + $0x568] sm:$0xff]  ;;  %v5556_v0 = vld [vmem:[%s12993_s5 + $0x578] sm:$0xff]  ;;  %v7355_v10 = vpack.c.bf16 %v5588_v48, %v5586_v55 }
 0x761   :  { %v5593_v47 = vld [vmem:[%s12995_s7 + $0x478] sm:$0xff] }
 0x762   :  { %7256 = vmatpush1.bf16.msra.mxu1 %v7255_v25  ;;  %7286 = vmatprep.subr.bf16.mxu0 %v7285_v21  ;;  %v5520_v25 = vld [vmem:[%s12993_s5 + $0x458] sm:$0xff]  ;;  %v7325_v21 = vpack.c.bf16 %v5556_v0, %v5554_v6  ;;  %v5590_v6 = vld [vmem:[%s12995_s7 + $0x460] sm:$0xff]  ;;  %v5592_v0 = vld [vmem:[%s12995_s7 + $0x470] sm:$0xff] }
 0x763   :  { %7258 = vmatprep.subr.bf16.mxu1 %v7257_v17  ;;  %v7289_v17 = vpack.c.bf16 %v5520_v25, %v5518_v24  ;;  %v5558_v24 = vld [vmem:[%s12993_s5 + $0x588] sm:$0xff]  ;;  %v5560_v25 = vld [vmem:[%s12993_s5 + $0x598] sm:$0xff] }
 0x764   :  { %7288 = vmatpush1.bf16.msra.mxu0 %v7287_v58  ;;  %v7327_v58 = vpack.c.bf16 %v5555_v23, %v5553_v9  ;;  %v5597_v9 = vld [vmem:[%s12995_s7 + $0x498] sm:$0xff]  ;;  %v7359_v23 = vpack.c.bf16 %v5592_v0, %v5590_v6 }
 0x765   :  { %7290 = vmatprep.subr.bf16.mxu0 %v7289_v17  ;;  %v7329_v17 = vpack.c.bf16 %v5560_v25, %v5558_v24  ;;  %v5594_v24 = vld [vmem:[%s12995_s7 + $0x480] sm:$0xff]  ;;  %v5596_v25 = vld [vmem:[%s12995_s7 + $0x490] sm:$0xff] }
 0x766   :  { %7260 = vmatpush1.bf16.msra.mxu1 %v7259_v33  ;;  %v5524_v33 = vld [vmem:[%s12993_s5 + $0x478] sm:$0xff] }
 0x767   :  { %7262 = vmatprep.subr.bf16.mxu1 %v7261_v35  ;;  %v7293_v35 = vpack.c.bf16 %v5524_v33, %v5522_v31  ;;  %v5562_v31 = vld [vmem:[%s12993_s5 + $0x5a8] sm:$0xff]  ;;  %v5564_v33 = vld [vmem:[%s12993_s5 + $0x5b8] sm:$0xff] }
 0x768   :  { %7292 = vmatpush1.bf16.msra.mxu0 %v7291_v29  ;;  %v7331_v29 = vpack.c.bf16 %v5559_v27, %v5557_v26  ;;  %v5601_v26 = vld [vmem:[%s12995_s7 + $0x4b8] sm:$0xff]  ;;  %v7363_v27 = vpack.c.bf16 %v5596_v25, %v5594_v24 }
 0x769   :  { %7294 = vmatprep.subr.bf16.mxu0 %v7293_v35  ;;  %v7333_v35 = vpack.c.bf16 %v5564_v33, %v5562_v31  ;;  %v5598_v31 = vld [vmem:[%s12995_s7 + $0x4a0] sm:$0xff]  ;;  %v5600_v33 = vld [vmem:[%s12995_s7 + $0x4b0] sm:$0xff] }
 0x76a   :  { %7264 = vmatpush1.bf16.msra.mxu1 %v7263_v38  ;;  %v7297_v38 = vpack.c.bf16 %v5528_v37, %v5526_v20  ;;  %v5566_v20 = vld [vmem:[%s12993_s5 + $0x5c8] sm:$0xff]  ;;  %v5568_v37 = vld [vmem:[%s12993_s5 + $0x5d8] sm:$0xff] }
 0x76b   :  { %7266 = vmatprep.subr.bf16.mxu1 %v7265_v40  ;;  %v5527_v40 = vld [vmem:[%s12993_s5 + $0x490] sm:$0xff] }
 0x76c   :  { %7296 = vmatpush1.bf16.msra.mxu0 %v7295_v28  ;;  %v7299_v30 = vpack.c.bf16 %v5527_v40, %v5525_v39  ;;  %v7335_v28 = vpack.c.bf16 %v5563_v22, %v5561_v36  ;;  %v5565_v39 = vld [vmem:[%s12993_s5 + $0x5c0] sm:$0xff]  ;;  %v5567_v40 = vld [vmem:[%s12993_s5 + $0x5d0] sm:$0xff]  ;;  %v5605_v36 = vld [vmem:[%s12995_s7 + $0x4d8] sm:$0xff]  ;;  %v7367_v22 = vpack.c.bf16 %v5600_v33, %v5598_v31 }
 0x76d   :  { %7298 = vmatprep.subr.bf16.mxu0 %v7297_v38  ;;  %v7337_v38 = vpack.c.bf16 %v5568_v37, %v5566_v20  ;;  %v5602_v20 = vld [vmem:[%s12995_s7 + $0x4c0] sm:$0xff]  ;;  %v5604_v37 = vld [vmem:[%s12995_s7 + $0x4d0] sm:$0xff] }
 0x76e   :  { %7268 = vmatpush1.bf16.msra.mxu1 %v7267_v49  ;;  %v7303_v49 = vpack.c.bf16 %v5531_v46, %v5529_v44  ;;  %v5569_v44 = vld [vmem:[%s12993_s5 + $0x5e0] sm:$0xff]  ;;  %v5571_v46 = vld [vmem:[%s12993_s5 + $0x5f0] sm:$0xff] }
 0x76f   :  { %7270 = vmatprep.subr.bf16.mxu1 %v7269_v51  ;;  %v5536_v51 = vld [vmem:[%s12993_s5 + $0x4d8] sm:$0xff] }
 0x770   :  { %7300 = vmatpush1.bf16.msra.mxu0 %v7299_v30  ;;  %v7305_v52 = vpack.c.bf16 %v5536_v51, %v5534_v50  ;;  %v7339_v30 = vpack.c.bf16 %v5567_v40, %v5565_v39  ;;  %v5386_v51 = vld [vmem:[%s13001_s10 + $0x1] ss:$0 sm:$0xff]  ;;  %v5609_v39 = vld [vmem:[%s12995_s7 + $0x4f8] sm:$0xff]  ;;  %v7371_v40 = vpack.c.bf16 %v5604_v37, %v5602_v20 }
 0x771   :  { %7302 = vmatprep.subr.bf16.mxu0 %v7301_v43  ;;  %v7341_v43 = vpack.c.bf16 %v5572_v42, %v5570_v41  ;;  %v5606_v42 = vld [vmem:[%s12995_s7 + $0x4e0] sm:$0xff] }
 0x772   :  { %7272 = vmatpush1.bf16.msra.mxu1 %v7271_v60  ;;  %v5540_v60 = vld [vmem:[%s12993_s5 + $0x4f8] sm:$0xff] }
 0x773   :  { %7274 = vmatprep.subr.bf16.mxu1 %v7273_v61  ;;  %v7309_v61 = vpack.c.bf16 %v5540_v60, %v5538_v59 }
 0x774   :  { %7304 = vmatpush1.bf16.msra.mxu0 %v7303_v49  ;;  %v7343_v49 = vpack.c.bf16 %v5571_v46, %v5569_v44  ;;  %v5420_v44 = vld [vmem:[%s13003_s12 + $0x1] ss:$0 sm:$0xff] }
 0x775   :  { %7306 = vmatprep.subr.bf16.mxu0 %v7305_v52 }
 0x776   :  { %7276 = vmatpush1.bf16.msra.mxu1 %v7275_v4  ;;  %v5544_v4 = vld [vmem:[%s12993_s5 + $0x518] sm:$0xff] }
 0x777   :  { %7278 = vmatprep.subr.bf16.mxu1 %v7277_v1  ;;  %v7313_v1 = vpack.c.bf16 %v5544_v4, %v5542_v56  ;;  %v5580_v4 = vld [vmem:[%s12995_s7 + $0x410] sm:$0xff] }
 0x778   :  { %7308 = vmatpush1.bf16.msra.mxu0 %v7307_v57 }
 0x779   :  { %7310 = vmatprep.subr.bf16.mxu0 %v7309_v61  ;;  %v5579_v61 = vld [vmem:[%s12995_s7 + $0x408] sm:$0xff] }
 0x77a   :  { %7280 = vmatpush1.bf16.msra.mxu1 %v7279_v8  ;;  %v7315_v8 = vpack.c.bf16 %v5543_v7, %v5541_v5  ;;  %v7345_v56 = vpack.c.bf16 %v5581_v62, %v5579_v61  ;;  %v5585_v5 = vld [vmem:[%s12995_s7 + $0x438] sm:$0xff]  ;;  %v7347_v7 = vpack.c.bf16 %v5580_v4, %v5578_v63 }
 0x77c   :  { %7312 = vmatpush1.bf16.msra.mxu0 %v7311_v45  ;;  %7346 = vmatprep.subr.bf16.mxu1 %v7345_v56 }
 0x77d   :  { %2353 = vmatmul.mubr.f32.vlgmr.msra.gmra.mrb[24].mxu1 %v2206_v16  ;;  %7314 = vmatprep.subr.bf16.mxu0 %v7313_v1  ;;  %v5545_v16 = vld [vmem:[%s12993_s5 + $0x520] sm:$0xff]  ;;  %v5583_v1 = vld [vmem:[%s12995_s7 + $0x428] sm:$0xff] }
 0x77e   :  { %2358 = vmatprep.mubr.f32.mxu1 %v2209_v14  ;;  %v7317_v14 = vpack.c.bf16 %v5548_v13, %v5546_v11  ;;  %v5582_v11 = vld [vmem:[%s12995_s7 + $0x420] sm:$0xff]  ;;  %v5584_v13 = vld [vmem:[%s12995_s7 + $0x430] sm:$0xff]  ;;  %7348 = vmatpush1.bf16.msra.mxu1 %v7347_v7 }
 0x780   :  { %7316 = vmatpush1.bf16.msra.mxu0 %v7315_v8  ;;  %v7349_v8 = vpack.c.bf16 %v5585_v5, %v5583_v1 }
 0x781   :  { %2359 = vmatmul.mubr.f32.gmra.mrb[26].mxu1 %v2208_v19  ;;  %v7319_v19 = vpack.c.bf16 %v5547_v18, %v5545_v16  ;;  %7318 = vmatprep.subr.bf16.mxu0 %v7317_v14  ;;  %v5587_v14 = vld [vmem:[%s12995_s7 + $0x448] sm:$0xff]  ;;  %v5589_v16 = vld [vmem:[%s12995_s7 + $0x458] sm:$0xff]  ;;  %v7351_v18 = vpack.c.bf16 %v5584_v13, %v5582_v11 }
 0x782   :  { %7350 = vmatprep.subr.bf16.mxu1 %v7349_v8 }
 0x783   :  { %7352 = vmatpush1.bf16.msra.mxu1 %v7351_v18 }
 0x784   :  { %7320 = vmatpush1.bf16.msra.mxu0 %v7319_v19  ;;  %v7353_v19 = vpack.c.bf16 %v5589_v16, %v5587_v14 }
 0x785   :  { %7322 = vmatprep.subr.bf16.mxu0 %v7321_v12  ;;  %v5591_v12 = vld [vmem:[%s12995_s7 + $0x468] sm:$0xff] }
 0x786   :  { %7354 = vmatprep.subr.bf16.mxu1 %v7353_v19 }
 0x787   :  { %7356 = vmatpush1.bf16.msra.mxu1 %v7355_v10 }
 0x788   :  { %7324 = vmatpush1.bf16.msra.mxu0 %v7323_v15  ;;  %v7357_v15 = vpack.c.bf16 %v5593_v47, %v5591_v12 }
 0x789   :  { %7326 = vmatprep.subr.bf16.mxu0 %v7325_v21  ;;  %v5595_v21 = vld [vmem:[%s12995_s7 + $0x488] sm:$0xff] }
 0x78a   :  { %7358 = vmatprep.subr.bf16.mxu1 %v7357_v15 }
 0x78b   :  { %7360 = vmatpush1.bf16.msra.mxu1 %v7359_v23 }
 0x78c   :  { %7328 = vmatpush1.bf16.msra.mxu0 %v7327_v58  ;;  %v7361_v58 = vpack.c.bf16 %v5597_v9, %v5595_v21 }
 0x78d   :  { %7330 = vmatprep.subr.bf16.mxu0 %v7329_v17  ;;  %v5599_v17 = vld [vmem:[%s12995_s7 + $0x4a8] sm:$0xff] }
 0x78e   :  { %7362 = vmatprep.subr.bf16.mxu1 %v7361_v58 }
 0x78f   :  { %7364 = vmatpush1.bf16.msra.mxu1 %v7363_v27 }
 0x790   :  { %7332 = vmatpush1.bf16.msra.mxu0 %v7331_v29  ;;  %v7365_v29 = vpack.c.bf16 %v5601_v26, %v5599_v17  ;;  %v10814_v26 = vld [vmem:[%s13005_s14] ss:$0 sm:$0xff] }
 0x791   :  { %7334 = vmatprep.subr.bf16.mxu0 %v7333_v35  ;;  %v5603_v35 = vld [vmem:[%s12995_s7 + $0x4c8] sm:$0xff] }
 0x792   :  { %7366 = vmatprep.subr.bf16.mxu1 %v7365_v29 }
 0x793   :  { %7368 = vmatpush1.bf16.msra.mxu1 %v7367_v22 }
 0x794   :  { %7336 = vmatpush1.bf16.msra.mxu0 %v7335_v28  ;;  %v7369_v28 = vpack.c.bf16 %v5605_v36, %v5603_v35 }
 0x795   :  { %7338 = vmatprep.subr.bf16.mxu0 %v7337_v38  ;;  %v5607_v38 = vld [vmem:[%s12995_s7 + $0x4e8] sm:$0xff] }
 0x796   :  { %7370 = vmatprep.subr.bf16.mxu1 %v7369_v28  ;;  %v7373_v41 = vpack.c.bf16 %v5609_v39, %v5607_v38  ;;  %v5504_v38 = vld [vmem:[%s12996_s4 + $0x4] sm:$0x3] }
 0x797   :  { %7372 = vmatpush1.bf16.msra.mxu1 %v7371_v40  ;;  %v2281_v39 = vrot.slane %v5504_v38, %v8830_v32  ;;  %v2285_v40 = vrot.slane %v5504_v38, %v8835_v34 }
 0x798   :  { %7340 = vmatpush1.bf16.msra.mxu0 %v7339_v30  ;;  %7374 = vmatprep.subr.bf16.mxu1 %v7373_v41 }
 0x799   :  { %7342 = vmatprep.subr.bf16.mxu0 %v7341_v43  ;;  %v5608_v43 = vld [vmem:[%s12995_s7 + $0x4f0] sm:$0xff] }
 0x79c   :  { %7344 = vmatpush1.bf16.msra.mxu0 %v7343_v49 }
 0x7f0   :  { %v6415_v50 = vpop.f32.mrb[16].mxu1 }
 0x7f1   :  { %v6416_v52 = vpop.f32.mrb[17].mxu1 }
 0x7f2   :  { %v6417_v53 = vadd.f32 %v6416_v52, %v6415_v50  ;;  %v7375_v50 = vpack.c.bf16 %v5608_v43, %v5606_v42 }
 0x7f4   :  { %v1858_v54 = vadd.f32 %v6417_v53, %v5386_v51  ;;  %v6418_v57 = vpop.f32.mrb[18].mxu1  ;;  %7376 = vmatpush1.bf16.msra.mxu1 %v7375_v50 }
 0x7f5   :  { %v6419_v59 = vpop.f32.mrb[19].mxu1 }
 0x7f6   :  { %5421 = vst.msk [vmem:[%s13002_s15 + $0x10] sm:$0xff] %vm1054_vm4, %v1858_v54  ;;  %v6420_v60 = vadd.f32 %v6419_v59, %v6418_v57  ;;  %v8419_v54 = vld [vmem:[%s13004_s13] ss:$0 sm:$0xff] }
 0x7f8   :  { %v1863_v45 = vadd.f32 %v6420_v60, %v5386_v51 }
 0x7fa   :  { %5422 = vst.msk [vmem:[%s13002_s15 + $0x18] sm:$0xff] %vm1054_vm4, %v1863_v45 }
 0x810   :  { %v6453_v30 = vpop.f32.mrb[20].mxu1 }
 0x811   :  { %v6454_v46 = vpop.f32.mrb[21].mxu1 }
 0x812   :  { %v6455_v49 = vadd.f32 %v6454_v46, %v6453_v30 }
 0x814   :  { %v1974_v51 = vadd.f32 %v6455_v49, %v5420_v44  ;;  %v6456_v52 = vpop.f32.mrb[22].mxu1 }
 0x815   :  { %v6457_v53 = vpop.f32.mrb[23].mxu1 }
 0x816   :  { %v1982_v57 = vsub.f32 %v8419_v54, %v1974_v51  ;;  %v6458_v59 = vadd.f32 %v6457_v53, %v6456_v52 }
 0x818   :  { %v1990_v60 = vand.u32 2147483647, %v1982_v57  ;;  %v1979_v61 = vadd.f32 %v6458_v59, %v5420_v44  ;;  %v1984_v47 = vmax.f32 %v1982_v57, 0.0  ;;  %vm1986_vm14 = vcmp.ne.f32.partialorder %v1982_v57, %v1982_v57 }
 0x81a   :  { %v1992_v62 = vsub.f32 0.0, %v1990_v60  ;;  %v1983_v63 = vsub.f32 %v8419_v54, %v1979_v61 }
 0x81c   :  { %v1994_v45 = vmul.f32 1.442695, %v1992_v62  ;;  %v1991_v56 = vand.u32 2147483647, %v1983_v63  ;;  %v1985_v58 = vmax.f32 %v1983_v63, 0.0  ;;  %vm1987_vm0 = vcmp.ne.f32.partialorder %v1983_v63, %v1983_v63 }
 0x81e   :  { %8163 = vpow2.f32 %v1994_v45  ;;  %v1993_v4 = vsub.f32 0.0, %v1991_v56 }
 0x820   :  { %v1996_v1 = vmul.f32 1.442695, %v1993_v4 }
 0x822   :  { %8165 = vpow2.f32 %v1996_v1 }
 0x828   :  { %v8164_v5 = vpop.eup %8163 }
 0x829   :  { %v1998_v7 = vadd.f32 1.0, %v8164_v5  ;;  %v2001_v13 = vmul.f32 -0.5, %v8164_v5  ;;  %v2004_v18 = vand.u32 2147483647, %v8164_v5 }
 0x82b   :  { %8167 = vlog2.f32 %v1998_v7  ;;  %v2002_v14 = vadd.f32 1.0, %v2001_v13  ;;  %vm2005_vm13 = vcmp.lt.f32.partialorder %v2004_v18, 0.0004427343 }
 0x82c   :  { %v8166_v8 = vpop.eup %8165 }
 0x82d   :  { %v2007_v11 = vadd.f32 1.0, %v8166_v8  ;;  %v2010_v16 = vmul.f32 -0.5, %v8166_v8  ;;  %v2003_v48 = vmul.f32 %v8164_v5, %v2002_v14  ;;  %v2013_v10 = vand.u32 2147483647, %v8166_v8 }
 0x82f   :  { %8169 = vlog2.f32 %v2007_v11  ;;  %v2011_v12 = vadd.f32 1.0, %v2010_v16  ;;  %vm2014_vm15 = vcmp.lt.f32.partialorder %v2013_v10, 0.0004427343 }
 0x831   :  { %v2012_v9 = vmul.f32 %v8166_v8, %v2011_v12 }
 0x835   :  { %v8168_v19 = vpop.eup %8167 }
 0x836   :  { %v2000_v55 = vmul.f32 0.6931472, %v8168_v19 }
 0x838   :  { %v2006_v15 = vsel %vm2005_vm13, %v2003_v48, %v2000_v55 }
 0x839   :  { %v8170_v6 = vpop.eup %8169  ;;  %v2016_v0 = vadd.f32 %v2006_v15, %v1984_v47 }
 0x83a   :  { %v2009_v21 = vmul.f32 0.6931472, %v8170_v6 }
 0x83b   :  { %v2018_v23 = vsel %vm1986_vm14, %v1982_v57, %v2016_v0 }
 0x83c   :  { %v2020_v24 = vsub.f32 %v8419_v54, %v2018_v23  ;;  %v2015_v25 = vsel %vm2014_vm15, %v2012_v9, %v2009_v21 }
 0x83d   :  { %v2017_v17 = vadd.f32 %v2015_v25, %v1985_v58 }
 0x83e   :  { %v2022_v27 = vsub.f32 %v2020_v24, %v10814_v26 }
 0x83f   :  { %v2019_v29 = vsel %vm1987_vm0, %v1983_v63, %v2017_v17 }
 0x840   :  { %v2030_v31 = vand.u32 2147483647, %v2022_v27  ;;  %v2021_v33 = vsub.f32 %v8419_v54, %v2019_v29  ;;  %v2024_v8 = vmax.f32 %v2022_v27, 0.0  ;;  %vm2026_vm5 = vcmp.ne.f32.partialorder %v2022_v27, %v2022_v27 }
 0x842   :  { %v2032_v35 = vsub.f32 0.0, %v2030_v31  ;;  %v10818_v36 = vsub.f32 %v2021_v33, %v10814_v26 }
 0x844   :  { %v2034_v22 = vmul.f32 1.442695, %v2032_v35  ;;  %v2031_v28 = vand.u32 2147483647, %v10818_v36  ;;  %v2025_v10 = vmax.f32 %v10818_v36, 0.0  ;;  %vm2027_vm7 = vcmp.ne.f32.partialorder %v10818_v36, %v10818_v36 }
 0x846   :  { %8171 = vpow2.f32 %v2034_v22  ;;  %v2033_v20 = vsub.f32 0.0, %v2031_v28 }
 0x848   :  { %v2036_v37 = vmul.f32 1.442695, %v2033_v20 }
 0x84a   :  { %8173 = vpow2.f32 %v2036_v37 }
 0x850   :  { %v8172_v30 = vpop.eup %8171  ;;  %v2354_v41 = vpop.f32.mrb[24].mxu1 }
 0x851   :  { %v2038_v42 = vadd.f32 1.0, %v8172_v30  ;;  %v10826_v43 = vadd.f32 %v2354_v41, %v2281_v39  ;;  %v2356_v44 = vpop.f32.mrb[25].mxu1  ;;  %v2041_v57 = vmul.f32 -0.5, %v8172_v30  ;;  %v2044_v56 = vand.u32 2147483647, %v8172_v30  ;;  %v5610_v41 = vld [vmem:[%s12995_s7 + $0x500] sm:$0xff] }
 0x852   :  { %v2357_v46 = vadd.f32 %v2356_v44, %v2285_v40  ;;  %v5615_v44 = vld [vmem:[%s12995_s7 + $0x528] sm:$0xff] }
 0x853   :  { %8175 = vlog2.f32 %v2038_v42  ;;  %v5505_v49 = vmul.f32 -1.442695, %v10826_v43  ;;  %v2042_v63 = vadd.f32 1.0, %v2041_v57  ;;  %vm2045_vm1 = vcmp.lt.f32.partialorder %v2044_v56, 0.0004427343  ;;  %v5612_v42 = vld [vmem:[%s12995_s7 + $0x510] sm:$0xff] }
 0x854   :  { %v8174_v50 = vpop.eup %8173  ;;  %v5506_v51 = vmul.f32 -1.442695, %v2357_v46  ;;  %v2360_v52 = vpop.f32.mrb[26].mxu1  ;;  %v5622_v56 = vld [vmem:[%s12995_s7 + $0x560] sm:$0xff] }
 0x855   :  { %v2047_v53 = vadd.f32 1.0, %v8174_v50  ;;  %v2362_v54 = vpop.f32.mrb[27].mxu1  ;;  %8177 = vpow2.f32 %v5505_v49  ;;  %v2361_v59 = vadd.f32 %v2360_v52, %v2281_v39  ;;  %v2050_v45 = vmul.f32 -0.5, %v8174_v50  ;;  %v5611_v39 = vld [vmem:[%s12995_s7 + $0x508] sm:$0xff] }
 0x856   :  { %v2363_v60 = vadd.f32 %v2362_v54, %v2285_v40  ;;  %v2043_v5 = vmul.f32 %v8172_v30, %v2042_v63  ;;  %v2053_v11 = vand.u32 2147483647, %v8174_v50  ;;  %v5613_v40 = vld [vmem:[%s12995_s7 + $0x518] sm:$0xff] }
 0x857   :  { %8179 = vlog2.f32 %v2047_v53  ;;  %v5507_v61 = vmul.f32 -1.442695, %v2361_v59  ;;  %v2051_v7 = vadd.f32 1.0, %v2050_v45  ;;  %v7377_v30 = vpack.c.bf16 %v5613_v40, %v5611_v39  ;;  %v5619_v53 = vld [vmem:[%s12995_s7 + $0x548] sm:$0xff]  ;;  %v5621_v54 = vld [vmem:[%s12995_s7 + $0x558] sm:$0xff] }
 0x858   :  { %8181 = vpow2.f32 %v5506_v51  ;;  %v5508_v62 = vmul.f32 -1.442695, %v2363_v60  ;;  %vm2054_vm6 = vcmp.lt.f32.partialorder %v2053_v11, 0.0004427343  ;;  %v5616_v51 = vld [vmem:[%s12995_s7 + $0x530] sm:$0xff]  ;;  %v7385_v57 = vpack.c.bf16 %v5621_v54, %v5619_v53  ;;  %v5625_v63 = vld [vmem:[%s12995_s7 + $0x578] sm:$0xff] }
 0x859   :  { %8183 = vpow2.f32 %v5507_v61  ;;  %v2052_v12 = vmul.f32 %v8174_v50, %v2051_v7  ;;  %7378 = vmatprep.subr.bf16.mxu1 %v7377_v30  ;;  %v5614_v50 = vld [vmem:[%s12995_s7 + $0x520] sm:$0xff]  ;;  %v5629_v7 = vld [vmem:[%s12995_s7 + $0x598] sm:$0xff] }
 0x85a   :  { %8185 = vpow2.f32 %v5508_v62  ;;  %v7383_v52 = vpack.c.bf16 %v5616_v51, %v5614_v50  ;;  %v5623_v62 = vld [vmem:[%s12995_s7 + $0x568] sm:$0xff]  ;;  %v5626_v11 = vld [vmem:[%s12995_s7 + $0x580] sm:$0xff] }
 0x85b   :  { %v7389_v45 = vpack.c.bf16 %v5625_v63, %v5623_v62 }
 0x85d   :  { %v8176_v4 = vpop.eup %8175 }
 0x85e   :  { %v2040_v1 = vmul.f32 0.6931472, %v8176_v4  ;;  %v5624_v4 = vld [vmem:[%s12995_s7 + $0x570] sm:$0xff] }
 0x85f   :  { %v8178_v13 = vpop.eup %8177 }
 0x860   :  { %v2046_v14 = vsel %vm2045_vm1, %v2043_v5, %v2040_v1  ;;  %v2377_v19 = vadd.f32 1.0, %v8178_v13  ;;  %v7391_v1 = vpack.c.bf16 %v5624_v4, %v5622_v56  ;;  %v5627_v5 = vld [vmem:[%s12995_s7 + $0x588] sm:$0xff]  ;;  %v5628_v13 = vld [vmem:[%s12995_s7 + $0x590] sm:$0xff] }
 0x861   :  { %v8180_v16 = vpop.eup %8179  ;;  %v2056_v18 = vadd.f32 %v2046_v14, %v2024_v8  ;;  %v7393_v8 = vpack.c.bf16 %v5629_v7, %v5627_v5  ;;  %v7395_v14 = vpack.c.bf16 %v5628_v13, %v5626_v11  ;;  %v5719_v7 = vld [vmem:[%s12991_s0 + $0x30] sm:$0xff]  ;;  %v5663_v11 = vld [vmem:[%s12998_s9 + $0x280] sm:$0xff]  ;;  %v5664_v13 = vld [vmem:[%s12998_s9 + $0x288] sm:$0xff] }
 0x862   :  { %v8182_v55 = vpop.eup %8181  ;;  %v2049_v48 = vmul.f32 0.6931472, %v8180_v16  ;;  %8187 = vrcp.f32 %v2377_v19  ;;  %v5631_v16 = vld [vmem:[%s12995_s7 + $0x5a8] sm:$0xff] }
 0x863   :  { %v2058_v47 = vsel %vm2026_vm5, %v2022_v27, %v2056_v18  ;;  %v2378_v15 = vadd.f32 1.0, %v8182_v55  ;;  %v8184_v6 = vpop.eup %8183  ;;  %v5633_v18 = vld [vmem:[%s12995_s7 + $0x5b8] sm:$0xff]  ;;  %v5630_v55 = vld [vmem:[%s12995_s7 + $0x5a0] sm:$0xff] }
 0x864   :  { %v2060_v0 = vadd.f32 %v10814_v26, %v2058_v47  ;;  %v2055_v21 = vsel %vm2054_vm6, %v2052_v12, %v2049_v48  ;;  %v8186_v9 = vpop.eup %8185  ;;  %v2379_v58 = vadd.f32 1.0, %v8184_v6  ;;  %v7397_v19 = vpack.c.bf16 %v5633_v18, %v5631_v16  ;;  %v5632_v48 = vld [vmem:[%s12995_s7 + $0x5b0] sm:$0xff]  ;;  %v5635_v47 = vld [vmem:[%s12995_s7 + $0x5c8] sm:$0xff]  ;;  %v5634_v6 = vld [vmem:[%s12995_s7 + $0x5c0] sm:$0xff] }
 0x865   :  { %v2057_v23 = vadd.f32 %v2055_v21, %v2025_v10  ;;  %8189 = vrcp.f32 %v2378_v15  ;;  %v2380_v25 = vadd.f32 1.0, %v8186_v9  ;;  %v7399_v12 = vpack.c.bf16 %v5632_v48, %v5630_v55  ;;  %v5637_v10 = vld [vmem:[%s12995_s7 + $0x5d8] sm:$0xff]  ;;  %v5639_v9 = vld [vmem:[%s12995_s7 + $0x5e8] sm:$0xff]  ;;  %v5647_v16 = vld [vmem:[%s12998_s9 + $0x200] sm:$0xff] }
 0x866   :  { %v2065_v24 = vmul.f32 1.442695, %v2060_v0  ;;  %8191 = vrcp.f32 %v2379_v58  ;;  %v7401_v15 = vpack.c.bf16 %v5637_v10, %v5635_v47  ;;  %v5636_v0 = vld [vmem:[%s12995_s7 + $0x5d0] sm:$0xff]  ;;  %v5648_v18 = vld [vmem:[%s12998_s9 + $0x208] sm:$0xff]  ;;  %v5666_v48 = vld [vmem:[%s12998_s9 + $0x298] sm:$0xff] }
 0x867   :  { %v2059_v17 = vsel %vm2027_vm7, %v10818_v36, %v2057_v23  ;;  %v7403_v21 = vpack.c.bf16 %v5636_v0, %v5634_v6  ;;  %v5641_v23 = vld [vmem:[%s12995_s7 + $0x5f8] sm:$0xff]  ;;  %v5665_v55 = vld [vmem:[%s12998_s9 + $0x290] sm:$0xff]  ;;  %v5667_v6 = vld [vmem:[%s12998_s9 + $0x2a0] sm:$0xff] }
 0x868   :  { %8193 = vpow2.f32 %v2065_v24  ;;  %v2061_v27 = vadd.f32 %v10814_v26, %v2059_v17  ;;  %v7405_v58 = vpack.c.bf16 %v5641_v23, %v5639_v9  ;;  %v5638_v24 = vld [vmem:[%s12995_s7 + $0x5e0] sm:$0xff]  ;;  %v5649_v47 = vld [vmem:[%s12998_s9 + $0x210] sm:$0xff]  ;;  %v5650_v10 = vld [vmem:[%s12998_s9 + $0x218] sm:$0xff] }
 0x869   :  { %8195 = vrcp.f32 %v2380_v25  ;;  %v5640_v25 = vld [vmem:[%s12995_s7 + $0x5f0] sm:$0xff]  ;;  %v5668_v0 = vld [vmem:[%s12998_s9 + $0x2a8] sm:$0xff]  ;;  %v5651_v9 = vld [vmem:[%s12998_s9 + $0x220] sm:$0xff] }
 0x86a   :  { %v2067_v29 = vmul.f32 1.442695, %v2061_v27  ;;  %v7407_v17 = vpack.c.bf16 %v5640_v25, %v5638_v24  ;;  %v5722_v27 = vld [vmem:[%s13009_s23 + $0x68] sm:$0xff]  ;;  %v5669_v24 = vld [vmem:[%s12998_s9 + $0x2b0] sm:$0xff]  ;;  %v5670_v25 = vld [vmem:[%s12998_s9 + $0x2b8] sm:$0xff] }
 0x86b   :  { %v5652_v23 = vld [vmem:[%s12998_s9 + $0x228] sm:$0xff] }
 0x86c   :  { %8197 = vpow2.f32 %v2067_v29  ;;  %v8188_v31 = vpop.eup %8187  ;;  %v5724_v29 = vld [vmem:[%s13009_s23 + $0x78] sm:$0xf] }
 0x86d   :  { %v2389_v28 = vmul.f32 %v8188_v31, %v10826_v43  ;;  %v7379_v43 = vpack.c.bf16 %v5612_v42, %v5610_v41  ;;  %v7473_v31 = vpack.c.bf16 %v5724_v29, %v5722_v27  ;;  %v5653_v27 = vld [vmem:[%s12998_s9 + $0x230] sm:$0xff]  ;;  %v5654_v29 = vld [vmem:[%s12998_s9 + $0x238] sm:$0xff] }
 0x86f   :  { %v8190_v33 = vpop.eup %8189  ;;  %7380 = vmatpush1.bf16.msra.mxu1 %v7379_v43 }
 0x870   :  { %v2390_v35 = vmul.f32 %v8190_v33, %v2357_v46  ;;  %v8192_v22 = vpop.eup %8191  ;;  %v5617_v46 = vld [vmem:[%s12995_s7 + $0x538] sm:$0xff]  ;;  %v5573_v33 = vld [vmem:[%s12997_s6 + $0x4] sm:$0x3] }
 0x871   :  { %v2391_v26 = vmul.f32 %v8192_v22, %v2361_v59  ;;  %v7381_v49 = vpack.c.bf16 %v5617_v46, %v5615_v44  ;;  %v5618_v59 = vld [vmem:[%s12995_s7 + $0x540] sm:$0xff]  ;;  %v2468_v22 = vrot.slane %v5573_v33, %v8835_v34 }
 0x872   :  { %v8194_v20 = vpop.eup %8193  ;;  %2535 = vmatprep.mubr.f32.mxu0 %v2390_v35  ;;  %v2464_v35 = vrot.slane %v5573_v33, %v8830_v32  ;;  %v5671_v33 = vld [vmem:[%s12998_s9 + $0x2c0] sm:$0xff] }
 0x873   :  { %v8196_v37 = vpop.eup %8195  ;;  %5423 = vst.msk [vmem:[%s13006_s16 + $0x10] sm:$0xff] %vm1054_vm4, %v8194_v20  ;;  %2536 = vmatmul.mubr.f32.vlgmr.msra.gmra.mrb[28].mxu0 %v2389_v28  ;;  %7382 = vmatprep.subr.bf16.mxu1 %v7381_v49 }
 0x874   :  { %v2392_v36 = vmul.f32 %v8196_v37, %v2363_v60  ;;  %7384 = vmatpush1.bf16.msra.mxu1 %v7383_v52  ;;  %v5620_v60 = vld [vmem:[%s12995_s7 + $0x550] sm:$0xff] }
 0x875   :  { %v7387_v61 = vpack.c.bf16 %v5620_v60, %v5618_v59  ;;  %7386 = vmatprep.subr.bf16.mxu1 %v7385_v57  ;;  %v5721_v57 = vld [vmem:[%s13009_s23 + $0x60] sm:$0xff]  ;;  %v5723_v59 = vld [vmem:[%s13009_s23 + $0x70] sm:$0xf] }
 0x876   :  { %v8198_v38 = vpop.eup %8197  ;;  %2541 = vmatprep.mubr.f32.mxu0 %v2392_v36  ;;  %v7476_v63 = vpack.c.bf16 %v5723_v59, %v5721_v57  ;;  %v5697_v59 = vld [vmem:[%s12999_s11 + $0x280] sm:$0xff] }
 0x877   :  { %5424 = vst.msk [vmem:[%s13006_s16 + $0x18] sm:$0xff] %vm1054_vm4, %v8198_v38  ;;  %2542 = vmatmul.mubr.f32.gmra.mrb[30].mxu0 %v2391_v26 }
 0x878   :  { %7388 = vmatpush1.bf16.msra.mxu1 %v7387_v61 }
 0x879   :  { %7390 = vmatprep.subr.bf16.mxu1 %v7389_v45 }
 0x87c   :  { %7392 = vmatpush1.bf16.msra.mxu1 %v7391_v1 }
 0x87d   :  { %7394 = vmatprep.subr.bf16.mxu1 %v7393_v8  ;;  %v5720_v8 = vld [vmem:[%s12991_s0 + $0x38] sm:$0xff] }
 0x880   :  { %7396 = vmatpush1.bf16.msra.mxu1 %v7395_v14  ;;  %v7409_v14 = vpack.c.bf16 %v5664_v13, %v5663_v11 }
 0x881   :  { %7398 = vmatprep.subr.bf16.mxu1 %v7397_v19  ;;  %v7411_v19 = vpack.c.bf16 %v5648_v18, %v5647_v16 }
 0x882   :  { %7410 = vmatprep.subr.bf16.mxu0 %v7409_v14 }
 0x883   :  { %7412 = vmatpush3.bf16.msra.mxu0 %v7411_v19 }
 0x884   :  { %7400 = vmatpush1.bf16.msra.mxu1 %v7399_v12  ;;  %v7413_v12 = vpack.c.bf16 %v5666_v48, %v5665_v55 }
 0x885   :  { %7402 = vmatprep.subr.bf16.mxu1 %v7401_v15  ;;  %v7415_v15 = vpack.c.bf16 %v5650_v10, %v5649_v47 }
 0x886   :  { %7414 = vmatprep.subr.bf16.mxu0 %v7413_v12 }
 0x887   :  { %7416 = vmatpush3.bf16.msra.mxu0 %v7415_v15 }
 0x888   :  { %7404 = vmatpush1.bf16.msra.mxu1 %v7403_v21  ;;  %v7417_v21 = vpack.c.bf16 %v5668_v0, %v5667_v6 }
 0x889   :  { %7406 = vmatprep.subr.bf16.mxu1 %v7405_v58  ;;  %v7419_v58 = vpack.c.bf16 %v5652_v23, %v5651_v9 }
 0x88a   :  { %7418 = vmatprep.subr.bf16.mxu0 %v7417_v21 }
 0x88b   :  { %7420 = vmatpush3.bf16.msra.mxu0 %v7419_v58 }
 0x88c   :  { %7408 = vmatpush1.bf16.msra.mxu1 %v7407_v17  ;;  %v7421_v17 = vpack.c.bf16 %v5670_v25, %v5669_v24  ;;  %v11087_v24 = vld [vmem:[%s12994_s2 + $0x6] sm:$0x3] }
 0x88d   :  { %7475 = vmatprep.subr.msk.bf16.mxu1 %vm8518_vm2, %v7473_v31  ;;  %v7423_v31 = vpack.c.bf16 %v5654_v29, %v5653_v27  ;;  %v11091_v25 = vrot.slane %v11087_v24, %v8835_v34  ;;  %v5682_v27 = vld [vmem:[%s12999_s11 + $0x208] sm:$0xff] }
 0x88e   :  { %7422 = vmatprep.subr.bf16.mxu0 %v7421_v17  ;;  %v5681_v17 = vld [vmem:[%s12999_s11 + $0x200] sm:$0xff] }
 0x88f   :  { %7424 = vmatpush3.bf16.msra.mxu0 %v7423_v31  ;;  %v5699_v31 = vld [vmem:[%s12999_s11 + $0x290] sm:$0xff] }
 0x946   :  { %v2537_v28 = vpop.f32.mrb[28].mxu0 }
 0x947   :  { %v2538_v20 = vadd.f32 %v2537_v28, %v2464_v35  ;;  %v2539_v37 = vpop.f32.mrb[29].mxu0  ;;  %v5655_v28 = vld [vmem:[%s12998_s9 + $0x240] sm:$0xff] }
 0x948   :  { %v2540_v36 = vadd.f32 %v2539_v37, %v2468_v22 }
 0x949   :  { %v5574_v26 = vmul.f32 -1.442695, %v2538_v20 }
 0x94a   :  { %v5575_v38 = vmul.f32 -1.442695, %v2540_v36  ;;  %v2543_v39 = vpop.f32.mrb[30].mxu0 }
 0x94b   :  { %8199 = vpow2.f32 %v5574_v26  ;;  %v2544_v40 = vadd.f32 %v2543_v39, %v2464_v35  ;;  %v2545_v30 = vpop.f32.mrb[31].mxu0  ;;  %v5672_v35 = vld [vmem:[%s12998_s9 + $0x2c8] sm:$0xff]  ;;  %v5674_v26 = vld [vmem:[%s12998_s9 + $0x2d8] sm:$0xff]  ;;  %v5657_v39 = vld [vmem:[%s12998_s9 + $0x250] sm:$0xff] }
 0x94c   :  { %8201 = vpow2.f32 %v5575_v38  ;;  %v2546_v41 = vadd.f32 %v2545_v30, %v2468_v22  ;;  %v7425_v22 = vpack.c.bf16 %v5672_v35, %v5671_v33  ;;  %v5700_v33 = vld [vmem:[%s12999_s11 + $0x298] sm:$0xff] }
 0x94d   :  { %v5576_v42 = vmul.f32 -1.442695, %v2544_v40 }
 0x94e   :  { %v5577_v43 = vmul.f32 -1.442695, %v2546_v41  ;;  %7426 = vmatprep.subr.bf16.mxu0 %v7425_v22 }
 0x94f   :  { %8203 = vpow2.f32 %v5576_v42  ;;  %v5676_v42 = vld [vmem:[%s12998_s9 + $0x2e8] sm:$0xff] }
 0x950   :  { %8205 = vpow2.f32 %v5577_v43 }
 0x955   :  { %v8200_v44 = vpop.eup %8199 }
 0x956   :  { %v8202_v46 = vpop.eup %8201  ;;  %v2560_v49 = vadd.f32 1.0, %v8200_v44  ;;  %v5659_v44 = vld [vmem:[%s12998_s9 + $0x260] sm:$0xff] }
 0x957   :  { %v2561_v50 = vadd.f32 1.0, %v8202_v46  ;;  %v5660_v46 = vld [vmem:[%s12998_s9 + $0x268] sm:$0xff] }
 0x958   :  { %8207 = vrcp.f32 %v2560_v49  ;;  %v7435_v49 = vpack.c.bf16 %v5660_v46, %v5659_v44 }
 0x959   :  { %v8204_v51 = vpop.eup %8203  ;;  %8209 = vrcp.f32 %v2561_v50  ;;  %v5677_v50 = vld [vmem:[%s12998_s9 + $0x2f0] sm:$0xff] }
 0x95a   :  { %v8206_v52 = vpop.eup %8205  ;;  %v2562_v53 = vadd.f32 1.0, %v8204_v51  ;;  %v5678_v51 = vld [vmem:[%s12998_s9 + $0x2f8] sm:$0xff] }
 0x95b   :  { %v2563_v54 = vadd.f32 1.0, %v8206_v52  ;;  %v7437_v52 = vpack.c.bf16 %v5678_v51, %v5677_v50  ;;  %v5685_v50 = vld [vmem:[%s12999_s11 + $0x220] sm:$0xff]  ;;  %v5686_v51 = vld [vmem:[%s12999_s11 + $0x228] sm:$0xff] }
 0x95c   :  { %8211 = vrcp.f32 %v2562_v53  ;;  %v5661_v53 = vld [vmem:[%s12998_s9 + $0x270] sm:$0xff] }
 0x95d   :  { %8213 = vrcp.f32 %v2563_v54  ;;  %v5662_v54 = vld [vmem:[%s12998_s9 + $0x278] sm:$0xff] }
 0x95e   :  { %v7439_v57 = vpack.c.bf16 %v5662_v54, %v5661_v53  ;;  %v5704_v53 = vld [vmem:[%s12999_s11 + $0x2b8] sm:$0xff]  ;;  %v7451_v54 = vpack.c.bf16 %v5686_v51, %v5685_v50  ;;  %v5742_v51 = vld [vmem:[%s12992_s3 + $0x640] sm:$0xff] }
 0x962   :  { %v8208_v60 = vpop.eup %8207 }
 0x963   :  { %v8210_v61 = vpop.eup %8209  ;;  %v2572_v45 = vmul.f32 %v8208_v60, %v2538_v20  ;;  %v5656_v20 = vld [vmem:[%s12998_s9 + $0x248] sm:$0xff] }
 0x964   :  { %v2573_v62 = vmul.f32 %v8210_v61, %v2540_v36  ;;  %v7427_v37 = vpack.c.bf16 %v5656_v20, %v5655_v28  ;;  %v5673_v36 = vld [vmem:[%s12998_s9 + $0x2d0] sm:$0xff]  ;;  %v5698_v60 = vld [vmem:[%s12999_s11 + $0x288] sm:$0xff]  ;;  %v7443_v20 = vpack.c.bf16 %v5682_v27, %v5681_v17  ;;  %v5696_v17 = vld [vmem:[%s12999_s11 + $0x278] sm:$0xff] }
 0x965   :  { %v7429_v38 = vpack.c.bf16 %v5674_v26, %v5673_v36  ;;  %v7441_v61 = vpack.c.bf16 %v5698_v60, %v5697_v59  ;;  %v7445_v36 = vpack.c.bf16 %v5700_v33, %v5699_v31  ;;  %v5683_v26 = vld [vmem:[%s12999_s11 + $0x210] sm:$0xff]  ;;  %v5688_v60 = vld [vmem:[%s12999_s11 + $0x238] sm:$0xff]  ;;  %v5735_v27 = vld [vmem:[%s12992_s3 + $0x608] sm:$0xff] }
 0x966   :  { %v8212_v56 = vpop.eup %8211  ;;  %2718 = vmatprep.mubr.f32.mxu1 %v2573_v62  ;;  %7428 = vmatpush3.bf16.msra.mxu0 %v7427_v37  ;;  %v5642_v62 = vld [vmem:[%s13000_s8 + $0x4] sm:$0x3]  ;;  %v5687_v59 = vld [vmem:[%s12999_s11 + $0x230] sm:$0xff] }
 0x967   :  { %v8214_v4 = vpop.eup %8213  ;;  %2719 = vmatmul.mubr.f32.vlgmr.msra.gmra.mrb[28].mxu1 %v2572_v45  ;;  %v2574_v5 = vmul.f32 %v8212_v56, %v2544_v40  ;;  %v5658_v40 = vld [vmem:[%s12998_s9 + $0x258] sm:$0xff]  ;;  %7430 = vmatprep.subr.bf16.mxu0 %v7429_v38  ;;  %v2651_v45 = vrot.slane %v5642_v62, %v8835_v34 }
 0x968   :  { %v2575_v1 = vmul.f32 %v8214_v4, %v2546_v41  ;;  %7478 = vmatpush1.bf16.msk.msra.mxu1 %vm8518_vm2, %v7476_v63  ;;  %v7431_v30 = vpack.c.bf16 %v5658_v40, %v5657_v39  ;;  %v5675_v41 = vld [vmem:[%s12998_s9 + $0x2e0] sm:$0xff]  ;;  %v2647_v63 = vrot.slane %v5642_v62, %v8830_v32  ;;  %v5684_v38 = vld [vmem:[%s12999_s11 + $0x218] sm:$0xff]  ;;  %v5706_v62 = vld [vmem:[%s12999_s11 + $0x2c8] sm:$0xff] }
 0x969   :  { %v7433_v43 = vpack.c.bf16 %v5676_v42, %v5675_v41  ;;  %v5701_v40 = vld [vmem:[%s12999_s11 + $0x2a0] sm:$0xff]  ;;  %v7447_v44 = vpack.c.bf16 %v5684_v38, %v5683_v26 }
 0x96a   :  { %2724 = vmatprep.mubr.f32.mxu1 %v2575_v1  ;;  %7432 = vmatpush3.bf16.msra.mxu0 %v7431_v30  ;;  %v5702_v30 = vld [vmem:[%s12999_s11 + $0x2a8] sm:$0xff] }
 0x96b   :  { %2725 = vmatmul.mubr.f32.gmra.mrb[30].mxu1 %v2574_v5  ;;  %7434 = vmatprep.subr.bf16.mxu0 %v7433_v43 }
 0x96c   :  { %3178 = vmatprep.mubr.f32.mxu1 %v8426_v3 }
 0x96e   :  { %7436 = vmatpush3.bf16.msra.mxu0 %v7435_v49  ;;  %v7449_v49 = vpack.c.bf16 %v5702_v30, %v5701_v40  ;;  %v5738_v40 = vld [vmem:[%s12992_s3 + $0x620] sm:$0xff]  ;;  %v5740_v30 = vld [vmem:[%s12992_s3 + $0x630] sm:$0xff] }
 0x96f   :  { %5728 = vmatmul.mubr.msk.f32.vlgmr.msra.gmra.mrb[32].mxu1 %vm72_vm3, %v5719_v7  ;;  %7438 = vmatprep.subr.bf16.mxu0 %v7437_v52  ;;  %v5703_v52 = vld [vmem:[%s12999_s11 + $0x2b0] sm:$0xff] }
 0x970   :  { %3184 = vmatprep.mubr.f32.mxu1 %v8426_v3 }
 0x972   :  { %7440 = vmatpush3.bf16.msra.mxu0 %v7439_v57  ;;  %v7453_v57 = vpack.c.bf16 %v5704_v53, %v5703_v52  ;;  %v5744_v52 = vld [vmem:[%s12992_s3 + $0x650] sm:$0xff] }
 0x973   :  { %5729 = vmatmul.mubr.msk.f32.gmra.mrb[34].mxu1 %vm72_vm3, %v5720_v8  ;;  %7442 = vmatprep.subr.bf16.mxu0 %v7441_v61  ;;  %v5705_v61 = vld [vmem:[%s12999_s11 + $0x2c0] sm:$0xff] }
 0xa3a   :  { %v2720_v56 = vpop.f32.mrb[28].mxu1 }
 0xa3b   :  { %v2721_v4 = vadd.f32 %v2720_v56, %v2647_v63  ;;  %v2722_v1 = vpop.f32.mrb[29].mxu1  ;;  %v5689_v56 = vld [vmem:[%s12999_s11 + $0x240] sm:$0xff] }
 0xa3c   :  { %v2723_v5 = vadd.f32 %v2722_v1, %v2651_v45  ;;  %v5707_v1 = vld [vmem:[%s12999_s11 + $0x2d0] sm:$0xff] }
 0xa3d   :  { %v5643_v7 = vmul.f32 -1.442695, %v2721_v4 }
 0xa3e   :  { %v5644_v8 = vmul.f32 -1.442695, %v2723_v5  ;;  %v2726_v11 = vpop.f32.mrb[30].mxu1 }
 0xa3f   :  { %8215 = vpow2.f32 %v5643_v7  ;;  %v2727_v13 = vadd.f32 %v2726_v11, %v2647_v63  ;;  %v2728_v14 = vpop.f32.mrb[31].mxu1  ;;  %v7455_v63 = vpack.c.bf16 %v5688_v60, %v5687_v59  ;;  %v5751_v59 = vld [vmem:[%s12992_s3 + $0x688] sm:$0xff] }
 0xa40   :  { %8217 = vpow2.f32 %v5644_v8  ;;  %v2729_v16 = vadd.f32 %v2728_v14, %v2651_v45  ;;  %v7457_v45 = vpack.c.bf16 %v5706_v62, %v5705_v61  ;;  %v5692_v14 = vld [vmem:[%s12999_s11 + $0x258] sm:$0xff]  ;;  %v5750_v62 = vld [vmem:[%s12992_s3 + $0x680] sm:$0xff] }
 0xa41   :  { %v5645_v18 = vmul.f32 -1.442695, %v2727_v13 }
 0xa42   :  { %v5646_v19 = vmul.f32 -1.442695, %v2729_v16  ;;  %v11078_v55 = vpop.f32.mrb[32].mxu1 }
 0xa43   :  { %8219 = vpow2.f32 %v5645_v18  ;;  %v3182_v48 = vpop.f32.mrb[33].mxu1  ;;  %v5710_v18 = vld [vmem:[%s12999_s11 + $0x2e8] sm:$0xff] }
 0xa44   :  { %8221 = vpow2.f32 %v5646_v19  ;;  %v11106_v35 = vadd.f32 %v3182_v48, %v11091_v25 }
 0xa46   :  { %v11080_v12 = vpop.f32.mrb[34].mxu1  ;;  %v5731_v41 = vmul.f32 -1.442695, %v11106_v35 }
 0xa47   :  { %v11082_v47 = vpop.f32.mrb[35].mxu1 }
 0xa49   :  { %v8216_v10 = vpop.eup %8215 }
 0xa4a   :  { %v8218_v15 = vpop.eup %8217  ;;  %v2743_v6 = vadd.f32 1.0, %v8216_v10 }
 0xa4b   :  { %v2744_v0 = vadd.f32 1.0, %v8218_v15  ;;  %v5693_v15 = vld [vmem:[%s12999_s11 + $0x260] sm:$0xff] }
 0xa4c   :  { %8223 = vrcp.f32 %v2743_v6  ;;  %v5694_v6 = vld [vmem:[%s12999_s11 + $0x268] sm:$0xff] }
 0xa4d   :  { %v8220_v21 = vpop.eup %8219  ;;  %8225 = vrcp.f32 %v2744_v0  ;;  %v5711_v0 = vld [vmem:[%s12999_s11 + $0x2f0] sm:$0xff] }
 0xa4e   :  { %v8222_v9 = vpop.eup %8221  ;;  %v2745_v23 = vadd.f32 1.0, %v8220_v21  ;;  %v5712_v21 = vld [vmem:[%s12999_s11 + $0x2f8] sm:$0xff] }
 0xa4f   :  { %v2746_v58 = vadd.f32 1.0, %v8222_v9  ;;  %v7467_v9 = vpack.c.bf16 %v5694_v6, %v5693_v15 }
 0xa50   :  { %8227 = vrcp.f32 %v2745_v23  ;;  %v7469_v23 = vpack.c.bf16 %v5712_v21, %v5711_v0  ;;  %v5762_v0 = vld [vmem:[%s12992_s3 + $0x6e0] sm:$0xff]  ;;  %v5764_v21 = vld [vmem:[%s12992_s3 + $0x6f0] sm:$0xff] }
 0xa51   :  { %8229 = vrcp.f32 %v2746_v58  ;;  %v5695_v58 = vld [vmem:[%s12999_s11 + $0x270] sm:$0xff] }
 0xa52   :  { %8231 = vpow2.f32 %v5731_v41  ;;  %v7471_v31 = vpack.c.bf16 %v5696_v17, %v5695_v58  ;;  %v5743_v41 = vld [vmem:[%s12992_s3 + $0x648] sm:$0xff]  ;;  %v7509_v17 = vpack.c.bf16 %v5764_v21, %v5762_v0  ;;  %v5794_v0 = vld [vmem:[%s12992_s3 + $0x7e0] sm:$0xff]  ;;  %v5796_v21 = vld [vmem:[%s12992_s3 + $0x7f0] sm:$0xff] }
 0xa56   :  { %v8224_v29 = vpop.eup %8223 }
 0xa57   :  { %v8226_v22 = vpop.eup %8225  ;;  %v11108_v37 = vmul.f32 %v8224_v29, %v2721_v4  ;;  %v5690_v4 = vld [vmem:[%s12999_s11 + $0x248] sm:$0xff]  ;;  %v5737_v29 = vld [vmem:[%s12992_s3 + $0x618] sm:$0xff] }
 0xa58   :  { %v2756_v28 = vmul.f32 %v8226_v22, %v2723_v5  ;;  %v5708_v5 = vld [vmem:[%s12999_s11 + $0x2d8] sm:$0xff]  ;;  %v7459_v8 = vpack.c.bf16 %v5690_v4, %v5689_v56  ;;  %v7479_v33 = vpack.c.bf16 %v5737_v29, %v5735_v27  ;;  %v5734_v22 = vld [vmem:[%s12992_s3 + $0x600] sm:$0xff] }
 0xa59   :  { %v7461_v11 = vpack.c.bf16 %v5708_v5, %v5707_v1  ;;  %v5757_v56 = vld [vmem:[%s12992_s3 + $0x6b8] sm:$0xff]  ;;  %v5754_v5 = vld [vmem:[%s12992_s3 + $0x6a0] sm:$0xff] }
 0xa5a   :  { %v8228_v39 = vpop.eup %8227  ;;  %2864 = vmatprep.mubr.f32.mxu0 %v2756_v28  ;;  %v5766_v29 = vld [vmem:[%s12992_s3 + $0x700] sm:$0xff] }
 0xa5b   :  { %v8230_v42 = vpop.eup %8229  ;;  %2865 = vmatmul.mubr.f32.vlgmr.msra.gmra.mrb[32].mxu0 %v11108_v37  ;;  %v11126_v46 = vmul.f32 %v8228_v39, %v2727_v13  ;;  %v5691_v13 = vld [vmem:[%s12999_s11 + $0x250] sm:$0xff] }
 0xa5c   :  { %v11124_v43 = vmul.f32 %v8230_v42, %v2729_v16  ;;  %7444 = vmatpush3.bf16.msra.mxu0 %v7443_v20  ;;  %v8232_v7 = vpop.eup %8231  ;;  %v5709_v16 = vld [vmem:[%s12999_s11 + $0x2e0] sm:$0xff]  ;;  %v7463_v48 = vpack.c.bf16 %v5692_v14, %v5691_v13  ;;  %v5739_v20 = vld [vmem:[%s12992_s3 + $0x628] sm:$0xff]  ;;  %v5745_v42 = vld [vmem:[%s12992_s3 + $0x658] sm:$0xff] }
 0xa5d   :  { %7446 = vmatprep.subr.bf16.mxu0 %v7445_v36  ;;  %v3204_v19 = vadd.f32 1.0, %v8232_v7  ;;  %v7465_v10 = vpack.c.bf16 %v5710_v18, %v5709_v16  ;;  %v5741_v36 = vld [vmem:[%s12992_s3 + $0x638] sm:$0xff]  ;;  %v7487_v50 = vpack.c.bf16 %v5745_v42, %v5743_v41  ;;  %v5756_v7 = vld [vmem:[%s12992_s3 + $0x6b0] sm:$0xff]  ;;  %v5758_v16 = vld [vmem:[%s12992_s3 + $0x6c0] sm:$0xff] }
 0xa5e   :  { %2869 = vmatprep.mubr.f32.mxu0 %v11124_v43  ;;  %v7483_v39 = vpack.c.bf16 %v5741_v36, %v5739_v20  ;;  %v7501_v13 = vpack.c.bf16 %v5756_v7, %v5754_v5  ;;  %v5760_v18 = vld [vmem:[%s12992_s3 + $0x6d0] sm:$0xff]  ;;  %v5770_v36 = vld [vmem:[%s12992_s3 + $0x720] sm:$0xff] }
 0xa5f   :  { %2870 = vmatmul.mubr.f32.gmra.mrb[34].mxu0 %v11126_v46  ;;  %8233 = vrcp.f32 %v3204_v19  ;;  %v5763_v19 = vld [vmem:[%s12992_s3 + $0x6e8] sm:$0xff]  ;;  %v7505_v15 = vpack.c.bf16 %v5760_v18, %v5758_v16  ;;  %v5774_v41 = vld [vmem:[%s12992_s3 + $0x740] sm:$0xff]  ;;  %v5776_v42 = vld [vmem:[%s12992_s3 + $0x750] sm:$0xff] }
 0xa60   :  { %7448 = vmatpush3.bf16.msra.mxu0 %v7447_v44  ;;  %2980 = vmatprep.mubr.f32.mxu0 %v2756_v28  ;;  %v5736_v28 = vld [vmem:[%s12992_s3 + $0x610] sm:$0xff]  ;;  %v5786_v5 = vld [vmem:[%s12992_s3 + $0x7a0] sm:$0xff] }
 0xa61   :  { %7450 = vmatprep.subr.bf16.mxu0 %v7449_v49  ;;  %v7481_v26 = vpack.c.bf16 %v5736_v28, %v5734_v22  ;;  %v7485_v49 = vpack.c.bf16 %v5740_v30, %v5738_v40  ;;  %v5788_v7 = vld [vmem:[%s12992_s3 + $0x7b0] sm:$0xff]  ;;  %v5790_v18 = vld [vmem:[%s12992_s3 + $0x7c0] sm:$0xff] }
 0xa64   :  { %7452 = vmatpush3.bf16.msra.mxu0 %v7451_v54  ;;  %v5746_v54 = vld [vmem:[%s12992_s3 + $0x660] sm:$0xff] }
 0xa65   :  { %7454 = vmatprep.subr.bf16.mxu0 %v7453_v57  ;;  %v5748_v57 = vld [vmem:[%s12992_s3 + $0x670] sm:$0xff] }
 0xa66   :  { %v7493_v60 = vpack.c.bf16 %v5748_v57, %v5746_v54 }
 0xa68   :  { %7456 = vmatpush3.bf16.msra.mxu0 %v7455_v63  ;;  %v5752_v63 = vld [vmem:[%s12992_s3 + $0x690] sm:$0xff] }
 0xa69   :  { %7458 = vmatprep.subr.bf16.mxu0 %v7457_v45  ;;  %v8234_v38 = vpop.eup %8233  ;;  %v5755_v45 = vld [vmem:[%s12992_s3 + $0x6a8] sm:$0xff]  ;;  %v7497_v4 = vpack.c.bf16 %v5752_v63, %v5750_v62  ;;  %v5789_v62 = vld [vmem:[%s12992_s3 + $0x7b8] sm:$0xff] }
 0xa6a   :  { %v3216_v44 = vmul.f32 %v8234_v38, %v11106_v35  ;;  %v7489_v35 = vpack.c.bf16 %v5744_v52, %v5742_v51  ;;  %v7499_v1 = vpack.c.bf16 %v5757_v56, %v5755_v45  ;;  %v5775_v38 = vld [vmem:[%s12992_s3 + $0x748] sm:$0xff]  ;;  %v5778_v52 = vld [vmem:[%s12992_s3 + $0x760] sm:$0xff] }
 0xa6c   :  { %7460 = vmatpush3.bf16.msra.mxu0 %v7459_v8  ;;  %v5759_v8 = vld [vmem:[%s12992_s3 + $0x6c8] sm:$0xff] }
 0xa6d   :  { %7462 = vmatprep.subr.bf16.mxu0 %v7461_v11  ;;  %v5761_v11 = vld [vmem:[%s12992_s3 + $0x6d8] sm:$0xff] }
 0xa6e   :  { %v7503_v14 = vpack.c.bf16 %v5761_v11, %v5759_v8  ;;  %v5791_v8 = vld [vmem:[%s12992_s3 + $0x7c8] sm:$0xff]  ;;  %v5793_v11 = vld [vmem:[%s12992_s3 + $0x7d8] sm:$0xff] }
 0xa6f   :  { %v7535_v16 = vpack.c.bf16 %v5793_v11, %v5791_v8  ;;  %v5829_v8 = vld [vmem:[%s12993_s5 + $0x6d0] sm:$0xff] }
 0xa70   :  { %7464 = vmatpush3.bf16.msra.mxu0 %v7463_v48  ;;  %v5765_v48 = vld [vmem:[%s12992_s3 + $0x6f8] sm:$0xff] }
 0xa71   :  { %7466 = vmatprep.subr.bf16.mxu0 %v7465_v10  ;;  %v3095_v10 = vrot.slane %v11087_v24, %v8830_v32  ;;  %v7507_v6 = vpack.c.bf16 %v5765_v48, %v5763_v19  ;;  %v5769_v24 = vld [vmem:[%s12992_s3 + $0x718] sm:$0xff]  ;;  %v5792_v19 = vld [vmem:[%s12992_s3 + $0x7d0] sm:$0xff]  ;;  %v5795_v48 = vld [vmem:[%s12992_s3 + $0x7e8] sm:$0xff] }
 0xa73   :  { %v11309_v58 = vadd.f32 %v11078_v55, %v3095_v10  ;;  %v5773_v55 = vld [vmem:[%s12992_s3 + $0x738] sm:$0xff]  ;;  %v11326_v22 = vadd.f32 %v11080_v12, %v3095_v10 }
 0xa74   :  { %7468 = vmatpush3.bf16.msra.mxu0 %v7467_v9  ;;  %v5767_v9 = vld [vmem:[%s12992_s3 + $0x708] sm:$0xff]  ;;  %v5777_v12 = vld [vmem:[%s12992_s3 + $0x758] sm:$0xff] }
 0xa75   :  { %7470 = vmatprep.subr.bf16.mxu0 %v7469_v23  ;;  %v11306_v23 = vadd.f32 %v11082_v47, %v11091_v25  ;;  %v7511_v27 = vpack.c.bf16 %v5769_v24, %v5767_v9  ;;  %v5771_v47 = vld [vmem:[%s12992_s3 + $0x728] sm:$0xff]  ;;  %v5730_v25 = vmul.f32 -1.442695, %v11309_v58  ;;  %v7519_v30 = vpack.c.bf16 %v5777_v12, %v5775_v38  ;;  %v5797_v10 = vld [vmem:[%s12992_s3 + $0x7f8] sm:$0xff]  ;;  %v5809_v38 = vld [vmem:[%s12993_s5 + $0x630] sm:$0xff] }
 0xa76   :  { %v7515_v20 = vpack.c.bf16 %v5773_v55, %v5771_v47  ;;  %v7541_v9 = vpack.c.bf16 %v5796_v21, %v5794_v0  ;;  %v5804_v47 = vld [vmem:[%s12993_s5 + $0x608] sm:$0xff]  ;;  %v5806_v55 = vld [vmem:[%s12993_s5 + $0x618] sm:$0xff]  ;;  %v5835_v0 = vld [vmem:[%s12993_s5 + $0x700] sm:$0xff] }
 0xa77   :  { %v5837_v21 = vld [vmem:[%s12993_s5 + $0x710] sm:$0xff] }
 0xa78   :  { %7472 = vmatpush3.bf16.msra.mxu0 %v7471_v31  ;;  %v5768_v31 = vld [vmem:[%s12992_s3 + $0x710] sm:$0xff] }
 0xa79   :  { %7480 = vmatprep.subr.bf16.mxu0 %v7479_v33  ;;  %v5733_v33 = vmul.f32 -1.442695, %v11306_v23  ;;  %v7513_v28 = vpack.c.bf16 %v5768_v31, %v5766_v29 }
 0xa7b   :  { %2981 = vmatmul.mubr.f32.vlgmr.msra.gmra.mrb[36].mxu0 %v11108_v37  ;;  %v5747_v37 = vld [vmem:[%s12992_s3 + $0x668] sm:$0xff]  ;;  %8235 = vpow2.f32 %v5733_v33 }
 0xa7c   :  { %2985 = vmatprep.mubr.f32.mxu0 %v11124_v43  ;;  %7482 = vmatpush1.bf16.msra.mxu0 %v7481_v26  ;;  %v5749_v43 = vld [vmem:[%s12992_s3 + $0x678] sm:$0xff]  ;;  %v5772_v26 = vld [vmem:[%s12992_s3 + $0x730] sm:$0xff]  ;;  %8237 = vpow2.f32 %v5730_v25  ;;  %v7543_v25 = vpack.c.bf16 %v5806_v55, %v5804_v47  ;;  %v5844_v47 = vld [vmem:[%s12993_s5 + $0x748] sm:$0xff] }
 0xa7d   :  { %7484 = vmatprep.subr.bf16.mxu0 %v7483_v39  ;;  %v7491_v53 = vpack.c.bf16 %v5749_v43, %v5747_v37  ;;  %v5732_v39 = vmul.f32 -1.442695, %v11326_v22  ;;  %v7517_v40 = vpack.c.bf16 %v5772_v26, %v5770_v36  ;;  %v5780_v37 = vld [vmem:[%s12992_s3 + $0x770] sm:$0xff]  ;;  %v5783_v43 = vld [vmem:[%s12992_s3 + $0x788] sm:$0xff]  ;;  %v5807_v26 = vld [vmem:[%s12993_s5 + $0x620] sm:$0xff] }
 0xa7e   :  { %v7525_v54 = vpack.c.bf16 %v5780_v37, %v5778_v52  ;;  %7544 = vmatprep.subr.bf16.mxu1 %v7543_v25  ;;  %v7549_v12 = vpack.c.bf16 %v5809_v38, %v5807_v26  ;;  %v5815_v52 = vld [vmem:[%s12993_s5 + $0x660] sm:$0xff]  ;;  %v5817_v37 = vld [vmem:[%s12993_s5 + $0x670] sm:$0xff]  ;;  %v5846_v55 = vld [vmem:[%s12993_s5 + $0x758] sm:$0xff] }
 0xa7f   :  { %2986 = vmatmul.mubr.f32.gmra.mrb[38].mxu0 %v11126_v46  ;;  %v5753_v46 = vld [vmem:[%s12992_s3 + $0x698] sm:$0xff]  ;;  %8239 = vpow2.f32 %v5732_v39  ;;  %v5812_v39 = vld [vmem:[%s12993_s5 + $0x648] sm:$0xff]  ;;  %v7583_v25 = vpack.c.bf16 %v5846_v55, %v5844_v47  ;;  %v5847_v26 = vld [vmem:[%s12993_s5 + $0x760] sm:$0xff] }
 0xa80   :  { %7486 = vmatpush1.bf16.msra.mxu0 %v7485_v49  ;;  %3361 = vmatprep.mubr.f32.mxu0 %v3216_v44  ;;  %v7495_v61 = vpack.c.bf16 %v5753_v46, %v5751_v59  ;;  %v5779_v44 = vld [vmem:[%s12992_s3 + $0x768] sm:$0xff]  ;;  %v5781_v49 = vld [vmem:[%s12992_s3 + $0x778] sm:$0xff]  ;;  %v5782_v46 = vld [vmem:[%s12992_s3 + $0x780] sm:$0xff] }
 0xa81   :  { %7488 = vmatprep.subr.bf16.mxu0 %v7487_v50  ;;  %v7521_v50 = vpack.c.bf16 %v5776_v42, %v5774_v41  ;;  %v7523_v51 = vpack.c.bf16 %v5781_v49, %v5779_v44  ;;  %v5811_v41 = vld [vmem:[%s12993_s5 + $0x640] sm:$0xff]  ;;  %v5813_v42 = vld [vmem:[%s12993_s5 + $0x650] sm:$0xff]  ;;  %v5816_v49 = vld [vmem:[%s12993_s5 + $0x668] sm:$0xff] }
 0xa82   :  { %v7553_v44 = vpack.c.bf16 %v5813_v42, %v5811_v41  ;;  %v5849_v38 = vld [vmem:[%s12993_s5 + $0x770] sm:$0xff]  ;;  %v5851_v41 = vld [vmem:[%s12993_s5 + $0x780] sm:$0xff] }
 0xa83   :  { %v5853_v42 = vld [vmem:[%s12993_s5 + $0x790] sm:$0xff]  ;;  %v5880_v47 = vld [vmem:[%s12995_s7 + $0x640] sm:$0xff] }
 0xa84   :  { %7490 = vmatpush1.bf16.msra.mxu0 %v7489_v35  ;;  %v5785_v35 = vld [vmem:[%s12992_s3 + $0x798] sm:$0xff]  ;;  %v5882_v55 = vld [vmem:[%s12995_s7 + $0x650] sm:$0xff] }
 0xa85   :  { %7492 = vmatprep.subr.bf16.mxu0 %v7491_v53  ;;  %v8236_v53 = vpop.eup %8235  ;;  %v7527_v59 = vpack.c.bf16 %v5785_v35, %v5783_v43  ;;  %v7557_v43 = vpack.c.bf16 %v5817_v37, %v5815_v52  ;;  %v5820_v35 = vld [vmem:[%s12993_s5 + $0x688] sm:$0xff]  ;;  %v5855_v52 = vld [vmem:[%s12993_s5 + $0x7a0] sm:$0xff]  ;;  %v5857_v37 = vld [vmem:[%s12993_s5 + $0x7b0] sm:$0xff] }
 0xa86   :  { %v8238_v57 = vpop.eup %8237  ;;  %v3206_v63 = vadd.f32 1.0, %v8236_v53  ;;  %v5822_v53 = vld [vmem:[%s12993_s5 + $0x698] sm:$0xff] }
 0xa87   :  { %v3203_v45 = vadd.f32 1.0, %v8238_v57  ;;  %v5819_v57 = vld [vmem:[%s12993_s5 + $0x680] sm:$0xff] }
 0xa88   :  { %7494 = vmatpush1.bf16.msra.mxu0 %v7493_v60  ;;  %v5784_v60 = vld [vmem:[%s12992_s3 + $0x790] sm:$0xff]  ;;  %8241 = vrcp.f32 %v3206_v63  ;;  %v5823_v63 = vld [vmem:[%s12993_s5 + $0x6a0] sm:$0xff] }
 0xa89   :  { %7496 = vmatprep.subr.bf16.mxu0 %v7495_v61  ;;  %v5787_v61 = vld [vmem:[%s12992_s3 + $0x7a8] sm:$0xff]  ;;  %v7529_v56 = vpack.c.bf16 %v5784_v60, %v5782_v46  ;;  %8243 = vrcp.f32 %v3203_v45  ;;  %v5825_v45 = vld [vmem:[%s12993_s5 + $0x6b0] sm:$0xff] }
 0xa8a   :  { %v5824_v60 = vld [vmem:[%s12993_s5 + $0x6a8] sm:$0xff] }
 0xa8c   :  { %7498 = vmatpush1.bf16.msra.mxu0 %v7497_v4  ;;  %v8240_v4 = vpop.eup %8239 }
 0xa8d   :  { %7500 = vmatprep.subr.bf16.mxu0 %v7499_v1  ;;  %v7531_v1 = vpack.c.bf16 %v5789_v62, %v5787_v61  ;;  %v5826_v61 = vld [vmem:[%s12993_s5 + $0x6b8] sm:$0xff] }
 0xa8e   :  { %v7563_v62 = vpack.c.bf16 %v5826_v61, %v5824_v60  ;;  %v5864_v60 = vld [vmem:[%s12993_s5 + $0x7e8] sm:$0xff]  ;;  %v5866_v61 = vld [vmem:[%s12993_s5 + $0x7f8] sm:$0xff] }
 0xa90   :  { %7502 = vmatpush1.bf16.msra.mxu0 %v7501_v13  ;;  %v3205_v13 = vadd.f32 1.0, %v8240_v4  ;;  %v5828_v4 = vld [vmem:[%s12993_s5 + $0x6c8] sm:$0xff] }
 0xa91   :  { %7504 = vmatprep.subr.bf16.mxu0 %v7503_v14  ;;  %v7533_v14 = vpack.c.bf16 %v5788_v7, %v5786_v5  ;;  %v5827_v7 = vld [vmem:[%s12993_s5 + $0x6c0] sm:$0xff] }
 0xa92   :  { %8245 = vrcp.f32 %v3205_v13  ;;  %v8242_v24 = vpop.eup %8241  ;;  %v7569_v11 = vpack.c.bf16 %v5829_v8, %v5827_v7  ;;  %v5832_v13 = vld [vmem:[%s12993_s5 + $0x6e8] sm:$0xff] }
 0xa94   :  { %7506 = vmatpush1.bf16.msra.mxu0 %v7505_v15  ;;  %v7537_v15 = vpack.c.bf16 %v5792_v19, %v5790_v18  ;;  %v5831_v18 = vld [vmem:[%s12993_s5 + $0x6e0] sm:$0xff]  ;;  %v5833_v19 = vld [vmem:[%s12993_s5 + $0x6f0] sm:$0xff] }
 0xa95   :  { %7508 = vmatprep.subr.bf16.mxu0 %v7507_v6  ;;  %v7539_v6 = vpack.c.bf16 %v5797_v10, %v5795_v48  ;;  %v7573_v48 = vpack.c.bf16 %v5833_v19, %v5831_v18  ;;  %v5836_v10 = vld [vmem:[%s12993_s5 + $0x708] sm:$0xff]  ;;  %v5875_v18 = vld [vmem:[%s12995_s7 + $0x618] sm:$0xff]  ;;  %v5872_v19 = vld [vmem:[%s12995_s7 + $0x600] sm:$0xff] }
 0xa98   :  { %7510 = vmatpush1.bf16.msra.mxu0 %v7509_v17  ;;  %v8244_v17 = vpop.eup %8243 }
 0xa99   :  { %7512 = vmatprep.subr.bf16.mxu0 %v7511_v27  ;;  %v3218_v27 = vmul.f32 %v8242_v24, %v11306_v23  ;;  %v3215_v29 = vmul.f32 %v8244_v17, %v11309_v58  ;;  %v5803_v23 = vld [vmem:[%s12993_s5 + $0x600] sm:$0xff]  ;;  %v5805_v58 = vld [vmem:[%s12993_s5 + $0x610] sm:$0xff]  ;;  %v5840_v24 = vld [vmem:[%s12993_s5 + $0x728] sm:$0xff] }
 0xa9a   :  { %v5842_v17 = vld [vmem:[%s12993_s5 + $0x738] sm:$0xff] }
 0xa9c   :  { %7514 = vmatpush1.bf16.msra.mxu0 %v7513_v28  ;;  %v8246_v31 = vpop.eup %8245  ;;  %v7545_v28 = vpack.c.bf16 %v5805_v58, %v5803_v23  ;;  %v5843_v23 = vld [vmem:[%s12993_s5 + $0x740] sm:$0xff]  ;;  %v5845_v58 = vld [vmem:[%s12993_s5 + $0x750] sm:$0xff] }
 0xa9d   :  { %7516 = vmatprep.subr.bf16.mxu0 %v7515_v20  ;;  %v3217_v33 = vmul.f32 %v8246_v31, %v11326_v22  ;;  %v5808_v22 = vld [vmem:[%s12993_s5 + $0x628] sm:$0xff]  ;;  %v5810_v20 = vld [vmem:[%s12993_s5 + $0x638] sm:$0xff]  ;;  %v5841_v31 = vld [vmem:[%s12993_s5 + $0x730] sm:$0xff] }
 0xa9e   :  { %7546 = vmatpush1.bf16.msra.mxu1 %v7545_v28  ;;  %v7547_v36 = vpack.c.bf16 %v5810_v20, %v5808_v22  ;;  %v7585_v28 = vpack.c.bf16 %v5845_v58, %v5843_v23  ;;  %v5848_v22 = vld [vmem:[%s12993_s5 + $0x768] sm:$0xff]  ;;  %v5850_v20 = vld [vmem:[%s12993_s5 + $0x778] sm:$0xff]  ;;  %v7617_v58 = vpack.c.bf16 %v5882_v55, %v5880_v47 }
 0xa9f   :  { %v5887_v23 = vld [vmem:[%s12995_s7 + $0x678] sm:$0xff] }
 0xaa0   :  { %7518 = vmatpush1.bf16.msra.mxu0 %v7517_v40  ;;  %7548 = vmatprep.subr.bf16.mxu1 %v7547_v36  ;;  %v5814_v40 = vld [vmem:[%s12993_s5 + $0x658] sm:$0xff]  ;;  %v7587_v36 = vpack.c.bf16 %v5850_v20, %v5848_v22  ;;  %v5884_v22 = vld [vmem:[%s12995_s7 + $0x660] sm:$0xff]  ;;  %v5886_v20 = vld [vmem:[%s12995_s7 + $0x670] sm:$0xff] }
 0xaa1   :  { %7520 = vmatprep.subr.bf16.mxu0 %v7519_v30  ;;  %v7551_v30 = vpack.c.bf16 %v5814_v40, %v5812_v39  ;;  %v5852_v39 = vld [vmem:[%s12993_s5 + $0x788] sm:$0xff]  ;;  %v5854_v40 = vld [vmem:[%s12993_s5 + $0x798] sm:$0xff] }
 0xaa2   :  { %7550 = vmatpush1.bf16.msra.mxu1 %v7549_v12  ;;  %v7589_v12 = vpack.c.bf16 %v5849_v38, %v5847_v26  ;;  %v5891_v26 = vld [vmem:[%s12995_s7 + $0x698] sm:$0xff]  ;;  %v7621_v38 = vpack.c.bf16 %v5886_v20, %v5884_v22 }
 0xaa3   :  { %7552 = vmatprep.subr.bf16.mxu1 %v7551_v30  ;;  %v7591_v30 = vpack.c.bf16 %v5854_v40, %v5852_v39  ;;  %v5888_v39 = vld [vmem:[%s12995_s7 + $0x680] sm:$0xff]  ;;  %v5890_v40 = vld [vmem:[%s12995_s7 + $0x690] sm:$0xff] }
 0xaa4   :  { %7522 = vmatpush1.bf16.msra.mxu0 %v7521_v50  ;;  %v5818_v50 = vld [vmem:[%s12993_s5 + $0x678] sm:$0xff] }
 0xaa5   :  { %7524 = vmatprep.subr.bf16.mxu0 %v7523_v51  ;;  %v7555_v51 = vpack.c.bf16 %v5818_v50, %v5816_v49  ;;  %v5856_v49 = vld [vmem:[%s12993_s5 + $0x7a8] sm:$0xff]  ;;  %v5858_v50 = vld [vmem:[%s12993_s5 + $0x7b8] sm:$0xff] }
 0xaa6   :  { %7554 = vmatpush1.bf16.msra.mxu1 %v7553_v44  ;;  %v7593_v44 = vpack.c.bf16 %v5853_v42, %v5851_v41  ;;  %v5895_v41 = vld [vmem:[%s12995_s7 + $0x6b8] sm:$0xff]  ;;  %v7625_v42 = vpack.c.bf16 %v5890_v40, %v5888_v39 }
 0xaa7   :  { %7556 = vmatprep.subr.bf16.mxu1 %v7555_v51  ;;  %v7595_v51 = vpack.c.bf16 %v5858_v50, %v5856_v49  ;;  %v5892_v49 = vld [vmem:[%s12995_s7 + $0x6a0] sm:$0xff]  ;;  %v5894_v50 = vld [vmem:[%s12995_s7 + $0x6b0] sm:$0xff] }
 0xaa8   :  { %7526 = vmatpush1.bf16.msra.mxu0 %v7525_v54  ;;  %v7559_v54 = vpack.c.bf16 %v5822_v53, %v5820_v35  ;;  %v5860_v35 = vld [vmem:[%s12993_s5 + $0x7c8] sm:$0xff]  ;;  %v5862_v53 = vld [vmem:[%s12993_s5 + $0x7d8] sm:$0xff] }
 0xaa9   :  { %7528 = vmatprep.subr.bf16.mxu0 %v7527_v59  ;;  %v5821_v59 = vld [vmem:[%s12993_s5 + $0x690] sm:$0xff] }
 0xaaa   :  { %7558 = vmatpush1.bf16.msra.mxu1 %v7557_v43  ;;  %v7561_v46 = vpack.c.bf16 %v5821_v59, %v5819_v57  ;;  %v7597_v43 = vpack.c.bf16 %v5857_v37, %v5855_v52  ;;  %v5859_v57 = vld [vmem:[%s12993_s5 + $0x7c0] sm:$0xff]  ;;  %v5861_v59 = vld [vmem:[%s12993_s5 + $0x7d0] sm:$0xff]  ;;  %v5899_v52 = vld [vmem:[%s12995_s7 + $0x6d8] sm:$0xff]  ;;  %v7629_v37 = vpack.c.bf16 %v5894_v50, %v5892_v49 }
 0xaab   :  { %7560 = vmatprep.subr.bf16.mxu1 %v7559_v54  ;;  %v7599_v54 = vpack.c.bf16 %v5862_v53, %v5860_v35  ;;  %v5896_v35 = vld [vmem:[%s12995_s7 + $0x6c0] sm:$0xff]  ;;  %v5898_v53 = vld [vmem:[%s12995_s7 + $0x6d0] sm:$0xff] }
 0xaac   :  { %7530 = vmatpush1.bf16.msra.mxu0 %v7529_v56  ;;  %v7565_v56 = vpack.c.bf16 %v5825_v45, %v5823_v63  ;;  %v5863_v63 = vld [vmem:[%s12993_s5 + $0x7e0] sm:$0xff]  ;;  %v5865_v45 = vld [vmem:[%s12993_s5 + $0x7f0] sm:$0xff] }
 0xaad   :  { %7532 = vmatprep.subr.bf16.mxu0 %v7531_v1  ;;  %v5830_v1 = vld [vmem:[%s12993_s5 + $0x6d8] sm:$0xff] }
 0xaae   :  { %7562 = vmatpush1.bf16.msra.mxu1 %v7561_v46  ;;  %v7567_v5 = vpack.c.bf16 %v5830_v1, %v5828_v4  ;;  %v7601_v46 = vpack.c.bf16 %v5861_v59, %v5859_v57  ;;  %v5680_v1 = vld [vmem:[%s13001_s10 + $0x2] ss:$0 sm:$0xff]  ;;  %v5903_v57 = vld [vmem:[%s12995_s7 + $0x6f8] sm:$0xff]  ;;  %v7633_v59 = vpack.c.bf16 %v5898_v53, %v5896_v35 }
 0xaaf   :  { %7564 = vmatprep.subr.bf16.mxu1 %v7563_v62  ;;  %v7603_v62 = vpack.c.bf16 %v5866_v61, %v5864_v60  ;;  %v5900_v61 = vld [vmem:[%s12995_s7 + $0x6e0] sm:$0xff] }
 0xab0   :  { %7534 = vmatpush1.bf16.msra.mxu0 %v7533_v14  ;;  %v5834_v14 = vld [vmem:[%s12993_s5 + $0x6f8] sm:$0xff] }
 0xab1   :  { %7536 = vmatprep.subr.bf16.mxu0 %v7535_v16  ;;  %v7571_v16 = vpack.c.bf16 %v5834_v14, %v5832_v13 }
 0xab2   :  { %7566 = vmatpush1.bf16.msra.mxu1 %v7565_v56  ;;  %v7605_v56 = vpack.c.bf16 %v5865_v45, %v5863_v63  ;;  %v5714_v63 = vld [vmem:[%s13003_s12 + $0x2] ss:$0 sm:$0xff] }
 0xab3   :  { %7568 = vmatprep.subr.bf16.mxu1 %v7567_v5 }
 0xab4   :  { %7538 = vmatpush1.bf16.msra.mxu0 %v7537_v15  ;;  %v5838_v15 = vld [vmem:[%s12993_s5 + $0x718] sm:$0xff] }
 0xab5   :  { %7540 = vmatprep.subr.bf16.mxu0 %v7539_v6  ;;  %v7575_v6 = vpack.c.bf16 %v5838_v15, %v5836_v10  ;;  %v5874_v15 = vld [vmem:[%s12995_s7 + $0x610] sm:$0xff] }
 0xab6   :  { %7570 = vmatpush1.bf16.msra.mxu1 %v7569_v11 }
 0xab7   :  { %7572 = vmatprep.subr.bf16.mxu1 %v7571_v16  ;;  %v5873_v16 = vld [vmem:[%s12995_s7 + $0x608] sm:$0xff] }
 0xab8   :  { %7542 = vmatpush1.bf16.msra.mxu0 %v7541_v9  ;;  %v7577_v9 = vpack.c.bf16 %v5837_v21, %v5835_v0  ;;  %v7607_v10 = vpack.c.bf16 %v5875_v18, %v5873_v16  ;;  %v5879_v0 = vld [vmem:[%s12995_s7 + $0x638] sm:$0xff]  ;;  %v7609_v21 = vpack.c.bf16 %v5874_v15, %v5872_v19 }
 0xaba   :  { %7574 = vmatpush1.bf16.msra.mxu1 %v7573_v48  ;;  %7608 = vmatprep.subr.bf16.mxu0 %v7607_v10 }
 0xabb   :  { %3362 = vmatmul.mubr.f32.vlgmr.msra.gmra.mrb[40].mxu0 %v3215_v29  ;;  %7576 = vmatprep.subr.bf16.mxu1 %v7575_v6  ;;  %v5839_v29 = vld [vmem:[%s12993_s5 + $0x720] sm:$0xff]  ;;  %v5877_v6 = vld [vmem:[%s12995_s7 + $0x628] sm:$0xff] }
 0xabc   :  { %3367 = vmatprep.mubr.f32.mxu0 %v3218_v27  ;;  %v7579_v27 = vpack.c.bf16 %v5842_v17, %v5840_v24  ;;  %v5876_v24 = vld [vmem:[%s12995_s7 + $0x620] sm:$0xff]  ;;  %v5878_v17 = vld [vmem:[%s12995_s7 + $0x630] sm:$0xff]  ;;  %7610 = vmatpush1.bf16.msra.mxu0 %v7609_v21 }
 0xabe   :  { %7578 = vmatpush1.bf16.msra.mxu1 %v7577_v9  ;;  %v7611_v9 = vpack.c.bf16 %v5879_v0, %v5877_v6 }
 0xabf   :  { %3368 = vmatmul.mubr.f32.gmra.mrb[42].mxu0 %v3217_v33  ;;  %v7581_v33 = vpack.c.bf16 %v5841_v31, %v5839_v29  ;;  %7580 = vmatprep.subr.bf16.mxu1 %v7579_v27  ;;  %v5881_v27 = vld [vmem:[%s12995_s7 + $0x648] sm:$0xff]  ;;  %v5883_v29 = vld [vmem:[%s12995_s7 + $0x658] sm:$0xff]  ;;  %v7613_v31 = vpack.c.bf16 %v5878_v17, %v5876_v24 }
 0xac0   :  { %7612 = vmatprep.subr.bf16.mxu0 %v7611_v9 }
 0xac1   :  { %7614 = vmatpush1.bf16.msra.mxu0 %v7613_v31 }
 0xac2   :  { %7582 = vmatpush1.bf16.msra.mxu1 %v7581_v33  ;;  %v7615_v33 = vpack.c.bf16 %v5883_v29, %v5881_v27 }
 0xac3   :  { %7584 = vmatprep.subr.bf16.mxu1 %v7583_v25  ;;  %v5885_v25 = vld [vmem:[%s12995_s7 + $0x668] sm:$0xff] }
 0xac4   :  { %7616 = vmatprep.subr.bf16.mxu0 %v7615_v33 }
 0xac5   :  { %7618 = vmatpush1.bf16.msra.mxu0 %v7617_v58 }
 0xac6   :  { %7586 = vmatpush1.bf16.msra.mxu1 %v7585_v28  ;;  %v7619_v28 = vpack.c.bf16 %v5887_v23, %v5885_v25 }
 0xac7   :  { %7588 = vmatprep.subr.bf16.mxu1 %v7587_v36  ;;  %v5889_v36 = vld [vmem:[%s12995_s7 + $0x688] sm:$0xff] }
 0xac8   :  { %7620 = vmatprep.subr.bf16.mxu0 %v7619_v28 }
 0xac9   :  { %7622 = vmatpush1.bf16.msra.mxu0 %v7621_v38 }
 0xaca   :  { %7590 = vmatpush1.bf16.msra.mxu1 %v7589_v12  ;;  %v7623_v12 = vpack.c.bf16 %v5891_v26, %v5889_v36 }
 0xacb   :  { %7592 = vmatprep.subr.bf16.mxu1 %v7591_v30  ;;  %v5893_v30 = vld [vmem:[%s12995_s7 + $0x6a8] sm:$0xff] }
 0xacc   :  { %7624 = vmatprep.subr.bf16.mxu0 %v7623_v12 }
 0xacd   :  { %7626 = vmatpush1.bf16.msra.mxu0 %v7625_v42 }
 0xace   :  { %7594 = vmatpush1.bf16.msra.mxu1 %v7593_v44  ;;  %v7627_v44 = vpack.c.bf16 %v5895_v41, %v5893_v30  ;;  %v11718_v41 = vld [vmem:[%s13005_s14] ss:$0 sm:$0xff] }
 0xacf   :  { %7596 = vmatprep.subr.bf16.mxu1 %v7595_v51  ;;  %v5897_v51 = vld [vmem:[%s12995_s7 + $0x6c8] sm:$0xff] }
 0xad0   :  { %7628 = vmatprep.subr.bf16.mxu0 %v7627_v44 }
 0xad1   :  { %7630 = vmatpush1.bf16.msra.mxu0 %v7629_v37 }
 0xad2   :  { %7598 = vmatpush1.bf16.msra.mxu1 %v7597_v43  ;;  %v7631_v43 = vpack.c.bf16 %v5899_v52, %v5897_v51 }
 0xad3   :  { %7600 = vmatprep.subr.bf16.mxu1 %v7599_v54  ;;  %v5901_v54 = vld [vmem:[%s12995_s7 + $0x6e8] sm:$0xff] }
 0xad4   :  { %7632 = vmatprep.subr.bf16.mxu0 %v7631_v43  ;;  %v7635_v60 = vpack.c.bf16 %v5903_v57, %v5901_v54  ;;  %v5798_v54 = vld [vmem:[%s12996_s4 + $0x6] sm:$0x3] }
 0xad5   :  { %7634 = vmatpush1.bf16.msra.mxu0 %v7633_v59  ;;  %v3290_v57 = vrot.slane %v5798_v54, %v8830_v32  ;;  %v3294_v59 = vrot.slane %v5798_v54, %v8835_v34 }
 0xad6   :  { %7602 = vmatpush1.bf16.msra.mxu1 %v7601_v46  ;;  %7636 = vmatprep.subr.bf16.mxu0 %v7635_v60 }
 0xad7   :  { %7604 = vmatprep.subr.bf16.mxu1 %v7603_v62  ;;  %v5902_v62 = vld [vmem:[%s12995_s7 + $0x6f0] sm:$0xff] }
 0xada   :  { %7606 = vmatpush1.bf16.msra.mxu1 %v7605_v56 }
 0xb2e   :  { %v6491_v4 = vpop.f32.mrb[32].mxu0 }
 0xb2f   :  { %v6492_v5 = vpop.f32.mrb[33].mxu0 }
 0xb30   :  { %v6493_v7 = vadd.f32 %v6492_v5, %v6491_v4  ;;  %v7637_v4 = vpack.c.bf16 %v5902_v62, %v5900_v61 }
 0xb32   :  { %v2867_v8 = vadd.f32 %v6493_v7, %v5680_v1  ;;  %v6494_v11 = vpop.f32.mrb[34].mxu0  ;;  %7638 = vmatpush1.bf16.msra.mxu0 %v7637_v4 }
 0xb33   :  { %v6495_v13 = vpop.f32.mrb[35].mxu0 }
 0xb34   :  { %5715 = vst.msk [vmem:[%s13002_s15 + $0x20] sm:$0xff] %vm1054_vm4, %v2867_v8  ;;  %v6496_v14 = vadd.f32 %v6495_v13, %v6494_v11  ;;  %v8421_v8 = vld [vmem:[%s13004_s13] ss:$0 sm:$0xff] }
 0xb36   :  { %v2872_v48 = vadd.f32 %v6496_v14, %v5680_v1 }
 0xb38   :  { %5716 = vst.msk [vmem:[%s13002_s15 + $0x28] sm:$0xff] %vm1054_vm4, %v2872_v48 }
 0xb4e   :  { %v6529_v46 = vpop.f32.mrb[36].mxu0 }
 0xb4f   :  { %v6530_v45 = vpop.f32.mrb[37].mxu0 }
 0xb50   :  { %v6531_v56 = vadd.f32 %v6530_v45, %v6529_v46 }
 0xb52   :  { %v2983_v1 = vadd.f32 %v6531_v56, %v5714_v63  ;;  %v6532_v5 = vpop.f32.mrb[38].mxu0 }
 0xb53   :  { %v6533_v7 = vpop.f32.mrb[39].mxu0 }
 0xb54   :  { %v2991_v11 = vsub.f32 %v8421_v8, %v2983_v1  ;;  %v6534_v13 = vadd.f32 %v6533_v7, %v6532_v5 }
 0xb56   :  { %v2999_v14 = vand.u32 2147483647, %v2991_v11  ;;  %v2988_v16 = vadd.f32 %v6534_v13, %v5714_v63  ;;  %v2993_v23 = vmax.f32 %v2991_v11, 0.0  ;;  %vm2995_vm9 = vcmp.ne.f32.partialorder %v2991_v11, %v2991_v11 }
 0xb58   :  { %v3001_v18 = vsub.f32 0.0, %v2999_v14  ;;  %v2992_v19 = vsub.f32 %v8421_v8, %v2988_v16 }
 0xb5a   :  { %v3003_v48 = vmul.f32 1.442695, %v3001_v18  ;;  %v3000_v10 = vand.u32 2147483647, %v2992_v19  ;;  %v2994_v12 = vmax.f32 %v2992_v19, 0.0  ;;  %vm2996_vm11 = vcmp.ne.f32.partialorder %v2992_v19, %v2992_v19 }
 0xb5c   :  { %8247 = vpow2.f32 %v3003_v48  ;;  %v3002_v15 = vsub.f32 0.0, %v3000_v10 }
 0xb5e   :  { %v3005_v6 = vmul.f32 1.442695, %v3002_v15 }
 0xb60   :  { %8249 = vpow2.f32 %v3005_v6 }
 0xb66   :  { %v8248_v0 = vpop.eup %8247 }
 0xb67   :  { %v3007_v21 = vadd.f32 1.0, %v8248_v0  ;;  %v3010_v17 = vmul.f32 -0.5, %v8248_v0  ;;  %v3013_v31 = vand.u32 2147483647, %v8248_v0 }
 0xb69   :  { %8251 = vlog2.f32 %v3007_v21  ;;  %v3011_v27 = vadd.f32 1.0, %v3010_v17  ;;  %vm3014_vm8 = vcmp.lt.f32.partialorder %v3013_v31, 0.0004427343 }
 0xb6a   :  { %v8250_v9 = vpop.eup %8249 }
 0xb6b   :  { %v3016_v24 = vadd.f32 1.0, %v8250_v9  ;;  %v3019_v29 = vmul.f32 -0.5, %v8250_v9  ;;  %v3012_v55 = vmul.f32 %v8248_v0, %v3011_v27  ;;  %v3022_v58 = vand.u32 2147483647, %v8250_v9 }
 0xb6d   :  { %8253 = vlog2.f32 %v3016_v24  ;;  %v3020_v25 = vadd.f32 1.0, %v3019_v29  ;;  %vm3023_vm10 = vcmp.lt.f32.partialorder %v3022_v58, 0.0004427343 }
 0xb6f   :  { %v3021_v26 = vmul.f32 %v8250_v9, %v3020_v25 }
 0xb73   :  { %v8252_v33 = vpop.eup %8251 }
 0xb74   :  { %v3009_v47 = vmul.f32 0.6931472, %v8252_v33 }
 0xb76   :  { %v3015_v28 = vsel %vm3014_vm8, %v3012_v55, %v3009_v47 }
 0xb77   :  { %v8254_v22 = vpop.eup %8253  ;;  %v3025_v20 = vadd.f32 %v3015_v28, %v2993_v23 }
 0xb78   :  { %v3018_v36 = vmul.f32 0.6931472, %v8254_v22 }
 0xb79   :  { %v3027_v38 = vsel %vm2995_vm9, %v2991_v11, %v3025_v20 }
 0xb7a   :  { %v3029_v39 = vsub.f32 %v8421_v8, %v3027_v38  ;;  %v3024_v40 = vsel %vm3023_vm10, %v3021_v26, %v3018_v36 }
 0xb7b   :  { %v3026_v30 = vadd.f32 %v3024_v40, %v2994_v12 }
 0xb7c   :  { %v3031_v42 = vsub.f32 %v3029_v39, %v11718_v41 }
 0xb7d   :  { %v3028_v44 = vsel %vm2996_vm11, %v2992_v19, %v3026_v30 }
 0xb7e   :  { %v3039_v49 = vand.u32 2147483647, %v3031_v42  ;;  %v3030_v50 = vsub.f32 %v8421_v8, %v3028_v44  ;;  %v3033_v9 = vmax.f32 %v3031_v42, 0.0  ;;  %vm3035_vm13 = vcmp.ne.f32.partialorder %v3031_v42, %v3031_v42 }
 0xb80   :  { %v3041_v51 = vsub.f32 0.0, %v3039_v49  ;;  %v11722_v52 = vsub.f32 %v3030_v50, %v11718_v41 }
 0xb82   :  { %v3043_v37 = vmul.f32 1.442695, %v3041_v51  ;;  %v3040_v43 = vand.u32 2147483647, %v11722_v52  ;;  %v3034_v58 = vmax.f32 %v11722_v52, 0.0  ;;  %vm3036_vm15 = vcmp.ne.f32.partialorder %v11722_v52, %v11722_v52 }
 0xb84   :  { %8255 = vpow2.f32 %v3043_v37  ;;  %v3042_v35 = vsub.f32 0.0, %v3040_v43 }
 0xb86   :  { %v3045_v53 = vmul.f32 1.442695, %v3042_v35 }
 0xb88   :  { %8257 = vpow2.f32 %v3045_v53 }
 0xb8e   :  { %v8256_v46 = vpop.eup %8255  ;;  %v3363_v60 = vpop.f32.mrb[40].mxu0 }
 0xb8f   :  { %v3047_v61 = vadd.f32 1.0, %v8256_v46  ;;  %v11730_v62 = vadd.f32 %v3363_v60, %v3290_v57  ;;  %v3365_v63 = vpop.f32.mrb[41].mxu0  ;;  %v3050_v11 = vmul.f32 -0.5, %v8256_v46  ;;  %v3053_v10 = vand.u32 2147483647, %v8256_v46  ;;  %v5904_v60 = vld [vmem:[%s12995_s7 + $0x700] sm:$0xff] }
 0xb90   :  { %v3366_v45 = vadd.f32 %v3365_v63, %v3294_v59  ;;  %v5909_v63 = vld [vmem:[%s12995_s7 + $0x728] sm:$0xff] }
 0xb91   :  { %8259 = vlog2.f32 %v3047_v61  ;;  %v5799_v56 = vmul.f32 -1.442695, %v11730_v62  ;;  %v3051_v19 = vadd.f32 1.0, %v3050_v11  ;;  %vm3054_vm12 = vcmp.lt.f32.partialorder %v3053_v10, 0.0004427343  ;;  %v5906_v61 = vld [vmem:[%s12995_s7 + $0x710] sm:$0xff] }
 0xb92   :  { %v8258_v4 = vpop.eup %8257  ;;  %v5800_v1 = vmul.f32 -1.442695, %v3366_v45  ;;  %v3369_v5 = vpop.f32.mrb[42].mxu0  ;;  %v5916_v10 = vld [vmem:[%s12995_s7 + $0x760] sm:$0xff] }
 0xb93   :  { %v3056_v7 = vadd.f32 1.0, %v8258_v4  ;;  %v3371_v8 = vpop.f32.mrb[43].mxu0  ;;  %8261 = vpow2.f32 %v5799_v56  ;;  %v3370_v13 = vadd.f32 %v3369_v5, %v3290_v57  ;;  %v3059_v48 = vmul.f32 -0.5, %v8258_v4  ;;  %v5905_v57 = vld [vmem:[%s12995_s7 + $0x708] sm:$0xff] }
 0xb94   :  { %v3372_v14 = vadd.f32 %v3371_v8, %v3294_v59  ;;  %v3052_v0 = vmul.f32 %v8256_v46, %v3051_v19  ;;  %v3062_v24 = vand.u32 2147483647, %v8258_v4  ;;  %v5907_v59 = vld [vmem:[%s12995_s7 + $0x718] sm:$0xff] }
 0xb95   :  { %8263 = vlog2.f32 %v3056_v7  ;;  %v5801_v16 = vmul.f32 -1.442695, %v3370_v13  ;;  %v3060_v21 = vadd.f32 1.0, %v3059_v48  ;;  %v7639_v46 = vpack.c.bf16 %v5907_v59, %v5905_v57  ;;  %v5913_v7 = vld [vmem:[%s12995_s7 + $0x748] sm:$0xff]  ;;  %v5915_v8 = vld [vmem:[%s12995_s7 + $0x758] sm:$0xff] }
 0xb96   :  { %8265 = vpow2.f32 %v5800_v1  ;;  %v5802_v18 = vmul.f32 -1.442695, %v3372_v14  ;;  %vm3063_vm14 = vcmp.lt.f32.partialorder %v3062_v24, 0.0004427343  ;;  %v5910_v1 = vld [vmem:[%s12995_s7 + $0x730] sm:$0xff]  ;;  %v7647_v11 = vpack.c.bf16 %v5915_v8, %v5913_v7  ;;  %v5919_v19 = vld [vmem:[%s12995_s7 + $0x778] sm:$0xff] }
 0xb97   :  { %8267 = vpow2.f32 %v5801_v16  ;;  %v3061_v25 = vmul.f32 %v8258_v4, %v3060_v21  ;;  %7640 = vmatprep.subr.bf16.mxu0 %v7639_v46  ;;  %v5908_v4 = vld [vmem:[%s12995_s7 + $0x720] sm:$0xff]  ;;  %v5923_v21 = vld [vmem:[%s12995_s7 + $0x798] sm:$0xff] }
 0xb98   :  { %8269 = vpow2.f32 %v5802_v18  ;;  %v7645_v5 = vpack.c.bf16 %v5910_v1, %v5908_v4  ;;  %v5917_v18 = vld [vmem:[%s12995_s7 + $0x768] sm:$0xff]  ;;  %v5920_v24 = vld [vmem:[%s12995_s7 + $0x780] sm:$0xff] }
 0xb99   :  { %v7651_v48 = vpack.c.bf16 %v5919_v19, %v5917_v18 }
 0xb9b   :  { %v8260_v15 = vpop.eup %8259 }
 0xb9c   :  { %v3049_v6 = vmul.f32 0.6931472, %v8260_v15  ;;  %v5918_v15 = vld [vmem:[%s12995_s7 + $0x770] sm:$0xff] }
 0xb9d   :  { %v8262_v17 = vpop.eup %8261 }
 0xb9e   :  { %v3055_v27 = vsel %vm3054_vm12, %v3052_v0, %v3049_v6  ;;  %v3386_v33 = vadd.f32 1.0, %v8262_v17  ;;  %v7653_v6 = vpack.c.bf16 %v5918_v15, %v5916_v10  ;;  %v5921_v0 = vld [vmem:[%s12995_s7 + $0x788] sm:$0xff]  ;;  %v5922_v17 = vld [vmem:[%s12995_s7 + $0x790] sm:$0xff] }
 0xb9f   :  { %v8264_v29 = vpop.eup %8263  ;;  %v3065_v31 = vadd.f32 %v3055_v27, %v3033_v9  ;;  %v7655_v9 = vpack.c.bf16 %v5923_v21, %v5921_v0  ;;  %v7657_v27 = vpack.c.bf16 %v5922_v17, %v5920_v24  ;;  %v6013_v21 = vld [vmem:[%s12991_s0 + $0x40] sm:$0xff]  ;;  %v5958_v24 = vld [vmem:[%s12998_s9 + $0x388] sm:$0xff] }
 0xba0   :  { %v8266_v47 = vpop.eup %8265  ;;  %v3058_v55 = vmul.f32 0.6931472, %v8264_v29  ;;  %8271 = vrcp.f32 %v3386_v33  ;;  %v5925_v29 = vld [vmem:[%s12995_s7 + $0x7a8] sm:$0xff]  ;;  %v7671_v17 = vpack.c.bf16 %v5958_v24, %v5957_v2 }
 0xba1   :  { %v3067_v23 = vsel %vm3035_vm13, %v3031_v42, %v3065_v31  ;;  %v3387_v28 = vadd.f32 1.0, %v8266_v47  ;;  %v8268_v22 = vpop.eup %8267  ;;  %v5927_v31 = vld [vmem:[%s12995_s7 + $0x7b8] sm:$0xff]  ;;  %v5924_v47 = vld [vmem:[%s12995_s7 + $0x7a0] sm:$0xff] }
 0xba2   :  { %v3069_v20 = vadd.f32 %v11718_v41, %v3067_v23  ;;  %v3064_v36 = vsel %vm3063_vm14, %v3061_v25, %v3058_v55  ;;  %v8270_v26 = vpop.eup %8269  ;;  %v3388_v12 = vadd.f32 1.0, %v8268_v22  ;;  %v7659_v33 = vpack.c.bf16 %v5927_v31, %v5925_v29  ;;  %v5926_v55 = vld [vmem:[%s12995_s7 + $0x7b0] sm:$0xff]  ;;  %v5929_v23 = vld [vmem:[%s12995_s7 + $0x7c8] sm:$0xff]  ;;  %v5928_v22 = vld [vmem:[%s12995_s7 + $0x7c0] sm:$0xff]  ;;  %7672 = vmatprep.subr.bf16.mxu1 %v7671_v17 }
 0xba3   :  { %v3066_v38 = vadd.f32 %v3064_v36, %v3034_v58  ;;  %8273 = vrcp.f32 %v3387_v28  ;;  %v3389_v40 = vadd.f32 1.0, %v8270_v26  ;;  %v7661_v25 = vpack.c.bf16 %v5926_v55, %v5924_v47  ;;  %v5931_v58 = vld [vmem:[%s12995_s7 + $0x7d8] sm:$0xff]  ;;  %v5933_v26 = vld [vmem:[%s12995_s7 + $0x7e8] sm:$0xff]  ;;  %v5959_v31 = vld [vmem:[%s12998_s9 + $0x390] sm:$0xff] }
 0xba4   :  { %v3074_v39 = vmul.f32 1.442695, %v3069_v20  ;;  %8275 = vrcp.f32 %v3388_v12  ;;  %v7663_v28 = vpack.c.bf16 %v5931_v58, %v5929_v23  ;;  %v5930_v20 = vld [vmem:[%s12995_s7 + $0x7d0] sm:$0xff]  ;;  %v5961_v58 = vld [vmem:[%s12998_s9 + $0x3a0] sm:$0xff] }
 0xba5   :  { %v3068_v30 = vsel %vm3036_vm15, %v11722_v52, %v3066_v38  ;;  %v7665_v36 = vpack.c.bf16 %v5930_v20, %v5928_v22  ;;  %v5935_v38 = vld [vmem:[%s12995_s7 + $0x7f8] sm:$0xff]  ;;  %v5943_v55 = vld [vmem:[%s12998_s9 + $0x310] sm:$0xff]  ;;  %v5945_v20 = vld [vmem:[%s12998_s9 + $0x320] sm:$0xff] }
 0xba6   :  { %8277 = vpow2.f32 %v3074_v39  ;;  %v3070_v42 = vadd.f32 %v11718_v41, %v3068_v30  ;;  %v7667_v12 = vpack.c.bf16 %v5935_v38, %v5933_v26  ;;  %v5932_v39 = vld [vmem:[%s12995_s7 + $0x7e0] sm:$0xff]  ;;  %v5963_v38 = vld [vmem:[%s12998_s9 + $0x3b0] sm:$0xff] }
 0xba7   :  { %8279 = vrcp.f32 %v3389_v40  ;;  %v5934_v40 = vld [vmem:[%s12995_s7 + $0x7f0] sm:$0xff] }
 0xba8   :  { %v3076_v44 = vmul.f32 1.442695, %v3070_v42  ;;  %v7669_v30 = vpack.c.bf16 %v5934_v40, %v5932_v39  ;;  %v6016_v42 = vld [vmem:[%s13009_s23 + $0x88] sm:$0xff]  ;;  %v5947_v40 = vld [vmem:[%s12998_s9 + $0x330] sm:$0xff] }
 0xbaa   :  { %8281 = vpow2.f32 %v3076_v44  ;;  %v8272_v49 = vpop.eup %8271  ;;  %v6018_v44 = vld [vmem:[%s13009_s23 + $0x98] sm:$0xf] }
 0xbab   :  { %v3398_v43 = vmul.f32 %v8272_v49, %v11730_v62  ;;  %v7641_v62 = vpack.c.bf16 %v5906_v61, %v5904_v60  ;;  %v7735_v49 = vpack.c.bf16 %v6018_v44, %v6016_v42  ;;  %v5965_v44 = vld [vmem:[%s12998_s9 + $0x3c0] sm:$0xff] }
 0xbad   :  { %v8274_v50 = vpop.eup %8273  ;;  %7642 = vmatpush1.bf16.msra.mxu0 %v7641_v62 }
 0xbae   :  { %v3399_v51 = vmul.f32 %v8274_v50, %v3366_v45  ;;  %v8276_v37 = vpop.eup %8275  ;;  %v5911_v45 = vld [vmem:[%s12995_s7 + $0x738] sm:$0xff]  ;;  %v5867_v50 = vld [vmem:[%s12997_s6 + $0x6] sm:$0x3] }
 0xbaf   :  { %v3400_v41 = vmul.f32 %v8276_v37, %v3370_v13  ;;  %v7643_v56 = vpack.c.bf16 %v5911_v45, %v5909_v63  ;;  %v5912_v13 = vld [vmem:[%s12995_s7 + $0x740] sm:$0xff]  ;;  %v3477_v37 = vrot.slane %v5867_v50, %v8835_v34 }
 0xbb0   :  { %v8278_v35 = vpop.eup %8277  ;;  %3544 = vmatprep.mubr.f32.mxu1 %v3399_v51  ;;  %v3473_v51 = vrot.slane %v5867_v50, %v8830_v32 }
 0xbb1   :  { %v8280_v53 = vpop.eup %8279  ;;  %5717 = vst.msk [vmem:[%s13006_s16 + $0x20] sm:$0xff] %vm1054_vm4, %v8278_v35  ;;  %3545 = vmatmul.mubr.f32.vlgmr.msra.gmra.mrb[36].mxu1 %v3398_v43  ;;  %7644 = vmatprep.subr.bf16.mxu0 %v7643_v56 }
 0xbb2   :  { %v3401_v52 = vmul.f32 %v8280_v53, %v3372_v14  ;;  %7646 = vmatpush1.bf16.msra.mxu0 %v7645_v5  ;;  %v5914_v14 = vld [vmem:[%s12995_s7 + $0x750] sm:$0xff] }
 0xbb3   :  { %v7649_v16 = vpack.c.bf16 %v5914_v14, %v5912_v13  ;;  %7648 = vmatprep.subr.bf16.mxu0 %v7647_v11  ;;  %v6015_v11 = vld [vmem:[%s13009_s23 + $0x80] sm:$0xff]  ;;  %v6017_v13 = vld [vmem:[%s13009_s23 + $0x90] sm:$0xf] }
 0xbb4   :  { %v8282_v54 = vpop.eup %8281  ;;  %3550 = vmatprep.mubr.f32.mxu1 %v3401_v52  ;;  %v7738_v19 = vpack.c.bf16 %v6017_v13, %v6015_v11  ;;  %v5992_v11 = vld [vmem:[%s12999_s11 + $0x388] sm:$0xff] }
 0xbb5   :  { %5718 = vst.msk [vmem:[%s13006_s16 + $0x28] sm:$0xff] %vm1054_vm4, %v8282_v54  ;;  %3551 = vmatmul.mubr.f32.gmra.mrb[38].mxu1 %v3400_v41 }
 0xbb6   :  { %7650 = vmatpush1.bf16.msra.mxu0 %v7649_v16 }
 0xbb7   :  { %7652 = vmatprep.subr.bf16.mxu0 %v7651_v48 }
 0xbba   :  { %7654 = vmatpush1.bf16.msra.mxu0 %v7653_v6 }
 0xbbb   :  { %7656 = vmatprep.subr.bf16.mxu0 %v7655_v9  ;;  %v6014_v9 = vld [vmem:[%s12991_s0 + $0x48] sm:$0xff] }
 0xbbe   :  { %7658 = vmatpush1.bf16.msra.mxu0 %v7657_v27  ;;  %v5941_v27 = vld [vmem:[%s12998_s9 + $0x300] sm:$0xff] }
 0xbbf   :  { %7660 = vmatprep.subr.bf16.mxu0 %v7659_v33  ;;  %v5960_v33 = vld [vmem:[%s12998_s9 + $0x398] sm:$0xff] }
 0xbc0   :  { %v7675_v47 = vpack.c.bf16 %v5960_v33, %v5959_v31 }
 0xbc2   :  { %7662 = vmatpush1.bf16.msra.mxu0 %v7661_v25  ;;  %v5944_v25 = vld [vmem:[%s12998_s9 + $0x318] sm:$0xff] }
 0xbc3   :  { %7664 = vmatprep.subr.bf16.mxu0 %v7663_v28  ;;  %v7677_v23 = vpack.c.bf16 %v5944_v25, %v5943_v55  ;;  %v5962_v28 = vld [vmem:[%s12998_s9 + $0x3a8] sm:$0xff] }
 0xbc4   :  { %v7679_v22 = vpack.c.bf16 %v5962_v28, %v5961_v58 }
 0xbc6   :  { %7666 = vmatpush1.bf16.msra.mxu0 %v7665_v36  ;;  %v5946_v36 = vld [vmem:[%s12998_s9 + $0x328] sm:$0xff] }
 0xbc7   :  { %7668 = vmatprep.subr.bf16.mxu0 %v7667_v12  ;;  %v7681_v26 = vpack.c.bf16 %v5946_v36, %v5945_v20  ;;  %v5964_v12 = vld [vmem:[%s12998_s9 + $0x3b8] sm:$0xff]  ;;  %v11991_v36 = vld [vmem:[%s12994_s2 + $0x8] sm:$0x3] }
 0xbc8   :  { %v7683_v39 = vpack.c.bf16 %v5964_v12, %v5963_v38  ;;  %v5975_v38 = vld [vmem:[%s12999_s11 + $0x300] sm:$0xff]  ;;  %v5976_v12 = vld [vmem:[%s12999_s11 + $0x308] sm:$0xff] }
 0xbca   :  { %7670 = vmatpush1.bf16.msra.mxu0 %v7669_v30  ;;  %v5948_v30 = vld [vmem:[%s12998_s9 + $0x338] sm:$0xff] }
 0xbcb   :  { %7737 = vmatprep.subr.msk.bf16.mxu0 %vm8518_vm2, %v7735_v49  ;;  %v7685_v42 = vpack.c.bf16 %v5948_v30, %v5947_v40  ;;  %v5966_v49 = vld [vmem:[%s12998_s9 + $0x3c8] sm:$0xff]  ;;  %v5993_v40 = vld [vmem:[%s12999_s11 + $0x390] sm:$0xff]  ;;  %v5994_v30 = vld [vmem:[%s12999_s11 + $0x398] sm:$0xff] }
 0xbcc   :  { %v7687_v50 = vpack.c.bf16 %v5966_v49, %v5965_v44 }
 0xc84   :  { %v3546_v43 = vpop.f32.mrb[36].mxu1 }
 0xc85   :  { %v3547_v35 = vadd.f32 %v3546_v43, %v3473_v51  ;;  %v3548_v53 = vpop.f32.mrb[37].mxu1 }
 0xc86   :  { %v3549_v52 = vadd.f32 %v3548_v53, %v3477_v37  ;;  %v5968_v53 = vld [vmem:[%s12998_s9 + $0x3d8] sm:$0xff] }
 0xc87   :  { %v5868_v41 = vmul.f32 -1.442695, %v3547_v35 }
 0xc88   :  { %v5869_v54 = vmul.f32 -1.442695, %v3549_v52  ;;  %v3552_v57 = vpop.f32.mrb[38].mxu1 }
 0xc89   :  { %8283 = vpow2.f32 %v5868_v41  ;;  %v3553_v59 = vadd.f32 %v3552_v57, %v3473_v51  ;;  %v3554_v46 = vpop.f32.mrb[39].mxu1  ;;  %v5949_v51 = vld [vmem:[%s12998_s9 + $0x340] sm:$0xff]  ;;  %v5951_v41 = vld [vmem:[%s12998_s9 + $0x350] sm:$0xff] }
 0xc8a   :  { %8285 = vpow2.f32 %v5869_v54  ;;  %v3555_v60 = vadd.f32 %v3554_v46, %v3477_v37  ;;  %v5950_v37 = vld [vmem:[%s12998_s9 + $0x348] sm:$0xff]  ;;  %v5952_v54 = vld [vmem:[%s12998_s9 + $0x358] sm:$0xff] }
 0xc8b   :  { %v5870_v61 = vmul.f32 -1.442695, %v3553_v59  ;;  %v7689_v43 = vpack.c.bf16 %v5950_v37, %v5949_v51  ;;  %v7693_v57 = vpack.c.bf16 %v5952_v54, %v5951_v41  ;;  %v5970_v46 = vld [vmem:[%s12998_s9 + $0x3e8] sm:$0xff]  ;;  %v7707_v37 = vpack.c.bf16 %v5994_v30, %v5993_v40  ;;  %v6028_v40 = vld [vmem:[%s12992_s3 + $0x800] sm:$0xff]  ;;  %v6030_v30 = vld [vmem:[%s12992_s3 + $0x810] sm:$0xff] }
 0xc8c   :  { %v5871_v62 = vmul.f32 -1.442695, %v3555_v60  ;;  %v5996_v41 = vld [vmem:[%s12999_s11 + $0x3a8] sm:$0xff] }
 0xc8d   :  { %8287 = vpow2.f32 %v5870_v61  ;;  %v5953_v61 = vld [vmem:[%s12998_s9 + $0x360] sm:$0xff] }
 0xc8e   :  { %8289 = vpow2.f32 %v5871_v62  ;;  %v5954_v62 = vld [vmem:[%s12998_s9 + $0x368] sm:$0xff] }
 0xc93   :  { %v8284_v63 = vpop.eup %8283 }
 0xc94   :  { %v8286_v45 = vpop.eup %8285  ;;  %v3569_v56 = vadd.f32 1.0, %v8284_v63  ;;  %v7697_v63 = vpack.c.bf16 %v5954_v62, %v5953_v61  ;;  %v5979_v62 = vld [vmem:[%s12999_s11 + $0x320] sm:$0xff] }
 0xc95   :  { %v3570_v4 = vadd.f32 1.0, %v8286_v45  ;;  %v5971_v45 = vld [vmem:[%s12998_s9 + $0x3f0] sm:$0xff] }
 0xc96   :  { %8291 = vrcp.f32 %v3569_v56  ;;  %v5972_v56 = vld [vmem:[%s12998_s9 + $0x3f8] sm:$0xff] }
 0xc97   :  { %v8288_v1 = vpop.eup %8287  ;;  %8293 = vrcp.f32 %v3570_v4  ;;  %v7699_v4 = vpack.c.bf16 %v5972_v56, %v5971_v45  ;;  %v5997_v45 = vld [vmem:[%s12999_s11 + $0x3b0] sm:$0xff]  ;;  %v5998_v56 = vld [vmem:[%s12999_s11 + $0x3b8] sm:$0xff] }
 0xc98   :  { %v8290_v5 = vpop.eup %8289  ;;  %v3571_v7 = vadd.f32 1.0, %v8288_v1  ;;  %v5955_v1 = vld [vmem:[%s12998_s9 + $0x370] sm:$0xff] }
 0xc99   :  { %v3572_v8 = vadd.f32 1.0, %v8290_v5  ;;  %v5956_v5 = vld [vmem:[%s12998_s9 + $0x378] sm:$0xff] }
 0xc9a   :  { %8295 = vrcp.f32 %v3571_v7  ;;  %v7701_v7 = vpack.c.bf16 %v5956_v5, %v5955_v1  ;;  %v7715_v1 = vpack.c.bf16 %v5998_v56, %v5997_v45  ;;  %v5981_v5 = vld [vmem:[%s12999_s11 + $0x330] sm:$0xff]  ;;  %v6040_v45 = vld [vmem:[%s12992_s3 + $0x860] sm:$0xff] }
 0xc9b   :  { %8297 = vrcp.f32 %v3572_v8  ;;  %v5991_v8 = vld [vmem:[%s12999_s11 + $0x380] sm:$0xff]  ;;  %v6042_v56 = vld [vmem:[%s12992_s3 + $0x870] sm:$0xff] }
 0xc9c   :  { %v7703_v13 = vpack.c.bf16 %v5992_v11, %v5991_v8  ;;  %v5999_v8 = vld [vmem:[%s12999_s11 + $0x3c0] sm:$0xff]  ;;  %v6000_v11 = vld [vmem:[%s12999_s11 + $0x3c8] sm:$0xff] }
 0xca0   :  { %v8292_v14 = vpop.eup %8291 }
 0xca1   :  { %v8294_v16 = vpop.eup %8293  ;;  %v3581_v48 = vmul.f32 %v8292_v14, %v3547_v35  ;;  %v5967_v35 = vld [vmem:[%s12998_s9 + $0x3d0] sm:$0xff]  ;;  %v5936_v14 = vld [vmem:[%s13000_s8 + $0x6] sm:$0x3] }
 0xca2   :  { %v3582_v18 = vmul.f32 %v8294_v16, %v3549_v52  ;;  %v7691_v52 = vpack.c.bf16 %v5968_v53, %v5967_v35  ;;  %v3656_v16 = vrot.slane %v5936_v14, %v8830_v32  ;;  %v5978_v35 = vld [vmem:[%s12999_s11 + $0x318] sm:$0xff] }
 0xca4   :  { %v8296_v10 = vpop.eup %8295  ;;  %3727 = vmatprep.mubr.f32.mxu0 %v3582_v18  ;;  %v3660_v18 = vrot.slane %v5936_v14, %v8835_v34  ;;  %v7719_v14 = vpack.c.bf16 %v6000_v11, %v5999_v8  ;;  %v6046_v8 = vld [vmem:[%s12992_s3 + $0x890] sm:$0xff]  ;;  %v6049_v11 = vld [vmem:[%s12992_s3 + $0x8a8] sm:$0xff] }
 0xca5   :  { %v8298_v15 = vpop.eup %8297  ;;  %3728 = vmatmul.mubr.f32.vlgmr.msra.gmra.mrb[44].mxu0 %v3581_v48  ;;  %v3583_v0 = vmul.f32 %v8296_v10, %v3553_v59  ;;  %v5969_v59 = vld [vmem:[%s12998_s9 + $0x3e0] sm:$0xff] }
 0xca6   :  { %v3584_v6 = vmul.f32 %v8298_v15, %v3555_v60  ;;  %7740 = vmatpush1.bf16.msk.msra.mxu0 %vm8518_vm2, %v7738_v19  ;;  %v7695_v60 = vpack.c.bf16 %v5970_v46, %v5969_v59 }
 0xca8   :  { %3733 = vmatprep.mubr.f32.mxu0 %v3584_v6 }
 0xca9   :  { %3734 = vmatmul.mubr.f32.gmra.mrb[46].mxu0 %v3583_v0 }
 0xcaa   :  { %4187 = vmatprep.mubr.f32.mxu0 %v8426_v3 }
 0xcad   :  { %6022 = vmatmul.mubr.msk.f32.vlgmr.msra.gmra.mrb[48].mxu0 %vm72_vm3, %v6013_v21 }
 0xcae   :  { %4193 = vmatprep.mubr.f32.mxu0 %v8426_v3  ;;  %v5942_v3 = vld [vmem:[%s12998_s9 + $0x308] sm:$0xff] }
 0xcaf   :  { %v7673_v29 = vpack.c.bf16 %v5942_v3, %v5941_v27 }
 0xcb1   :  { %6023 = vmatmul.mubr.msk.f32.gmra.mrb[50].mxu0 %vm72_vm3, %v6014_v9  ;;  %7674 = vmatpush3.bf16.msra.mxu1 %v7673_v29 }
 0xcb2   :  { %7676 = vmatprep.subr.bf16.mxu1 %v7675_v47 }
 0xcb5   :  { %7678 = vmatpush3.bf16.msra.mxu1 %v7677_v23 }
 0xcb6   :  { %7680 = vmatprep.subr.bf16.mxu1 %v7679_v22 }
 0xcb9   :  { %7682 = vmatpush3.bf16.msra.mxu1 %v7681_v26  ;;  %v11995_v26 = vrot.slane %v11991_v36, %v8835_v34 }
 0xcba   :  { %7684 = vmatprep.subr.bf16.mxu1 %v7683_v39 }
 0xcbd   :  { %7686 = vmatpush3.bf16.msra.mxu1 %v7685_v42 }
 0xcbe   :  { %7688 = vmatprep.subr.bf16.mxu1 %v7687_v50  ;;  %v7705_v50 = vpack.c.bf16 %v5976_v12, %v5975_v38  ;;  %v6031_v38 = vld [vmem:[%s12992_s3 + $0x818] sm:$0xff] }
 0xcc1   :  { %7690 = vmatpush3.bf16.msra.mxu1 %v7689_v43  ;;  %v5977_v43 = vld [vmem:[%s12999_s11 + $0x310] sm:$0xff] }
 0xcc2   :  { %7692 = vmatprep.subr.bf16.mxu1 %v7691_v52  ;;  %v5995_v52 = vld [vmem:[%s12999_s11 + $0x3a0] sm:$0xff]  ;;  %v7709_v46 = vpack.c.bf16 %v5978_v35, %v5977_v43 }
 0xcc3   :  { %v7711_v61 = vpack.c.bf16 %v5996_v41, %v5995_v52  ;;  %v6032_v35 = vld [vmem:[%s12992_s3 + $0x820] sm:$0xff]  ;;  %v6037_v52 = vld [vmem:[%s12992_s3 + $0x848] sm:$0xff]  ;;  %v6039_v41 = vld [vmem:[%s12992_s3 + $0x858] sm:$0xff] }
 0xcc5   :  { %7694 = vmatpush3.bf16.msra.mxu1 %v7693_v57 }
 0xcc6   :  { %7696 = vmatprep.subr.bf16.mxu1 %v7695_v60 }
 0xcc9   :  { %7698 = vmatpush3.bf16.msra.mxu1 %v7697_v63  ;;  %v5980_v63 = vld [vmem:[%s12999_s11 + $0x328] sm:$0xff] }
 0xcca   :  { %7700 = vmatprep.subr.bf16.mxu1 %v7699_v4  ;;  %v7713_v4 = vpack.c.bf16 %v5980_v63, %v5979_v62  ;;  %v6038_v62 = vld [vmem:[%s12992_s3 + $0x850] sm:$0xff] }
 0xccd   :  { %7702 = vmatpush3.bf16.msra.mxu1 %v7701_v7  ;;  %v5982_v7 = vld [vmem:[%s12999_s11 + $0x338] sm:$0xff] }
 0xcce   :  { %7704 = vmatprep.subr.bf16.mxu1 %v7703_v13  ;;  %v7717_v13 = vpack.c.bf16 %v5982_v7, %v5981_v5  ;;  %v6044_v7 = vld [vmem:[%s12992_s3 + $0x880] sm:$0xff] }
 0xd78   :  { %v3729_v19 = vpop.f32.mrb[44].mxu0 }
 0xd79   :  { %v3730_v48 = vadd.f32 %v3729_v19, %v3656_v16  ;;  %v3731_v10 = vpop.f32.mrb[45].mxu0  ;;  %v6001_v19 = vld [vmem:[%s12999_s11 + $0x3d0] sm:$0xff] }
 0xd7a   :  { %v3732_v15 = vadd.f32 %v3731_v10, %v3660_v18 }
 0xd7b   :  { %v5937_v6 = vmul.f32 -1.442695, %v3730_v48 }
 0xd7c   :  { %v5938_v0 = vmul.f32 -1.442695, %v3732_v15  ;;  %v3735_v21 = vpop.f32.mrb[46].mxu0 }
 0xd7d   :  { %8299 = vpow2.f32 %v5937_v6  ;;  %v3736_v9 = vadd.f32 %v3735_v21, %v3656_v16  ;;  %v3737_v2 = vpop.f32.mrb[47].mxu0  ;;  %v5983_v16 = vld [vmem:[%s12999_s11 + $0x340] sm:$0xff]  ;;  %v5986_v21 = vld [vmem:[%s12999_s11 + $0x358] sm:$0xff] }
 0xd7e   :  { %8301 = vpow2.f32 %v5938_v0  ;;  %v3738_v24 = vadd.f32 %v3737_v2, %v3660_v18  ;;  %v5984_v18 = vld [vmem:[%s12999_s11 + $0x348] sm:$0xff]  ;;  %v5985_v0 = vld [vmem:[%s12999_s11 + $0x350] sm:$0xff] }
 0xd7f   :  { %v5939_v17 = vmul.f32 -1.442695, %v3736_v9  ;;  %v6004_v2 = vld [vmem:[%s12999_s11 + $0x3e8] sm:$0xff] }
 0xd80   :  { %v5940_v27 = vmul.f32 -1.442695, %v3738_v24  ;;  %v11982_v3 = vpop.f32.mrb[48].mxu0 }
 0xd81   :  { %8303 = vpow2.f32 %v5939_v17  ;;  %v4191_v29 = vpop.f32.mrb[49].mxu0  ;;  %v7725_v17 = vpack.c.bf16 %v5986_v21, %v5985_v0  ;;  %v6052_v0 = vld [vmem:[%s12992_s3 + $0x8c0] sm:$0xff]  ;;  %v6054_v21 = vld [vmem:[%s12992_s3 + $0x8d0] sm:$0xff] }
 0xd82   :  { %8305 = vpow2.f32 %v5940_v27  ;;  %v12010_v42 = vadd.f32 %v4191_v29, %v11995_v26  ;;  %v5987_v29 = vld [vmem:[%s12999_s11 + $0x360] sm:$0xff] }
 0xd84   :  { %v11984_v31 = vpop.f32.mrb[50].mxu0  ;;  %v6025_v54 = vmul.f32 -1.442695, %v12010_v42 }
 0xd85   :  { %v11986_v33 = vpop.f32.mrb[51].mxu0 }
 0xd87   :  { %v8300_v47 = vpop.eup %8299 }
 0xd88   :  { %v8302_v55 = vpop.eup %8301  ;;  %v3752_v25 = vadd.f32 1.0, %v8300_v47  ;;  %v5988_v47 = vld [vmem:[%s12999_s11 + $0x368] sm:$0xff] }
 0xd89   :  { %v3753_v23 = vadd.f32 1.0, %v8302_v55  ;;  %v6005_v55 = vld [vmem:[%s12999_s11 + $0x3f0] sm:$0xff] }
 0xd8a   :  { %8307 = vrcp.f32 %v3752_v25  ;;  %v6006_v25 = vld [vmem:[%s12999_s11 + $0x3f8] sm:$0xff] }
 0xd8b   :  { %v8304_v58 = vpop.eup %8303  ;;  %8309 = vrcp.f32 %v3753_v23  ;;  %v7729_v23 = vpack.c.bf16 %v5988_v47, %v5987_v29  ;;  %v6056_v29 = vld [vmem:[%s12992_s3 + $0x8e0] sm:$0xff]  ;;  %v6058_v47 = vld [vmem:[%s12992_s3 + $0x8f0] sm:$0xff] }
 0xd8c   :  { %v8306_v28 = vpop.eup %8305  ;;  %v3754_v22 = vadd.f32 1.0, %v8304_v58  ;;  %v7731_v58 = vpack.c.bf16 %v6006_v25, %v6005_v55  ;;  %v6061_v55 = vld [vmem:[%s12992_s3 + $0x908] sm:$0xff] }
 0xd8d   :  { %v3755_v20 = vadd.f32 1.0, %v8306_v28  ;;  %v5989_v28 = vld [vmem:[%s12999_s11 + $0x370] sm:$0xff] }
 0xd8e   :  { %8311 = vrcp.f32 %v3754_v22  ;;  %v5990_v22 = vld [vmem:[%s12999_s11 + $0x378] sm:$0xff] }
 0xd8f   :  { %8313 = vrcp.f32 %v3755_v20  ;;  %v6029_v20 = vld [vmem:[%s12992_s3 + $0x808] sm:$0xff]  ;;  %v7733_v12 = vpack.c.bf16 %v5990_v22, %v5989_v28  ;;  %v6060_v22 = vld [vmem:[%s12992_s3 + $0x900] sm:$0xff] }
 0xd90   :  { %8315 = vpow2.f32 %v6025_v54 }
 0xd94   :  { %v8308_v39 = vpop.eup %8307 }
 0xd95   :  { %v8310_v44 = vpop.eup %8309  ;;  %v12012_v51 = vmul.f32 %v8308_v39, %v3730_v48  ;;  %v6002_v48 = vld [vmem:[%s12999_s11 + $0x3d8] sm:$0xff]  ;;  %v7741_v39 = vpack.c.bf16 %v6031_v38, %v6029_v20  ;;  %v6062_v20 = vld [vmem:[%s12992_s3 + $0x910] sm:$0xff] }
 0xd96   :  { %v3765_v49 = vmul.f32 %v8310_v44, %v3732_v15  ;;  %v7721_v15 = vpack.c.bf16 %v5984_v18, %v5983_v16  ;;  %v7723_v6 = vpack.c.bf16 %v6002_v48, %v6001_v19  ;;  %v6033_v44 = vld [vmem:[%s12992_s3 + $0x828] sm:$0xff]  ;;  %v6048_v18 = vld [vmem:[%s12992_s3 + $0x8a0] sm:$0xff]  ;;  %v6050_v19 = vld [vmem:[%s12992_s3 + $0x8b0] sm:$0xff] }
 0xd97   :  { %v6053_v48 = vld [vmem:[%s12992_s3 + $0x8c8] sm:$0xff]  ;;  %v6067_v38 = vld [vmem:[%s12992_s3 + $0x938] sm:$0xff] }
 0xd98   :  { %v8312_v53 = vpop.eup %8311  ;;  %3873 = vmatprep.mubr.f32.mxu1 %v3765_v49 }
 0xd99   :  { %v8314_v57 = vpop.eup %8313  ;;  %3874 = vmatmul.mubr.f32.vlgmr.msra.gmra.mrb[40].mxu1 %v12012_v51  ;;  %v12030_v60 = vmul.f32 %v8312_v53, %v3736_v9  ;;  %v6003_v9 = vld [vmem:[%s12999_s11 + $0x3e0] sm:$0xff]  ;;  %v6034_v53 = vld [vmem:[%s12992_s3 + $0x830] sm:$0xff] }
 0xd9a   :  { %v12028_v59 = vmul.f32 %v8314_v57, %v3738_v24  ;;  %7706 = vmatpush3.bf16.msra.mxu1 %v7705_v50  ;;  %v8316_v10 = vpop.eup %8315  ;;  %v7727_v27 = vpack.c.bf16 %v6004_v2, %v6003_v9  ;;  %v7743_v50 = vpack.c.bf16 %v6030_v30, %v6028_v40  ;;  %v7747_v57 = vpack.c.bf16 %v6034_v53, %v6032_v35  ;;  %v6057_v9 = vld [vmem:[%s12992_s3 + $0x8e8] sm:$0xff]  ;;  %v6059_v2 = vld [vmem:[%s12992_s3 + $0x8f8] sm:$0xff]  ;;  %v6064_v30 = vld [vmem:[%s12992_s3 + $0x920] sm:$0xff] }
 0xd9b   :  { %7708 = vmatprep.subr.bf16.mxu1 %v7707_v37  ;;  %v4213_v24 = vadd.f32 1.0, %v8316_v10  ;;  %v6055_v10 = vld [vmem:[%s12992_s3 + $0x8d8] sm:$0xff]  ;;  %v6068_v35 = vld [vmem:[%s12992_s3 + $0x940] sm:$0xff]  ;;  %v6070_v53 = vld [vmem:[%s12992_s3 + $0x950] sm:$0xff] }
 0xd9c   :  { %3878 = vmatprep.mubr.f32.mxu1 %v12028_v59 }
 0xd9d   :  { %3879 = vmatmul.mubr.f32.gmra.mrb[42].mxu1 %v12030_v60  ;;  %8317 = vrcp.f32 %v4213_v24  ;;  %v4104_v24 = vrot.slane %v11991_v36, %v8830_v32  ;;  %v6063_v36 = vld [vmem:[%s12992_s3 + $0x918] sm:$0xff] }
 0xd9e   :  { %7710 = vmatpush3.bf16.msra.mxu1 %v7709_v46  ;;  %3989 = vmatprep.mubr.f32.mxu1 %v3765_v49  ;;  %v6035_v49 = vld [vmem:[%s12992_s3 + $0x838] sm:$0xff]  ;;  %v7749_v46 = vpack.c.bf16 %v6039_v41, %v6037_v52  ;;  %v7773_v28 = vpack.c.bf16 %v6063_v36, %v6061_v55  ;;  %v6073_v52 = vld [vmem:[%s12992_s3 + $0x968] sm:$0xff] }
 0xd9f   :  { %7712 = vmatprep.subr.bf16.mxu1 %v7711_v61  ;;  %v7745_v43 = vpack.c.bf16 %v6035_v49, %v6033_v44  ;;  %v6036_v61 = vld [vmem:[%s12992_s3 + $0x840] sm:$0xff]  ;;  %v12209_v25 = vadd.f32 %v11982_v3, %v4104_v24  ;;  %v6065_v3 = vld [vmem:[%s12992_s3 + $0x928] sm:$0xff]  ;;  %v6066_v44 = vld [vmem:[%s12992_s3 + $0x930] sm:$0xff] }
 0xda0   :  { %v7777_v40 = vpack.c.bf16 %v6067_v38, %v6065_v3  ;;  %v6069_v49 = vld [vmem:[%s12992_s3 + $0x948] sm:$0xff]  ;;  %v6075_v41 = vld [vmem:[%s12992_s3 + $0x978] sm:$0xff] }
 0xda1   :  { %v6100_v3 = vld [vmem:[%s12993_s5 + $0x818] sm:$0xff] }
 0xda2   :  { %7714 = vmatpush3.bf16.msra.mxu1 %v7713_v4  ;;  %v6045_v4 = vld [vmem:[%s12992_s3 + $0x888] sm:$0xff] }
 0xda3   :  { %7716 = vmatprep.subr.bf16.mxu1 %v7715_v1  ;;  %v7755_v1 = vpack.c.bf16 %v6042_v56, %v6040_v45  ;;  %v6076_v45 = vld [vmem:[%s12992_s3 + $0x980] sm:$0xff]  ;;  %v6078_v56 = vld [vmem:[%s12992_s3 + $0x990] sm:$0xff] }
 0xda6   :  { %7718 = vmatpush3.bf16.msra.mxu1 %v7717_v13  ;;  %v6051_v13 = vld [vmem:[%s12992_s3 + $0x8b8] sm:$0xff] }
 0xda7   :  { %7720 = vmatprep.subr.bf16.mxu1 %v7719_v14  ;;  %v8318_v37 = vpop.eup %8317  ;;  %v7759_v14 = vpack.c.bf16 %v6046_v8, %v6044_v7  ;;  %v7761_v16 = vpack.c.bf16 %v6051_v13, %v6049_v11  ;;  %v7791_v7 = vpack.c.bf16 %v6078_v56, %v6076_v45  ;;  %v6118_v45 = vld [vmem:[%s12993_s5 + $0x8a8] sm:$0xff]  ;;  %v6120_v56 = vld [vmem:[%s12993_s5 + $0x8b8] sm:$0xff] }
 0xda8   :  { %v4225_v54 = vmul.f32 %v8318_v37, %v12010_v42  ;;  %v7751_v42 = vpack.c.bf16 %v6038_v62, %v6036_v61  ;;  %v7779_v37 = vpack.c.bf16 %v6066_v44, %v6064_v30  ;;  %v6074_v61 = vld [vmem:[%s12992_s3 + $0x970] sm:$0xff]  ;;  %v6077_v62 = vld [vmem:[%s12992_s3 + $0x988] sm:$0xff] }
 0xda9   :  { %v6103_v30 = vld [vmem:[%s12993_s5 + $0x830] sm:$0xff] }
 0xdaa   :  { %7722 = vmatpush3.bf16.msra.mxu1 %v7721_v15  ;;  %v7763_v15 = vpack.c.bf16 %v6050_v19, %v6048_v18  ;;  %v6085_v18 = vld [vmem:[%s12992_s3 + $0x9c8] sm:$0xff]  ;;  %v6087_v19 = vld [vmem:[%s12992_s3 + $0x9d8] sm:$0xff] }
 0xdab   :  { %7724 = vmatprep.subr.bf16.mxu1 %v7723_v6  ;;  %v7765_v6 = vpack.c.bf16 %v6055_v10, %v6053_v48 }
 0xdae   :  { %7726 = vmatpush3.bf16.msra.mxu1 %v7725_v17  ;;  %v7767_v17 = vpack.c.bf16 %v6054_v21, %v6052_v0  ;;  %v6086_v0 = vld [vmem:[%s12992_s3 + $0x9d0] sm:$0xff]  ;;  %v6089_v21 = vld [vmem:[%s12992_s3 + $0x9e8] sm:$0xff] }
 0xdaf   :  { %7728 = vmatprep.subr.bf16.mxu1 %v7727_v27  ;;  %v7769_v27 = vpack.c.bf16 %v6059_v2, %v6057_v9  ;;  %v6091_v9 = vld [vmem:[%s12992_s3 + $0x9f8] sm:$0xff] }
 0xdb2   :  { %7730 = vmatpush3.bf16.msra.mxu1 %v7729_v23  ;;  %v7771_v23 = vpack.c.bf16 %v6058_v47, %v6056_v29 }
 0xdb3   :  { %7732 = vmatprep.subr.bf16.mxu1 %v7731_v58  ;;  %v12213_v58 = vadd.f32 %v11986_v33, %v11995_v26  ;;  %v6024_v33 = vmul.f32 -1.442695, %v12209_v25  ;;  %v12229_v26 = vadd.f32 %v11984_v31, %v4104_v24  ;;  %v6071_v31 = vld [vmem:[%s12992_s3 + $0x958] sm:$0xff]  ;;  %v7801_v24 = vpack.c.bf16 %v6091_v9, %v6089_v21 }
 0xdb4   :  { %v6132_v21 = vld [vmem:[%s12993_s5 + $0x918] sm:$0xff] }
 0xdb5   :  { %8319 = vpow2.f32 %v6024_v33 }
 0xdb6   :  { %7734 = vmatpush3.bf16.msra.mxu1 %v7733_v12  ;;  %v6027_v12 = vmul.f32 -1.442695, %v12213_v58 }
 0xdb7   :  { %7742 = vmatprep.subr.bf16.mxu1 %v7741_v39  ;;  %v7775_v39 = vpack.c.bf16 %v6062_v20, %v6060_v22  ;;  %v6098_v20 = vld [vmem:[%s12993_s5 + $0x808] sm:$0xff] }
 0xdb8   :  { %8321 = vpow2.f32 %v6027_v12  ;;  %v7805_v38 = vpack.c.bf16 %v6100_v3, %v6098_v20  ;;  %v6104_v12 = vld [vmem:[%s12993_s5 + $0x838] sm:$0xff]  ;;  %v6137_v3 = vld [vmem:[%s12993_s5 + $0x940] sm:$0xff] }
 0xdb9   :  { %3990 = vmatmul.mubr.f32.vlgmr.msra.gmra.mrb[44].mxu1 %v12012_v51  ;;  %v6041_v51 = vld [vmem:[%s12992_s3 + $0x868] sm:$0xff] }
 0xdba   :  { %3994 = vmatprep.mubr.f32.mxu1 %v12028_v59  ;;  %7744 = vmatpush1.bf16.msra.mxu1 %v7743_v50  ;;  %v6043_v59 = vld [vmem:[%s12992_s3 + $0x878] sm:$0xff]  ;;  %v6026_v50 = vmul.f32 -1.442695, %v12229_v26 }
 0xdbb   :  { %7746 = vmatprep.subr.bf16.mxu1 %v7745_v43  ;;  %v7753_v63 = vpack.c.bf16 %v6043_v59, %v6041_v51  ;;  %v7781_v43 = vpack.c.bf16 %v6071_v31, %v6069_v49  ;;  %v6079_v51 = vld [vmem:[%s12992_s3 + $0x998] sm:$0xff]  ;;  %7806 = vmatprep.subr.bf16.mxu0 %v7805_v38  ;;  %v6106_v49 = vld [vmem:[%s12993_s5 + $0x848] sm:$0xff]  ;;  %v6139_v38 = vld [vmem:[%s12993_s5 + $0x950] sm:$0xff] }
 0xdbc   :  { %8323 = vpow2.f32 %v6026_v50  ;;  %v6108_v31 = vld [vmem:[%s12993_s5 + $0x858] sm:$0xff] }
 0xdbd   :  { %3995 = vmatmul.mubr.f32.gmra.mrb[46].mxu1 %v12030_v60  ;;  %v6047_v60 = vld [vmem:[%s12992_s3 + $0x898] sm:$0xff]  ;;  %v7813_v50 = vpack.c.bf16 %v6108_v31, %v6106_v49  ;;  %v6145_v31 = vld [vmem:[%s12993_s5 + $0x980] sm:$0xff] }
 0xdbe   :  { %7748 = vmatpush1.bf16.msra.mxu1 %v7747_v57  ;;  %4370 = vmatprep.mubr.f32.mxu1 %v4225_v54  ;;  %v7757_v5 = vpack.c.bf16 %v6047_v60, %v6045_v4  ;;  %v7783_v54 = vpack.c.bf16 %v6070_v53, %v6068_v35  ;;  %v7785_v57 = vpack.c.bf16 %v6075_v41, %v6073_v52  ;;  %v6081_v60 = vld [vmem:[%s12992_s3 + $0x9a8] sm:$0xff]  ;;  %v6112_v52 = vld [vmem:[%s12993_s5 + $0x878] sm:$0xff] }
 0xdbf   :  { %7750 = vmatprep.subr.bf16.mxu1 %v7749_v46  ;;  %v6072_v46 = vld [vmem:[%s12992_s3 + $0x960] sm:$0xff]  ;;  %v6110_v53 = vld [vmem:[%s12993_s5 + $0x868] sm:$0xff] }
 0xdc0   :  { %v7787_v59 = vpack.c.bf16 %v6074_v61, %v6072_v46  ;;  %v7817_v41 = vpack.c.bf16 %v6112_v52, %v6110_v53  ;;  %v6114_v61 = vld [vmem:[%s12993_s5 + $0x888] sm:$0xff]  ;;  %v6149_v52 = vld [vmem:[%s12993_s5 + $0x9a0] sm:$0xff] }
 0xdc2   :  { %7752 = vmatpush1.bf16.msra.mxu1 %v7751_v42  ;;  %v8320_v42 = vpop.eup %8319 }
 0xdc3   :  { %7754 = vmatprep.subr.bf16.mxu1 %v7753_v63  ;;  %v7789_v63 = vpack.c.bf16 %v6079_v51, %v6077_v62  ;;  %v8322_v4 = vpop.eup %8321  ;;  %v6116_v62 = vld [vmem:[%s12993_s5 + $0x898] sm:$0xff] }
 0xdc4   :  { %v4215_v11 = vadd.f32 1.0, %v8322_v4  ;;  %v7821_v51 = vpack.c.bf16 %v6116_v62, %v6114_v61  ;;  %v7825_v4 = vpack.c.bf16 %v6120_v56, %v6118_v45  ;;  %v6153_v62 = vld [vmem:[%s12993_s5 + $0x9c0] sm:$0xff] }
 0xdc5   :  { %v6157_v56 = vld [vmem:[%s12993_s5 + $0x9e0] sm:$0xff] }
 0xdc6   :  { %7756 = vmatpush1.bf16.msra.mxu1 %v7755_v1  ;;  %v6083_v1 = vld [vmem:[%s12992_s3 + $0x9b8] sm:$0xff]  ;;  %v8324_v8 = vpop.eup %8323 }
 0xdc7   :  { %7758 = vmatprep.subr.bf16.mxu1 %v7757_v5  ;;  %v4212_v5 = vadd.f32 1.0, %v8320_v42  ;;  %v7793_v13 = vpack.c.bf16 %v6083_v1, %v6081_v60  ;;  %v4214_v48 = vadd.f32 1.0, %v8324_v8  ;;  %v6115_v42 = vld [vmem:[%s12993_s5 + $0x890] sm:$0xff]  ;;  %v6117_v60 = vld [vmem:[%s12993_s5 + $0x8a0] sm:$0xff]  ;;  %v6124_v8 = vld [vmem:[%s12993_s5 + $0x8d8] sm:$0xff] }
 0xdc8   :  { %v6119_v1 = vld [vmem:[%s12993_s5 + $0x8b0] sm:$0xff] }
 0xdc9   :  { %8325 = vrcp.f32 %v4212_v5  ;;  %v7827_v5 = vpack.c.bf16 %v6119_v1, %v6117_v60 }
 0xdca   :  { %7760 = vmatpush1.bf16.msra.mxu1 %v7759_v14  ;;  %v6080_v14 = vld [vmem:[%s12992_s3 + $0x9a0] sm:$0xff]  ;;  %8327 = vrcp.f32 %v4215_v11 }
 0xdcb   :  { %7762 = vmatprep.subr.bf16.mxu1 %v7761_v16  ;;  %v6082_v16 = vld [vmem:[%s12992_s3 + $0x9b0] sm:$0xff]  ;;  %8329 = vrcp.f32 %v4214_v48 }
 0xdcc   :  { %v7795_v10 = vpack.c.bf16 %v6082_v16, %v6080_v14  ;;  %v6123_v14 = vld [vmem:[%s12993_s5 + $0x8d0] sm:$0xff] }
 0xdce   :  { %7764 = vmatpush1.bf16.msra.mxu1 %v7763_v15  ;;  %v7797_v15 = vpack.c.bf16 %v6087_v19, %v6085_v18  ;;  %v6126_v18 = vld [vmem:[%s12993_s5 + $0x8e8] sm:$0xff]  ;;  %v6128_v19 = vld [vmem:[%s12993_s5 + $0x8f8] sm:$0xff] }
 0xdcf   :  { %7766 = vmatprep.subr.bf16.mxu1 %v7765_v6  ;;  %v6084_v6 = vld [vmem:[%s12992_s3 + $0x9c0] sm:$0xff]  ;;  %v7833_v48 = vpack.c.bf16 %v6128_v19, %v6126_v18  ;;  %v6167_v18 = vld [vmem:[%s12995_s7 + $0x808] sm:$0xff]  ;;  %v6169_v19 = vld [vmem:[%s12995_s7 + $0x818] sm:$0xff] }
 0xdd0   :  { %v7799_v2 = vpack.c.bf16 %v6086_v0, %v6084_v6  ;;  %v6130_v0 = vld [vmem:[%s12993_s5 + $0x908] sm:$0xff] }
 0xdd1   :  { %v7837_v9 = vpack.c.bf16 %v6132_v21, %v6130_v0  ;;  %v6171_v0 = vld [vmem:[%s12995_s7 + $0x828] sm:$0xff]  ;;  %v6173_v21 = vld [vmem:[%s12995_s7 + $0x838] sm:$0xff] }
 0xdd2   :  { %7768 = vmatpush1.bf16.msra.mxu1 %v7767_v17  ;;  %v6088_v17 = vld [vmem:[%s12992_s3 + $0x9e0] sm:$0xff] }
 0xdd3   :  { %7770 = vmatprep.subr.bf16.mxu1 %v7769_v27  ;;  %v6090_v27 = vld [vmem:[%s12992_s3 + $0x9f0] sm:$0xff]  ;;  %v8326_v47 = vpop.eup %8325 }
 0xdd4   :  { %v7803_v29 = vpack.c.bf16 %v6090_v27, %v6088_v17  ;;  %v8328_v55 = vpop.eup %8327  ;;  %v4224_v36 = vmul.f32 %v8326_v47, %v12209_v25  ;;  %v6097_v25 = vld [vmem:[%s12993_s5 + $0x800] sm:$0xff]  ;;  %v6134_v27 = vld [vmem:[%s12993_s5 + $0x928] sm:$0xff] }
 0xdd6   :  { %7772 = vmatpush1.bf16.msra.mxu1 %v7771_v23  ;;  %v8330_v23 = vpop.eup %8329 }
 0xdd7   :  { %7774 = vmatprep.subr.bf16.mxu1 %v7773_v28  ;;  %v4227_v28 = vmul.f32 %v8328_v55, %v12213_v58  ;;  %v4226_v22 = vmul.f32 %v8330_v23, %v12229_v26  ;;  %v6099_v58 = vld [vmem:[%s12993_s5 + $0x810] sm:$0xff]  ;;  %v6102_v26 = vld [vmem:[%s12993_s5 + $0x828] sm:$0xff]  ;;  %v6133_v55 = vld [vmem:[%s12993_s5 + $0x920] sm:$0xff] }
 0xdd8   :  { %v7807_v33 = vpack.c.bf16 %v6099_v58, %v6097_v25  ;;  %v7847_v25 = vpack.c.bf16 %v6139_v38, %v6137_v3  ;;  %v6142_v58 = vld [vmem:[%s12993_s5 + $0x968] sm:$0xff]  ;;  %v6178_v38 = vld [vmem:[%s12995_s7 + $0x860] sm:$0xff] }
 0xdda   :  { %7776 = vmatpush1.bf16.msra.mxu1 %v7775_v39  ;;  %7808 = vmatpush1.bf16.msra.mxu0 %v7807_v33  ;;  %v7809_v39 = vpack.c.bf16 %v6104_v12, %v6102_v26  ;;  %v6144_v33 = vld [vmem:[%s12993_s5 + $0x978] sm:$0xff]  ;;  %v6141_v12 = vld [vmem:[%s12993_s5 + $0x960] sm:$0xff] }
 0xddb   :  { %7778 = vmatprep.subr.bf16.mxu1 %v7777_v40  ;;  %v6101_v40 = vld [vmem:[%s12993_s5 + $0x820] sm:$0xff]  ;;  %v7849_v26 = vpack.c.bf16 %v6144_v33, %v6142_v58  ;;  %v6183_v58 = vld [vmem:[%s12995_s7 + $0x888] sm:$0xff]  ;;  %v6185_v33 = vld [vmem:[%s12995_s7 + $0x898] sm:$0xff] }
 0xddc   :  { %v7811_v44 = vpack.c.bf16 %v6103_v30, %v6101_v40  ;;  %7810 = vmatprep.subr.bf16.mxu0 %v7809_v39  ;;  %v6143_v39 = vld [vmem:[%s12993_s5 + $0x970] sm:$0xff]  ;;  %v6146_v30 = vld [vmem:[%s12993_s5 + $0x988] sm:$0xff] }
 0xddd   :  { %v7851_v40 = vpack.c.bf16 %v6143_v39, %v6141_v12  ;;  %v7885_v12 = vpack.c.bf16 %v6185_v33, %v6183_v58  ;;  %v6182_v39 = vld [vmem:[%s12995_s7 + $0x880] sm:$0xff] }
 0xdde   :  { %7780 = vmatpush1.bf16.msra.mxu1 %v7779_v37  ;;  %7812 = vmatpush1.bf16.msra.mxu0 %v7811_v44  ;;  %v6105_v37 = vld [vmem:[%s12993_s5 + $0x840] sm:$0xff]  ;;  %v6148_v44 = vld [vmem:[%s12993_s5 + $0x998] sm:$0xff] }
 0xddf   :  { %7782 = vmatprep.subr.bf16.mxu1 %v7781_v43  ;;  %v6107_v43 = vld [vmem:[%s12993_s5 + $0x850] sm:$0xff]  ;;  %7814 = vmatprep.subr.bf16.mxu0 %v7813_v50  ;;  %v7853_v49 = vpack.c.bf16 %v6148_v44, %v6146_v30  ;;  %v6187_v30 = vld [vmem:[%s12995_s7 + $0x8a8] sm:$0xff]  ;;  %v6189_v44 = vld [vmem:[%s12995_s7 + $0x8b8] sm:$0xff] }
 0xde0   :  { %v7815_v35 = vpack.c.bf16 %v6107_v43, %v6105_v37  ;;  %v6147_v50 = vld [vmem:[%s12993_s5 + $0x990] sm:$0xff]  ;;  %v6150_v43 = vld [vmem:[%s12993_s5 + $0x9a8] sm:$0xff] }
 0xde1   :  { %v7855_v37 = vpack.c.bf16 %v6147_v50, %v6145_v31  ;;  %v7889_v31 = vpack.c.bf16 %v6189_v44, %v6187_v30  ;;  %v6186_v50 = vld [vmem:[%s12995_s7 + $0x8a0] sm:$0xff] }
 0xde2   :  { %7784 = vmatpush1.bf16.msra.mxu1 %v7783_v54  ;;  %7816 = vmatpush1.bf16.msra.mxu0 %v7815_v35  ;;  %v6109_v54 = vld [vmem:[%s12993_s5 + $0x860] sm:$0xff]  ;;  %v6152_v35 = vld [vmem:[%s12993_s5 + $0x9b8] sm:$0xff] }
 0xde3   :  { %7786 = vmatprep.subr.bf16.mxu1 %v7785_v57  ;;  %v6111_v57 = vld [vmem:[%s12993_s5 + $0x870] sm:$0xff]  ;;  %7818 = vmatprep.subr.bf16.mxu0 %v7817_v41  ;;  %v7857_v53 = vpack.c.bf16 %v6152_v35, %v6150_v43  ;;  %v6191_v43 = vld [vmem:[%s12995_s7 + $0x8c8] sm:$0xff]  ;;  %v6193_v35 = vld [vmem:[%s12995_s7 + $0x8d8] sm:$0xff] }
 0xde4   :  { %v7819_v46 = vpack.c.bf16 %v6111_v57, %v6109_v54  ;;  %v6151_v41 = vld [vmem:[%s12993_s5 + $0x9b0] sm:$0xff]  ;;  %v6154_v57 = vld [vmem:[%s12993_s5 + $0x9c8] sm:$0xff] }
 0xde5   :  { %v7859_v54 = vpack.c.bf16 %v6151_v41, %v6149_v52  ;;  %v7893_v52 = vpack.c.bf16 %v6193_v35, %v6191_v43  ;;  %v6190_v41 = vld [vmem:[%s12995_s7 + $0x8c0] sm:$0xff] }
 0xde6   :  { %7788 = vmatpush1.bf16.msra.mxu1 %v7787_v59  ;;  %7820 = vmatpush1.bf16.msra.mxu0 %v7819_v46  ;;  %v6113_v59 = vld [vmem:[%s12993_s5 + $0x880] sm:$0xff]  ;;  %v6156_v46 = vld [vmem:[%s12993_s5 + $0x9d8] sm:$0xff] }
 0xde7   :  { %7790 = vmatprep.subr.bf16.mxu1 %v7789_v63  ;;  %v7823_v63 = vpack.c.bf16 %v6115_v42, %v6113_v59  ;;  %7822 = vmatprep.subr.bf16.mxu0 %v7821_v51  ;;  %v7861_v61 = vpack.c.bf16 %v6156_v46, %v6154_v57  ;;  %v6155_v51 = vld [vmem:[%s12993_s5 + $0x9d0] sm:$0xff]  ;;  %v6158_v42 = vld [vmem:[%s12993_s5 + $0x9e8] sm:$0xff]  ;;  %v6197_v46 = vld [vmem:[%s12995_s7 + $0x8f8] sm:$0xff] }
 0xde8   :  { %v7863_v59 = vpack.c.bf16 %v6155_v51, %v6153_v62  ;;  %v6195_v57 = vld [vmem:[%s12995_s7 + $0x8e8] sm:$0xff] }
 0xde9   :  { %v7897_v51 = vpack.c.bf16 %v6197_v46, %v6195_v57 }
 0xdea   :  { %7792 = vmatpush1.bf16.msra.mxu1 %v7791_v7  ;;  %7824 = vmatpush1.bf16.msra.mxu0 %v7823_v63  ;;  %v6122_v7 = vld [vmem:[%s12993_s5 + $0x8c8] sm:$0xff]  ;;  %v6160_v63 = vld [vmem:[%s12993_s5 + $0x9f8] sm:$0xff] }
 0xdeb   :  { %7794 = vmatprep.subr.bf16.mxu1 %v7793_v13  ;;  %7826 = vmatprep.subr.bf16.mxu0 %v7825_v4  ;;  %v7829_v11 = vpack.c.bf16 %v6124_v8, %v6122_v7  ;;  %v6121_v13 = vld [vmem:[%s12993_s5 + $0x8c0] sm:$0xff]  ;;  %v7865_v45 = vpack.c.bf16 %v6160_v63, %v6158_v42  ;;  %v6159_v4 = vld [vmem:[%s12993_s5 + $0x9f0] sm:$0xff] }
 0xdec   :  { %v7831_v16 = vpack.c.bf16 %v6123_v14, %v6121_v13  ;;  %v7867_v60 = vpack.c.bf16 %v6159_v4, %v6157_v56  ;;  %v6196_v42 = vld [vmem:[%s12995_s7 + $0x8f0] sm:$0xff]  ;;  %v6008_v63 = vld [vmem:[%s13003_s12 + $0x3] ss:$0 sm:$0xff] }
 0xdee   :  { %7796 = vmatpush1.bf16.msra.mxu1 %v7795_v10  ;;  %7828 = vmatpush1.bf16.msra.mxu0 %v7827_v5  ;;  %v6125_v10 = vld [vmem:[%s12993_s5 + $0x8e0] sm:$0xff] }
 0xdef   :  { %7798 = vmatprep.subr.bf16.mxu1 %v7797_v15  ;;  %7830 = vmatprep.subr.bf16.mxu0 %v7829_v11  ;;  %v6127_v15 = vld [vmem:[%s12993_s5 + $0x8f0] sm:$0xff]  ;;  %v5974_v5 = vld [vmem:[%s13001_s10 + $0x3] ss:$0 sm:$0xff] }
 0xdf0   :  { %v7835_v6 = vpack.c.bf16 %v6127_v15, %v6125_v10  ;;  %v7869_v15 = vpack.c.bf16 %v6169_v19, %v6167_v18 }
 0xdf2   :  { %7800 = vmatpush1.bf16.msra.mxu1 %v7799_v2  ;;  %7832 = vmatpush1.bf16.msra.mxu0 %v7831_v16  ;;  %v6129_v2 = vld [vmem:[%s12993_s5 + $0x900] sm:$0xff] }
 0xdf3   :  { %7802 = vmatprep.subr.bf16.mxu1 %v7801_v24  ;;  %7834 = vmatprep.subr.bf16.mxu0 %v7833_v48  ;;  %v6131_v24 = vld [vmem:[%s12993_s5 + $0x910] sm:$0xff]  ;;  %v6166_v48 = vld [vmem:[%s12995_s7 + $0x800] sm:$0xff] }
 0xdf4   :  { %v7839_v17 = vpack.c.bf16 %v6131_v24, %v6129_v2  ;;  %v7873_v2 = vpack.c.bf16 %v6173_v21, %v6171_v0  ;;  %v6170_v24 = vld [vmem:[%s12995_s7 + $0x820] sm:$0xff] }
 0xdf6   :  { %7804 = vmatpush1.bf16.msra.mxu1 %v7803_v29  ;;  %7836 = vmatpush1.bf16.msra.mxu0 %v7835_v6  ;;  %v6136_v29 = vld [vmem:[%s12993_s5 + $0x938] sm:$0xff]  ;;  %v6168_v6 = vld [vmem:[%s12995_s7 + $0x810] sm:$0xff] }
 0xdf7   :  { %7838 = vmatprep.subr.bf16.mxu0 %v7837_v9  ;;  %v7841_v47 = vpack.c.bf16 %v6136_v29, %v6134_v27  ;;  %v7871_v9 = vpack.c.bf16 %v6168_v6, %v6166_v48  ;;  %v6175_v27 = vld [vmem:[%s12995_s7 + $0x848] sm:$0xff]  ;;  %7870 = vmatprep.subr.bf16.mxu1 %v7869_v15  ;;  %v6177_v29 = vld [vmem:[%s12995_s7 + $0x858] sm:$0xff] }
 0xdf9   :  { %4371 = vmatmul.mubr.f32.vlgmr.msra.gmra.mrb[48].mxu1 %v4224_v36  ;;  %v6135_v36 = vld [vmem:[%s12993_s5 + $0x930] sm:$0xff] }
 0xdfa   :  { %4376 = vmatprep.mubr.f32.mxu1 %v4227_v28  ;;  %7840 = vmatpush1.bf16.msra.mxu0 %v7839_v17  ;;  %v7843_v23 = vpack.c.bf16 %v6135_v36, %v6133_v55  ;;  %v6138_v28 = vld [vmem:[%s12993_s5 + $0x948] sm:$0xff]  ;;  %v6172_v17 = vld [vmem:[%s12995_s7 + $0x830] sm:$0xff]  ;;  %v7877_v55 = vpack.c.bf16 %v6177_v29, %v6175_v27  ;;  %v6174_v36 = vld [vmem:[%s12995_s7 + $0x840] sm:$0xff] }
 0xdfb   :  { %7842 = vmatprep.subr.bf16.mxu0 %v7841_v47  ;;  %7872 = vmatpush1.bf16.msra.mxu1 %v7871_v9  ;;  %v7875_v47 = vpack.c.bf16 %v6172_v17, %v6170_v24 }
 0xdfc   :  { %7874 = vmatprep.subr.bf16.mxu1 %v7873_v2 }
 0xdfd   :  { %4377 = vmatmul.mubr.f32.gmra.mrb[50].mxu1 %v4226_v22  ;;  %v6140_v22 = vld [vmem:[%s12993_s5 + $0x958] sm:$0xff] }
 0xdfe   :  { %7844 = vmatpush1.bf16.msra.mxu0 %v7843_v23  ;;  %v7845_v20 = vpack.c.bf16 %v6140_v22, %v6138_v28  ;;  %v6176_v23 = vld [vmem:[%s12995_s7 + $0x850] sm:$0xff]  ;;  %v6179_v28 = vld [vmem:[%s12995_s7 + $0x868] sm:$0xff]  ;;  %v6181_v22 = vld [vmem:[%s12995_s7 + $0x878] sm:$0xff] }
 0xdff   :  { %7876 = vmatpush1.bf16.msra.mxu1 %v7875_v47  ;;  %v7881_v3 = vpack.c.bf16 %v6181_v22, %v6179_v28 }
 0xe00   :  { %7846 = vmatprep.subr.bf16.mxu0 %v7845_v20  ;;  %v7879_v20 = vpack.c.bf16 %v6176_v23, %v6174_v36  ;;  %7878 = vmatprep.subr.bf16.mxu1 %v7877_v55 }
 0xe02   :  { %7848 = vmatpush1.bf16.msra.mxu0 %v7847_v25  ;;  %v6180_v25 = vld [vmem:[%s12995_s7 + $0x870] sm:$0xff] }
 0xe03   :  { %7850 = vmatprep.subr.bf16.mxu0 %v7849_v26  ;;  %7880 = vmatpush1.bf16.msra.mxu1 %v7879_v20  ;;  %v7883_v26 = vpack.c.bf16 %v6180_v25, %v6178_v38 }
 0xe04   :  { %7882 = vmatprep.subr.bf16.mxu1 %v7881_v3 }
 0xe06   :  { %7852 = vmatpush1.bf16.msra.mxu0 %v7851_v40  ;;  %v6184_v40 = vld [vmem:[%s12995_s7 + $0x890] sm:$0xff] }
 0xe07   :  { %7854 = vmatprep.subr.bf16.mxu0 %v7853_v49  ;;  %7884 = vmatpush1.bf16.msra.mxu1 %v7883_v26  ;;  %v7887_v49 = vpack.c.bf16 %v6184_v40, %v6182_v39  ;;  %v12627_v40 = vld [vmem:[%s13005_s14] ss:$0 sm:$0xff] }
 0xe08   :  { %7886 = vmatprep.subr.bf16.mxu1 %v7885_v12 }
 0xe0a   :  { %7856 = vmatpush1.bf16.msra.mxu0 %v7855_v37  ;;  %v6188_v37 = vld [vmem:[%s12995_s7 + $0x8b0] sm:$0xff] }
 0xe0b   :  { %7858 = vmatprep.subr.bf16.mxu0 %v7857_v53  ;;  %7888 = vmatpush1.bf16.msra.mxu1 %v7887_v49  ;;  %v7891_v53 = vpack.c.bf16 %v6188_v37, %v6186_v50 }
 0xe0c   :  { %7890 = vmatprep.subr.bf16.mxu1 %v7889_v31 }
 0xe0e   :  { %7860 = vmatpush1.bf16.msra.mxu0 %v7859_v54  ;;  %v6192_v54 = vld [vmem:[%s12995_s7 + $0x8d0] sm:$0xff] }
 0xe0f   :  { %7862 = vmatprep.subr.bf16.mxu0 %v7861_v61  ;;  %7892 = vmatpush1.bf16.msra.mxu1 %v7891_v53  ;;  %v7895_v61 = vpack.c.bf16 %v6192_v54, %v6190_v41  ;;  %v6092_v41 = vld [vmem:[%s12996_s4 + $0x8] sm:$0x3] }
 0xe10   :  { %7894 = vmatprep.subr.bf16.mxu1 %v7893_v52  ;;  %v4299_v54 = vrot.slane %v6092_v41, %v8830_v32  ;;  %v4303_v57 = vrot.slane %v6092_v41, %v8835_v34 }
 0xe12   :  { %7864 = vmatpush1.bf16.msra.mxu0 %v7863_v59  ;;  %v6194_v59 = vld [vmem:[%s12995_s7 + $0x8e0] sm:$0xff] }
 0xe13   :  { %7866 = vmatprep.subr.bf16.mxu0 %v7865_v45  ;;  %7896 = vmatpush1.bf16.msra.mxu1 %v7895_v61  ;;  %v7899_v4 = vpack.c.bf16 %v6196_v42, %v6194_v59 }
 0xe14   :  { %7898 = vmatprep.subr.bf16.mxu1 %v7897_v51 }
 0xe16   :  { %7868 = vmatpush1.bf16.msra.mxu0 %v7867_v60 }
 0xe17   :  { %7900 = vmatpush1.bf16.msra.mxu1 %v7899_v4 }
 0xe6c   :  { %v6567_v1 = vpop.f32.mrb[40].mxu1 }
 0xe6d   :  { %v6568_v7 = vpop.f32.mrb[41].mxu1 }
 0xe6e   :  { %v6569_v8 = vadd.f32 %v6568_v7, %v6567_v1  ;;  %v12619_v7 = vld [vmem:[%s13004_s13] ss:$0 sm:$0xff] }
 0xe70   :  { %v3876_v11 = vadd.f32 %v6569_v8, %v5974_v5  ;;  %v6570_v13 = vpop.f32.mrb[42].mxu1 }
 0xe71   :  { %v6571_v14 = vpop.f32.mrb[43].mxu1 }
 0xe72   :  { %6009 = vst.msk [vmem:[%s13002_s15 + $0x30] sm:$0xff] %vm1054_vm4, %v3876_v11  ;;  %v6572_v16 = vadd.f32 %v6571_v14, %v6570_v13 }
 0xe74   :  { %v3881_v10 = vadd.f32 %v6572_v16, %v5974_v5 }
 0xe76   :  { %6010 = vst.msk [vmem:[%s13002_s15 + $0x38] sm:$0xff] %vm1054_vm4, %v3881_v10 }
 0xe8c   :  { %v6605_v62 = vpop.f32.mrb[44].mxu1 }
 0xe8d   :  { %v6606_v45 = vpop.f32.mrb[45].mxu1 }
 0xe8e   :  { %v6607_v56 = vadd.f32 %v6606_v45, %v6605_v62 }
 0xe90   :  { %v3992_v60 = vadd.f32 %v6607_v56, %v6008_v63  ;;  %v6608_v1 = vpop.f32.mrb[46].mxu1 }
 0xe91   :  { %v6609_v5 = vpop.f32.mrb[47].mxu1 }
 0xe92   :  { %v4000_v8 = vsub.f32 %v12619_v7, %v3992_v60  ;;  %v6610_v11 = vadd.f32 %v6609_v5, %v6608_v1 }
 0xe94   :  { %v4008_v13 = vand.u32 2147483647, %v4000_v8  ;;  %v3997_v14 = vadd.f32 %v6610_v11, %v6008_v63  ;;  %v4002_v23 = vmax.f32 %v4000_v8, 0.0  ;;  %vm4004_vm3 = vcmp.ne.f32.partialorder %v4000_v8, %v4000_v8 }
 0xe96   :  { %v4010_v16 = vsub.f32 0.0, %v4008_v13  ;;  %v4001_v18 = vsub.f32 %v12619_v7, %v3997_v14 }
 0xe98   :  { %v4012_v19 = vmul.f32 1.442695, %v4010_v16  ;;  %v4009_v48 = vand.u32 2147483647, %v4001_v18  ;;  %v4003_v33 = vmax.f32 %v4001_v18, 0.0  ;;  %vm4005_vm1 = vcmp.ne.f32.partialorder %v4001_v18, %v4001_v18 }
 0xe9a   :  { %8331 = vpow2.f32 %v4012_v19  ;;  %v4011_v10 = vsub.f32 0.0, %v4009_v48 }
 0xe9c   :  { %v4014_v15 = vmul.f32 1.442695, %v4011_v10 }
 0xe9e   :  { %8333 = vpow2.f32 %v4014_v15 }
 0xea4   :  { %v8332_v6 = vpop.eup %8331 }
 0xea5   :  { %v4016_v0 = vadd.f32 1.0, %v8332_v6  ;;  %v4019_v2 = vmul.f32 -0.5, %v8332_v6  ;;  %v4022_v27 = vand.u32 2147483647, %v8332_v6 }
 0xea7   :  { %8335 = vlog2.f32 %v4016_v0  ;;  %v4020_v24 = vadd.f32 1.0, %v4019_v2  ;;  %vm4023_vm2 = vcmp.lt.f32.partialorder %v4022_v27, 0.0004427343 }
 0xea8   :  { %v8334_v21 = vpop.eup %8333 }
 0xea9   :  { %v4025_v9 = vadd.f32 1.0, %v8334_v21  ;;  %v4028_v17 = vmul.f32 -0.5, %v8334_v21  ;;  %v4021_v55 = vmul.f32 %v8332_v6, %v4020_v24  ;;  %v4031_v28 = vand.u32 2147483647, %v8334_v21 }
 0xeab   :  { %8337 = vlog2.f32 %v4025_v9  ;;  %v4029_v36 = vadd.f32 1.0, %v4028_v17  ;;  %vm4032_vm0 = vcmp.lt.f32.partialorder %v4031_v28, 0.0004427343 }
 0xead   :  { %v4030_v25 = vmul.f32 %v8334_v21, %v4029_v36 }
 0xeb1   :  { %v8336_v29 = vpop.eup %8335 }
 0xeb2   :  { %v4018_v47 = vmul.f32 0.6931472, %v8336_v29 }
 0xeb4   :  { %v4024_v22 = vsel %vm4023_vm2, %v4021_v55, %v4018_v47 }
 0xeb5   :  { %v8338_v20 = vpop.eup %8337  ;;  %v4034_v3 = vadd.f32 %v4024_v22, %v4002_v23 }
 0xeb6   :  { %v4027_v38 = vmul.f32 0.6931472, %v8338_v20 }
 0xeb7   :  { %v4036_v58 = vsel %vm4004_vm3, %v4000_v8, %v4034_v3 }
 0xeb8   :  { %v4038_v26 = vsub.f32 %v12619_v7, %v4036_v58  ;;  %v4033_v12 = vsel %vm4032_vm0, %v4030_v25, %v4027_v38 }
 0xeb9   :  { %v4035_v39 = vadd.f32 %v4033_v12, %v4003_v33 }
 0xeba   :  { %v4040_v30 = vsub.f32 %v4038_v26, %v12627_v40 }
 0xebb   :  { %v4037_v44 = vsel %vm4005_vm1, %v4001_v18, %v4035_v39 }
 0xebc   :  { %v4048_v49 = vand.u32 2147483647, %v4040_v30  ;;  %v4039_v31 = vsub.f32 %v12619_v7, %v4037_v44  ;;  %v4042_v0 = vmax.f32 %v4040_v30, 0.0  ;;  %vm4044_vm6 = vcmp.ne.f32.partialorder %v4040_v30, %v4040_v30 }
 0xebe   :  { %v4050_v50 = vsub.f32 0.0, %v4048_v49  ;;  %v12632_v37 = vsub.f32 %v4039_v31, %v12627_v40 }
 0xec0   :  { %v4052_v43 = vmul.f32 1.442695, %v4050_v50  ;;  %v4049_v35 = vand.u32 2147483647, %v12632_v37  ;;  %v4043_v23 = vmax.f32 %v12632_v37, 0.0  ;;  %vm4045_vm8 = vcmp.ne.f32.partialorder %v12632_v37, %v12632_v37 }
 0xec2   :  { %8339 = vpow2.f32 %v4052_v43  ;;  %v4051_v53 = vsub.f32 0.0, %v4049_v35 }
 0xec4   :  { %v4054_v52 = vmul.f32 1.442695, %v4051_v53 }
 0xec6   :  { %8341 = vpow2.f32 %v4054_v52 }
 0xecc   :  { %v8340_v46 = vpop.eup %8339  ;;  %v4372_v61 = vpop.f32.mrb[48].mxu1 }
 0xecd   :  { %v4056_v62 = vadd.f32 1.0, %v8340_v46  ;;  %v12640_v51 = vadd.f32 %v4372_v61, %v4299_v54  ;;  %v4374_v59 = vpop.f32.mrb[49].mxu1  ;;  %v4059_v5 = vmul.f32 -0.5, %v8340_v46  ;;  %v4062_v19 = vand.u32 2147483647, %v8340_v46  ;;  %v6198_v61 = vld [vmem:[%s12995_s7 + $0x900] sm:$0xff] }
 0xece   :  { %v4375_v42 = vadd.f32 %v4374_v59, %v4303_v57  ;;  %v6203_v59 = vld [vmem:[%s12995_s7 + $0x928] sm:$0xff] }
 0xecf   :  { %8343 = vlog2.f32 %v4056_v62  ;;  %v6093_v63 = vmul.f32 -1.442695, %v12640_v51  ;;  %v4060_v16 = vadd.f32 1.0, %v4059_v5  ;;  %vm4063_vm5 = vcmp.lt.f32.partialorder %v4062_v19, 0.0004427343  ;;  %v6200_v62 = vld [vmem:[%s12995_s7 + $0x910] sm:$0xff] }
 0xed0   :  { %v8342_v45 = vpop.eup %8341  ;;  %v6094_v56 = vmul.f32 -1.442695, %v4375_v42  ;;  %v4378_v4 = vpop.f32.mrb[50].mxu1  ;;  %v6210_v19 = vld [vmem:[%s12995_s7 + $0x960] sm:$0xff] }
 0xed1   :  { %v4065_v60 = vadd.f32 1.0, %v8342_v45  ;;  %v4380_v1 = vpop.f32.mrb[51].mxu1  ;;  %8345 = vpow2.f32 %v6093_v63  ;;  %v4379_v8 = vadd.f32 %v4378_v4, %v4299_v54  ;;  %v4068_v18 = vmul.f32 -0.5, %v8342_v45  ;;  %v6199_v54 = vld [vmem:[%s12995_s7 + $0x908] sm:$0xff] }
 0xed2   :  { %v4381_v11 = vadd.f32 %v4380_v1, %v4303_v57  ;;  %v4061_v15 = vmul.f32 %v8340_v46, %v4060_v16  ;;  %v4071_v21 = vand.u32 2147483647, %v8342_v45  ;;  %v6201_v57 = vld [vmem:[%s12995_s7 + $0x918] sm:$0xff] }
 0xed3   :  { %8347 = vlog2.f32 %v4065_v60  ;;  %v6095_v13 = vmul.f32 -1.442695, %v4379_v8  ;;  %v4069_v6 = vadd.f32 1.0, %v4068_v18  ;;  %v7901_v46 = vpack.c.bf16 %v6201_v57, %v6199_v54  ;;  %v6207_v60 = vld [vmem:[%s12995_s7 + $0x948] sm:$0xff]  ;;  %v6209_v1 = vld [vmem:[%s12995_s7 + $0x958] sm:$0xff] }
 0xed4   :  { %8349 = vpow2.f32 %v6094_v56  ;;  %v6096_v14 = vmul.f32 -1.442695, %v4381_v11  ;;  %vm4072_vm7 = vcmp.lt.f32.partialorder %v4071_v21, 0.0004427343  ;;  %v6204_v56 = vld [vmem:[%s12995_s7 + $0x930] sm:$0xff]  ;;  %v7909_v5 = vpack.c.bf16 %v6209_v1, %v6207_v60  ;;  %v6213_v16 = vld [vmem:[%s12995_s7 + $0x978] sm:$0xff] }
 0xed5   :  { %8351 = vpow2.f32 %v6095_v13  ;;  %v4070_v55 = vmul.f32 %v8342_v45, %v4069_v6  ;;  %7902 = vmatprep.subr.bf16.mxu1 %v7901_v46  ;;  %v6202_v45 = vld [vmem:[%s12995_s7 + $0x920] sm:$0xff]  ;;  %v6217_v6 = vld [vmem:[%s12995_s7 + $0x998] sm:$0xff] }
 0xed6   :  { %8353 = vpow2.f32 %v6096_v14  ;;  %v7907_v4 = vpack.c.bf16 %v6204_v56, %v6202_v45  ;;  %v6211_v14 = vld [vmem:[%s12995_s7 + $0x968] sm:$0xff]  ;;  %v6214_v21 = vld [vmem:[%s12995_s7 + $0x980] sm:$0xff] }
 0xed7   :  { %v7913_v18 = vpack.c.bf16 %v6213_v16, %v6211_v14  ;;  %v6251_v16 = vld [vmem:[%s12998_s9 + $0x480] sm:$0xff] }
 0xed9   :  { %v8344_v48 = vpop.eup %8343 }
 0xeda   :  { %v4058_v10 = vmul.f32 0.6931472, %v8344_v48  ;;  %v6212_v48 = vld [vmem:[%s12995_s7 + $0x970] sm:$0xff] }
 0xedb   :  { %v8346_v9 = vpop.eup %8345 }
 0xedc   :  { %v4064_v2 = vsel %vm4063_vm5, %v4061_v15, %v4058_v10  ;;  %v4395_v27 = vadd.f32 1.0, %v8346_v9  ;;  %v7915_v10 = vpack.c.bf16 %v6212_v48, %v6210_v19  ;;  %v6215_v15 = vld [vmem:[%s12995_s7 + $0x988] sm:$0xff]  ;;  %v6216_v9 = vld [vmem:[%s12995_s7 + $0x990] sm:$0xff]  ;;  %v6235_v48 = vld [vmem:[%s12998_s9 + $0x400] sm:$0xff] }
 0xedd   :  { %v8348_v24 = vpop.eup %8347  ;;  %v4074_v17 = vadd.f32 %v4064_v2, %v4042_v0  ;;  %v7917_v0 = vpack.c.bf16 %v6217_v6, %v6215_v15  ;;  %v7919_v2 = vpack.c.bf16 %v6216_v9, %v6214_v21  ;;  %v6253_v6 = vld [vmem:[%s12998_s9 + $0x490] sm:$0xff] }
 0xede   :  { %v8350_v29 = vpop.eup %8349  ;;  %v4067_v47 = vmul.f32 0.6931472, %v8348_v24  ;;  %8355 = vrcp.f32 %v4395_v27  ;;  %v6219_v24 = vld [vmem:[%s12995_s7 + $0x9a8] sm:$0xff]  ;;  %v6237_v9 = vld [vmem:[%s12998_s9 + $0x410] sm:$0xff] }
 0xedf   :  { %v4076_v36 = vsel %vm4044_vm6, %v4040_v30, %v4074_v17  ;;  %v4396_v28 = vadd.f32 1.0, %v8350_v29  ;;  %v8352_v22 = vpop.eup %8351  ;;  %v6221_v17 = vld [vmem:[%s12995_s7 + $0x9b8] sm:$0xff]  ;;  %v6218_v29 = vld [vmem:[%s12995_s7 + $0x9a0] sm:$0xff] }
 0xee0   :  { %v4078_v20 = vadd.f32 %v12627_v40, %v4076_v36  ;;  %v4073_v3 = vsel %vm4072_vm7, %v4070_v55, %v4067_v47  ;;  %v8354_v38 = vpop.eup %8353  ;;  %v4397_v58 = vadd.f32 1.0, %v8352_v22  ;;  %v7921_v27 = vpack.c.bf16 %v6221_v17, %v6219_v24  ;;  %v6220_v47 = vld [vmem:[%s12995_s7 + $0x9b0] sm:$0xff]  ;;  %v6223_v36 = vld [vmem:[%s12995_s7 + $0x9c8] sm:$0xff]  ;;  %v6222_v22 = vld [vmem:[%s12995_s7 + $0x9c0] sm:$0xff] }
 0xee1   :  { %v4075_v25 = vadd.f32 %v4073_v3, %v4043_v23  ;;  %8357 = vrcp.f32 %v4396_v28  ;;  %v4398_v26 = vadd.f32 1.0, %v8354_v38  ;;  %v7923_v55 = vpack.c.bf16 %v6220_v47, %v6218_v29  ;;  %v6225_v23 = vld [vmem:[%s12995_s7 + $0x9d8] sm:$0xff]  ;;  %v6227_v38 = vld [vmem:[%s12995_s7 + $0x9e8] sm:$0xff]  ;;  %v6255_v17 = vld [vmem:[%s12998_s9 + $0x4a0] sm:$0xff] }
 0xee2   :  { %v4083_v33 = vmul.f32 1.442695, %v4078_v20  ;;  %8359 = vrcp.f32 %v4397_v58  ;;  %v7925_v28 = vpack.c.bf16 %v6225_v23, %v6223_v36  ;;  %v6224_v20 = vld [vmem:[%s12995_s7 + $0x9d0] sm:$0xff]  ;;  %v6239_v47 = vld [vmem:[%s12998_s9 + $0x420] sm:$0xff] }
 0xee3   :  { %v4077_v12 = vsel %vm4045_vm8, %v12632_v37, %v4075_v25  ;;  %v7927_v3 = vpack.c.bf16 %v6224_v20, %v6222_v22  ;;  %v6229_v25 = vld [vmem:[%s12995_s7 + $0x9f8] sm:$0xff]  ;;  %v6257_v23 = vld [vmem:[%s12998_s9 + $0x4b0] sm:$0xff] }
 0xee4   :  { %8361 = vpow2.f32 %v4083_v33  ;;  %v4079_v39 = vadd.f32 %v12627_v40, %v4077_v12  ;;  %v7929_v58 = vpack.c.bf16 %v6229_v25, %v6227_v38  ;;  %v6226_v33 = vld [vmem:[%s12995_s7 + $0x9e0] sm:$0xff]  ;;  %v6241_v20 = vld [vmem:[%s12998_s9 + $0x430] sm:$0xff] }
 0xee5   :  { %8363 = vrcp.f32 %v4398_v26  ;;  %v6228_v26 = vld [vmem:[%s12995_s7 + $0x9f0] sm:$0xff]  ;;  %v6259_v25 = vld [vmem:[%s12998_s9 + $0x4c0] sm:$0xff] }
 0xee6   :  { %v4085_v30 = vmul.f32 1.442695, %v4079_v39  ;;  %v7931_v12 = vpack.c.bf16 %v6228_v26, %v6226_v33  ;;  %v6161_v39 = vld [vmem:[%s12997_s6 + $0x8] sm:$0x3]  ;;  %v6243_v26 = vld [vmem:[%s12998_s9 + $0x440] sm:$0xff] }
 0xee8   :  { %8365 = vpow2.f32 %v4085_v30  ;;  %v8356_v44 = vpop.eup %8355  ;;  %v4482_v30 = vrot.slane %v6161_v39, %v8830_v32 }
 0xee9   :  { %v4407_v43 = vmul.f32 %v8356_v44, %v12640_v51  ;;  %v7903_v51 = vpack.c.bf16 %v6200_v62, %v6198_v61  ;;  %v4486_v44 = vrot.slane %v6161_v39, %v8835_v34 }
 0xeeb   :  { %v8358_v49 = vpop.eup %8357  ;;  %7904 = vmatpush1.bf16.msra.mxu1 %v7903_v51 }
 0xeec   :  { %v4408_v31 = vmul.f32 %v8358_v49, %v4375_v42  ;;  %v8360_v50 = vpop.eup %8359  ;;  %v6205_v42 = vld [vmem:[%s12995_s7 + $0x938] sm:$0xff] }
 0xeed   :  { %v4409_v52 = vmul.f32 %v8360_v50, %v4379_v8  ;;  %v7905_v63 = vpack.c.bf16 %v6205_v42, %v6203_v59  ;;  %v6206_v8 = vld [vmem:[%s12995_s7 + $0x940] sm:$0xff] }
 0xeee   :  { %v8362_v35 = vpop.eup %8361  ;;  %4553 = vmatprep.mubr.f32.mxu0 %v4408_v31 }
 0xeef   :  { %v8364_v53 = vpop.eup %8363  ;;  %6011 = vst.msk [vmem:[%s13006_s16 + $0x30] sm:$0xff] %vm1054_vm4, %v8362_v35  ;;  %4554 = vmatmul.mubr.f32.vlgmr.msra.gmra.mrb[52].mxu0 %v4407_v43  ;;  %7906 = vmatprep.subr.bf16.mxu1 %v7905_v63 }
 0xef0   :  { %v4410_v37 = vmul.f32 %v8364_v53, %v4381_v11  ;;  %7908 = vmatpush1.bf16.msra.mxu1 %v7907_v4  ;;  %v6208_v11 = vld [vmem:[%s12995_s7 + $0x950] sm:$0xff] }
 0xef1   :  { %v7911_v13 = vpack.c.bf16 %v6208_v11, %v6206_v8  ;;  %7910 = vmatprep.subr.bf16.mxu1 %v7909_v5 }
 0xef2   :  { %v8366_v41 = vpop.eup %8365  ;;  %4559 = vmatprep.mubr.f32.mxu0 %v4410_v37 }
 0xef3   :  { %6012 = vst.msk [vmem:[%s13006_s16 + $0x38] sm:$0xff] %vm1054_vm4, %v8366_v41  ;;  %4560 = vmatmul.mubr.f32.gmra.mrb[54].mxu0 %v4409_v52 }
 0xef4   :  { %7912 = vmatpush1.bf16.msra.mxu1 %v7911_v13 }
 0xef5   :  { %7914 = vmatprep.subr.bf16.mxu1 %v7913_v18  ;;  %v6252_v18 = vld [vmem:[%s12998_s9 + $0x488] sm:$0xff] }
 0xef6   :  { %v7933_v19 = vpack.c.bf16 %v6252_v18, %v6251_v16 }
 0xef8   :  { %7916 = vmatpush1.bf16.msra.mxu1 %v7915_v10  ;;  %v6236_v10 = vld [vmem:[%s12998_s9 + $0x408] sm:$0xff]  ;;  %7934 = vmatprep.subr.bf16.mxu0 %v7933_v19 }
 0xef9   :  { %7918 = vmatprep.subr.bf16.mxu1 %v7917_v0  ;;  %v7935_v15 = vpack.c.bf16 %v6236_v10, %v6235_v48  ;;  %v6254_v0 = vld [vmem:[%s12998_s9 + $0x498] sm:$0xff] }
 0xefa   :  { %v7937_v21 = vpack.c.bf16 %v6254_v0, %v6253_v6 }
 0xefb   :  { %7936 = vmatpush3.bf16.msra.mxu0 %v7935_v15 }
 0xefc   :  { %7920 = vmatpush1.bf16.msra.mxu1 %v7919_v2  ;;  %v6238_v2 = vld [vmem:[%s12998_s9 + $0x418] sm:$0xff]  ;;  %7938 = vmatprep.subr.bf16.mxu0 %v7937_v21 }
 0xefd   :  { %7922 = vmatprep.subr.bf16.mxu1 %v7921_v27  ;;  %v7939_v24 = vpack.c.bf16 %v6238_v2, %v6237_v9  ;;  %v6256_v27 = vld [vmem:[%s12998_s9 + $0x4a8] sm:$0xff] }
 0xefe   :  { %v7941_v29 = vpack.c.bf16 %v6256_v27, %v6255_v17  ;;  %v6269_v17 = vld [vmem:[%s12999_s11 + $0x400] sm:$0xff]  ;;  %v6270_v27 = vld [vmem:[%s12999_s11 + $0x408] sm:$0xff] }
 0xeff   :  { %7940 = vmatpush3.bf16.msra.mxu0 %v7939_v24 }
 0xf00   :  { %7924 = vmatpush1.bf16.msra.mxu1 %v7923_v55  ;;  %v6240_v55 = vld [vmem:[%s12998_s9 + $0x428] sm:$0xff]  ;;  %7942 = vmatprep.subr.bf16.mxu0 %v7941_v29 }
 0xf01   :  { %7926 = vmatprep.subr.bf16.mxu1 %v7925_v28  ;;  %v7943_v36 = vpack.c.bf16 %v6240_v55, %v6239_v47  ;;  %v6258_v28 = vld [vmem:[%s12998_s9 + $0x4b8] sm:$0xff]  ;;  %v6287_v47 = vld [vmem:[%s12999_s11 + $0x490] sm:$0xff] }
 0xf02   :  { %v7945_v22 = vpack.c.bf16 %v6258_v28, %v6257_v23  ;;  %v6288_v55 = vld [vmem:[%s12999_s11 + $0x498] sm:$0xff]  ;;  %v7967_v28 = vpack.c.bf16 %v6270_v27, %v6269_v17  ;;  %v6302_v27 = vld [vmem:[%s13003_s12 + $0x4] ss:$0 sm:$0xff] }
 0xf03   :  { %7944 = vmatpush3.bf16.msra.mxu0 %v7943_v36 }
 0xf04   :  { %7928 = vmatpush1.bf16.msra.mxu1 %v7927_v3  ;;  %v6242_v3 = vld [vmem:[%s12998_s9 + $0x438] sm:$0xff]  ;;  %7946 = vmatprep.subr.bf16.mxu0 %v7945_v22 }
 0xf05   :  { %7930 = vmatprep.subr.bf16.mxu1 %v7929_v58  ;;  %v7947_v38 = vpack.c.bf16 %v6242_v3, %v6241_v20  ;;  %v6260_v58 = vld [vmem:[%s12998_s9 + $0x4c8] sm:$0xff]  ;;  %v7969_v20 = vpack.c.bf16 %v6288_v55, %v6287_v47  ;;  %v6271_v3 = vld [vmem:[%s12999_s11 + $0x410] sm:$0xff] }
 0xf06   :  { %v7949_v33 = vpack.c.bf16 %v6260_v58, %v6259_v25  ;;  %v6289_v58 = vld [vmem:[%s12999_s11 + $0x4a0] sm:$0xff] }
 0xf07   :  { %7948 = vmatpush3.bf16.msra.mxu0 %v7947_v38  ;;  %v6272_v38 = vld [vmem:[%s12999_s11 + $0x418] sm:$0xff] }
 0xf08   :  { %7932 = vmatpush1.bf16.msra.mxu1 %v7931_v12  ;;  %v6244_v12 = vld [vmem:[%s12998_s9 + $0x448] sm:$0xff]  ;;  %7950 = vmatprep.subr.bf16.mxu0 %v7949_v33 }
 0xf09   :  { %v7951_v39 = vpack.c.bf16 %v6244_v12, %v6243_v26  ;;  %v6290_v33 = vld [vmem:[%s12999_s11 + $0x4a8] sm:$0xff] }
 0xf0b   :  { %7952 = vmatpush3.bf16.msra.mxu0 %v7951_v39  ;;  %v7971_v39 = vpack.c.bf16 %v6272_v38, %v6271_v3 }
 0xfc2   :  { %v4555_v49 = vpop.f32.mrb[52].mxu0 }
 0xfc3   :  { %v4556_v31 = vadd.f32 %v4555_v49, %v4482_v30  ;;  %v4557_v50 = vpop.f32.mrb[53].mxu0 }
 0xfc4   :  { %v4558_v43 = vadd.f32 %v4557_v50, %v4486_v44  ;;  %v6246_v50 = vld [vmem:[%s12998_s9 + $0x458] sm:$0xff] }
 0xfc5   :  { %v6162_v35 = vmul.f32 -1.442695, %v4556_v31 }
 0xfc6   :  { %v6163_v53 = vmul.f32 -1.442695, %v4558_v43  ;;  %v4561_v37 = vpop.f32.mrb[54].mxu0 }
 0xfc7   :  { %8367 = vpow2.f32 %v6162_v35  ;;  %v4562_v52 = vadd.f32 %v4561_v37, %v4482_v30  ;;  %v4563_v41 = vpop.f32.mrb[55].mxu0  ;;  %v6261_v30 = vld [vmem:[%s12998_s9 + $0x4d0] sm:$0xff]  ;;  %v6263_v35 = vld [vmem:[%s12998_s9 + $0x4e0] sm:$0xff] }
 0xfc8   :  { %8369 = vpow2.f32 %v6163_v53  ;;  %v4564_v54 = vadd.f32 %v4563_v41, %v4486_v44  ;;  %v6262_v44 = vld [vmem:[%s12998_s9 + $0x4d8] sm:$0xff]  ;;  %v6264_v53 = vld [vmem:[%s12998_s9 + $0x4e8] sm:$0xff] }
 0xfc9   :  { %v6164_v57 = vmul.f32 -1.442695, %v4562_v52  ;;  %v7953_v49 = vpack.c.bf16 %v6262_v44, %v6261_v30  ;;  %v7957_v37 = vpack.c.bf16 %v6264_v53, %v6263_v35  ;;  %v6248_v41 = vld [vmem:[%s12998_s9 + $0x468] sm:$0xff]  ;;  %v7973_v44 = vpack.c.bf16 %v6290_v33, %v6289_v58 }
 0xfca   :  { %v6165_v46 = vmul.f32 -1.442695, %v4564_v54 }
 0xfcb   :  { %8371 = vpow2.f32 %v6164_v57  ;;  %7954 = vmatprep.subr.bf16.mxu0 %v7953_v49  ;;  %v6265_v57 = vld [vmem:[%s12998_s9 + $0x4f0] sm:$0xff]  ;;  %v6273_v49 = vld [vmem:[%s12999_s11 + $0x420] sm:$0xff] }
 0xfcc   :  { %8373 = vpow2.f32 %v6165_v46  ;;  %v6266_v46 = vld [vmem:[%s12998_s9 + $0x4f8] sm:$0xff] }
 0xfd1   :  { %v8368_v61 = vpop.eup %8367 }
 0xfd2   :  { %v8370_v62 = vpop.eup %8369  ;;  %v4578_v51 = vadd.f32 1.0, %v8368_v61  ;;  %v7961_v61 = vpack.c.bf16 %v6266_v46, %v6265_v57 }
 0xfd3   :  { %v4579_v59 = vadd.f32 1.0, %v8370_v62  ;;  %v6249_v62 = vld [vmem:[%s12998_s9 + $0x470] sm:$0xff] }
 0xfd4   :  { %8375 = vrcp.f32 %v4578_v51  ;;  %v6250_v51 = vld [vmem:[%s12998_s9 + $0x478] sm:$0xff] }
 0xfd5   :  { %v8372_v42 = vpop.eup %8371  ;;  %8377 = vrcp.f32 %v4579_v59  ;;  %v7963_v59 = vpack.c.bf16 %v6250_v51, %v6249_v62  ;;  %v6278_v62 = vld [vmem:[%s12999_s11 + $0x448] sm:$0xff]  ;;  %v6295_v51 = vld [vmem:[%s12999_s11 + $0x4d0] sm:$0xff] }
 0xfd6   :  { %v8374_v63 = vpop.eup %8373  ;;  %v4580_v45 = vadd.f32 1.0, %v8372_v42  ;;  %v6285_v42 = vld [vmem:[%s12999_s11 + $0x480] sm:$0xff] }
 0xfd7   :  { %v4581_v56 = vadd.f32 1.0, %v8374_v63  ;;  %v6286_v63 = vld [vmem:[%s12999_s11 + $0x488] sm:$0xff] }
 0xfd8   :  { %8379 = vrcp.f32 %v4580_v45  ;;  %v7965_v45 = vpack.c.bf16 %v6286_v63, %v6285_v42 }
 0xfd9   :  { %8381 = vrcp.f32 %v4581_v56  ;;  %v6230_v56 = vld [vmem:[%s13000_s8 + $0x8] sm:$0x3] }
 0xfde   :  { %v8376_v4 = vpop.eup %8375 }
 0xfdf   :  { %v8378_v60 = vpop.eup %8377  ;;  %v4590_v5 = vmul.f32 %v8376_v4, %v4556_v31  ;;  %v6245_v31 = vld [vmem:[%s12998_s9 + $0x450] sm:$0xff]  ;;  %v4665_v4 = vrot.slane %v6230_v56, %v8830_v32 }
 0xfe0   :  { %v4591_v1 = vmul.f32 %v8378_v60, %v4558_v43  ;;  %v7955_v43 = vpack.c.bf16 %v6246_v50, %v6245_v31  ;;  %v4669_v60 = vrot.slane %v6230_v56, %v8835_v34  ;;  %v6274_v31 = vld [vmem:[%s12999_s11 + $0x428] sm:$0xff]  ;;  %v6291_v50 = vld [vmem:[%s12999_s11 + $0x4b0] sm:$0xff]  ;;  %v6280_v56 = vld [vmem:[%s12999_s11 + $0x458] sm:$0xff] }
 0xfe1   :  { %v7975_v35 = vpack.c.bf16 %v6274_v31, %v6273_v49 }
 0xfe2   :  { %v8380_v8 = vpop.eup %8379  ;;  %4736 = vmatprep.mubr.f32.mxu1 %v4591_v1  ;;  %7956 = vmatpush3.bf16.msra.mxu0 %v7955_v43  ;;  %v6292_v43 = vld [vmem:[%s12999_s11 + $0x4b8] sm:$0xff] }
 0xfe3   :  { %v8382_v11 = vpop.eup %8381  ;;  %4737 = vmatmul.mubr.f32.vlgmr.msra.gmra.mrb[52].mxu1 %v4590_v5  ;;  %v4592_v14 = vmul.f32 %v8380_v8, %v4562_v52  ;;  %v6247_v52 = vld [vmem:[%s12998_s9 + $0x460] sm:$0xff]  ;;  %7958 = vmatprep.subr.bf16.mxu0 %v7957_v37  ;;  %v7977_v53 = vpack.c.bf16 %v6292_v43, %v6291_v50  ;;  %v6275_v37 = vld [vmem:[%s12999_s11 + $0x430] sm:$0xff] }
 0xfe4   :  { %v4593_v13 = vmul.f32 %v8382_v11, %v4564_v54  ;;  %v7959_v54 = vpack.c.bf16 %v6248_v41, %v6247_v52  ;;  %v6276_v52 = vld [vmem:[%s12999_s11 + $0x438] sm:$0xff]  ;;  %v6293_v41 = vld [vmem:[%s12999_s11 + $0x4c0] sm:$0xff] }
 0xfe5   :  { %v7979_v57 = vpack.c.bf16 %v6276_v52, %v6275_v37 }
 0xfe6   :  { %4742 = vmatprep.mubr.f32.mxu1 %v4593_v13  ;;  %7960 = vmatpush3.bf16.msra.mxu0 %v7959_v54  ;;  %v6294_v54 = vld [vmem:[%s12999_s11 + $0x4c8] sm:$0xff] }
 0xfe7   :  { %4743 = vmatmul.mubr.f32.gmra.mrb[54].mxu1 %v4592_v14  ;;  %7962 = vmatprep.subr.bf16.mxu0 %v7961_v61  ;;  %v7981_v46 = vpack.c.bf16 %v6294_v54, %v6293_v41  ;;  %v6277_v61 = vld [vmem:[%s12999_s11 + $0x440] sm:$0xff] }
 0xfe8   :  { %v7983_v42 = vpack.c.bf16 %v6278_v62, %v6277_v61 }
 0xfea   :  { %7964 = vmatpush3.bf16.msra.mxu0 %v7963_v59  ;;  %v6296_v59 = vld [vmem:[%s12999_s11 + $0x4d8] sm:$0xff] }
 0xfeb   :  { %7966 = vmatprep.subr.bf16.mxu0 %v7965_v45  ;;  %v7985_v63 = vpack.c.bf16 %v6296_v59, %v6295_v51  ;;  %v6279_v45 = vld [vmem:[%s12999_s11 + $0x450] sm:$0xff] }
0x10b6   :  { %v4738_v1 = vpop.f32.mrb[52].mxu1 }
0x10b7   :  { %v4739_v5 = vadd.f32 %v4738_v1, %v4665_v4  ;;  %v4740_v8 = vpop.f32.mrb[53].mxu1  ;;  %v7987_v1 = vpack.c.bf16 %v6280_v56, %v6279_v45 }
0x10b8   :  { %v4741_v11 = vadd.f32 %v4740_v8, %v4669_v60  ;;  %v6281_v8 = vld [vmem:[%s12999_s11 + $0x460] sm:$0xff] }
0x10b9   :  { %v6231_v13 = vmul.f32 -1.442695, %v4739_v5 }
0x10ba   :  { %v6232_v14 = vmul.f32 -1.442695, %v4741_v11  ;;  %v4744_v16 = vpop.f32.mrb[54].mxu1 }
0x10bb   :  { %8383 = vpow2.f32 %v6231_v13  ;;  %v4745_v18 = vadd.f32 %v4744_v16, %v4665_v4  ;;  %v4746_v19 = vpop.f32.mrb[55].mxu1  ;;  %v6297_v4 = vld [vmem:[%s12999_s11 + $0x4e0] sm:$0xff]  ;;  %v6299_v13 = vld [vmem:[%s12999_s11 + $0x4f0] sm:$0xff] }
0x10bc   :  { %8385 = vpow2.f32 %v6232_v14  ;;  %v4747_v48 = vadd.f32 %v4746_v19, %v4669_v60  ;;  %v6298_v60 = vld [vmem:[%s12999_s11 + $0x4e8] sm:$0xff]  ;;  %v6300_v14 = vld [vmem:[%s12999_s11 + $0x4f8] sm:$0xff]  ;;  %v6283_v19 = vld [vmem:[%s12999_s11 + $0x470] sm:$0xff] }
0x10bd   :  { %v6233_v10 = vmul.f32 -1.442695, %v4745_v18 }
0x10be   :  { %v6234_v15 = vmul.f32 -1.442695, %v4747_v48 }
0x10bf   :  { %8387 = vpow2.f32 %v6233_v10 }
0x10c0   :  { %8389 = vpow2.f32 %v6234_v15 }
0x10c5   :  { %v8384_v6 = vpop.eup %8383 }
0x10c6   :  { %v8386_v32 = vpop.eup %8385  ;;  %v4761_v0 = vadd.f32 1.0, %v8384_v6  ;;  %v6268_v6 = vld [vmem:[%s13001_s10 + $0x4] ss:$0 sm:$0xff] }
0x10c7   :  { %v4762_v34 = vadd.f32 1.0, %v8386_v32 }
0x10c8   :  { %8391 = vrcp.f32 %v4761_v0 }
0x10c9   :  { %v8388_v21 = vpop.eup %8387  ;;  %8393 = vrcp.f32 %v4762_v34 }
0x10ca   :  { %v8390_v9 = vpop.eup %8389  ;;  %v4763_v2 = vadd.f32 1.0, %v8388_v21 }
0x10cb   :  { %v4764_v24 = vadd.f32 1.0, %v8390_v9 }
0x10cc   :  { %8395 = vrcp.f32 %v4763_v2 }
0x10cd   :  { %8397 = vrcp.f32 %v4764_v24 }
0x10d2   :  { %v8392_v29 = vpop.eup %8391 }
0x10d3   :  { %v8394_v36 = vpop.eup %8393  ;;  %v12878_v22 = vmul.f32 %v8392_v29, %v4739_v5  ;;  %v7989_v5 = vpack.c.bf16 %v6298_v60, %v6297_v4 }
0x10d4   :  { %v4774_v23 = vmul.f32 %v8394_v36, %v4741_v11  ;;  %v6282_v11 = vld [vmem:[%s12999_s11 + $0x468] sm:$0xff] }
0x10d5   :  { %v7991_v16 = vpack.c.bf16 %v6282_v11, %v6281_v8 }
0x10d6   :  { %v8396_v25 = vpop.eup %8395  ;;  %4882 = vmatprep.mubr.f32.mxu0 %v4774_v23 }
0x10d7   :  { %v8398_v26 = vpop.eup %8397  ;;  %4883 = vmatmul.mubr.f32.vlgmr.msra.gmra.mrb[56].mxu0 %v12878_v22  ;;  %v4775_v30 = vmul.f32 %v8396_v25, %v4745_v18  ;;  %v7993_v18 = vpack.c.bf16 %v6300_v14, %v6299_v13 }
0x10d8   :  { %v4776_v12 = vmul.f32 %v8398_v26, %v4747_v48  ;;  %7968 = vmatpush3.bf16.msra.mxu0 %v7967_v28  ;;  %v6284_v48 = vld [vmem:[%s12999_s11 + $0x478] sm:$0xff] }
0x10d9   :  { %7970 = vmatprep.subr.bf16.mxu0 %v7969_v20  ;;  %v7995_v10 = vpack.c.bf16 %v6284_v48, %v6283_v19 }
0x10da   :  { %4887 = vmatprep.mubr.f32.mxu0 %v4776_v12 }
0x10db   :  { %4888 = vmatmul.mubr.f32.gmra.mrb[58].mxu0 %v4775_v30 }
0x10dc   :  { %7972 = vmatpush3.bf16.msra.mxu0 %v7971_v39  ;;  %4998 = vmatprep.mubr.f32.mxu0 %v4774_v23 }
0x10dd   :  { %7974 = vmatprep.subr.bf16.mxu0 %v7973_v44 }
0x10e0   :  { %7976 = vmatpush3.bf16.msra.mxu0 %v7975_v35 }
0x10e1   :  { %7978 = vmatprep.subr.bf16.mxu0 %v7977_v53 }
0x10e4   :  { %7980 = vmatpush3.bf16.msra.mxu0 %v7979_v57 }
0x10e5   :  { %7982 = vmatprep.subr.bf16.mxu0 %v7981_v46 }
0x10e8   :  { %7984 = vmatpush3.bf16.msra.mxu0 %v7983_v42 }
0x10e9   :  { %7986 = vmatprep.subr.bf16.mxu0 %v7985_v63 }
0x10ec   :  { %7988 = vmatpush3.bf16.msra.mxu0 %v7987_v1 }
0x10ed   :  { %7990 = vmatprep.subr.bf16.mxu0 %v7989_v5 }
0x10f0   :  { %7992 = vmatpush3.bf16.msra.mxu0 %v7991_v16 }
0x10f1   :  { %7994 = vmatprep.subr.bf16.mxu0 %v7993_v18 }
0x10f4   :  { %7996 = vmatpush3.bf16.msra.mxu0 %v7995_v10 }
0x10f7   :  { %4999 = vmatmul.mubr.f32.vlgmr.msra.gmra.mrb[60].mxu0 %v12878_v22 }
0x10f8   :  { %5003 = vmatprep.mubr.f32.mxu0 %v4776_v12 }
0x10fb   :  { %5004 = vmatmul.mubr.f32.gmra.mrb[62].mxu0 %v4775_v30 }
0x11aa   :  { %v6643_v15 = vpop.f32.mrb[56].mxu0 }
0x11ab   :  { %v6644_v32 = vpop.f32.mrb[57].mxu0 }
0x11ac   :  { %v6645_v0 = vadd.f32 %v6644_v32, %v6643_v15 }
0x11ae   :  { %v4885_v34 = vadd.f32 %v6645_v0, %v6268_v6  ;;  %v6646_v21 = vpop.f32.mrb[58].mxu0 }
0x11af   :  { %v6647_v9 = vpop.f32.mrb[59].mxu0 }
0x11b0   :  { %6303 = vst.msk [vmem:[%s13002_s15 + $0x40] sm:$0xff] %vm1054_vm4, %v4885_v34  ;;  %v6648_v2 = vadd.f32 %v6647_v9, %v6646_v21 }
0x11b2   :  { %v4890_v24 = vadd.f32 %v6648_v2, %v6268_v6 }
0x11b4   :  { %6304 = vst.msk [vmem:[%s13002_s15 + $0x48] sm:$0xff] %vm1054_vm4, %v4890_v24 }
0x11ca   :  { %v6681_v17 = vpop.f32.mrb[60].mxu0 }
0x11cb   :  { %v6682_v29 = vpop.f32.mrb[61].mxu0 }
0x11cc   :  { %v6683_v47 = vadd.f32 %v6682_v29, %v6681_v17 }
0x11ce   :  { %v5001_v55 = vadd.f32 %v6683_v47, %v6302_v27  ;;  %v6684_v36 = vpop.f32.mrb[62].mxu0 }
0x11cf   :  { %v6685_v23 = vpop.f32.mrb[63].mxu0 }
0x11d0   :  { %v5009_v28 = vsub.f32 %v12619_v7, %v5001_v55  ;;  %v6686_v22 = vadd.f32 %v6685_v23, %v6684_v36 }
0x11d2   :  { %v5017_v20 = vand.u32 2147483647, %v5009_v28  ;;  %v5006_v3 = vadd.f32 %v6686_v22, %v6302_v27  ;;  %v5011_v54 = vmax.f32 %v5009_v28, 0.0  ;;  %vm5013_vm10 = vcmp.ne.f32.partialorder %v5009_v28, %v5009_v28 }
0x11d4   :  { %v5019_v38 = vsub.f32 0.0, %v5017_v20  ;;  %v5010_v25 = vsub.f32 %v12619_v7, %v5006_v3 }
0x11d6   :  { %v5021_v58 = vmul.f32 1.442695, %v5019_v38  ;;  %v5018_v33 = vand.u32 2147483647, %v5010_v25  ;;  %v5012_v63 = vmax.f32 %v5010_v25, 0.0  ;;  %vm5014_vm12 = vcmp.ne.f32.partialorder %v5010_v25, %v5010_v25 }
0x11d8   :  { %8399 = vpow2.f32 %v5021_v58  ;;  %v5020_v26 = vsub.f32 0.0, %v5018_v33 }
0x11da   :  { %v5023_v12 = vmul.f32 1.442695, %v5020_v26 }
0x11dc   :  { %8401 = vpow2.f32 %v5023_v12 }
0x11e2   :  { %v8400_v39 = vpop.eup %8399 }
0x11e3   :  { %v5025_v30 = vadd.f32 1.0, %v8400_v39  ;;  %v5028_v31 = vmul.f32 -0.5, %v8400_v39  ;;  %v5031_v35 = vand.u32 2147483647, %v8400_v39 }
0x11e5   :  { %8403 = vlog2.f32 %v5025_v30  ;;  %v5029_v50 = vadd.f32 1.0, %v5028_v31  ;;  %vm5032_vm9 = vcmp.lt.f32.partialorder %v5031_v35, 0.0004427343 }
0x11e6   :  { %v8402_v44 = vpop.eup %8401 }
0x11e7   :  { %v5034_v49 = vadd.f32 1.0, %v8402_v44  ;;  %v5037_v43 = vmul.f32 -0.5, %v8402_v44  ;;  %v5030_v52 = vmul.f32 %v8400_v39, %v5029_v50  ;;  %v5040_v57 = vand.u32 2147483647, %v8402_v44 }
0x11e9   :  { %8405 = vlog2.f32 %v5034_v49  ;;  %v5038_v41 = vadd.f32 1.0, %v5037_v43  ;;  %vm5041_vm11 = vcmp.lt.f32.partialorder %v5040_v57, 0.0004427343 }
0x11eb   :  { %v5039_v59 = vmul.f32 %v8402_v44, %v5038_v41 }
0x11ef   :  { %v8404_v53 = vpop.eup %8403 }
0x11f0   :  { %v5027_v37 = vmul.f32 0.6931472, %v8404_v53 }
0x11f2   :  { %v5033_v46 = vsel %vm5032_vm9, %v5030_v52, %v5027_v37 }
0x11f3   :  { %v8406_v61 = vpop.eup %8405  ;;  %v5043_v62 = vadd.f32 %v5033_v46, %v5011_v54 }
0x11f4   :  { %v5036_v51 = vmul.f32 0.6931472, %v8406_v61 }
0x11f5   :  { %v5045_v42 = vsel %vm5013_vm10, %v5009_v28, %v5043_v62 }
0x11f6   :  { %v5047_v45 = vsub.f32 %v12619_v7, %v5045_v42  ;;  %v5042_v56 = vsel %vm5041_vm11, %v5039_v59, %v5036_v51 }
0x11f7   :  { %v5044_v4 = vadd.f32 %v5042_v56, %v5012_v63 }
0x11f8   :  { %v5049_v60 = vsub.f32 %v5047_v45, %v12627_v40 }
0x11f9   :  { %v5046_v1 = vsel %vm5014_vm12, %v5010_v25, %v5044_v4 }
0x11fa   :  { %v5057_v5 = vand.u32 2147483647, %v5049_v60  ;;  %v5048_v8 = vsub.f32 %v12619_v7, %v5046_v1  ;;  %v5051_v17 = vmax.f32 %v5049_v60, 0.0  ;;  %vm5053_vm14 = vcmp.ne.f32.partialorder %v5049_v60, %v5049_v60 }
0x11fc   :  { %v5059_v11 = vsub.f32 0.0, %v5057_v5  ;;  %v5050_v13 = vsub.f32 %v5048_v8, %v12627_v40 }
0x11fe   :  { %v5061_v14 = vmul.f32 1.442695, %v5059_v11  ;;  %v5058_v16 = vand.u32 2147483647, %v5050_v13  ;;  %v5052_v22 = vmax.f32 %v5050_v13, 0.0  ;;  %vm5054_vm2 = vcmp.ne.f32.partialorder %v5050_v13, %v5050_v13 }
0x1200   :  { %8407 = vpow2.f32 %v5061_v14  ;;  %v5060_v18 = vsub.f32 0.0, %v5058_v16 }
0x1202   :  { %v5063_v19 = vmul.f32 1.442695, %v5060_v18 }
0x1204   :  { %8409 = vpow2.f32 %v5063_v19 }
0x120a   :  { %v8408_v48 = vpop.eup %8407 }
0x120b   :  { %v5065_v10 = vadd.f32 1.0, %v8408_v48  ;;  %v5068_v32 = vmul.f32 -0.5, %v8408_v48  ;;  %v5071_v21 = vand.u32 2147483647, %v8408_v48 }
0x120d   :  { %8411 = vlog2.f32 %v5065_v10  ;;  %v5069_v0 = vadd.f32 1.0, %v5068_v32  ;;  %vm5072_vm13 = vcmp.lt.f32.partialorder %v5071_v21, 0.0004427343 }
0x120e   :  { %v8410_v15 = vpop.eup %8409 }
0x120f   :  { %v5074_v6 = vadd.f32 1.0, %v8410_v15  ;;  %v5077_v34 = vmul.f32 -0.5, %v8410_v15  ;;  %v5070_v2 = vmul.f32 %v8408_v48, %v5069_v0  ;;  %v5080_v27 = vand.u32 2147483647, %v8410_v15 }
0x1211   :  { %8413 = vlog2.f32 %v5074_v6  ;;  %v5078_v24 = vadd.f32 1.0, %v5077_v34  ;;  %vm5081_vm15 = vcmp.lt.f32.partialorder %v5080_v27, 0.0004427343 }
0x1213   :  { %v5079_v23 = vmul.f32 %v8410_v15, %v5078_v24 }
0x1217   :  { %v8412_v7 = vpop.eup %8411 }
0x1218   :  { %v5067_v9 = vmul.f32 0.6931472, %v8412_v7 }
0x121a   :  { %v5073_v29 = vsel %vm5072_vm13, %v5070_v2, %v5067_v9 }
0x121b   :  { %v8414_v47 = vpop.eup %8413  ;;  %v5083_v55 = vadd.f32 %v5073_v29, %v5051_v17 }
0x121c   :  { %v5076_v36 = vmul.f32 0.6931472, %v8414_v47 }
0x121d   :  { %v5085_v28 = vsel %vm5053_vm14, %v5049_v60, %v5083_v55 }
0x121e   :  { %v5087_v20 = vadd.f32 %v12627_v40, %v5085_v28  ;;  %v5082_v3 = vsel %vm5081_vm15, %v5079_v23, %v5076_v36 }
0x121f   :  { %v5084_v38 = vadd.f32 %v5082_v3, %v5052_v22 }
0x1220   :  { %v5092_v25 = vmul.f32 1.442695, %v5087_v20 }
0x1221   :  { %v5086_v58 = vsel %vm5054_vm2, %v5050_v13, %v5084_v38 }
0x1222   :  { %8415 = vpow2.f32 %v5092_v25  ;;  %v5088_v33 = vadd.f32 %v12627_v40, %v5086_v58 }
0x1224   :  { %v5094_v26 = vmul.f32 1.442695, %v5088_v33 }
0x1226   :  { %8417 = vpow2.f32 %v5094_v26 }
0x122c   :  { %v8416_v12 = vpop.eup %8415 }
0x122d   :  { %6305 = vst.msk [vmem:[%s13006_s16 + $0x40] sm:$0xff] %vm1054_vm4, %v8416_v12 }
0x1230   :  { %v8418_v39 = vpop.eup %8417 }
0x1231   :  { %6306 = vst.msk [vmem:[%s13006_s16 + $0x48] sm:$0xff] %vm1054_vm4, %v8418_v39 }

</bundles_post_ra>
